<compile_context>
chip_gen: v6e
topology: v6e:2x2x1
jax: 0.10.0
libtpu: 0.0.40
codegen_flags: <defaults>
</compile_context>

<pallas_src>
import math

import jax
import jax.numpy as jnp
from jax.experimental import pallas as pl
from jax.experimental.pallas import tpu as pltpu

EMBED_DIM = 32
NUM_HEADS = 8
HEAD_DIM = EMBED_DIM // NUM_HEADS
NUM_BLOCKS = 4
MLP_HIDDEN = EMBED_DIM * 4          # mlp_ratio = 4
LN_EPS = 1e-5                       # nn.LayerNorm default
L2_EPS = 1e-12                      # F.normalize default


# ----------------------------- kernel helpers -----------------------------

def _layernorm(x, gamma, beta):
    mu = jnp.mean(x, axis=-1, keepdims=True)
    var = jnp.mean((x - mu) ** 2, axis=-1, keepdims=True)
    return (x - mu) * jax.lax.rsqrt(var + LN_EPS) * gamma + beta


def _gelu_exact(x):
    # torch.nn.GELU default = exact erf-based GELU
    return 0.5 * x * (1.0 + jax.lax.erf(x * (1.0 / math.sqrt(2.0))))


# ----------------------------- fused kernel --------------------------------

def _make_fused_kernel(B, N):
    BN = B * N
    C = EMBED_DIM
    scale = 1.0 / math.sqrt(HEAD_DIM)

    def kernel(x_ref, g1_ref, b1_ref, wqkv_ref, bqkv_ref, wpr_ref, bpr_ref,
               g2_ref, b2_ref, w1_ref, bm1_ref, w2_ref, bm2_ref, o_ref):
        x = x_ref[...]  # (B*N, C) f32

        for blk in range(NUM_BLOCKS):        # static unroll over blocks
            # ---- attention branch: x + proj(MHA(LN1(x))) ----
            h = _layernorm(x, g1_ref[blk], b1_ref[blk])
            qkv = jnp.dot(h, wqkv_ref[blk],
                          preferred_element_type=jnp.float32) + bqkv_ref[blk]
            wpr = wpr_ref[blk]
            attn = jnp.zeros((BN, C), jnp.float32)
            for hd in range(NUM_HEADS):      # static unroll, batched over B
                lo, hi = hd * HEAD_DIM, (hd + 1) * HEAD_DIM
                q_h = qkv[:, lo:hi].reshape(B, N, HEAD_DIM)
                k_h = qkv[:, C + lo:C + hi].reshape(B, N, HEAD_DIM)
                v_h = qkv[:, 2 * C + lo:2 * C + hi].reshape(B, N, HEAD_DIM)
                s = jnp.einsum('bnd,bmd->bnm', q_h, k_h,
                               preferred_element_type=jnp.float32) * scale
                s = s - jnp.max(s, axis=-1, keepdims=True)
                p = jnp.exp(s)
                p = p * pl.reciprocal(jnp.sum(p, axis=-1, keepdims=True),
                                      approx=True)
                o_h = jnp.einsum('bnm,bmd->bnd', p, v_h,
                                 preferred_element_type=jnp.float32)
                # fuse the output projection into the head loop (no concat)
                attn = attn + jnp.dot(o_h.reshape(BN, HEAD_DIM), wpr[lo:hi, :],
                                      preferred_element_type=jnp.float32)
            x = x + attn + bpr_ref[blk]

            # ---- MLP branch: x + W2(GELU(W1(LN2(x)))) ----
            h2 = _layernorm(x, g2_ref[blk], b2_ref[blk])
            m = jnp.dot(h2, w1_ref[blk],
                        preferred_element_type=jnp.float32) + bm1_ref[blk]
            m = _gelu_exact(m)
            m = jnp.dot(m, w2_ref[blk],
                        preferred_element_type=jnp.float32) + bm2_ref[blk]
            x = x + m

        # ---- output head: L2-normalize rows, then per-batch Gram matrix ----
        nrm = jnp.sqrt(jnp.sum(x * x, axis=-1, keepdims=True))
        xn = x * pl.reciprocal(jnp.maximum(nrm, L2_EPS), approx=True)
        xb = xn.reshape(B, N, C)
        o_ref[...] = jnp.einsum('bnc,bmc->bnm', xb, xb,
                                preferred_element_type=jnp.float32)

    return kernel


def _full_spec(shape):
    nd = len(shape)
    return pl.BlockSpec(shape, lambda i, _nd=nd: (0,) * _nd)


def forensic_attention_head(x, params):
    """x: (B, N, C) float32; params: 12 block-stacked weight arrays."""
    B, N, C = x.shape
    assert C == EMBED_DIM
    x_flat = x.reshape(B * N, C)
    args = (x_flat,) + tuple(params)
    return pl.pallas_call(
        _make_fused_kernel(B, N),
        out_shape=jax.ShapeDtypeStruct((B, N, N), jnp.float32),
        grid=(1,),                              # single step: no batch grid
        in_specs=[_full_spec(a.shape) for a in args],
        out_specs=_full_spec((B, N, N)),
        compiler_params=pltpu.CompilerParams(
            dimension_semantics=("arbitrary",)),
    )(*args)


# -------------------------- synthetic parameters ---------------------------

def init_params(key):
    """Deterministic synthetic parameters, stacked along a leading block dim."""
    C, H3, Hm = EMBED_DIM, 3 * EMBED_DIM, MLP_HIDDEN
    blocks = []
    for _ in range(NUM_BLOCKS):
        key, *ks = jax.random.split(key, 9)
        blocks.append((
            jnp.ones((1, C), jnp.float32),                          # ln1 gamma
            jnp.zeros((1, C), jnp.float32),                         # ln1 beta
            0.05 * jax.random.normal(ks[0], (C, H3), jnp.float32),  # W_qkv
            0.01 * jax.random.normal(ks[1], (1, H3), jnp.float32),  # b_qkv
            0.05 * jax.random.normal(ks[2], (C, C), jnp.float32),   # W_proj
            0.01 * jax.random.normal(ks[3], (1, C), jnp.float32),   # b_proj
            jnp.ones((1, C), jnp.float32),                          # ln2 gamma
            jnp.zeros((1, C), jnp.float32),                         # ln2 beta
            0.05 * jax.random.normal(ks[4], (C, Hm), jnp.float32),  # W_mlp1
            0.01 * jax.random.normal(ks[5], (1, Hm), jnp.float32),  # b_mlp1
            0.05 * jax.random.normal(ks[6], (Hm, C), jnp.float32),  # W_mlp2
            0.01 * jax.random.normal(ks[7], (1, C), jnp.float32),   # b_mlp2
        ))
    # stack each parameter across blocks -> 12 arrays with leading NUM_BLOCKS
    return tuple(jnp.stack([blk[i] for blk in blocks]) for i in range(12))


# --------------------------------- main ------------------------------------

if __name__ == "__main__":
    key = jax.random.PRNGKey(0)
    k_x, k_p = jax.random.split(key)

    B, N, C = 2, 8, EMBED_DIM
    x = jax.random.normal(k_x, (B, N, C), jnp.float32)
    params = init_params(k_p)

    out = forensic_attention_head(x, params)   # (B, N, N)
    jax.block_until_ready(out)

    assert out.shape == (B, N, N)
    print("KERNEL_OK")
</pallas_src>

<mosaic_0001>
module attributes {stable_mosaic.version = 11 : i64} {
  func.func @kernel(%arg0: i32, %arg1: memref<16x32xf32, #tpu.memory_space<vmem>>, %arg2: memref<4x1x32xf32, #tpu.memory_space<vmem>>, %arg3: memref<4x1x32xf32, #tpu.memory_space<vmem>>, %arg4: memref<4x32x96xf32, #tpu.memory_space<vmem>>, %arg5: memref<4x1x96xf32, #tpu.memory_space<vmem>>, %arg6: memref<4x32x32xf32, #tpu.memory_space<vmem>>, %arg7: memref<4x1x32xf32, #tpu.memory_space<vmem>>, %arg8: memref<4x1x32xf32, #tpu.memory_space<vmem>>, %arg9: memref<4x1x32xf32, #tpu.memory_space<vmem>>, %arg10: memref<4x32x128xf32, #tpu.memory_space<vmem>>, %arg11: memref<4x1x128xf32, #tpu.memory_space<vmem>>, %arg12: memref<4x128x32xf32, #tpu.memory_space<vmem>>, %arg13: memref<4x1x32xf32, #tpu.memory_space<vmem>>, %arg14: memref<2x8x8xf32, #tpu.memory_space<vmem>>) attributes {dimension_semantics = [#tpu.dimension_semantics<arbitrary>], iteration_bounds = array<i64: 1>, scalar_prefetch = 0 : i64, scratch_operands = 0 : i64, tpu.core_type = #tpu.core_type<tc>, window_params = [{pipeline_mode = #tpu.pipeline_mode<synchronous>, transform_indices = @transform_0, window_bounds = array<i64: 16, 32>}, {pipeline_mode = #tpu.pipeline_mode<synchronous>, transform_indices = @transform_1, window_bounds = array<i64: 4, 1, 32>}, {pipeline_mode = #tpu.pipeline_mode<synchronous>, transform_indices = @transform_2, window_bounds = array<i64: 4, 1, 32>}, {pipeline_mode = #tpu.pipeline_mode<synchronous>, transform_indices = @transform_3, window_bounds = array<i64: 4, 32, 96>}, {pipeline_mode = #tpu.pipeline_mode<synchronous>, transform_indices = @transform_4, window_bounds = array<i64: 4, 1, 96>}, {pipeline_mode = #tpu.pipeline_mode<synchronous>, transform_indices = @transform_5, window_bounds = array<i64: 4, 32, 32>}, {pipeline_mode = #tpu.pipeline_mode<synchronous>, transform_indices = @transform_6, window_bounds = array<i64: 4, 1, 32>}, {pipeline_mode = #tpu.pipeline_mode<synchronous>, transform_indices = @transform_7, window_bounds = array<i64: 4, 1, 32>}, {pipeline_mode = #tpu.pipeline_mode<synchronous>, transform_indices = @transform_8, window_bounds = array<i64: 4, 1, 32>}, {pipeline_mode = #tpu.pipeline_mode<synchronous>, transform_indices = @transform_9, window_bounds = array<i64: 4, 32, 128>}, {pipeline_mode = #tpu.pipeline_mode<synchronous>, transform_indices = @transform_10, window_bounds = array<i64: 4, 1, 128>}, {pipeline_mode = #tpu.pipeline_mode<synchronous>, transform_indices = @transform_11, window_bounds = array<i64: 4, 128, 32>}, {pipeline_mode = #tpu.pipeline_mode<synchronous>, transform_indices = @transform_12, window_bounds = array<i64: 4, 1, 32>}, {pipeline_mode = #tpu.pipeline_mode<synchronous>, transform_indices = @transform_13, window_bounds = array<i64: 2, 8, 8>}]} {
    %c0 = arith.constant 0 : index
    %c0_0 = arith.constant 0 : index
    %0 = vector.load %arg1[%c0, %c0_0] : memref<16x32xf32, #tpu.memory_space<vmem>>, vector<16x32xf32>
    %c0_1 = arith.constant 0 : index
    %c0_2 = arith.constant 0 : index
    %c0_3 = arith.constant 0 : index
    %1 = vector.load %arg2[%c0_1, %c0_2, %c0_3] : memref<4x1x32xf32, #tpu.memory_space<vmem>>, vector<1x1x32xf32>
    %2 = vector.shape_cast %1 : vector<1x1x32xf32> to vector<1x32xf32>
    %c0_4 = arith.constant 0 : index
    %c0_5 = arith.constant 0 : index
    %c0_6 = arith.constant 0 : index
    %3 = vector.load %arg3[%c0_4, %c0_5, %c0_6] : memref<4x1x32xf32, #tpu.memory_space<vmem>>, vector<1x1x32xf32>
    %4 = vector.shape_cast %3 : vector<1x1x32xf32> to vector<1x32xf32>
    %cst = arith.constant dense<0.000000e+00> : vector<16xf32>
    %5 = vector.multi_reduction <add>, %0, %cst [1] : vector<16x32xf32> to vector<16xf32>
    %6 = vector.shape_cast %5 : vector<16xf32> to vector<16x1xf32>
    %cst_7 = arith.constant 3.200000e+01 : f32
    %7 = vector.broadcast %cst_7 : f32 to vector<16x1xf32>
    %8 = arith.divf %6, %7 : vector<16x1xf32>
    %9 = vector.broadcast %8 : vector<16x1xf32> to vector<16x32xf32>
    %10 = arith.subf %0, %9 : vector<16x32xf32>
    %11 = arith.mulf %10, %10 : vector<16x32xf32>
    %cst_8 = arith.constant dense<0.000000e+00> : vector<16xf32>
    %12 = vector.multi_reduction <add>, %11, %cst_8 [1] : vector<16x32xf32> to vector<16xf32>
    %13 = vector.shape_cast %12 : vector<16xf32> to vector<16x1xf32>
    %cst_9 = arith.constant 3.200000e+01 : f32
    %14 = vector.broadcast %cst_9 : f32 to vector<16x1xf32>
    %15 = arith.divf %13, %14 : vector<16x1xf32>
    %16 = vector.broadcast %8 : vector<16x1xf32> to vector<16x32xf32>
    %17 = arith.subf %0, %16 : vector<16x32xf32>
    %cst_10 = arith.constant 9.99999974E-6 : f32
    %18 = vector.broadcast %cst_10 : f32 to vector<16x1xf32>
    %19 = arith.addf %15, %18 : vector<16x1xf32>
    %20 = math.rsqrt %19 : vector<16x1xf32>
    %21 = vector.broadcast %20 : vector<16x1xf32> to vector<16x32xf32>
    %22 = arith.mulf %17, %21 : vector<16x32xf32>
    %23 = vector.broadcast %2 : vector<1x32xf32> to vector<16x32xf32>
    %24 = arith.mulf %22, %23 : vector<16x32xf32>
    %25 = vector.broadcast %4 : vector<1x32xf32> to vector<16x32xf32>
    %26 = arith.addf %24, %25 : vector<16x32xf32>
    %c0_11 = arith.constant 0 : index
    %c0_12 = arith.constant 0 : index
    %c0_13 = arith.constant 0 : index
    %27 = vector.load %arg4[%c0_11, %c0_12, %c0_13] : memref<4x32x96xf32, #tpu.memory_space<vmem>>, vector<1x32x96xf32>
    %28 = vector.shape_cast %27 : vector<1x32x96xf32> to vector<32x96xf32>
    %cst_14 = arith.constant dense<0.000000e+00> : vector<16x96xf32>
    %29 = tpu.matmul %26, %28, %cst_14 {dimension_numbers = #tpu.dot_dimension_numbers<[1], [0], [0], [1], [0, 0, 1, 1], [], []>} : vector<16x32xf32>, vector<32x96xf32>, vector<16x96xf32> -> vector<16x96xf32>
    %c0_15 = arith.constant 0 : index
    %c0_16 = arith.constant 0 : index
    %c0_17 = arith.constant 0 : index
    %30 = vector.load %arg5[%c0_15, %c0_16, %c0_17] : memref<4x1x96xf32, #tpu.memory_space<vmem>>, vector<1x1x96xf32>
    %31 = vector.shape_cast %30 : vector<1x1x96xf32> to vector<1x96xf32>
    %32 = vector.broadcast %31 : vector<1x96xf32> to vector<16x96xf32>
    %33 = arith.addf %29, %32 : vector<16x96xf32>
    %c0_18 = arith.constant 0 : index
    %c0_19 = arith.constant 0 : index
    %c0_20 = arith.constant 0 : index
    %34 = vector.load %arg6[%c0_18, %c0_19, %c0_20] : memref<4x32x32xf32, #tpu.memory_space<vmem>>, vector<1x32x32xf32>
    %35 = vector.shape_cast %34 : vector<1x32x32xf32> to vector<32x32xf32>
    %cst_21 = arith.constant 0.000000e+00 : f32
    %36 = vector.broadcast %cst_21 : f32 to vector<16x32xf32>
    %37 = vector.extract_strided_slice %33 {offsets = [0, 0], sizes = [16, 4], strides = [1, 1]} : vector<16x96xf32> to vector<16x4xf32>
    %38 = vector.shape_cast %37 : vector<16x4xf32> to vector<2x8x4xf32>
    %39 = vector.extract_strided_slice %33 {offsets = [0, 32], sizes = [16, 4], strides = [1, 1]} : vector<16x96xf32> to vector<16x4xf32>
    %40 = vector.shape_cast %39 : vector<16x4xf32> to vector<2x8x4xf32>
    %41 = vector.extract_strided_slice %33 {offsets = [0, 64], sizes = [16, 4], strides = [1, 1]} : vector<16x96xf32> to vector<16x4xf32>
    %42 = vector.shape_cast %41 : vector<16x4xf32> to vector<2x8x4xf32>
    "tpu.trace_start"() <{level = 10 : i32, message = "bnd,bmd->bnm"}> : () -> ()
    %cst_22 = arith.constant dense<0.000000e+00> : vector<2x8x8xf32>
    %43 = tpu.matmul %38, %40, %cst_22 {dimension_numbers = #tpu.dot_dimension_numbers<[2], [2], [1], [1], [0, 0, 0, 1, 1, 1], [0], [0]>} : vector<2x8x4xf32>, vector<2x8x4xf32>, vector<2x8x8xf32> -> vector<2x8x8xf32>
    "tpu.trace_stop"() : () -> ()
    %cst_23 = arith.constant 5.000000e-01 : f32
    %44 = vector.broadcast %cst_23 : f32 to vector<2x8x8xf32>
    %45 = arith.mulf %43, %44 : vector<2x8x8xf32>
    %cst_24 = arith.constant dense<0xFF800000> : vector<2x8xf32>
    %46 = vector.multi_reduction <maximumf>, %45, %cst_24 [2] : vector<2x8x8xf32> to vector<2x8xf32>
    %47 = vector.shape_cast %46 : vector<2x8xf32> to vector<2x8x1xf32>
    %48 = vector.broadcast %47 : vector<2x8x1xf32> to vector<2x8x8xf32>
    %49 = arith.subf %45, %48 : vector<2x8x8xf32>
    %50 = math.exp %49 : vector<2x8x8xf32>
    %cst_25 = arith.constant dense<0.000000e+00> : vector<2x8xf32>
    %51 = vector.multi_reduction <add>, %50, %cst_25 [2] : vector<2x8x8xf32> to vector<2x8xf32>
    %52 = vector.shape_cast %51 : vector<2x8xf32> to vector<2x8x1xf32>
    %53 = tpu.reciprocal %52 {approx = true} : vector<2x8x1xf32> -> vector<2x8x1xf32>
    %54 = vector.broadcast %53 : vector<2x8x1xf32> to vector<2x8x8xf32>
    %55 = arith.mulf %50, %54 : vector<2x8x8xf32>
    "tpu.trace_start"() <{level = 10 : i32, message = "bnm,bmd->bnd"}> : () -> ()
    %cst_26 = arith.constant dense<0.000000e+00> : vector<2x8x4xf32>
    %56 = tpu.matmul %55, %42, %cst_26 {dimension_numbers = #tpu.dot_dimension_numbers<[2], [1], [1], [2], [0, 0, 0, 1, 1, 2], [0], [0]>} : vector<2x8x8xf32>, vector<2x8x4xf32>, vector<2x8x4xf32> -> vector<2x8x4xf32>
    "tpu.trace_stop"() : () -> ()
    %57 = vector.shape_cast %56 : vector<2x8x4xf32> to vector<16x4xf32>
    %58 = vector.extract_strided_slice %35 {offsets = [0, 0], sizes = [4, 32], strides = [1, 1]} : vector<32x32xf32> to vector<4x32xf32>
    %cst_27 = arith.constant dense<0.000000e+00> : vector<16x32xf32>
    %59 = tpu.matmul %57, %58, %cst_27 {dimension_numbers = #tpu.dot_dimension_numbers<[1], [0], [0], [1], [0, 0, 1, 1], [], []>} : vector<16x4xf32>, vector<4x32xf32>, vector<16x32xf32> -> vector<16x32xf32>
    %60 = arith.addf %36, %59 : vector<16x32xf32>
    %61 = vector.extract_strided_slice %33 {offsets = [0, 4], sizes = [16, 4], strides = [1, 1]} : vector<16x96xf32> to vector<16x4xf32>
    %62 = vector.shape_cast %61 : vector<16x4xf32> to vector<2x8x4xf32>
    %63 = vector.extract_strided_slice %33 {offsets = [0, 36], sizes = [16, 4], strides = [1, 1]} : vector<16x96xf32> to vector<16x4xf32>
    %64 = vector.shape_cast %63 : vector<16x4xf32> to vector<2x8x4xf32>
    %65 = vector.extract_strided_slice %33 {offsets = [0, 68], sizes = [16, 4], strides = [1, 1]} : vector<16x96xf32> to vector<16x4xf32>
    %66 = vector.shape_cast %65 : vector<16x4xf32> to vector<2x8x4xf32>
    "tpu.trace_start"() <{level = 10 : i32, message = "bnd,bmd->bnm"}> : () -> ()
    %cst_28 = arith.constant dense<0.000000e+00> : vector<2x8x8xf32>
    %67 = tpu.matmul %62, %64, %cst_28 {dimension_numbers = #tpu.dot_dimension_numbers<[2], [2], [1], [1], [0, 0, 0, 1, 1, 1], [0], [0]>} : vector<2x8x4xf32>, vector<2x8x4xf32>, vector<2x8x8xf32> -> vector<2x8x8xf32>
    "tpu.trace_stop"() : () -> ()
    %cst_29 = arith.constant 5.000000e-01 : f32
    %68 = vector.broadcast %cst_29 : f32 to vector<2x8x8xf32>
    %69 = arith.mulf %67, %68 : vector<2x8x8xf32>
    %cst_30 = arith.constant dense<0xFF800000> : vector<2x8xf32>
    %70 = vector.multi_reduction <maximumf>, %69, %cst_30 [2] : vector<2x8x8xf32> to vector<2x8xf32>
    %71 = vector.shape_cast %70 : vector<2x8xf32> to vector<2x8x1xf32>
    %72 = vector.broadcast %71 : vector<2x8x1xf32> to vector<2x8x8xf32>
    %73 = arith.subf %69, %72 : vector<2x8x8xf32>
    %74 = math.exp %73 : vector<2x8x8xf32>
    %cst_31 = arith.constant dense<0.000000e+00> : vector<2x8xf32>
    %75 = vector.multi_reduction <add>, %74, %cst_31 [2] : vector<2x8x8xf32> to vector<2x8xf32>
    %76 = vector.shape_cast %75 : vector<2x8xf32> to vector<2x8x1xf32>
    %77 = tpu.reciprocal %76 {approx = true} : vector<2x8x1xf32> -> vector<2x8x1xf32>
    %78 = vector.broadcast %77 : vector<2x8x1xf32> to vector<2x8x8xf32>
    %79 = arith.mulf %74, %78 : vector<2x8x8xf32>
    "tpu.trace_start"() <{level = 10 : i32, message = "bnm,bmd->bnd"}> : () -> ()
    %cst_32 = arith.constant dense<0.000000e+00> : vector<2x8x4xf32>
    %80 = tpu.matmul %79, %66, %cst_32 {dimension_numbers = #tpu.dot_dimension_numbers<[2], [1], [1], [2], [0, 0, 0, 1, 1, 2], [0], [0]>} : vector<2x8x8xf32>, vector<2x8x4xf32>, vector<2x8x4xf32> -> vector<2x8x4xf32>
    "tpu.trace_stop"() : () -> ()
    %81 = vector.shape_cast %80 : vector<2x8x4xf32> to vector<16x4xf32>
    %82 = vector.extract_strided_slice %35 {offsets = [4, 0], sizes = [4, 32], strides = [1, 1]} : vector<32x32xf32> to vector<4x32xf32>
    %cst_33 = arith.constant dense<0.000000e+00> : vector<16x32xf32>
    %83 = tpu.matmul %81, %82, %cst_33 {dimension_numbers = #tpu.dot_dimension_numbers<[1], [0], [0], [1], [0, 0, 1, 1], [], []>} : vector<16x4xf32>, vector<4x32xf32>, vector<16x32xf32> -> vector<16x32xf32>
    %84 = arith.addf %60, %83 : vector<16x32xf32>
    %85 = vector.extract_strided_slice %33 {offsets = [0, 8], sizes = [16, 4], strides = [1, 1]} : vector<16x96xf32> to vector<16x4xf32>
    %86 = vector.shape_cast %85 : vector<16x4xf32> to vector<2x8x4xf32>
    %87 = vector.extract_strided_slice %33 {offsets = [0, 40], sizes = [16, 4], strides = [1, 1]} : vector<16x96xf32> to vector<16x4xf32>
    %88 = vector.shape_cast %87 : vector<16x4xf32> to vector<2x8x4xf32>
    %89 = vector.extract_strided_slice %33 {offsets = [0, 72], sizes = [16, 4], strides = [1, 1]} : vector<16x96xf32> to vector<16x4xf32>
    %90 = vector.shape_cast %89 : vector<16x4xf32> to vector<2x8x4xf32>
    "tpu.trace_start"() <{level = 10 : i32, message = "bnd,bmd->bnm"}> : () -> ()
    %cst_34 = arith.constant dense<0.000000e+00> : vector<2x8x8xf32>
    %91 = tpu.matmul %86, %88, %cst_34 {dimension_numbers = #tpu.dot_dimension_numbers<[2], [2], [1], [1], [0, 0, 0, 1, 1, 1], [0], [0]>} : vector<2x8x4xf32>, vector<2x8x4xf32>, vector<2x8x8xf32> -> vector<2x8x8xf32>
    "tpu.trace_stop"() : () -> ()
    %cst_35 = arith.constant 5.000000e-01 : f32
    %92 = vector.broadcast %cst_35 : f32 to vector<2x8x8xf32>
    %93 = arith.mulf %91, %92 : vector<2x8x8xf32>
    %cst_36 = arith.constant dense<0xFF800000> : vector<2x8xf32>
    %94 = vector.multi_reduction <maximumf>, %93, %cst_36 [2] : vector<2x8x8xf32> to vector<2x8xf32>
    %95 = vector.shape_cast %94 : vector<2x8xf32> to vector<2x8x1xf32>
    %96 = vector.broadcast %95 : vector<2x8x1xf32> to vector<2x8x8xf32>
    %97 = arith.subf %93, %96 : vector<2x8x8xf32>
    %98 = math.exp %97 : vector<2x8x8xf32>
    %cst_37 = arith.constant dense<0.000000e+00> : vector<2x8xf32>
    %99 = vector.multi_reduction <add>, %98, %cst_37 [2] : vector<2x8x8xf32> to vector<2x8xf32>
    %100 = vector.shape_cast %99 : vector<2x8xf32> to vector<2x8x1xf32>
    %101 = tpu.reciprocal %100 {approx = true} : vector<2x8x1xf32> -> vector<2x8x1xf32>
    %102 = vector.broadcast %101 : vector<2x8x1xf32> to vector<2x8x8xf32>
    %103 = arith.mulf %98, %102 : vector<2x8x8xf32>
    "tpu.trace_start"() <{level = 10 : i32, message = "bnm,bmd->bnd"}> : () -> ()
    %cst_38 = arith.constant dense<0.000000e+00> : vector<2x8x4xf32>
    %104 = tpu.matmul %103, %90, %cst_38 {dimension_numbers = #tpu.dot_dimension_numbers<[2], [1], [1], [2], [0, 0, 0, 1, 1, 2], [0], [0]>} : vector<2x8x8xf32>, vector<2x8x4xf32>, vector<2x8x4xf32> -> vector<2x8x4xf32>
    "tpu.trace_stop"() : () -> ()
    %105 = vector.shape_cast %104 : vector<2x8x4xf32> to vector<16x4xf32>
    %106 = vector.extract_strided_slice %35 {offsets = [8, 0], sizes = [4, 32], strides = [1, 1]} : vector<32x32xf32> to vector<4x32xf32>
    %cst_39 = arith.constant dense<0.000000e+00> : vector<16x32xf32>
    %107 = tpu.matmul %105, %106, %cst_39 {dimension_numbers = #tpu.dot_dimension_numbers<[1], [0], [0], [1], [0, 0, 1, 1], [], []>} : vector<16x4xf32>, vector<4x32xf32>, vector<16x32xf32> -> vector<16x32xf32>
    %108 = arith.addf %84, %107 : vector<16x32xf32>
    %109 = vector.extract_strided_slice %33 {offsets = [0, 12], sizes = [16, 4], strides = [1, 1]} : vector<16x96xf32> to vector<16x4xf32>
    %110 = vector.shape_cast %109 : vector<16x4xf32> to vector<2x8x4xf32>
    %111 = vector.extract_strided_slice %33 {offsets = [0, 44], sizes = [16, 4], strides = [1, 1]} : vector<16x96xf32> to vector<16x4xf32>
    %112 = vector.shape_cast %111 : vector<16x4xf32> to vector<2x8x4xf32>
    %113 = vector.extract_strided_slice %33 {offsets = [0, 76], sizes = [16, 4], strides = [1, 1]} : vector<16x96xf32> to vector<16x4xf32>
    %114 = vector.shape_cast %113 : vector<16x4xf32> to vector<2x8x4xf32>
    "tpu.trace_start"() <{level = 10 : i32, message = "bnd,bmd->bnm"}> : () -> ()
    %cst_40 = arith.constant dense<0.000000e+00> : vector<2x8x8xf32>
    %115 = tpu.matmul %110, %112, %cst_40 {dimension_numbers = #tpu.dot_dimension_numbers<[2], [2], [1], [1], [0, 0, 0, 1, 1, 1], [0], [0]>} : vector<2x8x4xf32>, vector<2x8x4xf32>, vector<2x8x8xf32> -> vector<2x8x8xf32>
    "tpu.trace_stop"() : () -> ()
    %cst_41 = arith.constant 5.000000e-01 : f32
    %116 = vector.broadcast %cst_41 : f32 to vector<2x8x8xf32>
    %117 = arith.mulf %115, %116 : vector<2x8x8xf32>
    %cst_42 = arith.constant dense<0xFF800000> : vector<2x8xf32>
    %118 = vector.multi_reduction <maximumf>, %117, %cst_42 [2] : vector<2x8x8xf32> to vector<2x8xf32>
    %119 = vector.shape_cast %118 : vector<2x8xf32> to vector<2x8x1xf32>
    %120 = vector.broadcast %119 : vector<2x8x1xf32> to vector<2x8x8xf32>
    %121 = arith.subf %117, %120 : vector<2x8x8xf32>
    %122 = math.exp %121 : vector<2x8x8xf32>
    %cst_43 = arith.constant dense<0.000000e+00> : vector<2x8xf32>
    %123 = vector.multi_reduction <add>, %122, %cst_43 [2] : vector<2x8x8xf32> to vector<2x8xf32>
    %124 = vector.shape_cast %123 : vector<2x8xf32> to vector<2x8x1xf32>
    %125 = tpu.reciprocal %124 {approx = true} : vector<2x8x1xf32> -> vector<2x8x1xf32>
    %126 = vector.broadcast %125 : vector<2x8x1xf32> to vector<2x8x8xf32>
    %127 = arith.mulf %122, %126 : vector<2x8x8xf32>
    "tpu.trace_start"() <{level = 10 : i32, message = "bnm,bmd->bnd"}> : () -> ()
    %cst_44 = arith.constant dense<0.000000e+00> : vector<2x8x4xf32>
    %128 = tpu.matmul %127, %114, %cst_44 {dimension_numbers = #tpu.dot_dimension_numbers<[2], [1], [1], [2], [0, 0, 0, 1, 1, 2], [0], [0]>} : vector<2x8x8xf32>, vector<2x8x4xf32>, vector<2x8x4xf32> -> vector<2x8x4xf32>
    "tpu.trace_stop"() : () -> ()
    %129 = vector.shape_cast %128 : vector<2x8x4xf32> to vector<16x4xf32>
    %130 = vector.extract_strided_slice %35 {offsets = [12, 0], sizes = [4, 32], strides = [1, 1]} : vector<32x32xf32> to vector<4x32xf32>
    %cst_45 = arith.constant dense<0.000000e+00> : vector<16x32xf32>
    %131 = tpu.matmul %129, %130, %cst_45 {dimension_numbers = #tpu.dot_dimension_numbers<[1], [0], [0], [1], [0, 0, 1, 1], [], []>} : vector<16x4xf32>, vector<4x32xf32>, vector<16x32xf32> -> vector<16x32xf32>
    %132 = arith.addf %108, %131 : vector<16x32xf32>
    %133 = vector.extract_strided_slice %33 {offsets = [0, 16], sizes = [16, 4], strides = [1, 1]} : vector<16x96xf32> to vector<16x4xf32>
    %134 = vector.shape_cast %133 : vector<16x4xf32> to vector<2x8x4xf32>
    %135 = vector.extract_strided_slice %33 {offsets = [0, 48], sizes = [16, 4], strides = [1, 1]} : vector<16x96xf32> to vector<16x4xf32>
    %136 = vector.shape_cast %135 : vector<16x4xf32> to vector<2x8x4xf32>
    %137 = vector.extract_strided_slice %33 {offsets = [0, 80], sizes = [16, 4], strides = [1, 1]} : vector<16x96xf32> to vector<16x4xf32>
    %138 = vector.shape_cast %137 : vector<16x4xf32> to vector<2x8x4xf32>
    "tpu.trace_start"() <{level = 10 : i32, message = "bnd,bmd->bnm"}> : () -> ()
    %cst_46 = arith.constant dense<0.000000e+00> : vector<2x8x8xf32>
    %139 = tpu.matmul %134, %136, %cst_46 {dimension_numbers = #tpu.dot_dimension_numbers<[2], [2], [1], [1], [0, 0, 0, 1, 1, 1], [0], [0]>} : vector<2x8x4xf32>, vector<2x8x4xf32>, vector<2x8x8xf32> -> vector<2x8x8xf32>
    "tpu.trace_stop"() : () -> ()
    %cst_47 = arith.constant 5.000000e-01 : f32
    %140 = vector.broadcast %cst_47 : f32 to vector<2x8x8xf32>
    %141 = arith.mulf %139, %140 : vector<2x8x8xf32>
    %cst_48 = arith.constant dense<0xFF800000> : vector<2x8xf32>
    %142 = vector.multi_reduction <maximumf>, %141, %cst_48 [2] : vector<2x8x8xf32> to vector<2x8xf32>
    %143 = vector.shape_cast %142 : vector<2x8xf32> to vector<2x8x1xf32>
    %144 = vector.broadcast %143 : vector<2x8x1xf32> to vector<2x8x8xf32>
    %145 = arith.subf %141, %144 : vector<2x8x8xf32>
    %146 = math.exp %145 : vector<2x8x8xf32>
    %cst_49 = arith.constant dense<0.000000e+00> : vector<2x8xf32>
    %147 = vector.multi_reduction <add>, %146, %cst_49 [2] : vector<2x8x8xf32> to vector<2x8xf32>
    %148 = vector.shape_cast %147 : vector<2x8xf32> to vector<2x8x1xf32>
    %149 = tpu.reciprocal %148 {approx = true} : vector<2x8x1xf32> -> vector<2x8x1xf32>
    %150 = vector.broadcast %149 : vector<2x8x1xf32> to vector<2x8x8xf32>
    %151 = arith.mulf %146, %150 : vector<2x8x8xf32>
    "tpu.trace_start"() <{level = 10 : i32, message = "bnm,bmd->bnd"}> : () -> ()
    %cst_50 = arith.constant dense<0.000000e+00> : vector<2x8x4xf32>
    %152 = tpu.matmul %151, %138, %cst_50 {dimension_numbers = #tpu.dot_dimension_numbers<[2], [1], [1], [2], [0, 0, 0, 1, 1, 2], [0], [0]>} : vector<2x8x8xf32>, vector<2x8x4xf32>, vector<2x8x4xf32> -> vector<2x8x4xf32>
    "tpu.trace_stop"() : () -> ()
    %153 = vector.shape_cast %152 : vector<2x8x4xf32> to vector<16x4xf32>
    %154 = vector.extract_strided_slice %35 {offsets = [16, 0], sizes = [4, 32], strides = [1, 1]} : vector<32x32xf32> to vector<4x32xf32>
    %cst_51 = arith.constant dense<0.000000e+00> : vector<16x32xf32>
    %155 = tpu.matmul %153, %154, %cst_51 {dimension_numbers = #tpu.dot_dimension_numbers<[1], [0], [0], [1], [0, 0, 1, 1], [], []>} : vector<16x4xf32>, vector<4x32xf32>, vector<16x32xf32> -> vector<16x32xf32>
    %156 = arith.addf %132, %155 : vector<16x32xf32>
    %157 = vector.extract_strided_slice %33 {offsets = [0, 20], sizes = [16, 4], strides = [1, 1]} : vector<16x96xf32> to vector<16x4xf32>
    %158 = vector.shape_cast %157 : vector<16x4xf32> to vector<2x8x4xf32>
    %159 = vector.extract_strided_slice %33 {offsets = [0, 52], sizes = [16, 4], strides = [1, 1]} : vector<16x96xf32> to vector<16x4xf32>
    %160 = vector.shape_cast %159 : vector<16x4xf32> to vector<2x8x4xf32>
    %161 = vector.extract_strided_slice %33 {offsets = [0, 84], sizes = [16, 4], strides = [1, 1]} : vector<16x96xf32> to vector<16x4xf32>
    %162 = vector.shape_cast %161 : vector<16x4xf32> to vector<2x8x4xf32>
    "tpu.trace_start"() <{level = 10 : i32, message = "bnd,bmd->bnm"}> : () -> ()
    %cst_52 = arith.constant dense<0.000000e+00> : vector<2x8x8xf32>
    %163 = tpu.matmul %158, %160, %cst_52 {dimension_numbers = #tpu.dot_dimension_numbers<[2], [2], [1], [1], [0, 0, 0, 1, 1, 1], [0], [0]>} : vector<2x8x4xf32>, vector<2x8x4xf32>, vector<2x8x8xf32> -> vector<2x8x8xf32>
    "tpu.trace_stop"() : () -> ()
    %cst_53 = arith.constant 5.000000e-01 : f32
    %164 = vector.broadcast %cst_53 : f32 to vector<2x8x8xf32>
    %165 = arith.mulf %163, %164 : vector<2x8x8xf32>
    %cst_54 = arith.constant dense<0xFF800000> : vector<2x8xf32>
    %166 = vector.multi_reduction <maximumf>, %165, %cst_54 [2] : vector<2x8x8xf32> to vector<2x8xf32>
    %167 = vector.shape_cast %166 : vector<2x8xf32> to vector<2x8x1xf32>
    %168 = vector.broadcast %167 : vector<2x8x1xf32> to vector<2x8x8xf32>
    %169 = arith.subf %165, %168 : vector<2x8x8xf32>
    %170 = math.exp %169 : vector<2x8x8xf32>
    %cst_55 = arith.constant dense<0.000000e+00> : vector<2x8xf32>
    %171 = vector.multi_reduction <add>, %170, %cst_55 [2] : vector<2x8x8xf32> to vector<2x8xf32>
    %172 = vector.shape_cast %171 : vector<2x8xf32> to vector<2x8x1xf32>
    %173 = tpu.reciprocal %172 {approx = true} : vector<2x8x1xf32> -> vector<2x8x1xf32>
    %174 = vector.broadcast %173 : vector<2x8x1xf32> to vector<2x8x8xf32>
    %175 = arith.mulf %170, %174 : vector<2x8x8xf32>
    "tpu.trace_start"() <{level = 10 : i32, message = "bnm,bmd->bnd"}> : () -> ()
    %cst_56 = arith.constant dense<0.000000e+00> : vector<2x8x4xf32>
    %176 = tpu.matmul %175, %162, %cst_56 {dimension_numbers = #tpu.dot_dimension_numbers<[2], [1], [1], [2], [0, 0, 0, 1, 1, 2], [0], [0]>} : vector<2x8x8xf32>, vector<2x8x4xf32>, vector<2x8x4xf32> -> vector<2x8x4xf32>
    "tpu.trace_stop"() : () -> ()
    %177 = vector.shape_cast %176 : vector<2x8x4xf32> to vector<16x4xf32>
    %178 = vector.extract_strided_slice %35 {offsets = [20, 0], sizes = [4, 32], strides = [1, 1]} : vector<32x32xf32> to vector<4x32xf32>
    %cst_57 = arith.constant dense<0.000000e+00> : vector<16x32xf32>
    %179 = tpu.matmul %177, %178, %cst_57 {dimension_numbers = #tpu.dot_dimension_numbers<[1], [0], [0], [1], [0, 0, 1, 1], [], []>} : vector<16x4xf32>, vector<4x32xf32>, vector<16x32xf32> -> vector<16x32xf32>
    %180 = arith.addf %156, %179 : vector<16x32xf32>
    %181 = vector.extract_strided_slice %33 {offsets = [0, 24], sizes = [16, 4], strides = [1, 1]} : vector<16x96xf32> to vector<16x4xf32>
    %182 = vector.shape_cast %181 : vector<16x4xf32> to vector<2x8x4xf32>
    %183 = vector.extract_strided_slice %33 {offsets = [0, 56], sizes = [16, 4], strides = [1, 1]} : vector<16x96xf32> to vector<16x4xf32>
    %184 = vector.shape_cast %183 : vector<16x4xf32> to vector<2x8x4xf32>
    %185 = vector.extract_strided_slice %33 {offsets = [0, 88], sizes = [16, 4], strides = [1, 1]} : vector<16x96xf32> to vector<16x4xf32>
    %186 = vector.shape_cast %185 : vector<16x4xf32> to vector<2x8x4xf32>
    "tpu.trace_start"() <{level = 10 : i32, message = "bnd,bmd->bnm"}> : () -> ()
    %cst_58 = arith.constant dense<0.000000e+00> : vector<2x8x8xf32>
    %187 = tpu.matmul %182, %184, %cst_58 {dimension_numbers = #tpu.dot_dimension_numbers<[2], [2], [1], [1], [0, 0, 0, 1, 1, 1], [0], [0]>} : vector<2x8x4xf32>, vector<2x8x4xf32>, vector<2x8x8xf32> -> vector<2x8x8xf32>
    "tpu.trace_stop"() : () -> ()
    %cst_59 = arith.constant 5.000000e-01 : f32
    %188 = vector.broadcast %cst_59 : f32 to vector<2x8x8xf32>
    %189 = arith.mulf %187, %188 : vector<2x8x8xf32>
    %cst_60 = arith.constant dense<0xFF800000> : vector<2x8xf32>
    %190 = vector.multi_reduction <maximumf>, %189, %cst_60 [2] : vector<2x8x8xf32> to vector<2x8xf32>
    %191 = vector.shape_cast %190 : vector<2x8xf32> to vector<2x8x1xf32>
    %192 = vector.broadcast %191 : vector<2x8x1xf32> to vector<2x8x8xf32>
    %193 = arith.subf %189, %192 : vector<2x8x8xf32>
    %194 = math.exp %193 : vector<2x8x8xf32>
    %cst_61 = arith.constant dense<0.000000e+00> : vector<2x8xf32>
    %195 = vector.multi_reduction <add>, %194, %cst_61 [2] : vector<2x8x8xf32> to vector<2x8xf32>
    %196 = vector.shape_cast %195 : vector<2x8xf32> to vector<2x8x1xf32>
    %197 = tpu.reciprocal %196 {approx = true} : vector<2x8x1xf32> -> vector<2x8x1xf32>
    %198 = vector.broadcast %197 : vector<2x8x1xf32> to vector<2x8x8xf32>
    %199 = arith.mulf %194, %198 : vector<2x8x8xf32>
    "tpu.trace_start"() <{level = 10 : i32, message = "bnm,bmd->bnd"}> : () -> ()
    %cst_62 = arith.constant dense<0.000000e+00> : vector<2x8x4xf32>
    %200 = tpu.matmul %199, %186, %cst_62 {dimension_numbers = #tpu.dot_dimension_numbers<[2], [1], [1], [2], [0, 0, 0, 1, 1, 2], [0], [0]>} : vector<2x8x8xf32>, vector<2x8x4xf32>, vector<2x8x4xf32> -> vector<2x8x4xf32>
    "tpu.trace_stop"() : () -> ()
    %201 = vector.shape_cast %200 : vector<2x8x4xf32> to vector<16x4xf32>
    %202 = vector.extract_strided_slice %35 {offsets = [24, 0], sizes = [4, 32], strides = [1, 1]} : vector<32x32xf32> to vector<4x32xf32>
    %cst_63 = arith.constant dense<0.000000e+00> : vector<16x32xf32>
    %203 = tpu.matmul %201, %202, %cst_63 {dimension_numbers = #tpu.dot_dimension_numbers<[1], [0], [0], [1], [0, 0, 1, 1], [], []>} : vector<16x4xf32>, vector<4x32xf32>, vector<16x32xf32> -> vector<16x32xf32>
    %204 = arith.addf %180, %203 : vector<16x32xf32>
    %205 = vector.extract_strided_slice %33 {offsets = [0, 28], sizes = [16, 4], strides = [1, 1]} : vector<16x96xf32> to vector<16x4xf32>
    %206 = vector.shape_cast %205 : vector<16x4xf32> to vector<2x8x4xf32>
    %207 = vector.extract_strided_slice %33 {offsets = [0, 60], sizes = [16, 4], strides = [1, 1]} : vector<16x96xf32> to vector<16x4xf32>
    %208 = vector.shape_cast %207 : vector<16x4xf32> to vector<2x8x4xf32>
    %209 = vector.extract_strided_slice %33 {offsets = [0, 92], sizes = [16, 4], strides = [1, 1]} : vector<16x96xf32> to vector<16x4xf32>
    %210 = vector.shape_cast %209 : vector<16x4xf32> to vector<2x8x4xf32>
    "tpu.trace_start"() <{level = 10 : i32, message = "bnd,bmd->bnm"}> : () -> ()
    %cst_64 = arith.constant dense<0.000000e+00> : vector<2x8x8xf32>
    %211 = tpu.matmul %206, %208, %cst_64 {dimension_numbers = #tpu.dot_dimension_numbers<[2], [2], [1], [1], [0, 0, 0, 1, 1, 1], [0], [0]>} : vector<2x8x4xf32>, vector<2x8x4xf32>, vector<2x8x8xf32> -> vector<2x8x8xf32>
    "tpu.trace_stop"() : () -> ()
    %cst_65 = arith.constant 5.000000e-01 : f32
    %212 = vector.broadcast %cst_65 : f32 to vector<2x8x8xf32>
    %213 = arith.mulf %211, %212 : vector<2x8x8xf32>
    %cst_66 = arith.constant dense<0xFF800000> : vector<2x8xf32>
    %214 = vector.multi_reduction <maximumf>, %213, %cst_66 [2] : vector<2x8x8xf32> to vector<2x8xf32>
    %215 = vector.shape_cast %214 : vector<2x8xf32> to vector<2x8x1xf32>
    %216 = vector.broadcast %215 : vector<2x8x1xf32> to vector<2x8x8xf32>
    %217 = arith.subf %213, %216 : vector<2x8x8xf32>
    %218 = math.exp %217 : vector<2x8x8xf32>
    %cst_67 = arith.constant dense<0.000000e+00> : vector<2x8xf32>
    %219 = vector.multi_reduction <add>, %218, %cst_67 [2] : vector<2x8x8xf32> to vector<2x8xf32>
    %220 = vector.shape_cast %219 : vector<2x8xf32> to vector<2x8x1xf32>
    %221 = tpu.reciprocal %220 {approx = true} : vector<2x8x1xf32> -> vector<2x8x1xf32>
    %222 = vector.broadcast %221 : vector<2x8x1xf32> to vector<2x8x8xf32>
    %223 = arith.mulf %218, %222 : vector<2x8x8xf32>
    "tpu.trace_start"() <{level = 10 : i32, message = "bnm,bmd->bnd"}> : () -> ()
    %cst_68 = arith.constant dense<0.000000e+00> : vector<2x8x4xf32>
    %224 = tpu.matmul %223, %210, %cst_68 {dimension_numbers = #tpu.dot_dimension_numbers<[2], [1], [1], [2], [0, 0, 0, 1, 1, 2], [0], [0]>} : vector<2x8x8xf32>, vector<2x8x4xf32>, vector<2x8x4xf32> -> vector<2x8x4xf32>
    "tpu.trace_stop"() : () -> ()
    %225 = vector.shape_cast %224 : vector<2x8x4xf32> to vector<16x4xf32>
    %226 = vector.extract_strided_slice %35 {offsets = [28, 0], sizes = [4, 32], strides = [1, 1]} : vector<32x32xf32> to vector<4x32xf32>
    %cst_69 = arith.constant dense<0.000000e+00> : vector<16x32xf32>
    %227 = tpu.matmul %225, %226, %cst_69 {dimension_numbers = #tpu.dot_dimension_numbers<[1], [0], [0], [1], [0, 0, 1, 1], [], []>} : vector<16x4xf32>, vector<4x32xf32>, vector<16x32xf32> -> vector<16x32xf32>
    %228 = arith.addf %204, %227 : vector<16x32xf32>
    %229 = arith.addf %0, %228 : vector<16x32xf32>
    %c0_70 = arith.constant 0 : index
    %c0_71 = arith.constant 0 : index
    %c0_72 = arith.constant 0 : index
    %230 = vector.load %arg7[%c0_70, %c0_71, %c0_72] : memref<4x1x32xf32, #tpu.memory_space<vmem>>, vector<1x1x32xf32>
    %231 = vector.shape_cast %230 : vector<1x1x32xf32> to vector<1x32xf32>
    %232 = vector.broadcast %231 : vector<1x32xf32> to vector<16x32xf32>
    %233 = arith.addf %229, %232 : vector<16x32xf32>
    %c0_73 = arith.constant 0 : index
    %c0_74 = arith.constant 0 : index
    %c0_75 = arith.constant 0 : index
    %234 = vector.load %arg8[%c0_73, %c0_74, %c0_75] : memref<4x1x32xf32, #tpu.memory_space<vmem>>, vector<1x1x32xf32>
    %235 = vector.shape_cast %234 : vector<1x1x32xf32> to vector<1x32xf32>
    %c0_76 = arith.constant 0 : index
    %c0_77 = arith.constant 0 : index
    %c0_78 = arith.constant 0 : index
    %236 = vector.load %arg9[%c0_76, %c0_77, %c0_78] : memref<4x1x32xf32, #tpu.memory_space<vmem>>, vector<1x1x32xf32>
    %237 = vector.shape_cast %236 : vector<1x1x32xf32> to vector<1x32xf32>
    %cst_79 = arith.constant dense<0.000000e+00> : vector<16xf32>
    %238 = vector.multi_reduction <add>, %233, %cst_79 [1] : vector<16x32xf32> to vector<16xf32>
    %239 = vector.shape_cast %238 : vector<16xf32> to vector<16x1xf32>
    %cst_80 = arith.constant 3.200000e+01 : f32
    %240 = vector.broadcast %cst_80 : f32 to vector<16x1xf32>
    %241 = arith.divf %239, %240 : vector<16x1xf32>
    %242 = vector.broadcast %241 : vector<16x1xf32> to vector<16x32xf32>
    %243 = arith.subf %233, %242 : vector<16x32xf32>
    %244 = arith.mulf %243, %243 : vector<16x32xf32>
    %cst_81 = arith.constant dense<0.000000e+00> : vector<16xf32>
    %245 = vector.multi_reduction <add>, %244, %cst_81 [1] : vector<16x32xf32> to vector<16xf32>
    %246 = vector.shape_cast %245 : vector<16xf32> to vector<16x1xf32>
    %cst_82 = arith.constant 3.200000e+01 : f32
    %247 = vector.broadcast %cst_82 : f32 to vector<16x1xf32>
    %248 = arith.divf %246, %247 : vector<16x1xf32>
    %249 = vector.broadcast %241 : vector<16x1xf32> to vector<16x32xf32>
    %250 = arith.subf %233, %249 : vector<16x32xf32>
    %cst_83 = arith.constant 9.99999974E-6 : f32
    %251 = vector.broadcast %cst_83 : f32 to vector<16x1xf32>
    %252 = arith.addf %248, %251 : vector<16x1xf32>
    %253 = math.rsqrt %252 : vector<16x1xf32>
    %254 = vector.broadcast %253 : vector<16x1xf32> to vector<16x32xf32>
    %255 = arith.mulf %250, %254 : vector<16x32xf32>
    %256 = vector.broadcast %235 : vector<1x32xf32> to vector<16x32xf32>
    %257 = arith.mulf %255, %256 : vector<16x32xf32>
    %258 = vector.broadcast %237 : vector<1x32xf32> to vector<16x32xf32>
    %259 = arith.addf %257, %258 : vector<16x32xf32>
    %c0_84 = arith.constant 0 : index
    %c0_85 = arith.constant 0 : index
    %c0_86 = arith.constant 0 : index
    %260 = vector.load %arg10[%c0_84, %c0_85, %c0_86] : memref<4x32x128xf32, #tpu.memory_space<vmem>>, vector<1x32x128xf32>
    %261 = vector.shape_cast %260 : vector<1x32x128xf32> to vector<32x128xf32>
    %cst_87 = arith.constant dense<0.000000e+00> : vector<16x128xf32>
    %262 = tpu.matmul %259, %261, %cst_87 {dimension_numbers = #tpu.dot_dimension_numbers<[1], [0], [0], [1], [0, 0, 1, 1], [], []>} : vector<16x32xf32>, vector<32x128xf32>, vector<16x128xf32> -> vector<16x128xf32>
    %c0_88 = arith.constant 0 : index
    %c0_89 = arith.constant 0 : index
    %c0_90 = arith.constant 0 : index
    %263 = vector.load %arg11[%c0_88, %c0_89, %c0_90] : memref<4x1x128xf32, #tpu.memory_space<vmem>>, vector<1x1x128xf32>
    %264 = vector.shape_cast %263 : vector<1x1x128xf32> to vector<1x128xf32>
    %265 = vector.broadcast %264 : vector<1x128xf32> to vector<16x128xf32>
    %266 = arith.addf %262, %265 : vector<16x128xf32>
    %cst_91 = arith.constant 5.000000e-01 : f32
    %267 = vector.broadcast %cst_91 : f32 to vector<16x128xf32>
    %268 = arith.mulf %267, %266 : vector<16x128xf32>
    %cst_92 = arith.constant 0.707106769 : f32
    %269 = vector.broadcast %cst_92 : f32 to vector<16x128xf32>
    %270 = arith.mulf %266, %269 : vector<16x128xf32>
    %271 = math.erf %270 : vector<16x128xf32>
    %cst_93 = arith.constant 1.000000e+00 : f32
    %272 = vector.broadcast %cst_93 : f32 to vector<16x128xf32>
    %273 = arith.addf %272, %271 : vector<16x128xf32>
    %274 = arith.mulf %268, %273 : vector<16x128xf32>
    %c0_94 = arith.constant 0 : index
    %c0_95 = arith.constant 0 : index
    %c0_96 = arith.constant 0 : index
    %275 = vector.load %arg12[%c0_94, %c0_95, %c0_96] : memref<4x128x32xf32, #tpu.memory_space<vmem>>, vector<1x128x32xf32>
    %276 = vector.shape_cast %275 : vector<1x128x32xf32> to vector<128x32xf32>
    %cst_97 = arith.constant dense<0.000000e+00> : vector<16x32xf32>
    %277 = tpu.matmul %274, %276, %cst_97 {dimension_numbers = #tpu.dot_dimension_numbers<[1], [0], [0], [1], [0, 0, 1, 1], [], []>} : vector<16x128xf32>, vector<128x32xf32>, vector<16x32xf32> -> vector<16x32xf32>
    %c0_98 = arith.constant 0 : index
    %c0_99 = arith.constant 0 : index
    %c0_100 = arith.constant 0 : index
    %278 = vector.load %arg13[%c0_98, %c0_99, %c0_100] : memref<4x1x32xf32, #tpu.memory_space<vmem>>, vector<1x1x32xf32>
    %279 = vector.shape_cast %278 : vector<1x1x32xf32> to vector<1x32xf32>
    %280 = vector.broadcast %279 : vector<1x32xf32> to vector<16x32xf32>
    %281 = arith.addf %277, %280 : vector<16x32xf32>
    %282 = arith.addf %233, %281 : vector<16x32xf32>
    %c1 = arith.constant 1 : index
    %c0_101 = arith.constant 0 : index
    %c0_102 = arith.constant 0 : index
    %283 = vector.load %arg2[%c1, %c0_101, %c0_102] : memref<4x1x32xf32, #tpu.memory_space<vmem>>, vector<1x1x32xf32>
    %284 = vector.shape_cast %283 : vector<1x1x32xf32> to vector<1x32xf32>
    %c1_103 = arith.constant 1 : index
    %c0_104 = arith.constant 0 : index
    %c0_105 = arith.constant 0 : index
    %285 = vector.load %arg3[%c1_103, %c0_104, %c0_105] : memref<4x1x32xf32, #tpu.memory_space<vmem>>, vector<1x1x32xf32>
    %286 = vector.shape_cast %285 : vector<1x1x32xf32> to vector<1x32xf32>
    %cst_106 = arith.constant dense<0.000000e+00> : vector<16xf32>
    %287 = vector.multi_reduction <add>, %282, %cst_106 [1] : vector<16x32xf32> to vector<16xf32>
    %288 = vector.shape_cast %287 : vector<16xf32> to vector<16x1xf32>
    %cst_107 = arith.constant 3.200000e+01 : f32
    %289 = vector.broadcast %cst_107 : f32 to vector<16x1xf32>
    %290 = arith.divf %288, %289 : vector<16x1xf32>
    %291 = vector.broadcast %290 : vector<16x1xf32> to vector<16x32xf32>
    %292 = arith.subf %282, %291 : vector<16x32xf32>
    %293 = arith.mulf %292, %292 : vector<16x32xf32>
    %cst_108 = arith.constant dense<0.000000e+00> : vector<16xf32>
    %294 = vector.multi_reduction <add>, %293, %cst_108 [1] : vector<16x32xf32> to vector<16xf32>
    %295 = vector.shape_cast %294 : vector<16xf32> to vector<16x1xf32>
    %cst_109 = arith.constant 3.200000e+01 : f32
    %296 = vector.broadcast %cst_109 : f32 to vector<16x1xf32>
    %297 = arith.divf %295, %296 : vector<16x1xf32>
    %298 = vector.broadcast %290 : vector<16x1xf32> to vector<16x32xf32>
    %299 = arith.subf %282, %298 : vector<16x32xf32>
    %cst_110 = arith.constant 9.99999974E-6 : f32
    %300 = vector.broadcast %cst_110 : f32 to vector<16x1xf32>
    %301 = arith.addf %297, %300 : vector<16x1xf32>
    %302 = math.rsqrt %301 : vector<16x1xf32>
    %303 = vector.broadcast %302 : vector<16x1xf32> to vector<16x32xf32>
    %304 = arith.mulf %299, %303 : vector<16x32xf32>
    %305 = vector.broadcast %284 : vector<1x32xf32> to vector<16x32xf32>
    %306 = arith.mulf %304, %305 : vector<16x32xf32>
    %307 = vector.broadcast %286 : vector<1x32xf32> to vector<16x32xf32>
    %308 = arith.addf %306, %307 : vector<16x32xf32>
    %c1_111 = arith.constant 1 : index
    %c0_112 = arith.constant 0 : index
    %c0_113 = arith.constant 0 : index
    %309 = vector.load %arg4[%c1_111, %c0_112, %c0_113] : memref<4x32x96xf32, #tpu.memory_space<vmem>>, vector<1x32x96xf32>
    %310 = vector.shape_cast %309 : vector<1x32x96xf32> to vector<32x96xf32>
    %cst_114 = arith.constant dense<0.000000e+00> : vector<16x96xf32>
    %311 = tpu.matmul %308, %310, %cst_114 {dimension_numbers = #tpu.dot_dimension_numbers<[1], [0], [0], [1], [0, 0, 1, 1], [], []>} : vector<16x32xf32>, vector<32x96xf32>, vector<16x96xf32> -> vector<16x96xf32>
    %c1_115 = arith.constant 1 : index
    %c0_116 = arith.constant 0 : index
    %c0_117 = arith.constant 0 : index
    %312 = vector.load %arg5[%c1_115, %c0_116, %c0_117] : memref<4x1x96xf32, #tpu.memory_space<vmem>>, vector<1x1x96xf32>
    %313 = vector.shape_cast %312 : vector<1x1x96xf32> to vector<1x96xf32>
    %314 = vector.broadcast %313 : vector<1x96xf32> to vector<16x96xf32>
    %315 = arith.addf %311, %314 : vector<16x96xf32>
    %c1_118 = arith.constant 1 : index
    %c0_119 = arith.constant 0 : index
    %c0_120 = arith.constant 0 : index
    %316 = vector.load %arg6[%c1_118, %c0_119, %c0_120] : memref<4x32x32xf32, #tpu.memory_space<vmem>>, vector<1x32x32xf32>
    %317 = vector.shape_cast %316 : vector<1x32x32xf32> to vector<32x32xf32>
    %cst_121 = arith.constant 0.000000e+00 : f32
    %318 = vector.broadcast %cst_121 : f32 to vector<16x32xf32>
    %319 = vector.extract_strided_slice %315 {offsets = [0, 0], sizes = [16, 4], strides = [1, 1]} : vector<16x96xf32> to vector<16x4xf32>
    %320 = vector.shape_cast %319 : vector<16x4xf32> to vector<2x8x4xf32>
    %321 = vector.extract_strided_slice %315 {offsets = [0, 32], sizes = [16, 4], strides = [1, 1]} : vector<16x96xf32> to vector<16x4xf32>
    %322 = vector.shape_cast %321 : vector<16x4xf32> to vector<2x8x4xf32>
    %323 = vector.extract_strided_slice %315 {offsets = [0, 64], sizes = [16, 4], strides = [1, 1]} : vector<16x96xf32> to vector<16x4xf32>
    %324 = vector.shape_cast %323 : vector<16x4xf32> to vector<2x8x4xf32>
    "tpu.trace_start"() <{level = 10 : i32, message = "bnd,bmd->bnm"}> : () -> ()
    %cst_122 = arith.constant dense<0.000000e+00> : vector<2x8x8xf32>
    %325 = tpu.matmul %320, %322, %cst_122 {dimension_numbers = #tpu.dot_dimension_numbers<[2], [2], [1], [1], [0, 0, 0, 1, 1, 1], [0], [0]>} : vector<2x8x4xf32>, vector<2x8x4xf32>, vector<2x8x8xf32> -> vector<2x8x8xf32>
    "tpu.trace_stop"() : () -> ()
    %cst_123 = arith.constant 5.000000e-01 : f32
    %326 = vector.broadcast %cst_123 : f32 to vector<2x8x8xf32>
    %327 = arith.mulf %325, %326 : vector<2x8x8xf32>
    %cst_124 = arith.constant dense<0xFF800000> : vector<2x8xf32>
    %328 = vector.multi_reduction <maximumf>, %327, %cst_124 [2] : vector<2x8x8xf32> to vector<2x8xf32>
    %329 = vector.shape_cast %328 : vector<2x8xf32> to vector<2x8x1xf32>
    %330 = vector.broadcast %329 : vector<2x8x1xf32> to vector<2x8x8xf32>
    %331 = arith.subf %327, %330 : vector<2x8x8xf32>
    %332 = math.exp %331 : vector<2x8x8xf32>
    %cst_125 = arith.constant dense<0.000000e+00> : vector<2x8xf32>
    %333 = vector.multi_reduction <add>, %332, %cst_125 [2] : vector<2x8x8xf32> to vector<2x8xf32>
    %334 = vector.shape_cast %333 : vector<2x8xf32> to vector<2x8x1xf32>
    %335 = tpu.reciprocal %334 {approx = true} : vector<2x8x1xf32> -> vector<2x8x1xf32>
    %336 = vector.broadcast %335 : vector<2x8x1xf32> to vector<2x8x8xf32>
    %337 = arith.mulf %332, %336 : vector<2x8x8xf32>
    "tpu.trace_start"() <{level = 10 : i32, message = "bnm,bmd->bnd"}> : () -> ()
    %cst_126 = arith.constant dense<0.000000e+00> : vector<2x8x4xf32>
    %338 = tpu.matmul %337, %324, %cst_126 {dimension_numbers = #tpu.dot_dimension_numbers<[2], [1], [1], [2], [0, 0, 0, 1, 1, 2], [0], [0]>} : vector<2x8x8xf32>, vector<2x8x4xf32>, vector<2x8x4xf32> -> vector<2x8x4xf32>
    "tpu.trace_stop"() : () -> ()
    %339 = vector.shape_cast %338 : vector<2x8x4xf32> to vector<16x4xf32>
    %340 = vector.extract_strided_slice %317 {offsets = [0, 0], sizes = [4, 32], strides = [1, 1]} : vector<32x32xf32> to vector<4x32xf32>
    %cst_127 = arith.constant dense<0.000000e+00> : vector<16x32xf32>
    %341 = tpu.matmul %339, %340, %cst_127 {dimension_numbers = #tpu.dot_dimension_numbers<[1], [0], [0], [1], [0, 0, 1, 1], [], []>} : vector<16x4xf32>, vector<4x32xf32>, vector<16x32xf32> -> vector<16x32xf32>
    %342 = arith.addf %318, %341 : vector<16x32xf32>
    %343 = vector.extract_strided_slice %315 {offsets = [0, 4], sizes = [16, 4], strides = [1, 1]} : vector<16x96xf32> to vector<16x4xf32>
    %344 = vector.shape_cast %343 : vector<16x4xf32> to vector<2x8x4xf32>
    %345 = vector.extract_strided_slice %315 {offsets = [0, 36], sizes = [16, 4], strides = [1, 1]} : vector<16x96xf32> to vector<16x4xf32>
    %346 = vector.shape_cast %345 : vector<16x4xf32> to vector<2x8x4xf32>
    %347 = vector.extract_strided_slice %315 {offsets = [0, 68], sizes = [16, 4], strides = [1, 1]} : vector<16x96xf32> to vector<16x4xf32>
    %348 = vector.shape_cast %347 : vector<16x4xf32> to vector<2x8x4xf32>
    "tpu.trace_start"() <{level = 10 : i32, message = "bnd,bmd->bnm"}> : () -> ()
    %cst_128 = arith.constant dense<0.000000e+00> : vector<2x8x8xf32>
    %349 = tpu.matmul %344, %346, %cst_128 {dimension_numbers = #tpu.dot_dimension_numbers<[2], [2], [1], [1], [0, 0, 0, 1, 1, 1], [0], [0]>} : vector<2x8x4xf32>, vector<2x8x4xf32>, vector<2x8x8xf32> -> vector<2x8x8xf32>
    "tpu.trace_stop"() : () -> ()
    %cst_129 = arith.constant 5.000000e-01 : f32
    %350 = vector.broadcast %cst_129 : f32 to vector<2x8x8xf32>
    %351 = arith.mulf %349, %350 : vector<2x8x8xf32>
    %cst_130 = arith.constant dense<0xFF800000> : vector<2x8xf32>
    %352 = vector.multi_reduction <maximumf>, %351, %cst_130 [2] : vector<2x8x8xf32> to vector<2x8xf32>
    %353 = vector.shape_cast %352 : vector<2x8xf32> to vector<2x8x1xf32>
    %354 = vector.broadcast %353 : vector<2x8x1xf32> to vector<2x8x8xf32>
    %355 = arith.subf %351, %354 : vector<2x8x8xf32>
    %356 = math.exp %355 : vector<2x8x8xf32>
    %cst_131 = arith.constant dense<0.000000e+00> : vector<2x8xf32>
    %357 = vector.multi_reduction <add>, %356, %cst_131 [2] : vector<2x8x8xf32> to vector<2x8xf32>
    %358 = vector.shape_cast %357 : vector<2x8xf32> to vector<2x8x1xf32>
    %359 = tpu.reciprocal %358 {approx = true} : vector<2x8x1xf32> -> vector<2x8x1xf32>
    %360 = vector.broadcast %359 : vector<2x8x1xf32> to vector<2x8x8xf32>
    %361 = arith.mulf %356, %360 : vector<2x8x8xf32>
    "tpu.trace_start"() <{level = 10 : i32, message = "bnm,bmd->bnd"}> : () -> ()
    %cst_132 = arith.constant dense<0.000000e+00> : vector<2x8x4xf32>
    %362 = tpu.matmul %361, %348, %cst_132 {dimension_numbers = #tpu.dot_dimension_numbers<[2], [1], [1], [2], [0, 0, 0, 1, 1, 2], [0], [0]>} : vector<2x8x8xf32>, vector<2x8x4xf32>, vector<2x8x4xf32> -> vector<2x8x4xf32>
    "tpu.trace_stop"() : () -> ()
    %363 = vector.shape_cast %362 : vector<2x8x4xf32> to vector<16x4xf32>
    %364 = vector.extract_strided_slice %317 {offsets = [4, 0], sizes = [4, 32], strides = [1, 1]} : vector<32x32xf32> to vector<4x32xf32>
    %cst_133 = arith.constant dense<0.000000e+00> : vector<16x32xf32>
    %365 = tpu.matmul %363, %364, %cst_133 {dimension_numbers = #tpu.dot_dimension_numbers<[1], [0], [0], [1], [0, 0, 1, 1], [], []>} : vector<16x4xf32>, vector<4x32xf32>, vector<16x32xf32> -> vector<16x32xf32>
    %366 = arith.addf %342, %365 : vector<16x32xf32>
    %367 = vector.extract_strided_slice %315 {offsets = [0, 8], sizes = [16, 4], strides = [1, 1]} : vector<16x96xf32> to vector<16x4xf32>
    %368 = vector.shape_cast %367 : vector<16x4xf32> to vector<2x8x4xf32>
    %369 = vector.extract_strided_slice %315 {offsets = [0, 40], sizes = [16, 4], strides = [1, 1]} : vector<16x96xf32> to vector<16x4xf32>
    %370 = vector.shape_cast %369 : vector<16x4xf32> to vector<2x8x4xf32>
    %371 = vector.extract_strided_slice %315 {offsets = [0, 72], sizes = [16, 4], strides = [1, 1]} : vector<16x96xf32> to vector<16x4xf32>
    %372 = vector.shape_cast %371 : vector<16x4xf32> to vector<2x8x4xf32>
    "tpu.trace_start"() <{level = 10 : i32, message = "bnd,bmd->bnm"}> : () -> ()
    %cst_134 = arith.constant dense<0.000000e+00> : vector<2x8x8xf32>
    %373 = tpu.matmul %368, %370, %cst_134 {dimension_numbers = #tpu.dot_dimension_numbers<[2], [2], [1], [1], [0, 0, 0, 1, 1, 1], [0], [0]>} : vector<2x8x4xf32>, vector<2x8x4xf32>, vector<2x8x8xf32> -> vector<2x8x8xf32>
    "tpu.trace_stop"() : () -> ()
    %cst_135 = arith.constant 5.000000e-01 : f32
    %374 = vector.broadcast %cst_135 : f32 to vector<2x8x8xf32>
    %375 = arith.mulf %373, %374 : vector<2x8x8xf32>
    %cst_136 = arith.constant dense<0xFF800000> : vector<2x8xf32>
    %376 = vector.multi_reduction <maximumf>, %375, %cst_136 [2] : vector<2x8x8xf32> to vector<2x8xf32>
    %377 = vector.shape_cast %376 : vector<2x8xf32> to vector<2x8x1xf32>
    %378 = vector.broadcast %377 : vector<2x8x1xf32> to vector<2x8x8xf32>
    %379 = arith.subf %375, %378 : vector<2x8x8xf32>
    %380 = math.exp %379 : vector<2x8x8xf32>
    %cst_137 = arith.constant dense<0.000000e+00> : vector<2x8xf32>
    %381 = vector.multi_reduction <add>, %380, %cst_137 [2] : vector<2x8x8xf32> to vector<2x8xf32>
    %382 = vector.shape_cast %381 : vector<2x8xf32> to vector<2x8x1xf32>
    %383 = tpu.reciprocal %382 {approx = true} : vector<2x8x1xf32> -> vector<2x8x1xf32>
    %384 = vector.broadcast %383 : vector<2x8x1xf32> to vector<2x8x8xf32>
    %385 = arith.mulf %380, %384 : vector<2x8x8xf32>
    "tpu.trace_start"() <{level = 10 : i32, message = "bnm,bmd->bnd"}> : () -> ()
    %cst_138 = arith.constant dense<0.000000e+00> : vector<2x8x4xf32>
    %386 = tpu.matmul %385, %372, %cst_138 {dimension_numbers = #tpu.dot_dimension_numbers<[2], [1], [1], [2], [0, 0, 0, 1, 1, 2], [0], [0]>} : vector<2x8x8xf32>, vector<2x8x4xf32>, vector<2x8x4xf32> -> vector<2x8x4xf32>
    "tpu.trace_stop"() : () -> ()
    %387 = vector.shape_cast %386 : vector<2x8x4xf32> to vector<16x4xf32>
    %388 = vector.extract_strided_slice %317 {offsets = [8, 0], sizes = [4, 32], strides = [1, 1]} : vector<32x32xf32> to vector<4x32xf32>
    %cst_139 = arith.constant dense<0.000000e+00> : vector<16x32xf32>
    %389 = tpu.matmul %387, %388, %cst_139 {dimension_numbers = #tpu.dot_dimension_numbers<[1], [0], [0], [1], [0, 0, 1, 1], [], []>} : vector<16x4xf32>, vector<4x32xf32>, vector<16x32xf32> -> vector<16x32xf32>
    %390 = arith.addf %366, %389 : vector<16x32xf32>
    %391 = vector.extract_strided_slice %315 {offsets = [0, 12], sizes = [16, 4], strides = [1, 1]} : vector<16x96xf32> to vector<16x4xf32>
    %392 = vector.shape_cast %391 : vector<16x4xf32> to vector<2x8x4xf32>
    %393 = vector.extract_strided_slice %315 {offsets = [0, 44], sizes = [16, 4], strides = [1, 1]} : vector<16x96xf32> to vector<16x4xf32>
    %394 = vector.shape_cast %393 : vector<16x4xf32> to vector<2x8x4xf32>
    %395 = vector.extract_strided_slice %315 {offsets = [0, 76], sizes = [16, 4], strides = [1, 1]} : vector<16x96xf32> to vector<16x4xf32>
    %396 = vector.shape_cast %395 : vector<16x4xf32> to vector<2x8x4xf32>
    "tpu.trace_start"() <{level = 10 : i32, message = "bnd,bmd->bnm"}> : () -> ()
    %cst_140 = arith.constant dense<0.000000e+00> : vector<2x8x8xf32>
    %397 = tpu.matmul %392, %394, %cst_140 {dimension_numbers = #tpu.dot_dimension_numbers<[2], [2], [1], [1], [0, 0, 0, 1, 1, 1], [0], [0]>} : vector<2x8x4xf32>, vector<2x8x4xf32>, vector<2x8x8xf32> -> vector<2x8x8xf32>
    "tpu.trace_stop"() : () -> ()
    %cst_141 = arith.constant 5.000000e-01 : f32
    %398 = vector.broadcast %cst_141 : f32 to vector<2x8x8xf32>
    %399 = arith.mulf %397, %398 : vector<2x8x8xf32>
    %cst_142 = arith.constant dense<0xFF800000> : vector<2x8xf32>
    %400 = vector.multi_reduction <maximumf>, %399, %cst_142 [2] : vector<2x8x8xf32> to vector<2x8xf32>
    %401 = vector.shape_cast %400 : vector<2x8xf32> to vector<2x8x1xf32>
    %402 = vector.broadcast %401 : vector<2x8x1xf32> to vector<2x8x8xf32>
    %403 = arith.subf %399, %402 : vector<2x8x8xf32>
    %404 = math.exp %403 : vector<2x8x8xf32>
    %cst_143 = arith.constant dense<0.000000e+00> : vector<2x8xf32>
    %405 = vector.multi_reduction <add>, %404, %cst_143 [2] : vector<2x8x8xf32> to vector<2x8xf32>
    %406 = vector.shape_cast %405 : vector<2x8xf32> to vector<2x8x1xf32>
    %407 = tpu.reciprocal %406 {approx = true} : vector<2x8x1xf32> -> vector<2x8x1xf32>
    %408 = vector.broadcast %407 : vector<2x8x1xf32> to vector<2x8x8xf32>
    %409 = arith.mulf %404, %408 : vector<2x8x8xf32>
    "tpu.trace_start"() <{level = 10 : i32, message = "bnm,bmd->bnd"}> : () -> ()
    %cst_144 = arith.constant dense<0.000000e+00> : vector<2x8x4xf32>
    %410 = tpu.matmul %409, %396, %cst_144 {dimension_numbers = #tpu.dot_dimension_numbers<[2], [1], [1], [2], [0, 0, 0, 1, 1, 2], [0], [0]>} : vector<2x8x8xf32>, vector<2x8x4xf32>, vector<2x8x4xf32> -> vector<2x8x4xf32>
    "tpu.trace_stop"() : () -> ()
    %411 = vector.shape_cast %410 : vector<2x8x4xf32> to vector<16x4xf32>
    %412 = vector.extract_strided_slice %317 {offsets = [12, 0], sizes = [4, 32], strides = [1, 1]} : vector<32x32xf32> to vector<4x32xf32>
    %cst_145 = arith.constant dense<0.000000e+00> : vector<16x32xf32>
    %413 = tpu.matmul %411, %412, %cst_145 {dimension_numbers = #tpu.dot_dimension_numbers<[1], [0], [0], [1], [0, 0, 1, 1], [], []>} : vector<16x4xf32>, vector<4x32xf32>, vector<16x32xf32> -> vector<16x32xf32>
    %414 = arith.addf %390, %413 : vector<16x32xf32>
    %415 = vector.extract_strided_slice %315 {offsets = [0, 16], sizes = [16, 4], strides = [1, 1]} : vector<16x96xf32> to vector<16x4xf32>
    %416 = vector.shape_cast %415 : vector<16x4xf32> to vector<2x8x4xf32>
    %417 = vector.extract_strided_slice %315 {offsets = [0, 48], sizes = [16, 4], strides = [1, 1]} : vector<16x96xf32> to vector<16x4xf32>
    %418 = vector.shape_cast %417 : vector<16x4xf32> to vector<2x8x4xf32>
    %419 = vector.extract_strided_slice %315 {offsets = [0, 80], sizes = [16, 4], strides = [1, 1]} : vector<16x96xf32> to vector<16x4xf32>
    %420 = vector.shape_cast %419 : vector<16x4xf32> to vector<2x8x4xf32>
    "tpu.trace_start"() <{level = 10 : i32, message = "bnd,bmd->bnm"}> : () -> ()
    %cst_146 = arith.constant dense<0.000000e+00> : vector<2x8x8xf32>
    %421 = tpu.matmul %416, %418, %cst_146 {dimension_numbers = #tpu.dot_dimension_numbers<[2], [2], [1], [1], [0, 0, 0, 1, 1, 1], [0], [0]>} : vector<2x8x4xf32>, vector<2x8x4xf32>, vector<2x8x8xf32> -> vector<2x8x8xf32>
    "tpu.trace_stop"() : () -> ()
    %cst_147 = arith.constant 5.000000e-01 : f32
    %422 = vector.broadcast %cst_147 : f32 to vector<2x8x8xf32>
    %423 = arith.mulf %421, %422 : vector<2x8x8xf32>
    %cst_148 = arith.constant dense<0xFF800000> : vector<2x8xf32>
    %424 = vector.multi_reduction <maximumf>, %423, %cst_148 [2] : vector<2x8x8xf32> to vector<2x8xf32>
    %425 = vector.shape_cast %424 : vector<2x8xf32> to vector<2x8x1xf32>
    %426 = vector.broadcast %425 : vector<2x8x1xf32> to vector<2x8x8xf32>
    %427 = arith.subf %423, %426 : vector<2x8x8xf32>
    %428 = math.exp %427 : vector<2x8x8xf32>
    %cst_149 = arith.constant dense<0.000000e+00> : vector<2x8xf32>
    %429 = vector.multi_reduction <add>, %428, %cst_149 [2] : vector<2x8x8xf32> to vector<2x8xf32>
    %430 = vector.shape_cast %429 : vector<2x8xf32> to vector<2x8x1xf32>
    %431 = tpu.reciprocal %430 {approx = true} : vector<2x8x1xf32> -> vector<2x8x1xf32>
    %432 = vector.broadcast %431 : vector<2x8x1xf32> to vector<2x8x8xf32>
    %433 = arith.mulf %428, %432 : vector<2x8x8xf32>
    "tpu.trace_start"() <{level = 10 : i32, message = "bnm,bmd->bnd"}> : () -> ()
    %cst_150 = arith.constant dense<0.000000e+00> : vector<2x8x4xf32>
    %434 = tpu.matmul %433, %420, %cst_150 {dimension_numbers = #tpu.dot_dimension_numbers<[2], [1], [1], [2], [0, 0, 0, 1, 1, 2], [0], [0]>} : vector<2x8x8xf32>, vector<2x8x4xf32>, vector<2x8x4xf32> -> vector<2x8x4xf32>
    "tpu.trace_stop"() : () -> ()
    %435 = vector.shape_cast %434 : vector<2x8x4xf32> to vector<16x4xf32>
    %436 = vector.extract_strided_slice %317 {offsets = [16, 0], sizes = [4, 32], strides = [1, 1]} : vector<32x32xf32> to vector<4x32xf32>
    %cst_151 = arith.constant dense<0.000000e+00> : vector<16x32xf32>
    %437 = tpu.matmul %435, %436, %cst_151 {dimension_numbers = #tpu.dot_dimension_numbers<[1], [0], [0], [1], [0, 0, 1, 1], [], []>} : vector<16x4xf32>, vector<4x32xf32>, vector<16x32xf32> -> vector<16x32xf32>
    %438 = arith.addf %414, %437 : vector<16x32xf32>
    %439 = vector.extract_strided_slice %315 {offsets = [0, 20], sizes = [16, 4], strides = [1, 1]} : vector<16x96xf32> to vector<16x4xf32>
    %440 = vector.shape_cast %439 : vector<16x4xf32> to vector<2x8x4xf32>
    %441 = vector.extract_strided_slice %315 {offsets = [0, 52], sizes = [16, 4], strides = [1, 1]} : vector<16x96xf32> to vector<16x4xf32>
    %442 = vector.shape_cast %441 : vector<16x4xf32> to vector<2x8x4xf32>
    %443 = vector.extract_strided_slice %315 {offsets = [0, 84], sizes = [16, 4], strides = [1, 1]} : vector<16x96xf32> to vector<16x4xf32>
    %444 = vector.shape_cast %443 : vector<16x4xf32> to vector<2x8x4xf32>
    "tpu.trace_start"() <{level = 10 : i32, message = "bnd,bmd->bnm"}> : () -> ()
    %cst_152 = arith.constant dense<0.000000e+00> : vector<2x8x8xf32>
    %445 = tpu.matmul %440, %442, %cst_152 {dimension_numbers = #tpu.dot_dimension_numbers<[2], [2], [1], [1], [0, 0, 0, 1, 1, 1], [0], [0]>} : vector<2x8x4xf32>, vector<2x8x4xf32>, vector<2x8x8xf32> -> vector<2x8x8xf32>
    "tpu.trace_stop"() : () -> ()
    %cst_153 = arith.constant 5.000000e-01 : f32
    %446 = vector.broadcast %cst_153 : f32 to vector<2x8x8xf32>
    %447 = arith.mulf %445, %446 : vector<2x8x8xf32>
    %cst_154 = arith.constant dense<0xFF800000> : vector<2x8xf32>
    %448 = vector.multi_reduction <maximumf>, %447, %cst_154 [2] : vector<2x8x8xf32> to vector<2x8xf32>
    %449 = vector.shape_cast %448 : vector<2x8xf32> to vector<2x8x1xf32>
    %450 = vector.broadcast %449 : vector<2x8x1xf32> to vector<2x8x8xf32>
    %451 = arith.subf %447, %450 : vector<2x8x8xf32>
    %452 = math.exp %451 : vector<2x8x8xf32>
    %cst_155 = arith.constant dense<0.000000e+00> : vector<2x8xf32>
    %453 = vector.multi_reduction <add>, %452, %cst_155 [2] : vector<2x8x8xf32> to vector<2x8xf32>
    %454 = vector.shape_cast %453 : vector<2x8xf32> to vector<2x8x1xf32>
    %455 = tpu.reciprocal %454 {approx = true} : vector<2x8x1xf32> -> vector<2x8x1xf32>
    %456 = vector.broadcast %455 : vector<2x8x1xf32> to vector<2x8x8xf32>
    %457 = arith.mulf %452, %456 : vector<2x8x8xf32>
    "tpu.trace_start"() <{level = 10 : i32, message = "bnm,bmd->bnd"}> : () -> ()
    %cst_156 = arith.constant dense<0.000000e+00> : vector<2x8x4xf32>
    %458 = tpu.matmul %457, %444, %cst_156 {dimension_numbers = #tpu.dot_dimension_numbers<[2], [1], [1], [2], [0, 0, 0, 1, 1, 2], [0], [0]>} : vector<2x8x8xf32>, vector<2x8x4xf32>, vector<2x8x4xf32> -> vector<2x8x4xf32>
    "tpu.trace_stop"() : () -> ()
    %459 = vector.shape_cast %458 : vector<2x8x4xf32> to vector<16x4xf32>
    %460 = vector.extract_strided_slice %317 {offsets = [20, 0], sizes = [4, 32], strides = [1, 1]} : vector<32x32xf32> to vector<4x32xf32>
    %cst_157 = arith.constant dense<0.000000e+00> : vector<16x32xf32>
    %461 = tpu.matmul %459, %460, %cst_157 {dimension_numbers = #tpu.dot_dimension_numbers<[1], [0], [0], [1], [0, 0, 1, 1], [], []>} : vector<16x4xf32>, vector<4x32xf32>, vector<16x32xf32> -> vector<16x32xf32>
    %462 = arith.addf %438, %461 : vector<16x32xf32>
    %463 = vector.extract_strided_slice %315 {offsets = [0, 24], sizes = [16, 4], strides = [1, 1]} : vector<16x96xf32> to vector<16x4xf32>
    %464 = vector.shape_cast %463 : vector<16x4xf32> to vector<2x8x4xf32>
    %465 = vector.extract_strided_slice %315 {offsets = [0, 56], sizes = [16, 4], strides = [1, 1]} : vector<16x96xf32> to vector<16x4xf32>
    %466 = vector.shape_cast %465 : vector<16x4xf32> to vector<2x8x4xf32>
    %467 = vector.extract_strided_slice %315 {offsets = [0, 88], sizes = [16, 4], strides = [1, 1]} : vector<16x96xf32> to vector<16x4xf32>
    %468 = vector.shape_cast %467 : vector<16x4xf32> to vector<2x8x4xf32>
    "tpu.trace_start"() <{level = 10 : i32, message = "bnd,bmd->bnm"}> : () -> ()
    %cst_158 = arith.constant dense<0.000000e+00> : vector<2x8x8xf32>
    %469 = tpu.matmul %464, %466, %cst_158 {dimension_numbers = #tpu.dot_dimension_numbers<[2], [2], [1], [1], [0, 0, 0, 1, 1, 1], [0], [0]>} : vector<2x8x4xf32>, vector<2x8x4xf32>, vector<2x8x8xf32> -> vector<2x8x8xf32>
    "tpu.trace_stop"() : () -> ()
    %cst_159 = arith.constant 5.000000e-01 : f32
    %470 = vector.broadcast %cst_159 : f32 to vector<2x8x8xf32>
    %471 = arith.mulf %469, %470 : vector<2x8x8xf32>
    %cst_160 = arith.constant dense<0xFF800000> : vector<2x8xf32>
    %472 = vector.multi_reduction <maximumf>, %471, %cst_160 [2] : vector<2x8x8xf32> to vector<2x8xf32>
    %473 = vector.shape_cast %472 : vector<2x8xf32> to vector<2x8x1xf32>
    %474 = vector.broadcast %473 : vector<2x8x1xf32> to vector<2x8x8xf32>
    %475 = arith.subf %471, %474 : vector<2x8x8xf32>
    %476 = math.exp %475 : vector<2x8x8xf32>
    %cst_161 = arith.constant dense<0.000000e+00> : vector<2x8xf32>
    %477 = vector.multi_reduction <add>, %476, %cst_161 [2] : vector<2x8x8xf32> to vector<2x8xf32>
    %478 = vector.shape_cast %477 : vector<2x8xf32> to vector<2x8x1xf32>
    %479 = tpu.reciprocal %478 {approx = true} : vector<2x8x1xf32> -> vector<2x8x1xf32>
    %480 = vector.broadcast %479 : vector<2x8x1xf32> to vector<2x8x8xf32>
    %481 = arith.mulf %476, %480 : vector<2x8x8xf32>
    "tpu.trace_start"() <{level = 10 : i32, message = "bnm,bmd->bnd"}> : () -> ()
    %cst_162 = arith.constant dense<0.000000e+00> : vector<2x8x4xf32>
    %482 = tpu.matmul %481, %468, %cst_162 {dimension_numbers = #tpu.dot_dimension_numbers<[2], [1], [1], [2], [0, 0, 0, 1, 1, 2], [0], [0]>} : vector<2x8x8xf32>, vector<2x8x4xf32>, vector<2x8x4xf32> -> vector<2x8x4xf32>
    "tpu.trace_stop"() : () -> ()
    %483 = vector.shape_cast %482 : vector<2x8x4xf32> to vector<16x4xf32>
    %484 = vector.extract_strided_slice %317 {offsets = [24, 0], sizes = [4, 32], strides = [1, 1]} : vector<32x32xf32> to vector<4x32xf32>
    %cst_163 = arith.constant dense<0.000000e+00> : vector<16x32xf32>
    %485 = tpu.matmul %483, %484, %cst_163 {dimension_numbers = #tpu.dot_dimension_numbers<[1], [0], [0], [1], [0, 0, 1, 1], [], []>} : vector<16x4xf32>, vector<4x32xf32>, vector<16x32xf32> -> vector<16x32xf32>
    %486 = arith.addf %462, %485 : vector<16x32xf32>
    %487 = vector.extract_strided_slice %315 {offsets = [0, 28], sizes = [16, 4], strides = [1, 1]} : vector<16x96xf32> to vector<16x4xf32>
    %488 = vector.shape_cast %487 : vector<16x4xf32> to vector<2x8x4xf32>
    %489 = vector.extract_strided_slice %315 {offsets = [0, 60], sizes = [16, 4], strides = [1, 1]} : vector<16x96xf32> to vector<16x4xf32>
    %490 = vector.shape_cast %489 : vector<16x4xf32> to vector<2x8x4xf32>
    %491 = vector.extract_strided_slice %315 {offsets = [0, 92], sizes = [16, 4], strides = [1, 1]} : vector<16x96xf32> to vector<16x4xf32>
    %492 = vector.shape_cast %491 : vector<16x4xf32> to vector<2x8x4xf32>
    "tpu.trace_start"() <{level = 10 : i32, message = "bnd,bmd->bnm"}> : () -> ()
    %cst_164 = arith.constant dense<0.000000e+00> : vector<2x8x8xf32>
    %493 = tpu.matmul %488, %490, %cst_164 {dimension_numbers = #tpu.dot_dimension_numbers<[2], [2], [1], [1], [0, 0, 0, 1, 1, 1], [0], [0]>} : vector<2x8x4xf32>, vector<2x8x4xf32>, vector<2x8x8xf32> -> vector<2x8x8xf32>
    "tpu.trace_stop"() : () -> ()
    %cst_165 = arith.constant 5.000000e-01 : f32
    %494 = vector.broadcast %cst_165 : f32 to vector<2x8x8xf32>
    %495 = arith.mulf %493, %494 : vector<2x8x8xf32>
    %cst_166 = arith.constant dense<0xFF800000> : vector<2x8xf32>
    %496 = vector.multi_reduction <maximumf>, %495, %cst_166 [2] : vector<2x8x8xf32> to vector<2x8xf32>
    %497 = vector.shape_cast %496 : vector<2x8xf32> to vector<2x8x1xf32>
    %498 = vector.broadcast %497 : vector<2x8x1xf32> to vector<2x8x8xf32>
    %499 = arith.subf %495, %498 : vector<2x8x8xf32>
    %500 = math.exp %499 : vector<2x8x8xf32>
    %cst_167 = arith.constant dense<0.000000e+00> : vector<2x8xf32>
    %501 = vector.multi_reduction <add>, %500, %cst_167 [2] : vector<2x8x8xf32> to vector<2x8xf32>
    %502 = vector.shape_cast %501 : vector<2x8xf32> to vector<2x8x1xf32>
    %503 = tpu.reciprocal %502 {approx = true} : vector<2x8x1xf32> -> vector<2x8x1xf32>
    %504 = vector.broadcast %503 : vector<2x8x1xf32> to vector<2x8x8xf32>
    %505 = arith.mulf %500, %504 : vector<2x8x8xf32>
    "tpu.trace_start"() <{level = 10 : i32, message = "bnm,bmd->bnd"}> : () -> ()
    %cst_168 = arith.constant dense<0.000000e+00> : vector<2x8x4xf32>
    %506 = tpu.matmul %505, %492, %cst_168 {dimension_numbers = #tpu.dot_dimension_numbers<[2], [1], [1], [2], [0, 0, 0, 1, 1, 2], [0], [0]>} : vector<2x8x8xf32>, vector<2x8x4xf32>, vector<2x8x4xf32> -> vector<2x8x4xf32>
    "tpu.trace_stop"() : () -> ()
    %507 = vector.shape_cast %506 : vector<2x8x4xf32> to vector<16x4xf32>
    %508 = vector.extract_strided_slice %317 {offsets = [28, 0], sizes = [4, 32], strides = [1, 1]} : vector<32x32xf32> to vector<4x32xf32>
    %cst_169 = arith.constant dense<0.000000e+00> : vector<16x32xf32>
    %509 = tpu.matmul %507, %508, %cst_169 {dimension_numbers = #tpu.dot_dimension_numbers<[1], [0], [0], [1], [0, 0, 1, 1], [], []>} : vector<16x4xf32>, vector<4x32xf32>, vector<16x32xf32> -> vector<16x32xf32>
    %510 = arith.addf %486, %509 : vector<16x32xf32>
    %511 = arith.addf %282, %510 : vector<16x32xf32>
    %c1_170 = arith.constant 1 : index
    %c0_171 = arith.constant 0 : index
    %c0_172 = arith.constant 0 : index
    %512 = vector.load %arg7[%c1_170, %c0_171, %c0_172] : memref<4x1x32xf32, #tpu.memory_space<vmem>>, vector<1x1x32xf32>
    %513 = vector.shape_cast %512 : vector<1x1x32xf32> to vector<1x32xf32>
    %514 = vector.broadcast %513 : vector<1x32xf32> to vector<16x32xf32>
    %515 = arith.addf %511, %514 : vector<16x32xf32>
    %c1_173 = arith.constant 1 : index
    %c0_174 = arith.constant 0 : index
    %c0_175 = arith.constant 0 : index
    %516 = vector.load %arg8[%c1_173, %c0_174, %c0_175] : memref<4x1x32xf32, #tpu.memory_space<vmem>>, vector<1x1x32xf32>
    %517 = vector.shape_cast %516 : vector<1x1x32xf32> to vector<1x32xf32>
    %c1_176 = arith.constant 1 : index
    %c0_177 = arith.constant 0 : index
    %c0_178 = arith.constant 0 : index
    %518 = vector.load %arg9[%c1_176, %c0_177, %c0_178] : memref<4x1x32xf32, #tpu.memory_space<vmem>>, vector<1x1x32xf32>
    %519 = vector.shape_cast %518 : vector<1x1x32xf32> to vector<1x32xf32>
    %cst_179 = arith.constant dense<0.000000e+00> : vector<16xf32>
    %520 = vector.multi_reduction <add>, %515, %cst_179 [1] : vector<16x32xf32> to vector<16xf32>
    %521 = vector.shape_cast %520 : vector<16xf32> to vector<16x1xf32>
    %cst_180 = arith.constant 3.200000e+01 : f32
    %522 = vector.broadcast %cst_180 : f32 to vector<16x1xf32>
    %523 = arith.divf %521, %522 : vector<16x1xf32>
    %524 = vector.broadcast %523 : vector<16x1xf32> to vector<16x32xf32>
    %525 = arith.subf %515, %524 : vector<16x32xf32>
    %526 = arith.mulf %525, %525 : vector<16x32xf32>
    %cst_181 = arith.constant dense<0.000000e+00> : vector<16xf32>
    %527 = vector.multi_reduction <add>, %526, %cst_181 [1] : vector<16x32xf32> to vector<16xf32>
    %528 = vector.shape_cast %527 : vector<16xf32> to vector<16x1xf32>
    %cst_182 = arith.constant 3.200000e+01 : f32
    %529 = vector.broadcast %cst_182 : f32 to vector<16x1xf32>
    %530 = arith.divf %528, %529 : vector<16x1xf32>
    %531 = vector.broadcast %523 : vector<16x1xf32> to vector<16x32xf32>
    %532 = arith.subf %515, %531 : vector<16x32xf32>
    %cst_183 = arith.constant 9.99999974E-6 : f32
    %533 = vector.broadcast %cst_183 : f32 to vector<16x1xf32>
    %534 = arith.addf %530, %533 : vector<16x1xf32>
    %535 = math.rsqrt %534 : vector<16x1xf32>
    %536 = vector.broadcast %535 : vector<16x1xf32> to vector<16x32xf32>
    %537 = arith.mulf %532, %536 : vector<16x32xf32>
    %538 = vector.broadcast %517 : vector<1x32xf32> to vector<16x32xf32>
    %539 = arith.mulf %537, %538 : vector<16x32xf32>
    %540 = vector.broadcast %519 : vector<1x32xf32> to vector<16x32xf32>
    %541 = arith.addf %539, %540 : vector<16x32xf32>
    %c1_184 = arith.constant 1 : index
    %c0_185 = arith.constant 0 : index
    %c0_186 = arith.constant 0 : index
    %542 = vector.load %arg10[%c1_184, %c0_185, %c0_186] : memref<4x32x128xf32, #tpu.memory_space<vmem>>, vector<1x32x128xf32>
    %543 = vector.shape_cast %542 : vector<1x32x128xf32> to vector<32x128xf32>
    %cst_187 = arith.constant dense<0.000000e+00> : vector<16x128xf32>
    %544 = tpu.matmul %541, %543, %cst_187 {dimension_numbers = #tpu.dot_dimension_numbers<[1], [0], [0], [1], [0, 0, 1, 1], [], []>} : vector<16x32xf32>, vector<32x128xf32>, vector<16x128xf32> -> vector<16x128xf32>
    %c1_188 = arith.constant 1 : index
    %c0_189 = arith.constant 0 : index
    %c0_190 = arith.constant 0 : index
    %545 = vector.load %arg11[%c1_188, %c0_189, %c0_190] : memref<4x1x128xf32, #tpu.memory_space<vmem>>, vector<1x1x128xf32>
    %546 = vector.shape_cast %545 : vector<1x1x128xf32> to vector<1x128xf32>
    %547 = vector.broadcast %546 : vector<1x128xf32> to vector<16x128xf32>
    %548 = arith.addf %544, %547 : vector<16x128xf32>
    %cst_191 = arith.constant 5.000000e-01 : f32
    %549 = vector.broadcast %cst_191 : f32 to vector<16x128xf32>
    %550 = arith.mulf %549, %548 : vector<16x128xf32>
    %cst_192 = arith.constant 0.707106769 : f32
    %551 = vector.broadcast %cst_192 : f32 to vector<16x128xf32>
    %552 = arith.mulf %548, %551 : vector<16x128xf32>
    %553 = math.erf %552 : vector<16x128xf32>
    %cst_193 = arith.constant 1.000000e+00 : f32
    %554 = vector.broadcast %cst_193 : f32 to vector<16x128xf32>
    %555 = arith.addf %554, %553 : vector<16x128xf32>
    %556 = arith.mulf %550, %555 : vector<16x128xf32>
    %c1_194 = arith.constant 1 : index
    %c0_195 = arith.constant 0 : index
    %c0_196 = arith.constant 0 : index
    %557 = vector.load %arg12[%c1_194, %c0_195, %c0_196] : memref<4x128x32xf32, #tpu.memory_space<vmem>>, vector<1x128x32xf32>
    %558 = vector.shape_cast %557 : vector<1x128x32xf32> to vector<128x32xf32>
    %cst_197 = arith.constant dense<0.000000e+00> : vector<16x32xf32>
    %559 = tpu.matmul %556, %558, %cst_197 {dimension_numbers = #tpu.dot_dimension_numbers<[1], [0], [0], [1], [0, 0, 1, 1], [], []>} : vector<16x128xf32>, vector<128x32xf32>, vector<16x32xf32> -> vector<16x32xf32>
    %c1_198 = arith.constant 1 : index
    %c0_199 = arith.constant 0 : index
    %c0_200 = arith.constant 0 : index
    %560 = vector.load %arg13[%c1_198, %c0_199, %c0_200] : memref<4x1x32xf32, #tpu.memory_space<vmem>>, vector<1x1x32xf32>
    %561 = vector.shape_cast %560 : vector<1x1x32xf32> to vector<1x32xf32>
    %562 = vector.broadcast %561 : vector<1x32xf32> to vector<16x32xf32>
    %563 = arith.addf %559, %562 : vector<16x32xf32>
    %564 = arith.addf %515, %563 : vector<16x32xf32>
    %c2 = arith.constant 2 : index
    %c0_201 = arith.constant 0 : index
    %c0_202 = arith.constant 0 : index
    %565 = vector.load %arg2[%c2, %c0_201, %c0_202] : memref<4x1x32xf32, #tpu.memory_space<vmem>>, vector<1x1x32xf32>
    %566 = vector.shape_cast %565 : vector<1x1x32xf32> to vector<1x32xf32>
    %c2_203 = arith.constant 2 : index
    %c0_204 = arith.constant 0 : index
    %c0_205 = arith.constant 0 : index
    %567 = vector.load %arg3[%c2_203, %c0_204, %c0_205] : memref<4x1x32xf32, #tpu.memory_space<vmem>>, vector<1x1x32xf32>
    %568 = vector.shape_cast %567 : vector<1x1x32xf32> to vector<1x32xf32>
    %cst_206 = arith.constant dense<0.000000e+00> : vector<16xf32>
    %569 = vector.multi_reduction <add>, %564, %cst_206 [1] : vector<16x32xf32> to vector<16xf32>
    %570 = vector.shape_cast %569 : vector<16xf32> to vector<16x1xf32>
    %cst_207 = arith.constant 3.200000e+01 : f32
    %571 = vector.broadcast %cst_207 : f32 to vector<16x1xf32>
    %572 = arith.divf %570, %571 : vector<16x1xf32>
    %573 = vector.broadcast %572 : vector<16x1xf32> to vector<16x32xf32>
    %574 = arith.subf %564, %573 : vector<16x32xf32>
    %575 = arith.mulf %574, %574 : vector<16x32xf32>
    %cst_208 = arith.constant dense<0.000000e+00> : vector<16xf32>
    %576 = vector.multi_reduction <add>, %575, %cst_208 [1] : vector<16x32xf32> to vector<16xf32>
    %577 = vector.shape_cast %576 : vector<16xf32> to vector<16x1xf32>
    %cst_209 = arith.constant 3.200000e+01 : f32
    %578 = vector.broadcast %cst_209 : f32 to vector<16x1xf32>
    %579 = arith.divf %577, %578 : vector<16x1xf32>
    %580 = vector.broadcast %572 : vector<16x1xf32> to vector<16x32xf32>
    %581 = arith.subf %564, %580 : vector<16x32xf32>
    %cst_210 = arith.constant 9.99999974E-6 : f32
    %582 = vector.broadcast %cst_210 : f32 to vector<16x1xf32>
    %583 = arith.addf %579, %582 : vector<16x1xf32>
    %584 = math.rsqrt %583 : vector<16x1xf32>
    %585 = vector.broadcast %584 : vector<16x1xf32> to vector<16x32xf32>
    %586 = arith.mulf %581, %585 : vector<16x32xf32>
    %587 = vector.broadcast %566 : vector<1x32xf32> to vector<16x32xf32>
    %588 = arith.mulf %586, %587 : vector<16x32xf32>
    %589 = vector.broadcast %568 : vector<1x32xf32> to vector<16x32xf32>
    %590 = arith.addf %588, %589 : vector<16x32xf32>
    %c2_211 = arith.constant 2 : index
    %c0_212 = arith.constant 0 : index
    %c0_213 = arith.constant 0 : index
    %591 = vector.load %arg4[%c2_211, %c0_212, %c0_213] : memref<4x32x96xf32, #tpu.memory_space<vmem>>, vector<1x32x96xf32>
    %592 = vector.shape_cast %591 : vector<1x32x96xf32> to vector<32x96xf32>
    %cst_214 = arith.constant dense<0.000000e+00> : vector<16x96xf32>
    %593 = tpu.matmul %590, %592, %cst_214 {dimension_numbers = #tpu.dot_dimension_numbers<[1], [0], [0], [1], [0, 0, 1, 1], [], []>} : vector<16x32xf32>, vector<32x96xf32>, vector<16x96xf32> -> vector<16x96xf32>
    %c2_215 = arith.constant 2 : index
    %c0_216 = arith.constant 0 : index
    %c0_217 = arith.constant 0 : index
    %594 = vector.load %arg5[%c2_215, %c0_216, %c0_217] : memref<4x1x96xf32, #tpu.memory_space<vmem>>, vector<1x1x96xf32>
    %595 = vector.shape_cast %594 : vector<1x1x96xf32> to vector<1x96xf32>
    %596 = vector.broadcast %595 : vector<1x96xf32> to vector<16x96xf32>
    %597 = arith.addf %593, %596 : vector<16x96xf32>
    %c2_218 = arith.constant 2 : index
    %c0_219 = arith.constant 0 : index
    %c0_220 = arith.constant 0 : index
    %598 = vector.load %arg6[%c2_218, %c0_219, %c0_220] : memref<4x32x32xf32, #tpu.memory_space<vmem>>, vector<1x32x32xf32>
    %599 = vector.shape_cast %598 : vector<1x32x32xf32> to vector<32x32xf32>
    %cst_221 = arith.constant 0.000000e+00 : f32
    %600 = vector.broadcast %cst_221 : f32 to vector<16x32xf32>
    %601 = vector.extract_strided_slice %597 {offsets = [0, 0], sizes = [16, 4], strides = [1, 1]} : vector<16x96xf32> to vector<16x4xf32>
    %602 = vector.shape_cast %601 : vector<16x4xf32> to vector<2x8x4xf32>
    %603 = vector.extract_strided_slice %597 {offsets = [0, 32], sizes = [16, 4], strides = [1, 1]} : vector<16x96xf32> to vector<16x4xf32>
    %604 = vector.shape_cast %603 : vector<16x4xf32> to vector<2x8x4xf32>
    %605 = vector.extract_strided_slice %597 {offsets = [0, 64], sizes = [16, 4], strides = [1, 1]} : vector<16x96xf32> to vector<16x4xf32>
    %606 = vector.shape_cast %605 : vector<16x4xf32> to vector<2x8x4xf32>
    "tpu.trace_start"() <{level = 10 : i32, message = "bnd,bmd->bnm"}> : () -> ()
    %cst_222 = arith.constant dense<0.000000e+00> : vector<2x8x8xf32>
    %607 = tpu.matmul %602, %604, %cst_222 {dimension_numbers = #tpu.dot_dimension_numbers<[2], [2], [1], [1], [0, 0, 0, 1, 1, 1], [0], [0]>} : vector<2x8x4xf32>, vector<2x8x4xf32>, vector<2x8x8xf32> -> vector<2x8x8xf32>
    "tpu.trace_stop"() : () -> ()
    %cst_223 = arith.constant 5.000000e-01 : f32
    %608 = vector.broadcast %cst_223 : f32 to vector<2x8x8xf32>
    %609 = arith.mulf %607, %608 : vector<2x8x8xf32>
    %cst_224 = arith.constant dense<0xFF800000> : vector<2x8xf32>
    %610 = vector.multi_reduction <maximumf>, %609, %cst_224 [2] : vector<2x8x8xf32> to vector<2x8xf32>
    %611 = vector.shape_cast %610 : vector<2x8xf32> to vector<2x8x1xf32>
    %612 = vector.broadcast %611 : vector<2x8x1xf32> to vector<2x8x8xf32>
    %613 = arith.subf %609, %612 : vector<2x8x8xf32>
    %614 = math.exp %613 : vector<2x8x8xf32>
    %cst_225 = arith.constant dense<0.000000e+00> : vector<2x8xf32>
    %615 = vector.multi_reduction <add>, %614, %cst_225 [2] : vector<2x8x8xf32> to vector<2x8xf32>
    %616 = vector.shape_cast %615 : vector<2x8xf32> to vector<2x8x1xf32>
    %617 = tpu.reciprocal %616 {approx = true} : vector<2x8x1xf32> -> vector<2x8x1xf32>
    %618 = vector.broadcast %617 : vector<2x8x1xf32> to vector<2x8x8xf32>
    %619 = arith.mulf %614, %618 : vector<2x8x8xf32>
    "tpu.trace_start"() <{level = 10 : i32, message = "bnm,bmd->bnd"}> : () -> ()
    %cst_226 = arith.constant dense<0.000000e+00> : vector<2x8x4xf32>
    %620 = tpu.matmul %619, %606, %cst_226 {dimension_numbers = #tpu.dot_dimension_numbers<[2], [1], [1], [2], [0, 0, 0, 1, 1, 2], [0], [0]>} : vector<2x8x8xf32>, vector<2x8x4xf32>, vector<2x8x4xf32> -> vector<2x8x4xf32>
    "tpu.trace_stop"() : () -> ()
    %621 = vector.shape_cast %620 : vector<2x8x4xf32> to vector<16x4xf32>
    %622 = vector.extract_strided_slice %599 {offsets = [0, 0], sizes = [4, 32], strides = [1, 1]} : vector<32x32xf32> to vector<4x32xf32>
    %cst_227 = arith.constant dense<0.000000e+00> : vector<16x32xf32>
    %623 = tpu.matmul %621, %622, %cst_227 {dimension_numbers = #tpu.dot_dimension_numbers<[1], [0], [0], [1], [0, 0, 1, 1], [], []>} : vector<16x4xf32>, vector<4x32xf32>, vector<16x32xf32> -> vector<16x32xf32>
    %624 = arith.addf %600, %623 : vector<16x32xf32>
    %625 = vector.extract_strided_slice %597 {offsets = [0, 4], sizes = [16, 4], strides = [1, 1]} : vector<16x96xf32> to vector<16x4xf32>
    %626 = vector.shape_cast %625 : vector<16x4xf32> to vector<2x8x4xf32>
    %627 = vector.extract_strided_slice %597 {offsets = [0, 36], sizes = [16, 4], strides = [1, 1]} : vector<16x96xf32> to vector<16x4xf32>
    %628 = vector.shape_cast %627 : vector<16x4xf32> to vector<2x8x4xf32>
    %629 = vector.extract_strided_slice %597 {offsets = [0, 68], sizes = [16, 4], strides = [1, 1]} : vector<16x96xf32> to vector<16x4xf32>
    %630 = vector.shape_cast %629 : vector<16x4xf32> to vector<2x8x4xf32>
    "tpu.trace_start"() <{level = 10 : i32, message = "bnd,bmd->bnm"}> : () -> ()
    %cst_228 = arith.constant dense<0.000000e+00> : vector<2x8x8xf32>
    %631 = tpu.matmul %626, %628, %cst_228 {dimension_numbers = #tpu.dot_dimension_numbers<[2], [2], [1], [1], [0, 0, 0, 1, 1, 1], [0], [0]>} : vector<2x8x4xf32>, vector<2x8x4xf32>, vector<2x8x8xf32> -> vector<2x8x8xf32>
    "tpu.trace_stop"() : () -> ()
    %cst_229 = arith.constant 5.000000e-01 : f32
    %632 = vector.broadcast %cst_229 : f32 to vector<2x8x8xf32>
    %633 = arith.mulf %631, %632 : vector<2x8x8xf32>
    %cst_230 = arith.constant dense<0xFF800000> : vector<2x8xf32>
    %634 = vector.multi_reduction <maximumf>, %633, %cst_230 [2] : vector<2x8x8xf32> to vector<2x8xf32>
    %635 = vector.shape_cast %634 : vector<2x8xf32> to vector<2x8x1xf32>
    %636 = vector.broadcast %635 : vector<2x8x1xf32> to vector<2x8x8xf32>
    %637 = arith.subf %633, %636 : vector<2x8x8xf32>
    %638 = math.exp %637 : vector<2x8x8xf32>
    %cst_231 = arith.constant dense<0.000000e+00> : vector<2x8xf32>
    %639 = vector.multi_reduction <add>, %638, %cst_231 [2] : vector<2x8x8xf32> to vector<2x8xf32>
    %640 = vector.shape_cast %639 : vector<2x8xf32> to vector<2x8x1xf32>
    %641 = tpu.reciprocal %640 {approx = true} : vector<2x8x1xf32> -> vector<2x8x1xf32>
    %642 = vector.broadcast %641 : vector<2x8x1xf32> to vector<2x8x8xf32>
    %643 = arith.mulf %638, %642 : vector<2x8x8xf32>
    "tpu.trace_start"() <{level = 10 : i32, message = "bnm,bmd->bnd"}> : () -> ()
    %cst_232 = arith.constant dense<0.000000e+00> : vector<2x8x4xf32>
    %644 = tpu.matmul %643, %630, %cst_232 {dimension_numbers = #tpu.dot_dimension_numbers<[2], [1], [1], [2], [0, 0, 0, 1, 1, 2], [0], [0]>} : vector<2x8x8xf32>, vector<2x8x4xf32>, vector<2x8x4xf32> -> vector<2x8x4xf32>
    "tpu.trace_stop"() : () -> ()
    %645 = vector.shape_cast %644 : vector<2x8x4xf32> to vector<16x4xf32>
    %646 = vector.extract_strided_slice %599 {offsets = [4, 0], sizes = [4, 32], strides = [1, 1]} : vector<32x32xf32> to vector<4x32xf32>
    %cst_233 = arith.constant dense<0.000000e+00> : vector<16x32xf32>
    %647 = tpu.matmul %645, %646, %cst_233 {dimension_numbers = #tpu.dot_dimension_numbers<[1], [0], [0], [1], [0, 0, 1, 1], [], []>} : vector<16x4xf32>, vector<4x32xf32>, vector<16x32xf32> -> vector<16x32xf32>
    %648 = arith.addf %624, %647 : vector<16x32xf32>
    %649 = vector.extract_strided_slice %597 {offsets = [0, 8], sizes = [16, 4], strides = [1, 1]} : vector<16x96xf32> to vector<16x4xf32>
    %650 = vector.shape_cast %649 : vector<16x4xf32> to vector<2x8x4xf32>
    %651 = vector.extract_strided_slice %597 {offsets = [0, 40], sizes = [16, 4], strides = [1, 1]} : vector<16x96xf32> to vector<16x4xf32>
    %652 = vector.shape_cast %651 : vector<16x4xf32> to vector<2x8x4xf32>
    %653 = vector.extract_strided_slice %597 {offsets = [0, 72], sizes = [16, 4], strides = [1, 1]} : vector<16x96xf32> to vector<16x4xf32>
    %654 = vector.shape_cast %653 : vector<16x4xf32> to vector<2x8x4xf32>
    "tpu.trace_start"() <{level = 10 : i32, message = "bnd,bmd->bnm"}> : () -> ()
    %cst_234 = arith.constant dense<0.000000e+00> : vector<2x8x8xf32>
    %655 = tpu.matmul %650, %652, %cst_234 {dimension_numbers = #tpu.dot_dimension_numbers<[2], [2], [1], [1], [0, 0, 0, 1, 1, 1], [0], [0]>} : vector<2x8x4xf32>, vector<2x8x4xf32>, vector<2x8x8xf32> -> vector<2x8x8xf32>
    "tpu.trace_stop"() : () -> ()
    %cst_235 = arith.constant 5.000000e-01 : f32
    %656 = vector.broadcast %cst_235 : f32 to vector<2x8x8xf32>
    %657 = arith.mulf %655, %656 : vector<2x8x8xf32>
    %cst_236 = arith.constant dense<0xFF800000> : vector<2x8xf32>
    %658 = vector.multi_reduction <maximumf>, %657, %cst_236 [2] : vector<2x8x8xf32> to vector<2x8xf32>
    %659 = vector.shape_cast %658 : vector<2x8xf32> to vector<2x8x1xf32>
    %660 = vector.broadcast %659 : vector<2x8x1xf32> to vector<2x8x8xf32>
    %661 = arith.subf %657, %660 : vector<2x8x8xf32>
    %662 = math.exp %661 : vector<2x8x8xf32>
    %cst_237 = arith.constant dense<0.000000e+00> : vector<2x8xf32>
    %663 = vector.multi_reduction <add>, %662, %cst_237 [2] : vector<2x8x8xf32> to vector<2x8xf32>
    %664 = vector.shape_cast %663 : vector<2x8xf32> to vector<2x8x1xf32>
    %665 = tpu.reciprocal %664 {approx = true} : vector<2x8x1xf32> -> vector<2x8x1xf32>
    %666 = vector.broadcast %665 : vector<2x8x1xf32> to vector<2x8x8xf32>
    %667 = arith.mulf %662, %666 : vector<2x8x8xf32>
    "tpu.trace_start"() <{level = 10 : i32, message = "bnm,bmd->bnd"}> : () -> ()
    %cst_238 = arith.constant dense<0.000000e+00> : vector<2x8x4xf32>
    %668 = tpu.matmul %667, %654, %cst_238 {dimension_numbers = #tpu.dot_dimension_numbers<[2], [1], [1], [2], [0, 0, 0, 1, 1, 2], [0], [0]>} : vector<2x8x8xf32>, vector<2x8x4xf32>, vector<2x8x4xf32> -> vector<2x8x4xf32>
    "tpu.trace_stop"() : () -> ()
    %669 = vector.shape_cast %668 : vector<2x8x4xf32> to vector<16x4xf32>
    %670 = vector.extract_strided_slice %599 {offsets = [8, 0], sizes = [4, 32], strides = [1, 1]} : vector<32x32xf32> to vector<4x32xf32>
    %cst_239 = arith.constant dense<0.000000e+00> : vector<16x32xf32>
    %671 = tpu.matmul %669, %670, %cst_239 {dimension_numbers = #tpu.dot_dimension_numbers<[1], [0], [0], [1], [0, 0, 1, 1], [], []>} : vector<16x4xf32>, vector<4x32xf32>, vector<16x32xf32> -> vector<16x32xf32>
    %672 = arith.addf %648, %671 : vector<16x32xf32>
    %673 = vector.extract_strided_slice %597 {offsets = [0, 12], sizes = [16, 4], strides = [1, 1]} : vector<16x96xf32> to vector<16x4xf32>
    %674 = vector.shape_cast %673 : vector<16x4xf32> to vector<2x8x4xf32>
    %675 = vector.extract_strided_slice %597 {offsets = [0, 44], sizes = [16, 4], strides = [1, 1]} : vector<16x96xf32> to vector<16x4xf32>
    %676 = vector.shape_cast %675 : vector<16x4xf32> to vector<2x8x4xf32>
    %677 = vector.extract_strided_slice %597 {offsets = [0, 76], sizes = [16, 4], strides = [1, 1]} : vector<16x96xf32> to vector<16x4xf32>
    %678 = vector.shape_cast %677 : vector<16x4xf32> to vector<2x8x4xf32>
    "tpu.trace_start"() <{level = 10 : i32, message = "bnd,bmd->bnm"}> : () -> ()
    %cst_240 = arith.constant dense<0.000000e+00> : vector<2x8x8xf32>
    %679 = tpu.matmul %674, %676, %cst_240 {dimension_numbers = #tpu.dot_dimension_numbers<[2], [2], [1], [1], [0, 0, 0, 1, 1, 1], [0], [0]>} : vector<2x8x4xf32>, vector<2x8x4xf32>, vector<2x8x8xf32> -> vector<2x8x8xf32>
    "tpu.trace_stop"() : () -> ()
    %cst_241 = arith.constant 5.000000e-01 : f32
    %680 = vector.broadcast %cst_241 : f32 to vector<2x8x8xf32>
    %681 = arith.mulf %679, %680 : vector<2x8x8xf32>
    %cst_242 = arith.constant dense<0xFF800000> : vector<2x8xf32>
    %682 = vector.multi_reduction <maximumf>, %681, %cst_242 [2] : vector<2x8x8xf32> to vector<2x8xf32>
    %683 = vector.shape_cast %682 : vector<2x8xf32> to vector<2x8x1xf32>
    %684 = vector.broadcast %683 : vector<2x8x1xf32> to vector<2x8x8xf32>
    %685 = arith.subf %681, %684 : vector<2x8x8xf32>
    %686 = math.exp %685 : vector<2x8x8xf32>
    %cst_243 = arith.constant dense<0.000000e+00> : vector<2x8xf32>
    %687 = vector.multi_reduction <add>, %686, %cst_243 [2] : vector<2x8x8xf32> to vector<2x8xf32>
    %688 = vector.shape_cast %687 : vector<2x8xf32> to vector<2x8x1xf32>
    %689 = tpu.reciprocal %688 {approx = true} : vector<2x8x1xf32> -> vector<2x8x1xf32>
    %690 = vector.broadcast %689 : vector<2x8x1xf32> to vector<2x8x8xf32>
    %691 = arith.mulf %686, %690 : vector<2x8x8xf32>
    "tpu.trace_start"() <{level = 10 : i32, message = "bnm,bmd->bnd"}> : () -> ()
    %cst_244 = arith.constant dense<0.000000e+00> : vector<2x8x4xf32>
    %692 = tpu.matmul %691, %678, %cst_244 {dimension_numbers = #tpu.dot_dimension_numbers<[2], [1], [1], [2], [0, 0, 0, 1, 1, 2], [0], [0]>} : vector<2x8x8xf32>, vector<2x8x4xf32>, vector<2x8x4xf32> -> vector<2x8x4xf32>
    "tpu.trace_stop"() : () -> ()
    %693 = vector.shape_cast %692 : vector<2x8x4xf32> to vector<16x4xf32>
    %694 = vector.extract_strided_slice %599 {offsets = [12, 0], sizes = [4, 32], strides = [1, 1]} : vector<32x32xf32> to vector<4x32xf32>
    %cst_245 = arith.constant dense<0.000000e+00> : vector<16x32xf32>
    %695 = tpu.matmul %693, %694, %cst_245 {dimension_numbers = #tpu.dot_dimension_numbers<[1], [0], [0], [1], [0, 0, 1, 1], [], []>} : vector<16x4xf32>, vector<4x32xf32>, vector<16x32xf32> -> vector<16x32xf32>
    %696 = arith.addf %672, %695 : vector<16x32xf32>
    %697 = vector.extract_strided_slice %597 {offsets = [0, 16], sizes = [16, 4], strides = [1, 1]} : vector<16x96xf32> to vector<16x4xf32>
    %698 = vector.shape_cast %697 : vector<16x4xf32> to vector<2x8x4xf32>
    %699 = vector.extract_strided_slice %597 {offsets = [0, 48], sizes = [16, 4], strides = [1, 1]} : vector<16x96xf32> to vector<16x4xf32>
    %700 = vector.shape_cast %699 : vector<16x4xf32> to vector<2x8x4xf32>
    %701 = vector.extract_strided_slice %597 {offsets = [0, 80], sizes = [16, 4], strides = [1, 1]} : vector<16x96xf32> to vector<16x4xf32>
    %702 = vector.shape_cast %701 : vector<16x4xf32> to vector<2x8x4xf32>
    "tpu.trace_start"() <{level = 10 : i32, message = "bnd,bmd->bnm"}> : () -> ()
    %cst_246 = arith.constant dense<0.000000e+00> : vector<2x8x8xf32>
    %703 = tpu.matmul %698, %700, %cst_246 {dimension_numbers = #tpu.dot_dimension_numbers<[2], [2], [1], [1], [0, 0, 0, 1, 1, 1], [0], [0]>} : vector<2x8x4xf32>, vector<2x8x4xf32>, vector<2x8x8xf32> -> vector<2x8x8xf32>
    "tpu.trace_stop"() : () -> ()
    %cst_247 = arith.constant 5.000000e-01 : f32
    %704 = vector.broadcast %cst_247 : f32 to vector<2x8x8xf32>
    %705 = arith.mulf %703, %704 : vector<2x8x8xf32>
    %cst_248 = arith.constant dense<0xFF800000> : vector<2x8xf32>
    %706 = vector.multi_reduction <maximumf>, %705, %cst_248 [2] : vector<2x8x8xf32> to vector<2x8xf32>
    %707 = vector.shape_cast %706 : vector<2x8xf32> to vector<2x8x1xf32>
    %708 = vector.broadcast %707 : vector<2x8x1xf32> to vector<2x8x8xf32>
    %709 = arith.subf %705, %708 : vector<2x8x8xf32>
    %710 = math.exp %709 : vector<2x8x8xf32>
    %cst_249 = arith.constant dense<0.000000e+00> : vector<2x8xf32>
    %711 = vector.multi_reduction <add>, %710, %cst_249 [2] : vector<2x8x8xf32> to vector<2x8xf32>
    %712 = vector.shape_cast %711 : vector<2x8xf32> to vector<2x8x1xf32>
    %713 = tpu.reciprocal %712 {approx = true} : vector<2x8x1xf32> -> vector<2x8x1xf32>
    %714 = vector.broadcast %713 : vector<2x8x1xf32> to vector<2x8x8xf32>
    %715 = arith.mulf %710, %714 : vector<2x8x8xf32>
    "tpu.trace_start"() <{level = 10 : i32, message = "bnm,bmd->bnd"}> : () -> ()
    %cst_250 = arith.constant dense<0.000000e+00> : vector<2x8x4xf32>
    %716 = tpu.matmul %715, %702, %cst_250 {dimension_numbers = #tpu.dot_dimension_numbers<[2], [1], [1], [2], [0, 0, 0, 1, 1, 2], [0], [0]>} : vector<2x8x8xf32>, vector<2x8x4xf32>, vector<2x8x4xf32> -> vector<2x8x4xf32>
    "tpu.trace_stop"() : () -> ()
    %717 = vector.shape_cast %716 : vector<2x8x4xf32> to vector<16x4xf32>
    %718 = vector.extract_strided_slice %599 {offsets = [16, 0], sizes = [4, 32], strides = [1, 1]} : vector<32x32xf32> to vector<4x32xf32>
    %cst_251 = arith.constant dense<0.000000e+00> : vector<16x32xf32>
    %719 = tpu.matmul %717, %718, %cst_251 {dimension_numbers = #tpu.dot_dimension_numbers<[1], [0], [0], [1], [0, 0, 1, 1], [], []>} : vector<16x4xf32>, vector<4x32xf32>, vector<16x32xf32> -> vector<16x32xf32>
    %720 = arith.addf %696, %719 : vector<16x32xf32>
    %721 = vector.extract_strided_slice %597 {offsets = [0, 20], sizes = [16, 4], strides = [1, 1]} : vector<16x96xf32> to vector<16x4xf32>
    %722 = vector.shape_cast %721 : vector<16x4xf32> to vector<2x8x4xf32>
    %723 = vector.extract_strided_slice %597 {offsets = [0, 52], sizes = [16, 4], strides = [1, 1]} : vector<16x96xf32> to vector<16x4xf32>
    %724 = vector.shape_cast %723 : vector<16x4xf32> to vector<2x8x4xf32>
    %725 = vector.extract_strided_slice %597 {offsets = [0, 84], sizes = [16, 4], strides = [1, 1]} : vector<16x96xf32> to vector<16x4xf32>
    %726 = vector.shape_cast %725 : vector<16x4xf32> to vector<2x8x4xf32>
    "tpu.trace_start"() <{level = 10 : i32, message = "bnd,bmd->bnm"}> : () -> ()
    %cst_252 = arith.constant dense<0.000000e+00> : vector<2x8x8xf32>
    %727 = tpu.matmul %722, %724, %cst_252 {dimension_numbers = #tpu.dot_dimension_numbers<[2], [2], [1], [1], [0, 0, 0, 1, 1, 1], [0], [0]>} : vector<2x8x4xf32>, vector<2x8x4xf32>, vector<2x8x8xf32> -> vector<2x8x8xf32>
    "tpu.trace_stop"() : () -> ()
    %cst_253 = arith.constant 5.000000e-01 : f32
    %728 = vector.broadcast %cst_253 : f32 to vector<2x8x8xf32>
    %729 = arith.mulf %727, %728 : vector<2x8x8xf32>
    %cst_254 = arith.constant dense<0xFF800000> : vector<2x8xf32>
    %730 = vector.multi_reduction <maximumf>, %729, %cst_254 [2] : vector<2x8x8xf32> to vector<2x8xf32>
    %731 = vector.shape_cast %730 : vector<2x8xf32> to vector<2x8x1xf32>
    %732 = vector.broadcast %731 : vector<2x8x1xf32> to vector<2x8x8xf32>
    %733 = arith.subf %729, %732 : vector<2x8x8xf32>
    %734 = math.exp %733 : vector<2x8x8xf32>
    %cst_255 = arith.constant dense<0.000000e+00> : vector<2x8xf32>
    %735 = vector.multi_reduction <add>, %734, %cst_255 [2] : vector<2x8x8xf32> to vector<2x8xf32>
    %736 = vector.shape_cast %735 : vector<2x8xf32> to vector<2x8x1xf32>
    %737 = tpu.reciprocal %736 {approx = true} : vector<2x8x1xf32> -> vector<2x8x1xf32>
    %738 = vector.broadcast %737 : vector<2x8x1xf32> to vector<2x8x8xf32>
    %739 = arith.mulf %734, %738 : vector<2x8x8xf32>
    "tpu.trace_start"() <{level = 10 : i32, message = "bnm,bmd->bnd"}> : () -> ()
    %cst_256 = arith.constant dense<0.000000e+00> : vector<2x8x4xf32>
    %740 = tpu.matmul %739, %726, %cst_256 {dimension_numbers = #tpu.dot_dimension_numbers<[2], [1], [1], [2], [0, 0, 0, 1, 1, 2], [0], [0]>} : vector<2x8x8xf32>, vector<2x8x4xf32>, vector<2x8x4xf32> -> vector<2x8x4xf32>
    "tpu.trace_stop"() : () -> ()
    %741 = vector.shape_cast %740 : vector<2x8x4xf32> to vector<16x4xf32>
    %742 = vector.extract_strided_slice %599 {offsets = [20, 0], sizes = [4, 32], strides = [1, 1]} : vector<32x32xf32> to vector<4x32xf32>
    %cst_257 = arith.constant dense<0.000000e+00> : vector<16x32xf32>
    %743 = tpu.matmul %741, %742, %cst_257 {dimension_numbers = #tpu.dot_dimension_numbers<[1], [0], [0], [1], [0, 0, 1, 1], [], []>} : vector<16x4xf32>, vector<4x32xf32>, vector<16x32xf32> -> vector<16x32xf32>
    %744 = arith.addf %720, %743 : vector<16x32xf32>
    %745 = vector.extract_strided_slice %597 {offsets = [0, 24], sizes = [16, 4], strides = [1, 1]} : vector<16x96xf32> to vector<16x4xf32>
    %746 = vector.shape_cast %745 : vector<16x4xf32> to vector<2x8x4xf32>
    %747 = vector.extract_strided_slice %597 {offsets = [0, 56], sizes = [16, 4], strides = [1, 1]} : vector<16x96xf32> to vector<16x4xf32>
    %748 = vector.shape_cast %747 : vector<16x4xf32> to vector<2x8x4xf32>
    %749 = vector.extract_strided_slice %597 {offsets = [0, 88], sizes = [16, 4], strides = [1, 1]} : vector<16x96xf32> to vector<16x4xf32>
    %750 = vector.shape_cast %749 : vector<16x4xf32> to vector<2x8x4xf32>
    "tpu.trace_start"() <{level = 10 : i32, message = "bnd,bmd->bnm"}> : () -> ()
    %cst_258 = arith.constant dense<0.000000e+00> : vector<2x8x8xf32>
    %751 = tpu.matmul %746, %748, %cst_258 {dimension_numbers = #tpu.dot_dimension_numbers<[2], [2], [1], [1], [0, 0, 0, 1, 1, 1], [0], [0]>} : vector<2x8x4xf32>, vector<2x8x4xf32>, vector<2x8x8xf32> -> vector<2x8x8xf32>
    "tpu.trace_stop"() : () -> ()
    %cst_259 = arith.constant 5.000000e-01 : f32
    %752 = vector.broadcast %cst_259 : f32 to vector<2x8x8xf32>
    %753 = arith.mulf %751, %752 : vector<2x8x8xf32>
    %cst_260 = arith.constant dense<0xFF800000> : vector<2x8xf32>
    %754 = vector.multi_reduction <maximumf>, %753, %cst_260 [2] : vector<2x8x8xf32> to vector<2x8xf32>
    %755 = vector.shape_cast %754 : vector<2x8xf32> to vector<2x8x1xf32>
    %756 = vector.broadcast %755 : vector<2x8x1xf32> to vector<2x8x8xf32>
    %757 = arith.subf %753, %756 : vector<2x8x8xf32>
    %758 = math.exp %757 : vector<2x8x8xf32>
    %cst_261 = arith.constant dense<0.000000e+00> : vector<2x8xf32>
    %759 = vector.multi_reduction <add>, %758, %cst_261 [2] : vector<2x8x8xf32> to vector<2x8xf32>
    %760 = vector.shape_cast %759 : vector<2x8xf32> to vector<2x8x1xf32>
    %761 = tpu.reciprocal %760 {approx = true} : vector<2x8x1xf32> -> vector<2x8x1xf32>
    %762 = vector.broadcast %761 : vector<2x8x1xf32> to vector<2x8x8xf32>
    %763 = arith.mulf %758, %762 : vector<2x8x8xf32>
    "tpu.trace_start"() <{level = 10 : i32, message = "bnm,bmd->bnd"}> : () -> ()
    %cst_262 = arith.constant dense<0.000000e+00> : vector<2x8x4xf32>
    %764 = tpu.matmul %763, %750, %cst_262 {dimension_numbers = #tpu.dot_dimension_numbers<[2], [1], [1], [2], [0, 0, 0, 1, 1, 2], [0], [0]>} : vector<2x8x8xf32>, vector<2x8x4xf32>, vector<2x8x4xf32> -> vector<2x8x4xf32>
    "tpu.trace_stop"() : () -> ()
    %765 = vector.shape_cast %764 : vector<2x8x4xf32> to vector<16x4xf32>
    %766 = vector.extract_strided_slice %599 {offsets = [24, 0], sizes = [4, 32], strides = [1, 1]} : vector<32x32xf32> to vector<4x32xf32>
    %cst_263 = arith.constant dense<0.000000e+00> : vector<16x32xf32>
    %767 = tpu.matmul %765, %766, %cst_263 {dimension_numbers = #tpu.dot_dimension_numbers<[1], [0], [0], [1], [0, 0, 1, 1], [], []>} : vector<16x4xf32>, vector<4x32xf32>, vector<16x32xf32> -> vector<16x32xf32>
    %768 = arith.addf %744, %767 : vector<16x32xf32>
    %769 = vector.extract_strided_slice %597 {offsets = [0, 28], sizes = [16, 4], strides = [1, 1]} : vector<16x96xf32> to vector<16x4xf32>
    %770 = vector.shape_cast %769 : vector<16x4xf32> to vector<2x8x4xf32>
    %771 = vector.extract_strided_slice %597 {offsets = [0, 60], sizes = [16, 4], strides = [1, 1]} : vector<16x96xf32> to vector<16x4xf32>
    %772 = vector.shape_cast %771 : vector<16x4xf32> to vector<2x8x4xf32>
    %773 = vector.extract_strided_slice %597 {offsets = [0, 92], sizes = [16, 4], strides = [1, 1]} : vector<16x96xf32> to vector<16x4xf32>
    %774 = vector.shape_cast %773 : vector<16x4xf32> to vector<2x8x4xf32>
    "tpu.trace_start"() <{level = 10 : i32, message = "bnd,bmd->bnm"}> : () -> ()
    %cst_264 = arith.constant dense<0.000000e+00> : vector<2x8x8xf32>
    %775 = tpu.matmul %770, %772, %cst_264 {dimension_numbers = #tpu.dot_dimension_numbers<[2], [2], [1], [1], [0, 0, 0, 1, 1, 1], [0], [0]>} : vector<2x8x4xf32>, vector<2x8x4xf32>, vector<2x8x8xf32> -> vector<2x8x8xf32>
    "tpu.trace_stop"() : () -> ()
    %cst_265 = arith.constant 5.000000e-01 : f32
    %776 = vector.broadcast %cst_265 : f32 to vector<2x8x8xf32>
    %777 = arith.mulf %775, %776 : vector<2x8x8xf32>
    %cst_266 = arith.constant dense<0xFF800000> : vector<2x8xf32>
    %778 = vector.multi_reduction <maximumf>, %777, %cst_266 [2] : vector<2x8x8xf32> to vector<2x8xf32>
    %779 = vector.shape_cast %778 : vector<2x8xf32> to vector<2x8x1xf32>
    %780 = vector.broadcast %779 : vector<2x8x1xf32> to vector<2x8x8xf32>
    %781 = arith.subf %777, %780 : vector<2x8x8xf32>
    %782 = math.exp %781 : vector<2x8x8xf32>
    %cst_267 = arith.constant dense<0.000000e+00> : vector<2x8xf32>
    %783 = vector.multi_reduction <add>, %782, %cst_267 [2] : vector<2x8x8xf32> to vector<2x8xf32>
    %784 = vector.shape_cast %783 : vector<2x8xf32> to vector<2x8x1xf32>
    %785 = tpu.reciprocal %784 {approx = true} : vector<2x8x1xf32> -> vector<2x8x1xf32>
    %786 = vector.broadcast %785 : vector<2x8x1xf32> to vector<2x8x8xf32>
    %787 = arith.mulf %782, %786 : vector<2x8x8xf32>
    "tpu.trace_start"() <{level = 10 : i32, message = "bnm,bmd->bnd"}> : () -> ()
    %cst_268 = arith.constant dense<0.000000e+00> : vector<2x8x4xf32>
    %788 = tpu.matmul %787, %774, %cst_268 {dimension_numbers = #tpu.dot_dimension_numbers<[2], [1], [1], [2], [0, 0, 0, 1, 1, 2], [0], [0]>} : vector<2x8x8xf32>, vector<2x8x4xf32>, vector<2x8x4xf32> -> vector<2x8x4xf32>
    "tpu.trace_stop"() : () -> ()
    %789 = vector.shape_cast %788 : vector<2x8x4xf32> to vector<16x4xf32>
    %790 = vector.extract_strided_slice %599 {offsets = [28, 0], sizes = [4, 32], strides = [1, 1]} : vector<32x32xf32> to vector<4x32xf32>
    %cst_269 = arith.constant dense<0.000000e+00> : vector<16x32xf32>
    %791 = tpu.matmul %789, %790, %cst_269 {dimension_numbers = #tpu.dot_dimension_numbers<[1], [0], [0], [1], [0, 0, 1, 1], [], []>} : vector<16x4xf32>, vector<4x32xf32>, vector<16x32xf32> -> vector<16x32xf32>
    %792 = arith.addf %768, %791 : vector<16x32xf32>
    %793 = arith.addf %564, %792 : vector<16x32xf32>
    %c2_270 = arith.constant 2 : index
    %c0_271 = arith.constant 0 : index
    %c0_272 = arith.constant 0 : index
    %794 = vector.load %arg7[%c2_270, %c0_271, %c0_272] : memref<4x1x32xf32, #tpu.memory_space<vmem>>, vector<1x1x32xf32>
    %795 = vector.shape_cast %794 : vector<1x1x32xf32> to vector<1x32xf32>
    %796 = vector.broadcast %795 : vector<1x32xf32> to vector<16x32xf32>
    %797 = arith.addf %793, %796 : vector<16x32xf32>
    %c2_273 = arith.constant 2 : index
    %c0_274 = arith.constant 0 : index
    %c0_275 = arith.constant 0 : index
    %798 = vector.load %arg8[%c2_273, %c0_274, %c0_275] : memref<4x1x32xf32, #tpu.memory_space<vmem>>, vector<1x1x32xf32>
    %799 = vector.shape_cast %798 : vector<1x1x32xf32> to vector<1x32xf32>
    %c2_276 = arith.constant 2 : index
    %c0_277 = arith.constant 0 : index
    %c0_278 = arith.constant 0 : index
    %800 = vector.load %arg9[%c2_276, %c0_277, %c0_278] : memref<4x1x32xf32, #tpu.memory_space<vmem>>, vector<1x1x32xf32>
    %801 = vector.shape_cast %800 : vector<1x1x32xf32> to vector<1x32xf32>
    %cst_279 = arith.constant dense<0.000000e+00> : vector<16xf32>
    %802 = vector.multi_reduction <add>, %797, %cst_279 [1] : vector<16x32xf32> to vector<16xf32>
    %803 = vector.shape_cast %802 : vector<16xf32> to vector<16x1xf32>
    %cst_280 = arith.constant 3.200000e+01 : f32
    %804 = vector.broadcast %cst_280 : f32 to vector<16x1xf32>
    %805 = arith.divf %803, %804 : vector<16x1xf32>
    %806 = vector.broadcast %805 : vector<16x1xf32> to vector<16x32xf32>
    %807 = arith.subf %797, %806 : vector<16x32xf32>
    %808 = arith.mulf %807, %807 : vector<16x32xf32>
    %cst_281 = arith.constant dense<0.000000e+00> : vector<16xf32>
    %809 = vector.multi_reduction <add>, %808, %cst_281 [1] : vector<16x32xf32> to vector<16xf32>
    %810 = vector.shape_cast %809 : vector<16xf32> to vector<16x1xf32>
    %cst_282 = arith.constant 3.200000e+01 : f32
    %811 = vector.broadcast %cst_282 : f32 to vector<16x1xf32>
    %812 = arith.divf %810, %811 : vector<16x1xf32>
    %813 = vector.broadcast %805 : vector<16x1xf32> to vector<16x32xf32>
    %814 = arith.subf %797, %813 : vector<16x32xf32>
    %cst_283 = arith.constant 9.99999974E-6 : f32
    %815 = vector.broadcast %cst_283 : f32 to vector<16x1xf32>
    %816 = arith.addf %812, %815 : vector<16x1xf32>
    %817 = math.rsqrt %816 : vector<16x1xf32>
    %818 = vector.broadcast %817 : vector<16x1xf32> to vector<16x32xf32>
    %819 = arith.mulf %814, %818 : vector<16x32xf32>
    %820 = vector.broadcast %799 : vector<1x32xf32> to vector<16x32xf32>
    %821 = arith.mulf %819, %820 : vector<16x32xf32>
    %822 = vector.broadcast %801 : vector<1x32xf32> to vector<16x32xf32>
    %823 = arith.addf %821, %822 : vector<16x32xf32>
    %c2_284 = arith.constant 2 : index
    %c0_285 = arith.constant 0 : index
    %c0_286 = arith.constant 0 : index
    %824 = vector.load %arg10[%c2_284, %c0_285, %c0_286] : memref<4x32x128xf32, #tpu.memory_space<vmem>>, vector<1x32x128xf32>
    %825 = vector.shape_cast %824 : vector<1x32x128xf32> to vector<32x128xf32>
    %cst_287 = arith.constant dense<0.000000e+00> : vector<16x128xf32>
    %826 = tpu.matmul %823, %825, %cst_287 {dimension_numbers = #tpu.dot_dimension_numbers<[1], [0], [0], [1], [0, 0, 1, 1], [], []>} : vector<16x32xf32>, vector<32x128xf32>, vector<16x128xf32> -> vector<16x128xf32>
    %c2_288 = arith.constant 2 : index
    %c0_289 = arith.constant 0 : index
    %c0_290 = arith.constant 0 : index
    %827 = vector.load %arg11[%c2_288, %c0_289, %c0_290] : memref<4x1x128xf32, #tpu.memory_space<vmem>>, vector<1x1x128xf32>
    %828 = vector.shape_cast %827 : vector<1x1x128xf32> to vector<1x128xf32>
    %829 = vector.broadcast %828 : vector<1x128xf32> to vector<16x128xf32>
    %830 = arith.addf %826, %829 : vector<16x128xf32>
    %cst_291 = arith.constant 5.000000e-01 : f32
    %831 = vector.broadcast %cst_291 : f32 to vector<16x128xf32>
    %832 = arith.mulf %831, %830 : vector<16x128xf32>
    %cst_292 = arith.constant 0.707106769 : f32
    %833 = vector.broadcast %cst_292 : f32 to vector<16x128xf32>
    %834 = arith.mulf %830, %833 : vector<16x128xf32>
    %835 = math.erf %834 : vector<16x128xf32>
    %cst_293 = arith.constant 1.000000e+00 : f32
    %836 = vector.broadcast %cst_293 : f32 to vector<16x128xf32>
    %837 = arith.addf %836, %835 : vector<16x128xf32>
    %838 = arith.mulf %832, %837 : vector<16x128xf32>
    %c2_294 = arith.constant 2 : index
    %c0_295 = arith.constant 0 : index
    %c0_296 = arith.constant 0 : index
    %839 = vector.load %arg12[%c2_294, %c0_295, %c0_296] : memref<4x128x32xf32, #tpu.memory_space<vmem>>, vector<1x128x32xf32>
    %840 = vector.shape_cast %839 : vector<1x128x32xf32> to vector<128x32xf32>
    %cst_297 = arith.constant dense<0.000000e+00> : vector<16x32xf32>
    %841 = tpu.matmul %838, %840, %cst_297 {dimension_numbers = #tpu.dot_dimension_numbers<[1], [0], [0], [1], [0, 0, 1, 1], [], []>} : vector<16x128xf32>, vector<128x32xf32>, vector<16x32xf32> -> vector<16x32xf32>
    %c2_298 = arith.constant 2 : index
    %c0_299 = arith.constant 0 : index
    %c0_300 = arith.constant 0 : index
    %842 = vector.load %arg13[%c2_298, %c0_299, %c0_300] : memref<4x1x32xf32, #tpu.memory_space<vmem>>, vector<1x1x32xf32>
    %843 = vector.shape_cast %842 : vector<1x1x32xf32> to vector<1x32xf32>
    %844 = vector.broadcast %843 : vector<1x32xf32> to vector<16x32xf32>
    %845 = arith.addf %841, %844 : vector<16x32xf32>
    %846 = arith.addf %797, %845 : vector<16x32xf32>
    %c3 = arith.constant 3 : index
    %c0_301 = arith.constant 0 : index
    %c0_302 = arith.constant 0 : index
    %847 = vector.load %arg2[%c3, %c0_301, %c0_302] : memref<4x1x32xf32, #tpu.memory_space<vmem>>, vector<1x1x32xf32>
    %848 = vector.shape_cast %847 : vector<1x1x32xf32> to vector<1x32xf32>
    %c3_303 = arith.constant 3 : index
    %c0_304 = arith.constant 0 : index
    %c0_305 = arith.constant 0 : index
    %849 = vector.load %arg3[%c3_303, %c0_304, %c0_305] : memref<4x1x32xf32, #tpu.memory_space<vmem>>, vector<1x1x32xf32>
    %850 = vector.shape_cast %849 : vector<1x1x32xf32> to vector<1x32xf32>
    %cst_306 = arith.constant dense<0.000000e+00> : vector<16xf32>
    %851 = vector.multi_reduction <add>, %846, %cst_306 [1] : vector<16x32xf32> to vector<16xf32>
    %852 = vector.shape_cast %851 : vector<16xf32> to vector<16x1xf32>
    %cst_307 = arith.constant 3.200000e+01 : f32
    %853 = vector.broadcast %cst_307 : f32 to vector<16x1xf32>
    %854 = arith.divf %852, %853 : vector<16x1xf32>
    %855 = vector.broadcast %854 : vector<16x1xf32> to vector<16x32xf32>
    %856 = arith.subf %846, %855 : vector<16x32xf32>
    %857 = arith.mulf %856, %856 : vector<16x32xf32>
    %cst_308 = arith.constant dense<0.000000e+00> : vector<16xf32>
    %858 = vector.multi_reduction <add>, %857, %cst_308 [1] : vector<16x32xf32> to vector<16xf32>
    %859 = vector.shape_cast %858 : vector<16xf32> to vector<16x1xf32>
    %cst_309 = arith.constant 3.200000e+01 : f32
    %860 = vector.broadcast %cst_309 : f32 to vector<16x1xf32>
    %861 = arith.divf %859, %860 : vector<16x1xf32>
    %862 = vector.broadcast %854 : vector<16x1xf32> to vector<16x32xf32>
    %863 = arith.subf %846, %862 : vector<16x32xf32>
    %cst_310 = arith.constant 9.99999974E-6 : f32
    %864 = vector.broadcast %cst_310 : f32 to vector<16x1xf32>
    %865 = arith.addf %861, %864 : vector<16x1xf32>
    %866 = math.rsqrt %865 : vector<16x1xf32>
    %867 = vector.broadcast %866 : vector<16x1xf32> to vector<16x32xf32>
    %868 = arith.mulf %863, %867 : vector<16x32xf32>
    %869 = vector.broadcast %848 : vector<1x32xf32> to vector<16x32xf32>
    %870 = arith.mulf %868, %869 : vector<16x32xf32>
    %871 = vector.broadcast %850 : vector<1x32xf32> to vector<16x32xf32>
    %872 = arith.addf %870, %871 : vector<16x32xf32>
    %c3_311 = arith.constant 3 : index
    %c0_312 = arith.constant 0 : index
    %c0_313 = arith.constant 0 : index
    %873 = vector.load %arg4[%c3_311, %c0_312, %c0_313] : memref<4x32x96xf32, #tpu.memory_space<vmem>>, vector<1x32x96xf32>
    %874 = vector.shape_cast %873 : vector<1x32x96xf32> to vector<32x96xf32>
    %cst_314 = arith.constant dense<0.000000e+00> : vector<16x96xf32>
    %875 = tpu.matmul %872, %874, %cst_314 {dimension_numbers = #tpu.dot_dimension_numbers<[1], [0], [0], [1], [0, 0, 1, 1], [], []>} : vector<16x32xf32>, vector<32x96xf32>, vector<16x96xf32> -> vector<16x96xf32>
    %c3_315 = arith.constant 3 : index
    %c0_316 = arith.constant 0 : index
    %c0_317 = arith.constant 0 : index
    %876 = vector.load %arg5[%c3_315, %c0_316, %c0_317] : memref<4x1x96xf32, #tpu.memory_space<vmem>>, vector<1x1x96xf32>
    %877 = vector.shape_cast %876 : vector<1x1x96xf32> to vector<1x96xf32>
    %878 = vector.broadcast %877 : vector<1x96xf32> to vector<16x96xf32>
    %879 = arith.addf %875, %878 : vector<16x96xf32>
    %c3_318 = arith.constant 3 : index
    %c0_319 = arith.constant 0 : index
    %c0_320 = arith.constant 0 : index
    %880 = vector.load %arg6[%c3_318, %c0_319, %c0_320] : memref<4x32x32xf32, #tpu.memory_space<vmem>>, vector<1x32x32xf32>
    %881 = vector.shape_cast %880 : vector<1x32x32xf32> to vector<32x32xf32>
    %cst_321 = arith.constant 0.000000e+00 : f32
    %882 = vector.broadcast %cst_321 : f32 to vector<16x32xf32>
    %883 = vector.extract_strided_slice %879 {offsets = [0, 0], sizes = [16, 4], strides = [1, 1]} : vector<16x96xf32> to vector<16x4xf32>
    %884 = vector.shape_cast %883 : vector<16x4xf32> to vector<2x8x4xf32>
    %885 = vector.extract_strided_slice %879 {offsets = [0, 32], sizes = [16, 4], strides = [1, 1]} : vector<16x96xf32> to vector<16x4xf32>
    %886 = vector.shape_cast %885 : vector<16x4xf32> to vector<2x8x4xf32>
    %887 = vector.extract_strided_slice %879 {offsets = [0, 64], sizes = [16, 4], strides = [1, 1]} : vector<16x96xf32> to vector<16x4xf32>
    %888 = vector.shape_cast %887 : vector<16x4xf32> to vector<2x8x4xf32>
    "tpu.trace_start"() <{level = 10 : i32, message = "bnd,bmd->bnm"}> : () -> ()
    %cst_322 = arith.constant dense<0.000000e+00> : vector<2x8x8xf32>
    %889 = tpu.matmul %884, %886, %cst_322 {dimension_numbers = #tpu.dot_dimension_numbers<[2], [2], [1], [1], [0, 0, 0, 1, 1, 1], [0], [0]>} : vector<2x8x4xf32>, vector<2x8x4xf32>, vector<2x8x8xf32> -> vector<2x8x8xf32>
    "tpu.trace_stop"() : () -> ()
    %cst_323 = arith.constant 5.000000e-01 : f32
    %890 = vector.broadcast %cst_323 : f32 to vector<2x8x8xf32>
    %891 = arith.mulf %889, %890 : vector<2x8x8xf32>
    %cst_324 = arith.constant dense<0xFF800000> : vector<2x8xf32>
    %892 = vector.multi_reduction <maximumf>, %891, %cst_324 [2] : vector<2x8x8xf32> to vector<2x8xf32>
    %893 = vector.shape_cast %892 : vector<2x8xf32> to vector<2x8x1xf32>
    %894 = vector.broadcast %893 : vector<2x8x1xf32> to vector<2x8x8xf32>
    %895 = arith.subf %891, %894 : vector<2x8x8xf32>
    %896 = math.exp %895 : vector<2x8x8xf32>
    %cst_325 = arith.constant dense<0.000000e+00> : vector<2x8xf32>
    %897 = vector.multi_reduction <add>, %896, %cst_325 [2] : vector<2x8x8xf32> to vector<2x8xf32>
    %898 = vector.shape_cast %897 : vector<2x8xf32> to vector<2x8x1xf32>
    %899 = tpu.reciprocal %898 {approx = true} : vector<2x8x1xf32> -> vector<2x8x1xf32>
    %900 = vector.broadcast %899 : vector<2x8x1xf32> to vector<2x8x8xf32>
    %901 = arith.mulf %896, %900 : vector<2x8x8xf32>
    "tpu.trace_start"() <{level = 10 : i32, message = "bnm,bmd->bnd"}> : () -> ()
    %cst_326 = arith.constant dense<0.000000e+00> : vector<2x8x4xf32>
    %902 = tpu.matmul %901, %888, %cst_326 {dimension_numbers = #tpu.dot_dimension_numbers<[2], [1], [1], [2], [0, 0, 0, 1, 1, 2], [0], [0]>} : vector<2x8x8xf32>, vector<2x8x4xf32>, vector<2x8x4xf32> -> vector<2x8x4xf32>
    "tpu.trace_stop"() : () -> ()
    %903 = vector.shape_cast %902 : vector<2x8x4xf32> to vector<16x4xf32>
    %904 = vector.extract_strided_slice %881 {offsets = [0, 0], sizes = [4, 32], strides = [1, 1]} : vector<32x32xf32> to vector<4x32xf32>
    %cst_327 = arith.constant dense<0.000000e+00> : vector<16x32xf32>
    %905 = tpu.matmul %903, %904, %cst_327 {dimension_numbers = #tpu.dot_dimension_numbers<[1], [0], [0], [1], [0, 0, 1, 1], [], []>} : vector<16x4xf32>, vector<4x32xf32>, vector<16x32xf32> -> vector<16x32xf32>
    %906 = arith.addf %882, %905 : vector<16x32xf32>
    %907 = vector.extract_strided_slice %879 {offsets = [0, 4], sizes = [16, 4], strides = [1, 1]} : vector<16x96xf32> to vector<16x4xf32>
    %908 = vector.shape_cast %907 : vector<16x4xf32> to vector<2x8x4xf32>
    %909 = vector.extract_strided_slice %879 {offsets = [0, 36], sizes = [16, 4], strides = [1, 1]} : vector<16x96xf32> to vector<16x4xf32>
    %910 = vector.shape_cast %909 : vector<16x4xf32> to vector<2x8x4xf32>
    %911 = vector.extract_strided_slice %879 {offsets = [0, 68], sizes = [16, 4], strides = [1, 1]} : vector<16x96xf32> to vector<16x4xf32>
    %912 = vector.shape_cast %911 : vector<16x4xf32> to vector<2x8x4xf32>
    "tpu.trace_start"() <{level = 10 : i32, message = "bnd,bmd->bnm"}> : () -> ()
    %cst_328 = arith.constant dense<0.000000e+00> : vector<2x8x8xf32>
    %913 = tpu.matmul %908, %910, %cst_328 {dimension_numbers = #tpu.dot_dimension_numbers<[2], [2], [1], [1], [0, 0, 0, 1, 1, 1], [0], [0]>} : vector<2x8x4xf32>, vector<2x8x4xf32>, vector<2x8x8xf32> -> vector<2x8x8xf32>
    "tpu.trace_stop"() : () -> ()
    %cst_329 = arith.constant 5.000000e-01 : f32
    %914 = vector.broadcast %cst_329 : f32 to vector<2x8x8xf32>
    %915 = arith.mulf %913, %914 : vector<2x8x8xf32>
    %cst_330 = arith.constant dense<0xFF800000> : vector<2x8xf32>
    %916 = vector.multi_reduction <maximumf>, %915, %cst_330 [2] : vector<2x8x8xf32> to vector<2x8xf32>
    %917 = vector.shape_cast %916 : vector<2x8xf32> to vector<2x8x1xf32>
    %918 = vector.broadcast %917 : vector<2x8x1xf32> to vector<2x8x8xf32>
    %919 = arith.subf %915, %918 : vector<2x8x8xf32>
    %920 = math.exp %919 : vector<2x8x8xf32>
    %cst_331 = arith.constant dense<0.000000e+00> : vector<2x8xf32>
    %921 = vector.multi_reduction <add>, %920, %cst_331 [2] : vector<2x8x8xf32> to vector<2x8xf32>
    %922 = vector.shape_cast %921 : vector<2x8xf32> to vector<2x8x1xf32>
    %923 = tpu.reciprocal %922 {approx = true} : vector<2x8x1xf32> -> vector<2x8x1xf32>
    %924 = vector.broadcast %923 : vector<2x8x1xf32> to vector<2x8x8xf32>
    %925 = arith.mulf %920, %924 : vector<2x8x8xf32>
    "tpu.trace_start"() <{level = 10 : i32, message = "bnm,bmd->bnd"}> : () -> ()
    %cst_332 = arith.constant dense<0.000000e+00> : vector<2x8x4xf32>
    %926 = tpu.matmul %925, %912, %cst_332 {dimension_numbers = #tpu.dot_dimension_numbers<[2], [1], [1], [2], [0, 0, 0, 1, 1, 2], [0], [0]>} : vector<2x8x8xf32>, vector<2x8x4xf32>, vector<2x8x4xf32> -> vector<2x8x4xf32>
    "tpu.trace_stop"() : () -> ()
    %927 = vector.shape_cast %926 : vector<2x8x4xf32> to vector<16x4xf32>
    %928 = vector.extract_strided_slice %881 {offsets = [4, 0], sizes = [4, 32], strides = [1, 1]} : vector<32x32xf32> to vector<4x32xf32>
    %cst_333 = arith.constant dense<0.000000e+00> : vector<16x32xf32>
    %929 = tpu.matmul %927, %928, %cst_333 {dimension_numbers = #tpu.dot_dimension_numbers<[1], [0], [0], [1], [0, 0, 1, 1], [], []>} : vector<16x4xf32>, vector<4x32xf32>, vector<16x32xf32> -> vector<16x32xf32>
    %930 = arith.addf %906, %929 : vector<16x32xf32>
    %931 = vector.extract_strided_slice %879 {offsets = [0, 8], sizes = [16, 4], strides = [1, 1]} : vector<16x96xf32> to vector<16x4xf32>
    %932 = vector.shape_cast %931 : vector<16x4xf32> to vector<2x8x4xf32>
    %933 = vector.extract_strided_slice %879 {offsets = [0, 40], sizes = [16, 4], strides = [1, 1]} : vector<16x96xf32> to vector<16x4xf32>
    %934 = vector.shape_cast %933 : vector<16x4xf32> to vector<2x8x4xf32>
    %935 = vector.extract_strided_slice %879 {offsets = [0, 72], sizes = [16, 4], strides = [1, 1]} : vector<16x96xf32> to vector<16x4xf32>
    %936 = vector.shape_cast %935 : vector<16x4xf32> to vector<2x8x4xf32>
    "tpu.trace_start"() <{level = 10 : i32, message = "bnd,bmd->bnm"}> : () -> ()
    %cst_334 = arith.constant dense<0.000000e+00> : vector<2x8x8xf32>
    %937 = tpu.matmul %932, %934, %cst_334 {dimension_numbers = #tpu.dot_dimension_numbers<[2], [2], [1], [1], [0, 0, 0, 1, 1, 1], [0], [0]>} : vector<2x8x4xf32>, vector<2x8x4xf32>, vector<2x8x8xf32> -> vector<2x8x8xf32>
    "tpu.trace_stop"() : () -> ()
    %cst_335 = arith.constant 5.000000e-01 : f32
    %938 = vector.broadcast %cst_335 : f32 to vector<2x8x8xf32>
    %939 = arith.mulf %937, %938 : vector<2x8x8xf32>
    %cst_336 = arith.constant dense<0xFF800000> : vector<2x8xf32>
    %940 = vector.multi_reduction <maximumf>, %939, %cst_336 [2] : vector<2x8x8xf32> to vector<2x8xf32>
    %941 = vector.shape_cast %940 : vector<2x8xf32> to vector<2x8x1xf32>
    %942 = vector.broadcast %941 : vector<2x8x1xf32> to vector<2x8x8xf32>
    %943 = arith.subf %939, %942 : vector<2x8x8xf32>
    %944 = math.exp %943 : vector<2x8x8xf32>
    %cst_337 = arith.constant dense<0.000000e+00> : vector<2x8xf32>
    %945 = vector.multi_reduction <add>, %944, %cst_337 [2] : vector<2x8x8xf32> to vector<2x8xf32>
    %946 = vector.shape_cast %945 : vector<2x8xf32> to vector<2x8x1xf32>
    %947 = tpu.reciprocal %946 {approx = true} : vector<2x8x1xf32> -> vector<2x8x1xf32>
    %948 = vector.broadcast %947 : vector<2x8x1xf32> to vector<2x8x8xf32>
    %949 = arith.mulf %944, %948 : vector<2x8x8xf32>
    "tpu.trace_start"() <{level = 10 : i32, message = "bnm,bmd->bnd"}> : () -> ()
    %cst_338 = arith.constant dense<0.000000e+00> : vector<2x8x4xf32>
    %950 = tpu.matmul %949, %936, %cst_338 {dimension_numbers = #tpu.dot_dimension_numbers<[2], [1], [1], [2], [0, 0, 0, 1, 1, 2], [0], [0]>} : vector<2x8x8xf32>, vector<2x8x4xf32>, vector<2x8x4xf32> -> vector<2x8x4xf32>
    "tpu.trace_stop"() : () -> ()
    %951 = vector.shape_cast %950 : vector<2x8x4xf32> to vector<16x4xf32>
    %952 = vector.extract_strided_slice %881 {offsets = [8, 0], sizes = [4, 32], strides = [1, 1]} : vector<32x32xf32> to vector<4x32xf32>
    %cst_339 = arith.constant dense<0.000000e+00> : vector<16x32xf32>
    %953 = tpu.matmul %951, %952, %cst_339 {dimension_numbers = #tpu.dot_dimension_numbers<[1], [0], [0], [1], [0, 0, 1, 1], [], []>} : vector<16x4xf32>, vector<4x32xf32>, vector<16x32xf32> -> vector<16x32xf32>
    %954 = arith.addf %930, %953 : vector<16x32xf32>
    %955 = vector.extract_strided_slice %879 {offsets = [0, 12], sizes = [16, 4], strides = [1, 1]} : vector<16x96xf32> to vector<16x4xf32>
    %956 = vector.shape_cast %955 : vector<16x4xf32> to vector<2x8x4xf32>
    %957 = vector.extract_strided_slice %879 {offsets = [0, 44], sizes = [16, 4], strides = [1, 1]} : vector<16x96xf32> to vector<16x4xf32>
    %958 = vector.shape_cast %957 : vector<16x4xf32> to vector<2x8x4xf32>
    %959 = vector.extract_strided_slice %879 {offsets = [0, 76], sizes = [16, 4], strides = [1, 1]} : vector<16x96xf32> to vector<16x4xf32>
    %960 = vector.shape_cast %959 : vector<16x4xf32> to vector<2x8x4xf32>
    "tpu.trace_start"() <{level = 10 : i32, message = "bnd,bmd->bnm"}> : () -> ()
    %cst_340 = arith.constant dense<0.000000e+00> : vector<2x8x8xf32>
    %961 = tpu.matmul %956, %958, %cst_340 {dimension_numbers = #tpu.dot_dimension_numbers<[2], [2], [1], [1], [0, 0, 0, 1, 1, 1], [0], [0]>} : vector<2x8x4xf32>, vector<2x8x4xf32>, vector<2x8x8xf32> -> vector<2x8x8xf32>
    "tpu.trace_stop"() : () -> ()
    %cst_341 = arith.constant 5.000000e-01 : f32
    %962 = vector.broadcast %cst_341 : f32 to vector<2x8x8xf32>
    %963 = arith.mulf %961, %962 : vector<2x8x8xf32>
    %cst_342 = arith.constant dense<0xFF800000> : vector<2x8xf32>
    %964 = vector.multi_reduction <maximumf>, %963, %cst_342 [2] : vector<2x8x8xf32> to vector<2x8xf32>
    %965 = vector.shape_cast %964 : vector<2x8xf32> to vector<2x8x1xf32>
    %966 = vector.broadcast %965 : vector<2x8x1xf32> to vector<2x8x8xf32>
    %967 = arith.subf %963, %966 : vector<2x8x8xf32>
    %968 = math.exp %967 : vector<2x8x8xf32>
    %cst_343 = arith.constant dense<0.000000e+00> : vector<2x8xf32>
    %969 = vector.multi_reduction <add>, %968, %cst_343 [2] : vector<2x8x8xf32> to vector<2x8xf32>
    %970 = vector.shape_cast %969 : vector<2x8xf32> to vector<2x8x1xf32>
    %971 = tpu.reciprocal %970 {approx = true} : vector<2x8x1xf32> -> vector<2x8x1xf32>
    %972 = vector.broadcast %971 : vector<2x8x1xf32> to vector<2x8x8xf32>
    %973 = arith.mulf %968, %972 : vector<2x8x8xf32>
    "tpu.trace_start"() <{level = 10 : i32, message = "bnm,bmd->bnd"}> : () -> ()
    %cst_344 = arith.constant dense<0.000000e+00> : vector<2x8x4xf32>
    %974 = tpu.matmul %973, %960, %cst_344 {dimension_numbers = #tpu.dot_dimension_numbers<[2], [1], [1], [2], [0, 0, 0, 1, 1, 2], [0], [0]>} : vector<2x8x8xf32>, vector<2x8x4xf32>, vector<2x8x4xf32> -> vector<2x8x4xf32>
    "tpu.trace_stop"() : () -> ()
    %975 = vector.shape_cast %974 : vector<2x8x4xf32> to vector<16x4xf32>
    %976 = vector.extract_strided_slice %881 {offsets = [12, 0], sizes = [4, 32], strides = [1, 1]} : vector<32x32xf32> to vector<4x32xf32>
    %cst_345 = arith.constant dense<0.000000e+00> : vector<16x32xf32>
    %977 = tpu.matmul %975, %976, %cst_345 {dimension_numbers = #tpu.dot_dimension_numbers<[1], [0], [0], [1], [0, 0, 1, 1], [], []>} : vector<16x4xf32>, vector<4x32xf32>, vector<16x32xf32> -> vector<16x32xf32>
    %978 = arith.addf %954, %977 : vector<16x32xf32>
    %979 = vector.extract_strided_slice %879 {offsets = [0, 16], sizes = [16, 4], strides = [1, 1]} : vector<16x96xf32> to vector<16x4xf32>
    %980 = vector.shape_cast %979 : vector<16x4xf32> to vector<2x8x4xf32>
    %981 = vector.extract_strided_slice %879 {offsets = [0, 48], sizes = [16, 4], strides = [1, 1]} : vector<16x96xf32> to vector<16x4xf32>
    %982 = vector.shape_cast %981 : vector<16x4xf32> to vector<2x8x4xf32>
    %983 = vector.extract_strided_slice %879 {offsets = [0, 80], sizes = [16, 4], strides = [1, 1]} : vector<16x96xf32> to vector<16x4xf32>
    %984 = vector.shape_cast %983 : vector<16x4xf32> to vector<2x8x4xf32>
    "tpu.trace_start"() <{level = 10 : i32, message = "bnd,bmd->bnm"}> : () -> ()
    %cst_346 = arith.constant dense<0.000000e+00> : vector<2x8x8xf32>
    %985 = tpu.matmul %980, %982, %cst_346 {dimension_numbers = #tpu.dot_dimension_numbers<[2], [2], [1], [1], [0, 0, 0, 1, 1, 1], [0], [0]>} : vector<2x8x4xf32>, vector<2x8x4xf32>, vector<2x8x8xf32> -> vector<2x8x8xf32>
    "tpu.trace_stop"() : () -> ()
    %cst_347 = arith.constant 5.000000e-01 : f32
    %986 = vector.broadcast %cst_347 : f32 to vector<2x8x8xf32>
    %987 = arith.mulf %985, %986 : vector<2x8x8xf32>
    %cst_348 = arith.constant dense<0xFF800000> : vector<2x8xf32>
    %988 = vector.multi_reduction <maximumf>, %987, %cst_348 [2] : vector<2x8x8xf32> to vector<2x8xf32>
    %989 = vector.shape_cast %988 : vector<2x8xf32> to vector<2x8x1xf32>
    %990 = vector.broadcast %989 : vector<2x8x1xf32> to vector<2x8x8xf32>
    %991 = arith.subf %987, %990 : vector<2x8x8xf32>
    %992 = math.exp %991 : vector<2x8x8xf32>
    %cst_349 = arith.constant dense<0.000000e+00> : vector<2x8xf32>
    %993 = vector.multi_reduction <add>, %992, %cst_349 [2] : vector<2x8x8xf32> to vector<2x8xf32>
    %994 = vector.shape_cast %993 : vector<2x8xf32> to vector<2x8x1xf32>
    %995 = tpu.reciprocal %994 {approx = true} : vector<2x8x1xf32> -> vector<2x8x1xf32>
    %996 = vector.broadcast %995 : vector<2x8x1xf32> to vector<2x8x8xf32>
    %997 = arith.mulf %992, %996 : vector<2x8x8xf32>
    "tpu.trace_start"() <{level = 10 : i32, message = "bnm,bmd->bnd"}> : () -> ()
    %cst_350 = arith.constant dense<0.000000e+00> : vector<2x8x4xf32>
    %998 = tpu.matmul %997, %984, %cst_350 {dimension_numbers = #tpu.dot_dimension_numbers<[2], [1], [1], [2], [0, 0, 0, 1, 1, 2], [0], [0]>} : vector<2x8x8xf32>, vector<2x8x4xf32>, vector<2x8x4xf32> -> vector<2x8x4xf32>
    "tpu.trace_stop"() : () -> ()
    %999 = vector.shape_cast %998 : vector<2x8x4xf32> to vector<16x4xf32>
    %1000 = vector.extract_strided_slice %881 {offsets = [16, 0], sizes = [4, 32], strides = [1, 1]} : vector<32x32xf32> to vector<4x32xf32>
    %cst_351 = arith.constant dense<0.000000e+00> : vector<16x32xf32>
    %1001 = tpu.matmul %999, %1000, %cst_351 {dimension_numbers = #tpu.dot_dimension_numbers<[1], [0], [0], [1], [0, 0, 1, 1], [], []>} : vector<16x4xf32>, vector<4x32xf32>, vector<16x32xf32> -> vector<16x32xf32>
    %1002 = arith.addf %978, %1001 : vector<16x32xf32>
    %1003 = vector.extract_strided_slice %879 {offsets = [0, 20], sizes = [16, 4], strides = [1, 1]} : vector<16x96xf32> to vector<16x4xf32>
    %1004 = vector.shape_cast %1003 : vector<16x4xf32> to vector<2x8x4xf32>
    %1005 = vector.extract_strided_slice %879 {offsets = [0, 52], sizes = [16, 4], strides = [1, 1]} : vector<16x96xf32> to vector<16x4xf32>
    %1006 = vector.shape_cast %1005 : vector<16x4xf32> to vector<2x8x4xf32>
    %1007 = vector.extract_strided_slice %879 {offsets = [0, 84], sizes = [16, 4], strides = [1, 1]} : vector<16x96xf32> to vector<16x4xf32>
    %1008 = vector.shape_cast %1007 : vector<16x4xf32> to vector<2x8x4xf32>
    "tpu.trace_start"() <{level = 10 : i32, message = "bnd,bmd->bnm"}> : () -> ()
    %cst_352 = arith.constant dense<0.000000e+00> : vector<2x8x8xf32>
    %1009 = tpu.matmul %1004, %1006, %cst_352 {dimension_numbers = #tpu.dot_dimension_numbers<[2], [2], [1], [1], [0, 0, 0, 1, 1, 1], [0], [0]>} : vector<2x8x4xf32>, vector<2x8x4xf32>, vector<2x8x8xf32> -> vector<2x8x8xf32>
    "tpu.trace_stop"() : () -> ()
    %cst_353 = arith.constant 5.000000e-01 : f32
    %1010 = vector.broadcast %cst_353 : f32 to vector<2x8x8xf32>
    %1011 = arith.mulf %1009, %1010 : vector<2x8x8xf32>
    %cst_354 = arith.constant dense<0xFF800000> : vector<2x8xf32>
    %1012 = vector.multi_reduction <maximumf>, %1011, %cst_354 [2] : vector<2x8x8xf32> to vector<2x8xf32>
    %1013 = vector.shape_cast %1012 : vector<2x8xf32> to vector<2x8x1xf32>
    %1014 = vector.broadcast %1013 : vector<2x8x1xf32> to vector<2x8x8xf32>
    %1015 = arith.subf %1011, %1014 : vector<2x8x8xf32>
    %1016 = math.exp %1015 : vector<2x8x8xf32>
    %cst_355 = arith.constant dense<0.000000e+00> : vector<2x8xf32>
    %1017 = vector.multi_reduction <add>, %1016, %cst_355 [2] : vector<2x8x8xf32> to vector<2x8xf32>
    %1018 = vector.shape_cast %1017 : vector<2x8xf32> to vector<2x8x1xf32>
    %1019 = tpu.reciprocal %1018 {approx = true} : vector<2x8x1xf32> -> vector<2x8x1xf32>
    %1020 = vector.broadcast %1019 : vector<2x8x1xf32> to vector<2x8x8xf32>
    %1021 = arith.mulf %1016, %1020 : vector<2x8x8xf32>
    "tpu.trace_start"() <{level = 10 : i32, message = "bnm,bmd->bnd"}> : () -> ()
    %cst_356 = arith.constant dense<0.000000e+00> : vector<2x8x4xf32>
    %1022 = tpu.matmul %1021, %1008, %cst_356 {dimension_numbers = #tpu.dot_dimension_numbers<[2], [1], [1], [2], [0, 0, 0, 1, 1, 2], [0], [0]>} : vector<2x8x8xf32>, vector<2x8x4xf32>, vector<2x8x4xf32> -> vector<2x8x4xf32>
    "tpu.trace_stop"() : () -> ()
    %1023 = vector.shape_cast %1022 : vector<2x8x4xf32> to vector<16x4xf32>
    %1024 = vector.extract_strided_slice %881 {offsets = [20, 0], sizes = [4, 32], strides = [1, 1]} : vector<32x32xf32> to vector<4x32xf32>
    %cst_357 = arith.constant dense<0.000000e+00> : vector<16x32xf32>
    %1025 = tpu.matmul %1023, %1024, %cst_357 {dimension_numbers = #tpu.dot_dimension_numbers<[1], [0], [0], [1], [0, 0, 1, 1], [], []>} : vector<16x4xf32>, vector<4x32xf32>, vector<16x32xf32> -> vector<16x32xf32>
    %1026 = arith.addf %1002, %1025 : vector<16x32xf32>
    %1027 = vector.extract_strided_slice %879 {offsets = [0, 24], sizes = [16, 4], strides = [1, 1]} : vector<16x96xf32> to vector<16x4xf32>
    %1028 = vector.shape_cast %1027 : vector<16x4xf32> to vector<2x8x4xf32>
    %1029 = vector.extract_strided_slice %879 {offsets = [0, 56], sizes = [16, 4], strides = [1, 1]} : vector<16x96xf32> to vector<16x4xf32>
    %1030 = vector.shape_cast %1029 : vector<16x4xf32> to vector<2x8x4xf32>
    %1031 = vector.extract_strided_slice %879 {offsets = [0, 88], sizes = [16, 4], strides = [1, 1]} : vector<16x96xf32> to vector<16x4xf32>
    %1032 = vector.shape_cast %1031 : vector<16x4xf32> to vector<2x8x4xf32>
    "tpu.trace_start"() <{level = 10 : i32, message = "bnd,bmd->bnm"}> : () -> ()
    %cst_358 = arith.constant dense<0.000000e+00> : vector<2x8x8xf32>
    %1033 = tpu.matmul %1028, %1030, %cst_358 {dimension_numbers = #tpu.dot_dimension_numbers<[2], [2], [1], [1], [0, 0, 0, 1, 1, 1], [0], [0]>} : vector<2x8x4xf32>, vector<2x8x4xf32>, vector<2x8x8xf32> -> vector<2x8x8xf32>
    "tpu.trace_stop"() : () -> ()
    %cst_359 = arith.constant 5.000000e-01 : f32
    %1034 = vector.broadcast %cst_359 : f32 to vector<2x8x8xf32>
    %1035 = arith.mulf %1033, %1034 : vector<2x8x8xf32>
    %cst_360 = arith.constant dense<0xFF800000> : vector<2x8xf32>
    %1036 = vector.multi_reduction <maximumf>, %1035, %cst_360 [2] : vector<2x8x8xf32> to vector<2x8xf32>
    %1037 = vector.shape_cast %1036 : vector<2x8xf32> to vector<2x8x1xf32>
    %1038 = vector.broadcast %1037 : vector<2x8x1xf32> to vector<2x8x8xf32>
    %1039 = arith.subf %1035, %1038 : vector<2x8x8xf32>
    %1040 = math.exp %1039 : vector<2x8x8xf32>
    %cst_361 = arith.constant dense<0.000000e+00> : vector<2x8xf32>
    %1041 = vector.multi_reduction <add>, %1040, %cst_361 [2] : vector<2x8x8xf32> to vector<2x8xf32>
    %1042 = vector.shape_cast %1041 : vector<2x8xf32> to vector<2x8x1xf32>
    %1043 = tpu.reciprocal %1042 {approx = true} : vector<2x8x1xf32> -> vector<2x8x1xf32>
    %1044 = vector.broadcast %1043 : vector<2x8x1xf32> to vector<2x8x8xf32>
    %1045 = arith.mulf %1040, %1044 : vector<2x8x8xf32>
    "tpu.trace_start"() <{level = 10 : i32, message = "bnm,bmd->bnd"}> : () -> ()
    %cst_362 = arith.constant dense<0.000000e+00> : vector<2x8x4xf32>
    %1046 = tpu.matmul %1045, %1032, %cst_362 {dimension_numbers = #tpu.dot_dimension_numbers<[2], [1], [1], [2], [0, 0, 0, 1, 1, 2], [0], [0]>} : vector<2x8x8xf32>, vector<2x8x4xf32>, vector<2x8x4xf32> -> vector<2x8x4xf32>
    "tpu.trace_stop"() : () -> ()
    %1047 = vector.shape_cast %1046 : vector<2x8x4xf32> to vector<16x4xf32>
    %1048 = vector.extract_strided_slice %881 {offsets = [24, 0], sizes = [4, 32], strides = [1, 1]} : vector<32x32xf32> to vector<4x32xf32>
    %cst_363 = arith.constant dense<0.000000e+00> : vector<16x32xf32>
    %1049 = tpu.matmul %1047, %1048, %cst_363 {dimension_numbers = #tpu.dot_dimension_numbers<[1], [0], [0], [1], [0, 0, 1, 1], [], []>} : vector<16x4xf32>, vector<4x32xf32>, vector<16x32xf32> -> vector<16x32xf32>
    %1050 = arith.addf %1026, %1049 : vector<16x32xf32>
    %1051 = vector.extract_strided_slice %879 {offsets = [0, 28], sizes = [16, 4], strides = [1, 1]} : vector<16x96xf32> to vector<16x4xf32>
    %1052 = vector.shape_cast %1051 : vector<16x4xf32> to vector<2x8x4xf32>
    %1053 = vector.extract_strided_slice %879 {offsets = [0, 60], sizes = [16, 4], strides = [1, 1]} : vector<16x96xf32> to vector<16x4xf32>
    %1054 = vector.shape_cast %1053 : vector<16x4xf32> to vector<2x8x4xf32>
    %1055 = vector.extract_strided_slice %879 {offsets = [0, 92], sizes = [16, 4], strides = [1, 1]} : vector<16x96xf32> to vector<16x4xf32>
    %1056 = vector.shape_cast %1055 : vector<16x4xf32> to vector<2x8x4xf32>
    "tpu.trace_start"() <{level = 10 : i32, message = "bnd,bmd->bnm"}> : () -> ()
    %cst_364 = arith.constant dense<0.000000e+00> : vector<2x8x8xf32>
    %1057 = tpu.matmul %1052, %1054, %cst_364 {dimension_numbers = #tpu.dot_dimension_numbers<[2], [2], [1], [1], [0, 0, 0, 1, 1, 1], [0], [0]>} : vector<2x8x4xf32>, vector<2x8x4xf32>, vector<2x8x8xf32> -> vector<2x8x8xf32>
    "tpu.trace_stop"() : () -> ()
    %cst_365 = arith.constant 5.000000e-01 : f32
    %1058 = vector.broadcast %cst_365 : f32 to vector<2x8x8xf32>
    %1059 = arith.mulf %1057, %1058 : vector<2x8x8xf32>
    %cst_366 = arith.constant dense<0xFF800000> : vector<2x8xf32>
    %1060 = vector.multi_reduction <maximumf>, %1059, %cst_366 [2] : vector<2x8x8xf32> to vector<2x8xf32>
    %1061 = vector.shape_cast %1060 : vector<2x8xf32> to vector<2x8x1xf32>
    %1062 = vector.broadcast %1061 : vector<2x8x1xf32> to vector<2x8x8xf32>
    %1063 = arith.subf %1059, %1062 : vector<2x8x8xf32>
    %1064 = math.exp %1063 : vector<2x8x8xf32>
    %cst_367 = arith.constant dense<0.000000e+00> : vector<2x8xf32>
    %1065 = vector.multi_reduction <add>, %1064, %cst_367 [2] : vector<2x8x8xf32> to vector<2x8xf32>
    %1066 = vector.shape_cast %1065 : vector<2x8xf32> to vector<2x8x1xf32>
    %1067 = tpu.reciprocal %1066 {approx = true} : vector<2x8x1xf32> -> vector<2x8x1xf32>
    %1068 = vector.broadcast %1067 : vector<2x8x1xf32> to vector<2x8x8xf32>
    %1069 = arith.mulf %1064, %1068 : vector<2x8x8xf32>
    "tpu.trace_start"() <{level = 10 : i32, message = "bnm,bmd->bnd"}> : () -> ()
    %cst_368 = arith.constant dense<0.000000e+00> : vector<2x8x4xf32>
    %1070 = tpu.matmul %1069, %1056, %cst_368 {dimension_numbers = #tpu.dot_dimension_numbers<[2], [1], [1], [2], [0, 0, 0, 1, 1, 2], [0], [0]>} : vector<2x8x8xf32>, vector<2x8x4xf32>, vector<2x8x4xf32> -> vector<2x8x4xf32>
    "tpu.trace_stop"() : () -> ()
    %1071 = vector.shape_cast %1070 : vector<2x8x4xf32> to vector<16x4xf32>
    %1072 = vector.extract_strided_slice %881 {offsets = [28, 0], sizes = [4, 32], strides = [1, 1]} : vector<32x32xf32> to vector<4x32xf32>
    %cst_369 = arith.constant dense<0.000000e+00> : vector<16x32xf32>
    %1073 = tpu.matmul %1071, %1072, %cst_369 {dimension_numbers = #tpu.dot_dimension_numbers<[1], [0], [0], [1], [0, 0, 1, 1], [], []>} : vector<16x4xf32>, vector<4x32xf32>, vector<16x32xf32> -> vector<16x32xf32>
    %1074 = arith.addf %1050, %1073 : vector<16x32xf32>
    %1075 = arith.addf %846, %1074 : vector<16x32xf32>
    %c3_370 = arith.constant 3 : index
    %c0_371 = arith.constant 0 : index
    %c0_372 = arith.constant 0 : index
    %1076 = vector.load %arg7[%c3_370, %c0_371, %c0_372] : memref<4x1x32xf32, #tpu.memory_space<vmem>>, vector<1x1x32xf32>
    %1077 = vector.shape_cast %1076 : vector<1x1x32xf32> to vector<1x32xf32>
    %1078 = vector.broadcast %1077 : vector<1x32xf32> to vector<16x32xf32>
    %1079 = arith.addf %1075, %1078 : vector<16x32xf32>
    %c3_373 = arith.constant 3 : index
    %c0_374 = arith.constant 0 : index
    %c0_375 = arith.constant 0 : index
    %1080 = vector.load %arg8[%c3_373, %c0_374, %c0_375] : memref<4x1x32xf32, #tpu.memory_space<vmem>>, vector<1x1x32xf32>
    %1081 = vector.shape_cast %1080 : vector<1x1x32xf32> to vector<1x32xf32>
    %c3_376 = arith.constant 3 : index
    %c0_377 = arith.constant 0 : index
    %c0_378 = arith.constant 0 : index
    %1082 = vector.load %arg9[%c3_376, %c0_377, %c0_378] : memref<4x1x32xf32, #tpu.memory_space<vmem>>, vector<1x1x32xf32>
    %1083 = vector.shape_cast %1082 : vector<1x1x32xf32> to vector<1x32xf32>
    %cst_379 = arith.constant dense<0.000000e+00> : vector<16xf32>
    %1084 = vector.multi_reduction <add>, %1079, %cst_379 [1] : vector<16x32xf32> to vector<16xf32>
    %1085 = vector.shape_cast %1084 : vector<16xf32> to vector<16x1xf32>
    %cst_380 = arith.constant 3.200000e+01 : f32
    %1086 = vector.broadcast %cst_380 : f32 to vector<16x1xf32>
    %1087 = arith.divf %1085, %1086 : vector<16x1xf32>
    %1088 = vector.broadcast %1087 : vector<16x1xf32> to vector<16x32xf32>
    %1089 = arith.subf %1079, %1088 : vector<16x32xf32>
    %1090 = arith.mulf %1089, %1089 : vector<16x32xf32>
    %cst_381 = arith.constant dense<0.000000e+00> : vector<16xf32>
    %1091 = vector.multi_reduction <add>, %1090, %cst_381 [1] : vector<16x32xf32> to vector<16xf32>
    %1092 = vector.shape_cast %1091 : vector<16xf32> to vector<16x1xf32>
    %cst_382 = arith.constant 3.200000e+01 : f32
    %1093 = vector.broadcast %cst_382 : f32 to vector<16x1xf32>
    %1094 = arith.divf %1092, %1093 : vector<16x1xf32>
    %1095 = vector.broadcast %1087 : vector<16x1xf32> to vector<16x32xf32>
    %1096 = arith.subf %1079, %1095 : vector<16x32xf32>
    %cst_383 = arith.constant 9.99999974E-6 : f32
    %1097 = vector.broadcast %cst_383 : f32 to vector<16x1xf32>
    %1098 = arith.addf %1094, %1097 : vector<16x1xf32>
    %1099 = math.rsqrt %1098 : vector<16x1xf32>
    %1100 = vector.broadcast %1099 : vector<16x1xf32> to vector<16x32xf32>
    %1101 = arith.mulf %1096, %1100 : vector<16x32xf32>
    %1102 = vector.broadcast %1081 : vector<1x32xf32> to vector<16x32xf32>
    %1103 = arith.mulf %1101, %1102 : vector<16x32xf32>
    %1104 = vector.broadcast %1083 : vector<1x32xf32> to vector<16x32xf32>
    %1105 = arith.addf %1103, %1104 : vector<16x32xf32>
    %c3_384 = arith.constant 3 : index
    %c0_385 = arith.constant 0 : index
    %c0_386 = arith.constant 0 : index
    %1106 = vector.load %arg10[%c3_384, %c0_385, %c0_386] : memref<4x32x128xf32, #tpu.memory_space<vmem>>, vector<1x32x128xf32>
    %1107 = vector.shape_cast %1106 : vector<1x32x128xf32> to vector<32x128xf32>
    %cst_387 = arith.constant dense<0.000000e+00> : vector<16x128xf32>
    %1108 = tpu.matmul %1105, %1107, %cst_387 {dimension_numbers = #tpu.dot_dimension_numbers<[1], [0], [0], [1], [0, 0, 1, 1], [], []>} : vector<16x32xf32>, vector<32x128xf32>, vector<16x128xf32> -> vector<16x128xf32>
    %c3_388 = arith.constant 3 : index
    %c0_389 = arith.constant 0 : index
    %c0_390 = arith.constant 0 : index
    %1109 = vector.load %arg11[%c3_388, %c0_389, %c0_390] : memref<4x1x128xf32, #tpu.memory_space<vmem>>, vector<1x1x128xf32>
    %1110 = vector.shape_cast %1109 : vector<1x1x128xf32> to vector<1x128xf32>
    %1111 = vector.broadcast %1110 : vector<1x128xf32> to vector<16x128xf32>
    %1112 = arith.addf %1108, %1111 : vector<16x128xf32>
    %cst_391 = arith.constant 5.000000e-01 : f32
    %1113 = vector.broadcast %cst_391 : f32 to vector<16x128xf32>
    %1114 = arith.mulf %1113, %1112 : vector<16x128xf32>
    %cst_392 = arith.constant 0.707106769 : f32
    %1115 = vector.broadcast %cst_392 : f32 to vector<16x128xf32>
    %1116 = arith.mulf %1112, %1115 : vector<16x128xf32>
    %1117 = math.erf %1116 : vector<16x128xf32>
    %cst_393 = arith.constant 1.000000e+00 : f32
    %1118 = vector.broadcast %cst_393 : f32 to vector<16x128xf32>
    %1119 = arith.addf %1118, %1117 : vector<16x128xf32>
    %1120 = arith.mulf %1114, %1119 : vector<16x128xf32>
    %c3_394 = arith.constant 3 : index
    %c0_395 = arith.constant 0 : index
    %c0_396 = arith.constant 0 : index
    %1121 = vector.load %arg12[%c3_394, %c0_395, %c0_396] : memref<4x128x32xf32, #tpu.memory_space<vmem>>, vector<1x128x32xf32>
    %1122 = vector.shape_cast %1121 : vector<1x128x32xf32> to vector<128x32xf32>
    %cst_397 = arith.constant dense<0.000000e+00> : vector<16x32xf32>
    %1123 = tpu.matmul %1120, %1122, %cst_397 {dimension_numbers = #tpu.dot_dimension_numbers<[1], [0], [0], [1], [0, 0, 1, 1], [], []>} : vector<16x128xf32>, vector<128x32xf32>, vector<16x32xf32> -> vector<16x32xf32>
    %c3_398 = arith.constant 3 : index
    %c0_399 = arith.constant 0 : index
    %c0_400 = arith.constant 0 : index
    %1124 = vector.load %arg13[%c3_398, %c0_399, %c0_400] : memref<4x1x32xf32, #tpu.memory_space<vmem>>, vector<1x1x32xf32>
    %1125 = vector.shape_cast %1124 : vector<1x1x32xf32> to vector<1x32xf32>
    %1126 = vector.broadcast %1125 : vector<1x32xf32> to vector<16x32xf32>
    %1127 = arith.addf %1123, %1126 : vector<16x32xf32>
    %1128 = arith.addf %1079, %1127 : vector<16x32xf32>
    %1129 = arith.mulf %1128, %1128 : vector<16x32xf32>
    %cst_401 = arith.constant dense<0.000000e+00> : vector<16xf32>
    %1130 = vector.multi_reduction <add>, %1129, %cst_401 [1] : vector<16x32xf32> to vector<16xf32>
    %1131 = vector.shape_cast %1130 : vector<16xf32> to vector<16x1xf32>
    %1132 = math.sqrt %1131 : vector<16x1xf32>
    %cst_402 = arith.constant 9.99999996E-13 : f32
    %1133 = vector.broadcast %cst_402 : f32 to vector<16x1xf32>
    %1134 = arith.maximumf %1132, %1133 : vector<16x1xf32>
    %1135 = tpu.reciprocal %1134 {approx = true} : vector<16x1xf32> -> vector<16x1xf32>
    %1136 = vector.broadcast %1135 : vector<16x1xf32> to vector<16x32xf32>
    %1137 = arith.mulf %1128, %1136 : vector<16x32xf32>
    %1138 = vector.shape_cast %1137 : vector<16x32xf32> to vector<2x8x32xf32>
    "tpu.trace_start"() <{level = 10 : i32, message = "bnc,bmc->bnm"}> : () -> ()
    %cst_403 = arith.constant dense<0.000000e+00> : vector<2x8x8xf32>
    %1139 = tpu.matmul %1138, %1138, %cst_403 {dimension_numbers = #tpu.dot_dimension_numbers<[2], [2], [1], [1], [0, 0, 0, 1, 1, 1], [0], [0]>} : vector<2x8x32xf32>, vector<2x8x32xf32>, vector<2x8x8xf32> -> vector<2x8x8xf32>
    "tpu.trace_stop"() : () -> ()
    %c0_404 = arith.constant 0 : index
    %c0_405 = arith.constant 0 : index
    %c0_406 = arith.constant 0 : index
    %1140 = vector.load %arg14[%c0_404, %c0_405, %c0_406] : memref<2x8x8xf32, #tpu.memory_space<vmem>>, vector<2x8x8xf32>
    tpu.vector_store %arg14[%c0_404, %c0_405, %c0_406], %1139 {strides = array<i32>} : memref<2x8x8xf32, #tpu.memory_space<vmem>>, vector<2x8x8xf32>,
    return
  }
  func.func @transform_0(%arg0: i32) -> (i32, i32) {
    %c0_i32 = arith.constant 0 : i32
    %c0_i32_0 = arith.constant 0 : i32
    %c0_i32_1 = arith.constant 0 : i32
    return %c0_i32, %c0_i32_0 : i32, i32
  }
  func.func @transform_1(%arg0: i32) -> (i32, i32, i32) {
    %c0_i32 = arith.constant 0 : i32
    %c0_i32_0 = arith.constant 0 : i32
    %c0_i32_1 = arith.constant 0 : i32
    %c0_i32_2 = arith.constant 0 : i32
    return %c0_i32, %c0_i32_0, %c0_i32_1 : i32, i32, i32
  }
  func.func @transform_2(%arg0: i32) -> (i32, i32, i32) {
    %c0_i32 = arith.constant 0 : i32
    %c0_i32_0 = arith.constant 0 : i32
    %c0_i32_1 = arith.constant 0 : i32
    %c0_i32_2 = arith.constant 0 : i32
    return %c0_i32, %c0_i32_0, %c0_i32_1 : i32, i32, i32
  }
  func.func @transform_3(%arg0: i32) -> (i32, i32, i32) {
    %c0_i32 = arith.constant 0 : i32
    %c0_i32_0 = arith.constant 0 : i32
    %c0_i32_1 = arith.constant 0 : i32
    %c0_i32_2 = arith.constant 0 : i32
    return %c0_i32, %c0_i32_0, %c0_i32_1 : i32, i32, i32
  }
  func.func @transform_4(%arg0: i32) -> (i32, i32, i32) {
    %c0_i32 = arith.constant 0 : i32
    %c0_i32_0 = arith.constant 0 : i32
    %c0_i32_1 = arith.constant 0 : i32
    %c0_i32_2 = arith.constant 0 : i32
    return %c0_i32, %c0_i32_0, %c0_i32_1 : i32, i32, i32
  }
  func.func @transform_5(%arg0: i32) -> (i32, i32, i32) {
    %c0_i32 = arith.constant 0 : i32
    %c0_i32_0 = arith.constant 0 : i32
    %c0_i32_1 = arith.constant 0 : i32
    %c0_i32_2 = arith.constant 0 : i32
    return %c0_i32, %c0_i32_0, %c0_i32_1 : i32, i32, i32
  }
  func.func @transform_6(%arg0: i32) -> (i32, i32, i32) {
    %c0_i32 = arith.constant 0 : i32
    %c0_i32_0 = arith.constant 0 : i32
    %c0_i32_1 = arith.constant 0 : i32
    %c0_i32_2 = arith.constant 0 : i32
    return %c0_i32, %c0_i32_0, %c0_i32_1 : i32, i32, i32
  }
  func.func @transform_7(%arg0: i32) -> (i32, i32, i32) {
    %c0_i32 = arith.constant 0 : i32
    %c0_i32_0 = arith.constant 0 : i32
    %c0_i32_1 = arith.constant 0 : i32
    %c0_i32_2 = arith.constant 0 : i32
    return %c0_i32, %c0_i32_0, %c0_i32_1 : i32, i32, i32
  }
  func.func @transform_8(%arg0: i32) -> (i32, i32, i32) {
    %c0_i32 = arith.constant 0 : i32
    %c0_i32_0 = arith.constant 0 : i32
    %c0_i32_1 = arith.constant 0 : i32
    %c0_i32_2 = arith.constant 0 : i32
    return %c0_i32, %c0_i32_0, %c0_i32_1 : i32, i32, i32
  }
  func.func @transform_9(%arg0: i32) -> (i32, i32, i32) {
    %c0_i32 = arith.constant 0 : i32
    %c0_i32_0 = arith.constant 0 : i32
    %c0_i32_1 = arith.constant 0 : i32
    %c0_i32_2 = arith.constant 0 : i32
    return %c0_i32, %c0_i32_0, %c0_i32_1 : i32, i32, i32
  }
  func.func @transform_10(%arg0: i32) -> (i32, i32, i32) {
    %c0_i32 = arith.constant 0 : i32
    %c0_i32_0 = arith.constant 0 : i32
    %c0_i32_1 = arith.constant 0 : i32
    %c0_i32_2 = arith.constant 0 : i32
    return %c0_i32, %c0_i32_0, %c0_i32_1 : i32, i32, i32
  }
  func.func @transform_11(%arg0: i32) -> (i32, i32, i32) {
    %c0_i32 = arith.constant 0 : i32
    %c0_i32_0 = arith.constant 0 : i32
    %c0_i32_1 = arith.constant 0 : i32
    %c0_i32_2 = arith.constant 0 : i32
    return %c0_i32, %c0_i32_0, %c0_i32_1 : i32, i32, i32
  }
  func.func @transform_12(%arg0: i32) -> (i32, i32, i32) {
    %c0_i32 = arith.constant 0 : i32
    %c0_i32_0 = arith.constant 0 : i32
    %c0_i32_1 = arith.constant 0 : i32
    %c0_i32_2 = arith.constant 0 : i32
    return %c0_i32, %c0_i32_0, %c0_i32_1 : i32, i32, i32
  }
  func.func @transform_13(%arg0: i32) -> (i32, i32, i32) {
    %c0_i32 = arith.constant 0 : i32
    %c0_i32_0 = arith.constant 0 : i32
    %c0_i32_1 = arith.constant 0 : i32
    %c0_i32_2 = arith.constant 0 : i32
    return %c0_i32, %c0_i32_0, %c0_i32_1 : i32, i32, i32
  }
}

</mosaic_0001>

<bundles_post_ra>
// kernel: tpu_custom_call.1
= control target key start
LH: loop header
LB: loop body
LE: loop exit
PB: predicated region body
PF: predicated region fallthrough
CT: control target
= control target key end

     0   :  { %s19631_s0 = inlined_call_operand.vmem [shape: f32[16,32], index: 0, kind: input, shape index: {}]   ;;  %s19632_s1 = inlined_call_operand.vmem [shape: f32[4,1,32], index: 1, kind: input, shape index: {}]   ;;  %s19633_s2 = inlined_call_operand.vmem [shape: f32[4,1,32], index: 2, kind: input, shape index: {}]   ;;  %s19634_s3 = inlined_call_operand.vmem [shape: f32[4,32,96], index: 3, kind: input, shape index: {}]   ;;  %s19635_s4 = inlined_call_operand.vmem [shape: f32[4,1,96], index: 4, kind: input, shape index: {}]   ;;  %s19636_s5 = inlined_call_operand.vmem [shape: f32[4,32,32], index: 5, kind: input, shape index: {}]   ;;  %s19637_s6 = inlined_call_operand.vmem [shape: f32[4,1,32], index: 6, kind: input, shape index: {}]   ;;  %s19638_s7 = inlined_call_operand.vmem [shape: f32[4,1,32], index: 7, kind: input, shape index: {}]   ;;  %s19639_s8 = inlined_call_operand.vmem [shape: f32[4,1,32], index: 8, kind: input, shape index: {}]   ;;  %s19640_s9 = inlined_call_operand.vmem [shape: f32[4,32,128], index: 9, kind: input, shape index: {}]   ;;  %s19641_s10 = inlined_call_operand.vmem [shape: f32[4,1,128], index: 10, kind: input, shape index: {}]   ;;  %s19642_s11 = inlined_call_operand.vmem [shape: f32[4,128,32], index: 11, kind: input, shape index: {}]   ;;  %s19643_s12 = inlined_call_operand.vmem [shape: f32[4,1,32], index: 12, kind: input, shape index: {}]   ;;  %s19644_s13 = inlined_call_operand.hbm [shape: f32[2,8,8], index: 13, kind: output, shape index: {}]  }
   0x1   :  { %19705 = sst [smem:[#allocation5_spill]] %s19637_s6 }
   0x2   :  { %19706 = sst [smem:[#allocation6_spill]] %s19644_s13 }
   0x3   :  { %v45_v0 = vld [vmem:[%s19631_s0] sm:$0xff]  ;;  %vm49_vm0 = vcmask 261120   ;;  %v46_v1 = vld [vmem:[%s19631_s0 + $0x8] sm:$0xff] }
   0x4   :  { %18 = vsyncpa [#allocation3], 0  ;;  %v50_v2 = vsel %vm49_vm0, %v45_v0, 0.0  ;;  %v53_v3 = vsel %vm49_vm0, %v46_v1, 0.0  ;;  %v96_v14 = vld [vmem:[%s19634_s3 + $0x18] sm:$0xff]  ;;  %v95_v15 = vld [vmem:[%s19634_s3 + $0x10] sm:$0xff] }
   0x5   :  { %51 = vadd.xlane.f32.xlu0 %v50_v2  ;;  %16144 = vmatprep.subr.mxu0 %v96_v14  ;;  %v94_v16 = vld [vmem:[%s19634_s3 + $0x8] sm:$0xff]  ;;  %v93_v17 = vld [vmem:[%s19634_s3] sm:$0xff]  ;;  %v17546_v34 = vmov 0.0   ;;  %vm17547_vm1 = vmmov 0   ;;  %s19689_s26 = smov 96   ;;  %vm192_vm2 = vcmask 31744  }
   0x6   :  { %16145 = vmatpush3.msra.mxu0 %v96_v14  ;;  %v15220_v25 = vld [vmem:[%s19632_s1] ss:$0 sm:$0xff]  ;;  %16170 = vmatprep.subr.mxu1 %v17546_v34  ;;  %vm346_vm3 = vcmask 64512   ;;  %s19687_s27 = smov 64   ;;  %s19685_s28 = smov 92   ;;  %vm861_vm4 = vcmask 1043456  }
   0x7   :  { %16146 = vmatprep.subr.mxu0 %v95_v15  ;;  %v15221_v27 = vld [vmem:[%s19633_s2] ss:$0 sm:$0xff]  ;;  %16172 = vmatprep.mubr.msk.f32.mxu1 %vm17547_vm1, %v17546_v34  ;;  %s19683_s29 = smov 124   ;;  %s19681_s30 = smov 60  }
   0x8   :  { %16147 = vmatpush3.msra.mxu0 %v95_v15  ;;  %v15222_v35 = vld [vmem:[%s19635_s4] ss:$0 sm:$0xff]  ;;  %s19679_s14 = smov 88   ;;  %s19677_s15 = smov 120  }
   0x9   :  { %54 = vadd.xlane.f32.xlu0 %v53_v3  ;;  %16148 = vmatprep.subr.mxu0 %v94_v16  ;;  %s19675_s18 = smov 56   ;;  %s19673_s19 = smov 84  }
   0xa   :  { %16149 = vmatpush3.msra.mxu0 %v94_v16  ;;  %s19671_s20 = smov 116   ;;  %s19669_s23 = smov 52  }
   0xb   :  { %16150 = vmatprep.subr.mxu0 %v93_v17  ;;  %s19667_s24 = smov 80   ;;  %s19665_s25 = smov 112  }
   0xc   :  { %16151 = vmatpush3.msra.mxu0 %v93_v17  ;;  %s19663_s16 = smov 48   ;;  %s19647_s17 = smov 76  }
   0xd   :  { %16155 = vmatprep.subr.mxu0 %v17546_v34  ;;  %s19645_s21 = smov 108   ;;  %s19651_s22 = smov 72  }
   0xe   :  { %s19726_s13 = smov 120  }
  0x8e   :  { %v52_v4 = vpop.xlane.xlu0 %51 }
  0x8f   :  { %v57_v5 = vmul.f32 0.03125, %v52_v4 }
  0x91   :  { %v59_v6 = vsub.f32 %v45_v0, %v57_v5 }
  0x92   :  { %v55_v7 = vpop.xlane.xlu0 %54 }
  0x93   :  { %v58_v8 = vmul.f32 0.03125, %v55_v7  ;;  %v61_v9 = vmul.f32 %v59_v6, %v59_v6 }
  0x95   :  { %v60_v10 = vsub.f32 %v46_v1, %v58_v8  ;;  %v63_v11 = vsel %vm49_vm0, %v61_v9, 0.0 }
  0x96   :  { %64 = vadd.xlane.f32.xlu1 %v63_v11 }
  0x97   :  { %v62_v12 = vmul.f32 %v60_v10, %v60_v10 }
  0x99   :  { %v66_v13 = vsel %vm49_vm0, %v62_v12, 0.0 }
  0x9a   :  { %67 = vadd.xlane.f32.xlu1 %v66_v13 }
 0x11f   :  { %v65_v18 = vpop.xlane.xlu1 %64 }
 0x120   :  { %v69_v19 = vmul.f32 0.03125, %v65_v18 }
 0x122   :  { %v71_v20 = vadd.f32 1e-05, %v69_v19 }
 0x123   :  { %v68_v21 = vpop.xlane.xlu1 %67 }
 0x124   :  { %17210 = vrsqrt.f32 %v71_v20  ;;  %v70_v22 = vmul.f32 0.03125, %v68_v21 }
 0x126   :  { %v72_v23 = vadd.f32 1e-05, %v70_v22 }
 0x128   :  { %17212 = vrsqrt.f32 %v72_v23 }
 0x131   :  { %v17211_v24 = vpop.eup %17210 }
 0x132   :  { %v75_v26 = vmul.f32 %v17211_v24, %v59_v6 }
 0x134   :  { %v83_v28 = vmul.f32 %v15220_v25, %v75_v26 }
 0x135   :  { %v17213_v29 = vpop.eup %17212 }
 0x136   :  { %v76_v30 = vmul.f32 %v17213_v29, %v60_v10  ;;  %v91_v31 = vadd.f32 %v15221_v27, %v83_v28 }
 0x138   :  { %v84_v32 = vmul.f32 %v15220_v25, %v76_v30  ;;  %16152 = vmatprep.mubr.msk.f32.mxu0 %vm49_vm0, %v91_v31  ;;  %v185_v31 = vld [vmem:[%s19636_s5] sm:$0xff] }
 0x13a   :  { %v92_v33 = vadd.f32 %v15221_v27, %v84_v32 }
 0x13c   :  { %16153 = vmatmul.mubr.msk.f32.vlgmr.msra.gmra.mxu0 %vm49_vm0, %v92_v33 }
 0x13d   :  { %16157 = vmatprep.mubr.msk.f32.mxu0 %vm17547_vm1, %v17546_v34 }
 0x1fc   :  { %v16154_v36 = vpop.f32.mrf.mxu0 }
 0x1fd   :  { %v17683_v37 = vadd.f32 %v16154_v36, %v15222_v35 }
 0x1fe   :  { %v176_v38 = vpop.f32.mrf.mxu0 }
 0x1ff   :  { %v17685_v39 = vadd.f32 %v15222_v35, %v176_v38  ;;  %268 = vrot.lane.b32.xlu1 %v17683_v37, %s19689_s26  ;;  %v854_v35 = vrot.slane %v185_v31, 4 }
 0x201   :  { %190 = vrot.lane.b32.xlu0 %v17685_v39, %s19689_s26 }
 0x271   :  { %v269_v41 = vpop.permute.xlu1 %268 }
 0x273   :  { %v191_v40 = vpop.permute.xlu0 %190 }
 0x274   :  { %16156 = vmatpush3.xpose.msk.msra.mxu0 %vm192_vm2, %v191_v40 }
 0x275   :  { %16160 = vmatprep.subr.mxu0 %v17546_v34 }
 0x277   :  { %16158 = vmatmul.mubr.msk.f32.vlgmr.msra.gmra.mxu0 %vm192_vm2, %v17685_v39 }
 0x278   :  { %16161 = vmatpush3.xpose.msk.msra.mxu0 %vm192_vm2, %v269_v41  ;;  %16162 = vmatprep.mubr.msk.f32.mxu0 %vm17547_vm1, %v17546_v34 }
 0x279   :  { %16165 = vmatprep.subr.mxu0 %v17546_v34 }
 0x27b   :  { %16163 = vmatmul.mubr.msk.f32.vlgmr.msra.gmra.mxu0 %vm192_vm2, %v17683_v37 }
 0x27c   :  { %16167 = vmatprep.mubr.msk.f32.mxu0 %vm17547_vm1, %v17546_v34 }
 0x337   :  { %v263_v42 = vpop.f32.mrf.mxu0 }
 0x338   :  { %v344_v43 = vmul.f32 0.5, %v263_v42 }
 0x339   :  { %v16159_v44 = vpop.f32.mrf.mxu0 }
 0x33a   :  { %v347_v45 = vsel %vm346_vm3, %v344_v43, -inf }
 0x33b   :  { %348 = vmax.xlane.f32.xlu1 %v347_v45  ;;  %v340_v46 = vpop.f32.mrf.mxu0 }
 0x33c   :  { %v345_v47 = vmul.f32 0.5, %v340_v46 }
 0x33d   :  { %v16164_v48 = vpop.f32.mrf.mxu0 }
 0x33e   :  { %v350_v49 = vsel %vm346_vm3, %v345_v47, -inf }
 0x33f   :  { %351 = vmax.xlane.f32.xlu0 %v350_v49 }
 0x34c   :  { %445 = vrot.lane.b32.xlu1 %v17683_v37, %s19687_s27 }
 0x350   :  { %523 = vrot.lane.b32.xlu1 %v17685_v39, %s19685_s28 }
 0x354   :  { %601 = vrot.lane.b32.xlu1 %v17683_v37, %s19685_s28 }
 0x3c4   :  { %v349_v50 = vpop.xlane.xlu1 %348 }
 0x3c5   :  { %v353_v51 = vsub.f32 %v344_v43, %v349_v50 }
 0x3c7   :  { %v355_v52 = vmul.f32 1.442695, %v353_v51 }
 0x3c8   :  { %v446_v53 = vpop.permute.xlu1 %445  ;;  %v352_v54 = vpop.xlane.xlu0 %351 }
 0x3c9   :  { %17214 = vpow2.f32 %v355_v52  ;;  %v354_v55 = vsub.f32 %v345_v47, %v352_v54  ;;  %16171 = vmatpush3.msra.mxu1 %v446_v53 }
 0x3ca   :  { %16180 = vmatprep.subr.mxu1 %v17546_v34 }
 0x3cb   :  { %v357_v56 = vmul.f32 1.442695, %v354_v55 }
 0x3cc   :  { %v524_v61 = vpop.permute.xlu1 %523 }
 0x3cd   :  { %17216 = vpow2.f32 %v357_v56 }
 0x3d0   :  { %v602_v62 = vpop.permute.xlu1 %601 }
 0x3d6   :  { %v17215_v57 = vpop.eup %17214 }
 0x3d7   :  { %v359_v58 = vsel %vm346_vm3, %v17215_v57, 0.0 }
 0x3d8   :  { %360 = vadd.xlane.f32.xlu0 %v359_v58 }
 0x3da   :  { %v17217_v59 = vpop.eup %17216 }
 0x3db   :  { %v362_v60 = vsel %vm346_vm3, %v17217_v59, 0.0 }
 0x3dc   :  { %363 = vadd.xlane.f32.xlu1 %v362_v60 }
 0x3ed   :  { %599 = vrot.lane.b32.xlu1 %v17683_v37, %s19683_s29 }
 0x3ee   :  { %369 = vrot.lane.b32.xlu0 %v17685_v39, %s19687_s27 }
 0x3f2   :  { %521 = vrot.lane.b32.xlu0 %v17685_v39, %s19683_s29 }
 0x461   :  { %v361_v63 = vpop.xlane.xlu0 %360 }
 0x462   :  { %17218 = vrcp.f32 %v361_v63 }
 0x465   :  { %v364_v0 = vpop.xlane.xlu1 %363  ;;  %v370_v1 = vpop.permute.xlu0 %369 }
 0x466   :  { %17220 = vrcp.f32 %v364_v0  ;;  %16166 = vmatpush3.msra.mxu0 %v370_v1 }
 0x467   :  { %16175 = vmatprep.subr.mxu0 %v17546_v34 }
 0x469   :  { %v522_v6 = vpop.permute.xlu0 %521  ;;  %v600_v7 = vpop.permute.xlu1 %599 }
 0x46f   :  { %v17219_v2 = vpop.eup %17218 }
 0x470   :  { %v367_v3 = vmul.f32 %v17219_v2, %v17215_v57 }
 0x472   :  { %16168 = vmatmul.mubr.msk.f32.vlgmr.msra.gmra.mxu0 %vm346_vm3, %v367_v3 }
 0x473   :  { %v17221_v4 = vpop.eup %17220  ;;  %16176 = vmatpush3.xpose.msk.msra.mxu0 %vm192_vm2, %v524_v61  ;;  %16177 = vmatprep.mubr.msk.f32.mxu0 %vm17547_vm1, %v17546_v34 }
 0x474   :  { %v368_v5 = vmul.f32 %v17221_v4, %v17217_v59  ;;  %16185 = vmatprep.subr.mxu0 %v17546_v34 }
 0x476   :  { %16173 = vmatmul.mubr.msk.f32.vlgmr.msra.gmra.mxu1 %vm346_vm3, %v368_v5  ;;  %16178 = vmatmul.mubr.msk.f32.vlgmr.msra.gmra.mxu0 %vm192_vm2, %v522_v6 }
 0x477   :  { %16181 = vmatpush3.xpose.msk.msra.mxu1 %vm192_vm2, %v602_v62  ;;  %16182 = vmatprep.mubr.msk.f32.mxu1 %vm17547_vm1, %v17546_v34 }
 0x478   :  { %16190 = vmatprep.subr.mxu1 %v17546_v34  ;;  %16187 = vmatprep.mubr.msk.f32.mxu0 %vm17547_vm1, %v17546_v34 }
 0x47a   :  { %16183 = vmatmul.mubr.msk.f32.vlgmr.msra.gmra.mxu1 %vm192_vm2, %v600_v7 }
 0x47b   :  { %16192 = vmatprep.mubr.msk.f32.mxu1 %vm17547_vm1, %v17546_v34 }
 0x532   :  { %v441_v8 = vpop.f32.mrf.mxu0 }
 0x534   :  { %v16169_v9 = vpop.f32.mrf.mxu0 }
 0x536   :  { %v517_v10 = vpop.f32.mrf.mxu1  ;;  %v595_v11 = vpop.f32.mrf.mxu0 }
 0x537   :  { %v677_v12 = vmul.f32 0.5, %v595_v11 }
 0x538   :  { %v16174_v13 = vpop.f32.mrf.mxu1  ;;  %v16179_v14 = vpop.f32.mrf.mxu0 }
 0x539   :  { %v679_v15 = vsel %vm346_vm3, %v677_v12, -inf }
 0x53a   :  { %v673_v16 = vpop.f32.mrf.mxu1  ;;  %680 = vmax.xlane.f32.xlu0 %v679_v15 }
 0x53b   :  { %v678_v17 = vmul.f32 0.5, %v673_v16 }
 0x53c   :  { %v16184_v18 = vpop.f32.mrf.mxu1 }
 0x53d   :  { %v682_v19 = vsel %vm346_vm3, %v678_v17, -inf }
 0x53e   :  { %683 = vmax.xlane.f32.xlu1 %v682_v19 }
 0x54f   :  { %777 = vrot.lane.b32.xlu1 %v17683_v37, %s19681_s30 }
 0x553   :  { %1024 = vrot.lane.b32.xlu1 %v17685_v39, %s19679_s14 }
 0x557   :  { %1102 = vrot.lane.b32.xlu1 %v17683_v37, %s19679_s14 }
 0x55b   :  { %1100 = vrot.lane.b32.xlu1 %v17683_v37, %s19677_s15 }
 0x5c3   :  { %v681_v20 = vpop.xlane.xlu0 %680 }
 0x5c4   :  { %v685_v21 = vsub.f32 %v677_v12, %v681_v20 }
 0x5c6   :  { %v687_v22 = vmul.f32 1.442695, %v685_v21  ;;  %v17819_v21 = vld [vmem:[%s19636_s5 + $0x8] sm:$0xff] }
 0x5c7   :  { %v684_v23 = vpop.xlane.xlu1 %683 }
 0x5c8   :  { %17222 = vpow2.f32 %v687_v22  ;;  %v686_v24 = vsub.f32 %v678_v17, %v684_v23 }
 0x5ca   :  { %v689_v25 = vmul.f32 1.442695, %v686_v24 }
 0x5cb   :  { %v778_v26 = vpop.permute.xlu1 %777 }
 0x5cc   :  { %17224 = vpow2.f32 %v689_v25  ;;  %16191 = vmatpush3.msra.mxu1 %v778_v26 }
 0x5cd   :  { %16200 = vmatprep.subr.msk.mxu1 %vm861_vm4, %v185_v31 }
 0x5cf   :  { %v1025_v41 = vpop.permute.xlu1 %1024 }
 0x5d3   :  { %v1103_v44 = vpop.permute.xlu1 %1102 }
 0x5d5   :  { %v17223_v27 = vpop.eup %17222 }
 0x5d6   :  { %v691_v28 = vsel %vm346_vm3, %v17223_v27, 0.0 }
 0x5d7   :  { %692 = vadd.xlane.f32.xlu0 %v691_v28  ;;  %v1101_v45 = vpop.permute.xlu1 %1100 }
 0x5d9   :  { %v17225_v29 = vpop.eup %17224 }
 0x5da   :  { %v694_v30 = vsel %vm346_vm3, %v17225_v29, 0.0 }
 0x5db   :  { %695 = vadd.xlane.f32.xlu0 %v694_v30 }
 0x5f1   :  { %701 = vrot.lane.b32.xlu0 %v17685_v39, %s19681_s30 }
 0x5f5   :  { %1022 = vrot.lane.b32.xlu0 %v17685_v39, %s19677_s15 }
 0x660   :  { %v693_v32 = vpop.xlane.xlu0 %692 }
 0x661   :  { %17226 = vrcp.f32 %v693_v32 }
 0x664   :  { %v696_v33 = vpop.xlane.xlu0 %695 }
 0x665   :  { %17228 = vrcp.f32 %v696_v33 }
 0x668   :  { %v702_v36 = vpop.permute.xlu0 %701 }
 0x669   :  { %16186 = vmatpush3.msra.mxu0 %v702_v36 }
 0x66a   :  { %16195 = vmatprep.subr.msk.mxu0 %vm861_vm4, %v854_v35 }
 0x66c   :  { %v1023_v50 = vpop.permute.xlu0 %1022 }
 0x66e   :  { %v17227_v38 = vpop.eup %17226 }
 0x66f   :  { %v699_v40 = vmul.f32 %v17227_v38, %v17223_v27 }
 0x671   :  { %16188 = vmatmul.mubr.msk.f32.vlgmr.msra.gmra.mxu0 %vm346_vm3, %v699_v40 }
 0x672   :  { %v17229_v42 = vpop.eup %17228  ;;  %16196 = vmatpush3.msk.msra.mxu0 %vm861_vm4, %v854_v35 }
 0x673   :  { %v700_v43 = vmul.f32 %v17229_v42, %v17225_v29  ;;  %16205 = vmatprep.subr.mxu0 %v17546_v34 }
 0x675   :  { %16193 = vmatmul.mubr.msk.f32.vlgmr.msra.gmra.mxu1 %vm346_vm3, %v700_v43 }
 0x676   :  { %16202 = vmatprep.mubr.msk.f32.mxu1 %vm192_vm2, %v441_v8  ;;  %16201 = vmatpush3.msk.msra.mxu1 %vm861_vm4, %v185_v31 }
 0x677   :  { %16210 = vmatprep.subr.mxu1 %v17546_v34 }
 0x679   :  { %16203 = vmatmul.mubr.msk.f32.vlgmr.msra.gmra.mxu1 %vm192_vm2, %v517_v10 }
 0x67a   :  { %16211 = vmatpush3.xpose.msk.msra.mxu1 %vm192_vm2, %v1103_v44  ;;  %16212 = vmatprep.mubr.msk.f32.mxu1 %vm17547_vm1, %v17546_v34 }
 0x67b   :  { %16220 = vmatprep.subr.mxu1 %v17546_v34 }
 0x67d   :  { %16213 = vmatmul.mubr.msk.f32.vlgmr.msra.gmra.mxu1 %vm192_vm2, %v1101_v45 }
 0x67e   :  { %16222 = vmatprep.mubr.msk.f32.mxu1 %vm17547_vm1, %v17546_v34 }
 0x731   :  { %v773_v46 = vpop.f32.mrf.mxu0 }
 0x732   :  { %16197 = vmatprep.mubr.msk.f32.mxu0 %vm192_vm2, %v773_v46 }
 0x733   :  { %v16189_v47 = vpop.f32.mrf.mxu0 }
 0x735   :  { %v849_v48 = vpop.f32.mrf.mxu1 }
 0x736   :  { %16198 = vmatmul.mubr.msk.f32.vlgmr.msra.gmra.mxu0 %vm192_vm2, %v849_v48 }
 0x737   :  { %16206 = vmatpush3.xpose.msk.msra.mxu0 %vm192_vm2, %v1025_v41  ;;  %v16194_v49 = vpop.f32.mrf.mxu1  ;;  %16207 = vmatprep.mubr.msk.f32.mxu0 %vm17547_vm1, %v17546_v34 }
 0x738   :  { %16215 = vmatprep.subr.mxu0 %v17546_v34 }
 0x739   :  { %v17779_v51 = vpop.f32.mrf.mxu1 }
 0x73a   :  { %16208 = vmatmul.mubr.msk.f32.vlgmr.msra.gmra.mxu0 %vm192_vm2, %v1023_v50 }
 0x73b   :  { %v17782_v52 = vpop.f32.mrf.mxu1  ;;  %16217 = vmatprep.mubr.msk.f32.mxu0 %vm17547_vm1, %v17546_v34 }
 0x73d   :  { %v1174_v53 = vpop.f32.mrf.mxu1 }
 0x73e   :  { %v1179_v54 = vmul.f32 0.5, %v1174_v53 }
 0x73f   :  { %v16214_v55 = vpop.f32.mrf.mxu1 }
 0x740   :  { %v1183_v56 = vsel %vm346_vm3, %v1179_v54, -inf }
 0x741   :  { %1184 = vmax.xlane.f32.xlu1 %v1183_v56  ;;  %v1772_v56 = vrot.slane %v17819_v21, 4 }
 0x752   :  { %1278 = vrot.lane.b32.xlu1 %v17683_v37, %s19675_s18 }
 0x756   :  { %1442 = vrot.lane.b32.xlu1 %v17685_v39, %s19673_s19 }
 0x75a   :  { %1520 = vrot.lane.b32.xlu1 %v17683_v37, %s19673_s19 }
 0x75e   :  { %1518 = vrot.lane.b32.xlu1 %v17683_v37, %s19671_s20 }
 0x7ca   :  { %v1185_v57 = vpop.xlane.xlu1 %1184 }
 0x7cb   :  { %v1187_v59 = vsub.f32 %v1179_v54, %v1185_v57 }
 0x7cd   :  { %v1190_v60 = vmul.f32 1.442695, %v1187_v59 }
 0x7ce   :  { %v1279_v58 = vpop.permute.xlu1 %1278 }
 0x7cf   :  { %16221 = vmatpush3.msra.mxu1 %v1279_v58  ;;  %17230 = vpow2.f32 %v1190_v60 }
 0x7d0   :  { %16230 = vmatprep.subr.mxu1 %v17546_v34 }
 0x7d2   :  { %v1443_v13 = vpop.permute.xlu1 %1442 }
 0x7d6   :  { %v1521_v26 = vpop.permute.xlu1 %1520 }
 0x7da   :  { %v1519_v29 = vpop.permute.xlu1 %1518 }
 0x7dc   :  { %v17231_v3 = vpop.eup %17230 }
 0x7dd   :  { %v1195_v4 = vsel %vm346_vm3, %v17231_v3, 0.0 }
 0x7f6   :  { %v17796_v61 = vpop.f32.mrf.mxu0 }
 0x7f7   :  { %v1019_v36 = vadd.f32 %v17779_v51, %v17796_v61 }
 0x7f8   :  { %v17798_v62 = vpop.f32.mrf.mxu0 }
 0x7fa   :  { %v1096_v63 = vpop.f32.mrf.mxu0 }
 0x7fb   :  { %v1178_v0 = vmul.f32 0.5, %v1096_v63 }
 0x7fc   :  { %v16209_v1 = vpop.f32.mrf.mxu0 }
 0x7fd   :  { %v1180_v2 = vsel %vm346_vm3, %v1178_v0, -inf }
 0x7fe   :  { %1181 = vmax.xlane.f32.xlu0 %v1180_v2 }
 0x802   :  { %1196 = vadd.xlane.f32.xlu0 %v1195_v4 }
 0x887   :  { %v1182_v5 = vpop.xlane.xlu0 %1181 }
 0x888   :  { %v1186_v6 = vsub.f32 %v1178_v0, %v1182_v5 }
 0x88a   :  { %v1188_v7 = vmul.f32 1.442695, %v1186_v6 }
 0x88b   :  { %v1197_v8 = vpop.xlane.xlu0 %1196 }
 0x88c   :  { %17232 = vpow2.f32 %v1188_v7 }
 0x88d   :  { %17234 = vrcp.f32 %v1197_v8 }
 0x899   :  { %v17233_v9 = vpop.eup %17232 }
 0x89a   :  { %v17235_v10 = vpop.eup %17234  ;;  %v1192_v11 = vsel %vm346_vm3, %v17233_v9, 0.0 }
 0x89b   :  { %1193 = vadd.xlane.f32.xlu0 %v1192_v11  ;;  %v1201_v12 = vmul.f32 %v17235_v10, %v17231_v3 }
 0x89d   :  { %16223 = vmatmul.mubr.msk.f32.vlgmr.msra.gmra.mxu1 %vm346_vm3, %v1201_v12 }
 0x89e   :  { %16231 = vmatpush3.xpose.msk.msra.mxu1 %vm192_vm2, %v1443_v13  ;;  %16232 = vmatprep.mubr.msk.f32.mxu1 %vm17547_vm1, %v17546_v34 }
 0x89f   :  { %16240 = vmatprep.subr.mxu1 %v17546_v34 }
 0x8b1   :  { %1202 = vrot.lane.b32.xlu0 %v17685_v39, %s19675_s18 }
 0x8b5   :  { %1440 = vrot.lane.b32.xlu0 %v17685_v39, %s19671_s20 }
 0x924   :  { %v1194_v14 = vpop.xlane.xlu0 %1193 }
 0x925   :  { %17236 = vrcp.f32 %v1194_v14 }
 0x928   :  { %v1203_v15 = vpop.permute.xlu0 %1202 }
 0x929   :  { %16216 = vmatpush3.msra.mxu0 %v1203_v15 }
 0x92a   :  { %16225 = vmatprep.subr.msk.mxu0 %vm861_vm4, %v17819_v21 }
 0x92c   :  { %v1441_v16 = vpop.permute.xlu0 %1440 }
 0x92d   :  { %16233 = vmatmul.mubr.msk.f32.vlgmr.msra.gmra.mxu1 %vm192_vm2, %v1441_v16 }
 0x92e   :  { %16242 = vmatprep.mubr.msk.f32.mxu1 %vm17547_vm1, %v17546_v34 }
 0x932   :  { %v17237_v17 = vpop.eup %17236 }
 0x933   :  { %v1200_v18 = vmul.f32 %v17237_v17, %v17233_v9 }
 0x935   :  { %16218 = vmatmul.mubr.msk.f32.vlgmr.msra.gmra.mxu0 %vm346_vm3, %v1200_v18 }
 0x936   :  { %16226 = vmatpush3.msk.msra.mxu0 %vm861_vm4, %v17819_v21 }
 0x937   :  { %16235 = vmatprep.subr.mxu0 %v17546_v34 }
 0x95d   :  { %v1350_v19 = vpop.f32.mrf.mxu1 }
 0x95f   :  { %v16224_v20 = vpop.f32.mrf.mxu1 }
 0x9ed   :  { %v1514_v22 = vpop.f32.mrf.mxu1 }
 0x9ee   :  { %v1596_v23 = vmul.f32 0.5, %v1514_v22 }
 0x9ef   :  { %v16234_v24 = vpop.f32.mrf.mxu1 }
 0x9f0   :  { %v1598_v25 = vsel %vm346_vm3, %v1596_v23, -inf }
 0x9f1   :  { %1599 = vmax.xlane.f32.xlu0 %v1598_v25 }
 0x9f5   :  { %v1274_v27 = vpop.f32.mrf.mxu0 }
 0x9f6   :  { %16227 = vmatprep.mubr.msk.f32.mxu0 %vm192_vm2, %v1274_v27 }
 0x9f7   :  { %v16219_v28 = vpop.f32.mrf.mxu0  ;;  %16228 = vmatmul.mubr.msk.f32.vlgmr.msra.gmra.mxu0 %vm192_vm2, %v1350_v19 }
 0x9f8   :  { %16236 = vmatpush3.xpose.msk.msra.mxu0 %vm192_vm2, %v1521_v26  ;;  %16237 = vmatprep.mubr.msk.f32.mxu0 %vm17547_vm1, %v17546_v34 }
 0x9f9   :  { %16245 = vmatprep.subr.mxu0 %v17546_v34 }
 0x9fb   :  { %16238 = vmatmul.mubr.msk.f32.vlgmr.msra.gmra.mxu0 %vm192_vm2, %v1519_v29 }
 0x9fc   :  { %16247 = vmatprep.mubr.msk.f32.mxu0 %vm17547_vm1, %v17546_v34 }
 0xa7a   :  { %v1600_v30 = vpop.xlane.xlu0 %1599 }
 0xa7b   :  { %v1604_v31 = vsub.f32 %v1596_v23, %v1600_v30 }
 0xa7d   :  { %v1606_v32 = vmul.f32 1.442695, %v1604_v31 }
 0xa7f   :  { %17238 = vpow2.f32 %v1606_v32 }
 0xa8c   :  { %v17239_v33 = vpop.eup %17238 }
 0xa8d   :  { %v1610_v35 = vsel %vm346_vm3, %v17239_v33, 0.0 }
 0xa8e   :  { %1611 = vadd.xlane.f32.xlu0 %v1610_v35 }
 0xab7   :  { %v16229_v38 = vpop.f32.mrf.mxu0 }
 0xab8   :  { %v17839_v40 = vadd.f32 %v16229_v38, %v1019_v36 }
 0xab9   :  { %v17841_v41 = vpop.f32.mrf.mxu0 }
 0xabb   :  { %v1592_v42 = vpop.f32.mrf.mxu0 }
 0xabc   :  { %v1597_v43 = vmul.f32 0.5, %v1592_v42 }
 0xabd   :  { %v16239_v44 = vpop.f32.mrf.mxu0 }
 0xabe   :  { %v1601_v45 = vsel %vm346_vm3, %v1597_v43, -inf }
 0xabf   :  { %1602 = vmax.xlane.f32.xlu1 %v1601_v45 }
 0xad0   :  { %1696 = vrot.lane.b32.xlu1 %v17683_v37, %s19669_s23 }
 0xad4   :  { %1860 = vrot.lane.b32.xlu1 %v17685_v39, %s19667_s24 }
 0xad8   :  { %1938 = vrot.lane.b32.xlu1 %v17683_v37, %s19667_s24  ;;  %s19714_s24 = smov 72  }
 0xadc   :  { %1936 = vrot.lane.b32.xlu1 %v17683_v37, %s19665_s25 }
 0xb17   :  { %v1612_v53 = vpop.xlane.xlu0 %1611 }
 0xb48   :  { %v1603_v46 = vpop.xlane.xlu1 %1602 }
 0xb49   :  { %v1605_v47 = vsub.f32 %v1597_v43, %v1603_v46 }
 0xb4b   :  { %v1608_v48 = vmul.f32 1.442695, %v1605_v47 }
 0xb4c   :  { %v1697_v49 = vpop.permute.xlu1 %1696 }
 0xb4d   :  { %17240 = vpow2.f32 %v1608_v48  ;;  %16246 = vmatpush3.msra.mxu0 %v1697_v49 }
 0xb4e   :  { %16255 = vmatprep.subr.mxu0 %v17546_v34  ;;  %17242 = vrcp.f32 %v1612_v53 }
 0xb50   :  { %v1861_v61 = vpop.permute.xlu1 %1860 }
 0xb54   :  { %v1939_v2 = vpop.permute.xlu1 %1938 }
 0xb58   :  { %v1937_v5 = vpop.permute.xlu1 %1936 }
 0xb5a   :  { %v17241_v50 = vpop.eup %17240 }
 0xb5b   :  { %v1613_v51 = vsel %vm346_vm3, %v17241_v50, 0.0  ;;  %v17243_v55 = vpop.eup %17242 }
 0xb5c   :  { %1614 = vadd.xlane.f32.xlu0 %v1613_v51  ;;  %v1618_v58 = vmul.f32 %v17243_v55, %v17239_v33 }
 0xb72   :  { %1620 = vrot.lane.b32.xlu0 %v17685_v39, %s19669_s23  ;;  %s19711_s23 = smov 76  }
 0xb76   :  { %1858 = vrot.lane.b32.xlu0 %v17685_v39, %s19665_s25  ;;  %s19707_s25 = smov 52  }
 0xbe5   :  { %v1615_v54 = vpop.xlane.xlu0 %1614 }
 0xbe6   :  { %17244 = vrcp.f32 %v1615_v54 }
 0xbe9   :  { %v1621_v57 = vpop.permute.xlu0 %1620 }
 0xbea   :  { %16241 = vmatpush3.msra.mxu1 %v1621_v57 }
 0xbeb   :  { %16243 = vmatmul.mubr.msk.f32.vlgmr.msra.gmra.mxu1 %vm346_vm3, %v1618_v58  ;;  %16250 = vmatprep.subr.msk.mxu1 %vm861_vm4, %v1772_v56 }
 0xbec   :  { %16251 = vmatpush3.msk.msra.mxu1 %vm861_vm4, %v1772_v56 }
 0xbed   :  { %16260 = vmatprep.subr.mxu1 %v17546_v34  ;;  %v1859_v63 = vpop.permute.xlu0 %1858 }
 0xbf3   :  { %v17245_v59 = vpop.eup %17244 }
 0xbf4   :  { %v1619_v60 = vmul.f32 %v17245_v59, %v17241_v50 }
 0xbf6   :  { %16248 = vmatmul.mubr.msk.f32.vlgmr.msra.gmra.mxu0 %vm346_vm3, %v1619_v60 }
 0xbf7   :  { %16256 = vmatpush3.xpose.msk.msra.mxu0 %vm192_vm2, %v1861_v61  ;;  %16257 = vmatprep.mubr.msk.f32.mxu0 %vm17547_vm1, %v17546_v34 }
 0xbf8   :  { %16265 = vmatprep.subr.mxu0 %v17546_v34 }
 0xbfa   :  { %16258 = vmatmul.mubr.msk.f32.vlgmr.msra.gmra.mxu0 %vm192_vm2, %v1859_v63 }
 0xbfb   :  { %16267 = vmatprep.mubr.msk.f32.mxu0 %vm17547_vm1, %v17546_v34 }
 0xcab   :  { %v1692_v0 = vpop.f32.mrf.mxu1 }
 0xcac   :  { %16252 = vmatprep.mubr.msk.f32.mxu1 %vm192_vm2, %v1692_v0 }
 0xcad   :  { %v16244_v1 = vpop.f32.mrf.mxu1 }
 0xcb6   :  { %v1768_v3 = vpop.f32.mrf.mxu0 }
 0xcb7   :  { %16253 = vmatmul.mubr.msk.f32.vlgmr.msra.gmra.mxu1 %vm192_vm2, %v1768_v3 }
 0xcb8   :  { %16261 = vmatpush3.xpose.msk.msra.mxu1 %vm192_vm2, %v1939_v2  ;;  %v16249_v4 = vpop.f32.mrf.mxu0  ;;  %16262 = vmatprep.mubr.msk.f32.mxu1 %vm17547_vm1, %v17546_v34 }
 0xcb9   :  { %16270 = vmatprep.subr.mxu1 %v17546_v34 }
 0xcba   :  { %v1932_v6 = vpop.f32.mrf.mxu0 }
 0xcbb   :  { %v2014_v7 = vmul.f32 0.5, %v1932_v6  ;;  %16263 = vmatmul.mubr.msk.f32.vlgmr.msra.gmra.mxu1 %vm192_vm2, %v1937_v5 }
 0xcbc   :  { %v16259_v8 = vpop.f32.mrf.mxu0  ;;  %16272 = vmatprep.mubr.msk.f32.mxu1 %vm17547_vm1, %v17546_v34 }
 0xcbd   :  { %v2016_v9 = vsel %vm346_vm3, %v2014_v7, -inf }
 0xcbe   :  { %2017 = vmax.xlane.f32.xlu0 %v2016_v9 }
 0xd47   :  { %v2018_v10 = vpop.xlane.xlu0 %2017 }
 0xd48   :  { %v2022_v11 = vsub.f32 %v2014_v7, %v2018_v10 }
 0xd4a   :  { %v2024_v12 = vmul.f32 1.442695, %v2022_v11 }
 0xd4c   :  { %17246 = vpow2.f32 %v2024_v12 }
 0xd59   :  { %v17247_v13 = vpop.eup %17246 }
 0xd5a   :  { %v2028_v14 = vsel %vm346_vm3, %v17247_v13, 0.0 }
 0xd5b   :  { %2029 = vadd.xlane.f32.xlu0 %v2028_v14 }
 0xd77   :  { %v16254_v15 = vpop.f32.mrf.mxu1 }
 0xd78   :  { %v17883_v16 = vadd.f32 %v16254_v15, %v17839_v40  ;;  %v17914_v40 = vld [vmem:[%s19636_s5 + $0x10] sm:$0xff] }
 0xd79   :  { %v17885_v17 = vpop.f32.mrf.mxu1  ;;  %v2608_v11 = vrot.slane %v17914_v40, 4 }
 0xd7b   :  { %v2010_v18 = vpop.f32.mrf.mxu1 }
 0xd7c   :  { %v2015_v19 = vmul.f32 0.5, %v2010_v18 }
 0xd7d   :  { %v16264_v20 = vpop.f32.mrf.mxu1 }
 0xd7e   :  { %v2019_v21 = vsel %vm346_vm3, %v2015_v19, -inf }
 0xd7f   :  { %2020 = vmax.xlane.f32.xlu1 %v2019_v21 }
 0xd90   :  { %2114 = vrot.lane.b32.xlu1 %v17683_v37, %s19663_s16 }
 0xd94   :  { %2278 = vrot.lane.b32.xlu1 %v17685_v39, %s19647_s17 }
 0xd98   :  { %2356 = vrot.lane.b32.xlu1 %v17683_v37, %s19647_s17  ;;  %s19649_s17 = smov 104  }
 0xd9c   :  { %2354 = vrot.lane.b32.xlu1 %v17683_v37, %s19645_s21 }
 0xde4   :  { %v2030_v28 = vpop.xlane.xlu0 %2029 }
 0xe08   :  { %v2021_v22 = vpop.xlane.xlu1 %2020 }
 0xe09   :  { %v2023_v23 = vsub.f32 %v2015_v19, %v2021_v22 }
 0xe0b   :  { %v2026_v24 = vmul.f32 1.442695, %v2023_v23 }
 0xe0c   :  { %v2115_v25 = vpop.permute.xlu1 %2114 }
 0xe0d   :  { %17248 = vpow2.f32 %v2026_v24  ;;  %16271 = vmatpush3.msra.mxu1 %v2115_v25 }
 0xe0e   :  { %16280 = vmatprep.subr.mxu1 %v17546_v34  ;;  %17250 = vrcp.f32 %v2030_v28 }
 0xe10   :  { %v2279_v36 = vpop.permute.xlu1 %2278 }
 0xe14   :  { %v2357_v44 = vpop.permute.xlu1 %2356 }
 0xe18   :  { %v2355_v47 = vpop.permute.xlu1 %2354 }
 0xe1a   :  { %v17249_v26 = vpop.eup %17248 }
 0xe1b   :  { %v2031_v27 = vsel %vm346_vm3, %v17249_v26, 0.0  ;;  %v17251_v30 = vpop.eup %17250 }
 0xe1c   :  { %2032 = vadd.xlane.f32.xlu0 %v2031_v27  ;;  %v2036_v32 = vmul.f32 %v17251_v30, %v17247_v13 }
 0xe32   :  { %2038 = vrot.lane.b32.xlu0 %v17685_v39, %s19663_s16  ;;  %s19708_s16 = smov 80  }
 0xe36   :  { %2276 = vrot.lane.b32.xlu0 %v17685_v39, %s19645_s21  ;;  %s19653_s21 = smov 44  }
 0xea5   :  { %v2033_v29 = vpop.xlane.xlu0 %2032 }
 0xea6   :  { %17252 = vrcp.f32 %v2033_v29 }
 0xea9   :  { %v2039_v31 = vpop.permute.xlu0 %2038 }
 0xeaa   :  { %16266 = vmatpush3.msra.mxu0 %v2039_v31 }
 0xeab   :  { %16268 = vmatmul.mubr.msk.f32.vlgmr.msra.gmra.mxu0 %vm346_vm3, %v2036_v32  ;;  %16275 = vmatprep.subr.msk.mxu0 %vm861_vm4, %v17914_v40 }
 0xeac   :  { %16276 = vmatpush3.msk.msra.mxu0 %vm861_vm4, %v17914_v40 }
 0xead   :  { %v2277_v38 = vpop.permute.xlu0 %2276  ;;  %16285 = vmatprep.subr.mxu0 %v17546_v34 }
 0xeb3   :  { %v17253_v33 = vpop.eup %17252 }
 0xeb4   :  { %v2037_v35 = vmul.f32 %v17253_v33, %v17249_v26 }
 0xeb6   :  { %16273 = vmatmul.mubr.msk.f32.vlgmr.msra.gmra.mxu1 %vm346_vm3, %v2037_v35 }
 0xeb7   :  { %16281 = vmatpush3.xpose.msk.msra.mxu1 %vm192_vm2, %v2279_v36  ;;  %16282 = vmatprep.mubr.msk.f32.mxu1 %vm17547_vm1, %v17546_v34 }
 0xeb8   :  { %16290 = vmatprep.subr.mxu1 %v17546_v34 }
 0xeba   :  { %16283 = vmatmul.mubr.msk.f32.vlgmr.msra.gmra.mxu1 %vm192_vm2, %v2277_v38 }
 0xebb   :  { %16292 = vmatprep.mubr.msk.f32.mxu1 %vm17547_vm1, %v17546_v34 }
 0xf6b   :  { %v2110_v42 = vpop.f32.mrf.mxu0 }
 0xf6c   :  { %16277 = vmatprep.mubr.msk.f32.mxu0 %vm192_vm2, %v2110_v42 }
 0xf6d   :  { %v16269_v43 = vpop.f32.mrf.mxu0 }
 0xf76   :  { %v2186_v45 = vpop.f32.mrf.mxu1 }
 0xf77   :  { %16278 = vmatmul.mubr.msk.f32.vlgmr.msra.gmra.mxu0 %vm192_vm2, %v2186_v45 }
 0xf78   :  { %16286 = vmatpush3.xpose.msk.msra.mxu0 %vm192_vm2, %v2357_v44  ;;  %v16274_v46 = vpop.f32.mrf.mxu1  ;;  %16287 = vmatprep.mubr.msk.f32.mxu0 %vm17547_vm1, %v17546_v34 }
 0xf79   :  { %16295 = vmatprep.subr.mxu0 %v17546_v34 }
 0xf7a   :  { %v2350_v48 = vpop.f32.mrf.mxu1 }
 0xf7b   :  { %v2432_v49 = vmul.f32 0.5, %v2350_v48  ;;  %16288 = vmatmul.mubr.msk.f32.vlgmr.msra.gmra.mxu0 %vm192_vm2, %v2355_v47 }
 0xf7c   :  { %v16284_v50 = vpop.f32.mrf.mxu1  ;;  %16297 = vmatprep.mubr.msk.f32.mxu0 %vm17547_vm1, %v17546_v34 }
 0xf7d   :  { %v2434_v51 = vsel %vm346_vm3, %v2432_v49, -inf }
 0xf7e   :  { %2435 = vmax.xlane.f32.xlu0 %v2434_v51 }
0x1007   :  { %v2436_v53 = vpop.xlane.xlu0 %2435 }
0x1008   :  { %v2440_v54 = vsub.f32 %v2432_v49, %v2436_v53 }
0x100a   :  { %v2442_v55 = vmul.f32 1.442695, %v2440_v54 }
0x100c   :  { %17254 = vpow2.f32 %v2442_v55 }
0x1019   :  { %v17255_v56 = vpop.eup %17254 }
0x101a   :  { %v2446_v57 = vsel %vm346_vm3, %v17255_v56, 0.0 }
0x101b   :  { %2447 = vadd.xlane.f32.xlu0 %v2446_v57 }
0x1037   :  { %v16279_v58 = vpop.f32.mrf.mxu0 }
0x1038   :  { %v17933_v59 = vadd.f32 %v16279_v58, %v17883_v16 }
0x1039   :  { %v17935_v60 = vpop.f32.mrf.mxu0 }
0x103b   :  { %v2428_v61 = vpop.f32.mrf.mxu0 }
0x103c   :  { %v2433_v63 = vmul.f32 0.5, %v2428_v61 }
0x103d   :  { %v16289_v0 = vpop.f32.mrf.mxu0 }
0x103e   :  { %v2437_v1 = vsel %vm346_vm3, %v2433_v63, -inf }
0x103f   :  { %2438 = vmax.xlane.f32.xlu1 %v2437_v1 }
0x1050   :  { %2532 = vrot.lane.b32.xlu1 %v17683_v37, %s19653_s21 }
0x1054   :  { %2696 = vrot.lane.b32.xlu1 %v17685_v39, %s19651_s22 }
0x1058   :  { %2774 = vrot.lane.b32.xlu1 %v17683_v37, %s19651_s22  ;;  %s19657_s22 = smov 68  }
0x105c   :  { %2772 = vrot.lane.b32.xlu1 %v17683_v37, %s19649_s17 }
0x10a4   :  { %v2448_v8 = vpop.xlane.xlu0 %2447 }
0x10c8   :  { %v2439_v2 = vpop.xlane.xlu1 %2438 }
0x10c9   :  { %v2441_v3 = vsub.f32 %v2433_v63, %v2439_v2  ;;  %v188_v63 = vld [vmem:[%s19636_s5 + $0x18] sm:$0xff] }
0x10cb   :  { %v2444_v4 = vmul.f32 1.442695, %v2441_v3 }
0x10cc   :  { %v2533_v5 = vpop.permute.xlu1 %2532 }
0x10cd   :  { %17256 = vpow2.f32 %v2444_v4  ;;  %16296 = vmatpush3.msra.mxu0 %v2533_v5 }
0x10ce   :  { %16305 = vmatprep.subr.mxu0 %v17546_v34  ;;  %17258 = vrcp.f32 %v2448_v8 }
0x10d0   :  { %v2697_v16 = vpop.permute.xlu1 %2696 }
0x10d4   :  { %v2775_v21 = vpop.permute.xlu1 %2774 }
0x10d8   :  { %v2773_v24 = vpop.permute.xlu1 %2772 }
0x10da   :  { %v17257_v6 = vpop.eup %17256 }
0x10db   :  { %v2449_v7 = vsel %vm346_vm3, %v17257_v6, 0.0  ;;  %v17259_v10 = vpop.eup %17258 }
0x10dc   :  { %2450 = vadd.xlane.f32.xlu0 %v2449_v7  ;;  %v2454_v13 = vmul.f32 %v17259_v10, %v17255_v56 }
0x10f2   :  { %2456 = vrot.lane.b32.xlu0 %v17685_v39, %s19653_s21  ;;  %s19655_s21 = smov 100  }
0x10f6   :  { %2694 = vrot.lane.b32.xlu0 %v17685_v39, %s19649_s17  ;;  %s19661_s17 = smov 40  }
0x1165   :  { %v2451_v9 = vpop.xlane.xlu0 %2450 }
0x1166   :  { %17260 = vrcp.f32 %v2451_v9 }
0x1169   :  { %v2457_v12 = vpop.permute.xlu0 %2456 }
0x116a   :  { %16291 = vmatpush3.msra.mxu1 %v2457_v12 }
0x116b   :  { %16293 = vmatmul.mubr.msk.f32.vlgmr.msra.gmra.mxu1 %vm346_vm3, %v2454_v13  ;;  %16300 = vmatprep.subr.msk.mxu1 %vm861_vm4, %v2608_v11 }
0x116c   :  { %16301 = vmatpush3.msk.msra.mxu1 %vm861_vm4, %v2608_v11 }
0x116d   :  { %16310 = vmatprep.subr.mxu1 %v17546_v34  ;;  %v2695_v18 = vpop.permute.xlu0 %2694 }
0x1173   :  { %v17261_v14 = vpop.eup %17260 }
0x1174   :  { %v2455_v15 = vmul.f32 %v17261_v14, %v17257_v6 }
0x1176   :  { %16298 = vmatmul.mubr.msk.f32.vlgmr.msra.gmra.mxu0 %vm346_vm3, %v2455_v15 }
0x1177   :  { %16306 = vmatpush3.xpose.msk.msra.mxu0 %vm192_vm2, %v2697_v16  ;;  %16307 = vmatprep.mubr.msk.f32.mxu0 %vm17547_vm1, %v17546_v34 }
0x1178   :  { %16315 = vmatprep.subr.mxu0 %v17546_v34 }
0x117a   :  { %16308 = vmatmul.mubr.msk.f32.vlgmr.msra.gmra.mxu0 %vm192_vm2, %v2695_v18 }
0x117b   :  { %16317 = vmatprep.mubr.msk.f32.mxu0 %vm17547_vm1, %v17546_v34 }
0x122b   :  { %v2528_v19 = vpop.f32.mrf.mxu1 }
0x122c   :  { %16302 = vmatprep.mubr.msk.f32.mxu1 %vm192_vm2, %v2528_v19 }
0x122d   :  { %v16294_v20 = vpop.f32.mrf.mxu1 }
0x1236   :  { %v2604_v22 = vpop.f32.mrf.mxu0 }
0x1237   :  { %16303 = vmatmul.mubr.msk.f32.vlgmr.msra.gmra.mxu1 %vm192_vm2, %v2604_v22 }
0x1238   :  { %16311 = vmatpush3.xpose.msk.msra.mxu1 %vm192_vm2, %v2775_v21  ;;  %v16299_v23 = vpop.f32.mrf.mxu0  ;;  %16312 = vmatprep.mubr.msk.f32.mxu1 %vm17547_vm1, %v17546_v34 }
0x1239   :  { %16320 = vmatprep.subr.mxu1 %v17546_v34 }
0x123a   :  { %v2768_v25 = vpop.f32.mrf.mxu0 }
0x123b   :  { %v2850_v26 = vmul.f32 0.5, %v2768_v25  ;;  %16313 = vmatmul.mubr.msk.f32.vlgmr.msra.gmra.mxu1 %vm192_vm2, %v2773_v24 }
0x123c   :  { %v16309_v27 = vpop.f32.mrf.mxu0  ;;  %16322 = vmatprep.mubr.msk.f32.mxu1 %vm17547_vm1, %v17546_v34 }
0x123d   :  { %v2852_v28 = vsel %vm346_vm3, %v2850_v26, -inf }
0x123e   :  { %2853 = vmax.xlane.f32.xlu0 %v2852_v28 }
0x12c7   :  { %v2854_v29 = vpop.xlane.xlu0 %2853 }
0x12c8   :  { %v2858_v30 = vsub.f32 %v2850_v26, %v2854_v29 }
0x12ca   :  { %v2860_v31 = vmul.f32 1.442695, %v2858_v30 }
0x12cc   :  { %17262 = vpow2.f32 %v2860_v31 }
0x12d9   :  { %v17263_v32 = vpop.eup %17262 }
0x12da   :  { %v2864_v33 = vsel %vm346_vm3, %v17263_v32, 0.0 }
0x12db   :  { %2865 = vadd.xlane.f32.xlu0 %v2864_v33 }
0x12f7   :  { %v16304_v35 = vpop.f32.mrf.mxu1 }
0x12f8   :  { %v17977_v36 = vadd.f32 %v16304_v35, %v17933_v59 }
0x12f9   :  { %v17979_v38 = vpop.f32.mrf.mxu1 }
0x12fb   :  { %v2846_v40 = vpop.f32.mrf.mxu1 }
0x12fc   :  { %v2851_v42 = vmul.f32 0.5, %v2846_v40 }
0x12fd   :  { %v16314_v43 = vpop.f32.mrf.mxu1 }
0x12fe   :  { %v2855_v44 = vsel %vm346_vm3, %v2851_v42, -inf }
0x12ff   :  { %2856 = vmax.xlane.f32.xlu1 %v2855_v44  ;;  %v1014_v44 = vadd.f32 %v17782_v52, %v17798_v62  ;;  %v17522_v52 = vld [vmem:[%s19631_s0 + $0x8] sm:$0xff] }
0x1310   :  { %2950 = vrot.lane.b32.xlu1 %v17683_v37, %s19661_s17 }
0x1314   :  { %3114 = vrot.lane.b32.xlu1 %v17685_v39, %s19657_s22 }
0x1318   :  { %3192 = vrot.lane.b32.xlu1 %v17683_v37, %s19657_s22  ;;  %s19712_s22 = smov 108  }
0x131c   :  { %3190 = vrot.lane.b32.xlu1 %v17683_v37, %s19655_s21 }
0x1364   :  { %v2866_v51 = vpop.xlane.xlu0 %2865 }
0x1388   :  { %v2857_v45 = vpop.xlane.xlu1 %2856 }
0x1389   :  { %v2859_v46 = vsub.f32 %v2851_v42, %v2857_v45  ;;  %v1438_v45 = vadd.f32 %v17841_v41, %v1014_v44  ;;  %v3688_v44 = vld [vmem:[%s19642_s11 + $0x8] sm:$0xff] }
0x138b   :  { %v2862_v47 = vmul.f32 1.442695, %v2859_v46  ;;  %v1856_v46 = vadd.f32 %v17885_v17, %v1438_v45  ;;  %v17523_v17 = vld [vmem:[%s19631_s0] sm:$0xff]  ;;  %s19713_s0 = smov 44  }
0x138c   :  { %v2951_v48 = vpop.permute.xlu1 %2950  ;;  %v3687_v45 = vld [vmem:[%s19642_s11] sm:$0xff] }
0x138d   :  { %17264 = vpow2.f32 %v2862_v47  ;;  %16321 = vmatpush3.msra.mxu1 %v2951_v48  ;;  %v2274_v47 = vadd.f32 %v17935_v60, %v1856_v46  ;;  %v15300_v46 = vld [vmem:[%s19641_s10] ss:$0 sm:$0xff] }
0x138e   :  { %16330 = vmatprep.subr.mxu1 %v17546_v34  ;;  %17266 = vrcp.f32 %v2866_v51 }
0x138f   :  { %v2692_v48 = vadd.f32 %v17979_v38, %v2274_v47 }
0x1390   :  { %v3115_v59 = vpop.permute.xlu1 %3114 }
0x1394   :  { %v3193_v2 = vpop.permute.xlu1 %3192 }
0x1398   :  { %v3191_v5 = vpop.permute.xlu1 %3190 }
0x139a   :  { %v17265_v49 = vpop.eup %17264 }
0x139b   :  { %v2867_v50 = vsel %vm346_vm3, %v17265_v49, 0.0  ;;  %v17267_v54 = vpop.eup %17266 }
0x139c   :  { %2868 = vadd.xlane.f32.xlu0 %v2867_v50  ;;  %v2872_v56 = vmul.f32 %v17267_v54, %v17263_v32  ;;  %v3444_v32 = vrot.slane %v188_v63, 4 }
0x13b2   :  { %2874 = vrot.lane.b32.xlu0 %v17685_v39, %s19661_s17  ;;  %s19709_s17 = smov 112  }
0x13b6   :  { %3112 = vrot.lane.b32.xlu0 %v17685_v39, %s19655_s21  ;;  %s19659_s21 = smov 36  }
0x1425   :  { %v2869_v53 = vpop.xlane.xlu0 %2868 }
0x1426   :  { %17268 = vrcp.f32 %v2869_v53  ;;  %v15297_v53 = vld [vmem:[%s19637_s6] ss:$0 sm:$0xff] }
0x1429   :  { %v2875_v55 = vpop.permute.xlu0 %2874 }
0x142a   :  { %16316 = vmatpush3.msra.mxu0 %v2875_v55 }
0x142b   :  { %16318 = vmatmul.mubr.msk.f32.vlgmr.msra.gmra.mxu0 %vm346_vm3, %v2872_v56  ;;  %16325 = vmatprep.subr.msk.mxu0 %vm861_vm4, %v188_v63 }
0x142c   :  { %16326 = vmatpush3.msk.msra.mxu0 %vm861_vm4, %v188_v63 }
0x142d   :  { %v3113_v61 = vpop.permute.xlu0 %3112  ;;  %16335 = vmatprep.subr.mxu0 %v17546_v34 }
0x1433   :  { %v17269_v57 = vpop.eup %17268 }
0x1434   :  { %v2873_v58 = vmul.f32 %v17269_v57, %v17265_v49 }
0x1436   :  { %16323 = vmatmul.mubr.msk.f32.vlgmr.msra.gmra.mxu1 %vm346_vm3, %v2873_v58 }
0x1437   :  { %16331 = vmatpush3.xpose.msk.msra.mxu1 %vm192_vm2, %v3115_v59  ;;  %16332 = vmatprep.mubr.msk.f32.mxu1 %vm17547_vm1, %v17546_v34 }
0x1438   :  { %16340 = vmatprep.subr.mxu1 %v17546_v34 }
0x143a   :  { %16333 = vmatmul.mubr.msk.f32.vlgmr.msra.gmra.mxu1 %vm192_vm2, %v3113_v61 }
0x143b   :  { %16342 = vmatprep.mubr.msk.f32.mxu1 %vm17547_vm1, %v17546_v34 }
0x14eb   :  { %v2946_v0 = vpop.f32.mrf.mxu0 }
0x14ec   :  { %16327 = vmatprep.mubr.msk.f32.mxu0 %vm192_vm2, %v2946_v0 }
0x14ed   :  { %v16319_v1 = vpop.f32.mrf.mxu0 }
0x14f6   :  { %v3022_v3 = vpop.f32.mrf.mxu1 }
0x14f7   :  { %16328 = vmatmul.mubr.msk.f32.vlgmr.msra.gmra.mxu0 %vm192_vm2, %v3022_v3 }
0x14f8   :  { %16336 = vmatpush3.xpose.msk.msra.mxu0 %vm192_vm2, %v3193_v2  ;;  %v16324_v4 = vpop.f32.mrf.mxu1  ;;  %16337 = vmatprep.mubr.msk.f32.mxu0 %vm17547_vm1, %v17546_v34 }
0x14f9   :  { %16345 = vmatprep.subr.mxu0 %v17546_v34 }
0x14fa   :  { %v3186_v6 = vpop.f32.mrf.mxu1 }
0x14fb   :  { %v3268_v7 = vmul.f32 0.5, %v3186_v6  ;;  %16338 = vmatmul.mubr.msk.f32.vlgmr.msra.gmra.mxu0 %vm192_vm2, %v3191_v5  ;;  %v3588_v6 = vld [vmem:[%s19640_s9 + $0x18] sm:$0xff] }
0x14fc   :  { %v16334_v8 = vpop.f32.mrf.mxu1  ;;  %16347 = vmatprep.mubr.msk.f32.mxu0 %vm17547_vm1, %v17546_v34 }
0x14fd   :  { %v3270_v9 = vsel %vm346_vm3, %v3268_v7, -inf  ;;  %v3586_v8 = vld [vmem:[%s19640_s9 + $0x8] sm:$0xff] }
0x14fe   :  { %3271 = vmax.xlane.f32.xlu0 %v3270_v9  ;;  %v3585_v9 = vld [vmem:[%s19640_s9] sm:$0xff] }
0x1587   :  { %v3272_v10 = vpop.xlane.xlu0 %3271 }
0x1588   :  { %v3276_v11 = vsub.f32 %v3268_v7, %v3272_v10  ;;  %v3587_v7 = vld [vmem:[%s19640_s9 + $0x10] sm:$0xff]  ;;  %v3702_v10 = vld [vmem:[%s19642_s11 + $0x78] sm:$0xff] }
0x158a   :  { %v3278_v12 = vmul.f32 1.442695, %v3276_v11  ;;  %v3701_v11 = vld [vmem:[%s19642_s11 + $0x70] sm:$0xff] }
0x158c   :  { %17270 = vpow2.f32 %v3278_v12  ;;  %v3700_v12 = vld [vmem:[%s19642_s11 + $0x68] sm:$0xff] }
0x1599   :  { %v17271_v13 = vpop.eup %17270 }
0x159a   :  { %v3282_v14 = vsel %vm346_vm3, %v17271_v13, 0.0 }
0x159b   :  { %3283 = vadd.xlane.f32.xlu0 %v3282_v14 }
0x15b7   :  { %v16329_v15 = vpop.f32.mrf.mxu0 }
0x15b8   :  { %v3111_v16 = vadd.f32 %v16329_v15, %v17977_v36 }
0x15b9   :  { %v3101_v18 = vpop.f32.mrf.mxu0 }
0x15ba   :  { %v3110_v50 = vadd.f32 %v3101_v18, %v2692_v48 }
0x15bb   :  { %v3264_v19 = vpop.f32.mrf.mxu0 }
0x15bc   :  { %v3269_v20 = vmul.f32 0.5, %v3264_v19 }
0x15bd   :  { %v16339_v21 = vpop.f32.mrf.mxu0 }
0x15be   :  { %v3273_v22 = vsel %vm346_vm3, %v3269_v20, -inf  ;;  %v15298_v21 = vld [vmem:[%s19638_s7] ss:$0 sm:$0xff] }
0x15bf   :  { %3274 = vmax.xlane.f32.xlu1 %v3273_v22 }
0x15d0   :  { %3368 = vrot.lane.b32.xlu1 %v17683_v37, %s19659_s21 }
0x1624   :  { %v3284_v29 = vpop.xlane.xlu0 %3283 }
0x1648   :  { %v3275_v23 = vpop.xlane.xlu1 %3274 }
0x1649   :  { %v3277_v24 = vsub.f32 %v3269_v20, %v3275_v23 }
0x164b   :  { %v3280_v25 = vmul.f32 1.442695, %v3277_v24 }
0x164c   :  { %v3369_v26 = vpop.permute.xlu1 %3368 }
0x164d   :  { %17272 = vpow2.f32 %v3280_v25  ;;  %16346 = vmatpush3.msra.mxu0 %v3369_v26  ;;  %v15299_v26 = vld [vmem:[%s19639_s8] ss:$0 sm:$0xff] }
0x164e   :  { %17274 = vrcp.f32 %v3284_v29  ;;  %16355 = vmatprep.subr.mxu0 %v3588_v6 }
0x165a   :  { %v17273_v27 = vpop.eup %17272 }
0x165b   :  { %v3285_v28 = vsel %vm346_vm3, %v17273_v27, 0.0  ;;  %v17275_v31 = vpop.eup %17274 }
0x165c   :  { %3286 = vadd.xlane.f32.xlu0 %v3285_v28  ;;  %v3290_v33 = vmul.f32 %v17275_v31, %v17271_v13  ;;  %v3698_v31 = vld [vmem:[%s19642_s11 + $0x58] sm:$0xff] }
0x1672   :  { %3292 = vrot.lane.b32.xlu0 %v17685_v39, %s19659_s21  ;;  %s19710_s21 = smov 48  }
0x16e5   :  { %v3287_v30 = vpop.xlane.xlu0 %3286 }
0x16e6   :  { %17276 = vrcp.f32 %v3287_v30  ;;  %v3699_v30 = vld [vmem:[%s19642_s11 + $0x60] sm:$0xff] }
0x16e9   :  { %v3293_v37 = vpop.permute.xlu0 %3292 }
0x16ea   :  { %16341 = vmatpush3.msra.mxu1 %v3293_v37  ;;  %v3696_v37 = vld [vmem:[%s19642_s11 + $0x48] sm:$0xff] }
0x16eb   :  { %16343 = vmatmul.mubr.msk.f32.vlgmr.msra.gmra.mxu1 %vm346_vm3, %v3290_v33  ;;  %16350 = vmatprep.subr.msk.mxu1 %vm861_vm4, %v3444_v32  ;;  %v3695_v33 = vld [vmem:[%s19642_s11 + $0x40] sm:$0xff] }
0x16ec   :  { %16351 = vmatpush3.msk.msra.mxu1 %vm861_vm4, %v3444_v32  ;;  %v3697_v32 = vld [vmem:[%s19642_s11 + $0x50] sm:$0xff] }
0x16ed   :  { %16366 = vmatprep.subr.mxu1 %v3702_v10 }
0x16f3   :  { %v17277_v35 = vpop.eup %17276 }
0x16f4   :  { %v3291_v36 = vmul.f32 %v17277_v35, %v17273_v27  ;;  %v3694_v35 = vld [vmem:[%s19642_s11 + $0x38] sm:$0xff] }
0x16f6   :  { %16348 = vmatmul.mubr.msk.f32.vlgmr.msra.gmra.mxu0 %vm346_vm3, %v3291_v36  ;;  %v3693_v36 = vld [vmem:[%s19642_s11 + $0x30] sm:$0xff] }
0x16f7   :  { %16356 = vmatpush3.msra.mxu0 %v3588_v6 }
0x16f8   :  { %16357 = vmatprep.subr.mxu0 %v3587_v7 }
0x16f9   :  { %16358 = vmatpush3.msra.mxu0 %v3587_v7 }
0x16fa   :  { %16359 = vmatprep.subr.mxu0 %v3586_v8 }
0x16fb   :  { %16360 = vmatpush3.msra.mxu0 %v3586_v8 }
0x16fc   :  { %16361 = vmatprep.subr.mxu0 %v3585_v9 }
0x16fd   :  { %16362 = vmatpush3.msra.mxu0 %v3585_v9 }
0x17ab   :  { %v3364_v39 = vpop.f32.mrf.mxu1 }
0x17ac   :  { %16352 = vmatprep.mubr.msk.f32.mxu1 %vm192_vm2, %v3364_v39  ;;  %v3692_v39 = vld [vmem:[%s19642_s11 + $0x28] sm:$0xff] }
0x17ad   :  { %v16344_v40 = vpop.f32.mrf.mxu1 }
0x17ae   :  { %v3691_v40 = vld [vmem:[%s19642_s11 + $0x20] sm:$0xff] }
0x17b6   :  { %v3440_v42 = vpop.f32.mrf.mxu0 }
0x17b7   :  { %16353 = vmatmul.mubr.msk.f32.vlgmr.msra.gmra.mxu1 %vm192_vm2, %v3440_v42  ;;  %v3690_v42 = vld [vmem:[%s19642_s11 + $0x18] sm:$0xff] }
0x17b8   :  { %v16349_v43 = vpop.f32.mrf.mxu0  ;;  %16367 = vmatpush3.msra.mxu1 %v3702_v10 }
0x17b9   :  { %16368 = vmatprep.subr.mxu1 %v3701_v11  ;;  %v3689_v43 = vld [vmem:[%s19642_s11 + $0x10] sm:$0xff] }
0x17ba   :  { %16369 = vmatpush3.msra.mxu1 %v3701_v11 }
0x17bb   :  { %16370 = vmatprep.subr.mxu1 %v3700_v12 }
0x17bc   :  { %16371 = vmatpush3.msra.mxu1 %v3700_v12 }
0x17bd   :  { %16372 = vmatprep.subr.mxu1 %v3699_v30 }
0x17be   :  { %16373 = vmatpush3.msra.mxu1 %v3699_v30  ;;  %v15307_v30 = vld [vmem:[%s19633_s2 + $0x1] ss:$0 sm:$0xff] }
0x17bf   :  { %16374 = vmatprep.subr.mxu1 %v3698_v31 }
0x17c0   :  { %16375 = vmatpush3.msra.mxu1 %v3698_v31 }
0x17c1   :  { %16376 = vmatprep.subr.mxu1 %v3697_v32 }
0x17c2   :  { %16377 = vmatpush3.msra.mxu1 %v3697_v32 }
0x17c3   :  { %16378 = vmatprep.subr.mxu1 %v3696_v37 }
0x17c4   :  { %16379 = vmatpush3.msra.mxu1 %v3696_v37 }
0x17c5   :  { %16380 = vmatprep.subr.mxu1 %v3695_v33 }
0x17c6   :  { %16381 = vmatpush3.msra.mxu1 %v3695_v33  ;;  %v15313_v33 = vld [vmem:[%s19635_s4 + $0x1] ss:$0 sm:$0xff] }
0x17c7   :  { %16382 = vmatprep.subr.mxu1 %v3694_v35 }
0x17c8   :  { %16383 = vmatpush3.msra.mxu1 %v3694_v35 }
0x17c9   :  { %16384 = vmatprep.subr.mxu1 %v3693_v36 }
0x17ca   :  { %16385 = vmatpush3.msra.mxu1 %v3693_v36 }
0x17cb   :  { %16386 = vmatprep.subr.mxu1 %v3692_v39 }
0x17cc   :  { %16387 = vmatpush3.msra.mxu1 %v3692_v39 }
0x17cd   :  { %16388 = vmatprep.subr.mxu1 %v3691_v40 }
0x17ce   :  { %16389 = vmatpush3.msra.mxu1 %v3691_v40 }
0x17cf   :  { %16390 = vmatprep.subr.mxu1 %v3690_v42 }
0x17d0   :  { %16391 = vmatpush3.msra.mxu1 %v3690_v42 }
0x17d1   :  { %16392 = vmatprep.subr.mxu1 %v3689_v43 }
0x17d2   :  { %16393 = vmatpush3.msra.mxu1 %v3689_v43 }
0x17d3   :  { %16394 = vmatprep.subr.mxu1 %v3688_v44 }
0x17d4   :  { %16395 = vmatpush3.msra.mxu1 %v3688_v44 }
0x17d5   :  { %16396 = vmatprep.subr.mxu1 %v3687_v45 }
0x17d6   :  { %16397 = vmatpush3.msra.mxu1 %v3687_v45 }
0x17d7   :  { %16437 = vmatprep.subr.mxu1 %v17546_v34 }
0x1877   :  { %v16354_v49 = vpop.f32.mrf.mxu1 }
0x1878   :  { %v3529_v51 = vadd.f32 %v16354_v49, %v3111_v16 }
0x1879   :  { %v3519_v54 = vpop.f32.mrf.mxu1 }
0x187a   :  { %v3531_v62 = vadd.f32 %v17522_v52, %v3529_v51  ;;  %v3528_v41 = vadd.f32 %v3519_v54, %v3110_v50 }
0x187c   :  { %v18047_v55 = vadd.f32 %v15297_v53, %v3531_v62  ;;  %v3530_v60 = vadd.f32 %v17523_v17, %v3528_v41 }
0x187e   :  { %v3546_v38 = vsel %vm49_vm0, %v18047_v55, 0.0  ;;  %v18054_v56 = vadd.f32 %v15297_v53, %v3530_v60 }
0x187f   :  { %3547 = vadd.xlane.f32.xlu0 %v3546_v38 }
0x1880   :  { %v3543_v57 = vsel %vm49_vm0, %v18054_v56, 0.0 }
0x1881   :  { %3544 = vadd.xlane.f32.xlu1 %v3543_v57 }
0x1908   :  { %v3548_v58 = vpop.xlane.xlu0 %3547 }
0x1909   :  { %v3550_v59 = vmul.f32 0.03125, %v3548_v58  ;;  %v15303_v58 = vld [vmem:[%s19643_s12] ss:$0 sm:$0xff] }
0x190a   :  { %v3545_v61 = vpop.xlane.xlu1 %3544 }
0x190b   :  { %v3552_v63 = vsub.f32 %v18047_v55, %v3550_v59  ;;  %v3549_v0 = vmul.f32 0.03125, %v3545_v61 }
0x190d   :  { %v3551_v1 = vsub.f32 %v18054_v56, %v3549_v0  ;;  %v3554_v2 = vmul.f32 %v3552_v63, %v3552_v63 }
0x190f   :  { %v3558_v3 = vsel %vm49_vm0, %v3554_v2, 0.0  ;;  %v3553_v4 = vmul.f32 %v3551_v1, %v3551_v1 }
0x1910   :  { %3559 = vadd.xlane.f32.xlu1 %v3558_v3 }
0x1911   :  { %v3555_v5 = vsel %vm49_vm0, %v3553_v4, 0.0 }
0x1912   :  { %3556 = vadd.xlane.f32.xlu0 %v3555_v5 }
0x1999   :  { %v3560_v13 = vpop.xlane.xlu1 %3559 }
0x199a   :  { %v3562_v14 = vmul.f32 0.03125, %v3560_v13  ;;  %v15311_v13 = vld [vmem:[%s19634_s3 + $0x38] sm:$0xff] }
0x199b   :  { %v3557_v15 = vpop.xlane.xlu0 %3556  ;;  %16401 = vmatprep.subr.mxu0 %v15311_v13 }
0x199c   :  { %v3564_v16 = vadd.f32 1e-05, %v3562_v14  ;;  %v3561_v18 = vmul.f32 0.03125, %v3557_v15  ;;  %v15310_v14 = vld [vmem:[%s19634_s3 + $0x30] sm:$0xff]  ;;  %v15309_v15 = vld [vmem:[%s19634_s3 + $0x28] sm:$0xff] }
0x199e   :  { %17278 = vrsqrt.f32 %v3564_v16  ;;  %v3563_v19 = vadd.f32 1e-05, %v3561_v18  ;;  %v15308_v16 = vld [vmem:[%s19634_s3 + $0x20] sm:$0xff] }
0x19a0   :  { %17280 = vrsqrt.f32 %v3563_v19 }
0x19ab   :  { %v17279_v20 = vpop.eup %17278 }
0x19ac   :  { %v3568_v22 = vmul.f32 %v17279_v20, %v3552_v63 }
0x19ad   :  { %v17281_v23 = vpop.eup %17280 }
0x19ae   :  { %v3567_v24 = vmul.f32 %v17281_v23, %v3551_v1  ;;  %v3576_v25 = vmul.f32 %v15298_v21, %v3568_v22 }
0x19b0   :  { %v3575_v27 = vmul.f32 %v15298_v21, %v3567_v24  ;;  %v3584_v29 = vadd.f32 %v15299_v26, %v3576_v25  ;;  %v15306_v25 = vld [vmem:[%s19632_s1 + $0x1] ss:$0 sm:$0xff] }
0x19b2   :  { %v3583_v28 = vadd.f32 %v15299_v26, %v3575_v27 }
0x19b4   :  { %16363 = vmatprep.mubr.msk.f32.mxu0 %vm49_vm0, %v3583_v28 }
0x19b5   :  { %16364 = vmatmul.mubr.msk.f32.vlgmr.msra.gmra.mxu0 %vm49_vm0, %v3584_v29 }
0x19b6   :  { %16402 = vmatpush3.msra.mxu0 %v15311_v13 }
0x19b7   :  { %16403 = vmatprep.subr.mxu0 %v15310_v14 }
0x19b8   :  { %16404 = vmatpush3.msra.mxu0 %v15310_v14 }
0x19b9   :  { %16405 = vmatprep.subr.mxu0 %v15309_v15 }
0x19ba   :  { %16406 = vmatpush3.msra.mxu0 %v15309_v15 }
0x19bb   :  { %16407 = vmatprep.subr.mxu0 %v15308_v16 }
0x19bc   :  { %16408 = vmatpush3.msra.mxu0 %v15308_v16 }
0x19bd   :  { %16412 = vmatprep.subr.mxu0 %v17546_v34 }
0x1a75   :  { %v16365_v47 = vpop.f32.mrf.mxu0 }
0x1a76   :  { %v3674_v48 = vadd.f32 %v16365_v47, %v15300_v46 }
0x1a77   :  { %v3668_v49 = vpop.f32.mrf.mxu0 }
0x1a78   :  { %v3680_v50 = vmul.f32 0.70710677, %v3674_v48  ;;  %v3669_v51 = vadd.f32 %v15300_v46, %v3668_v49  ;;  %v3678_v60 = vmul.f32 0.5, %v3674_v48 }
0x1a7a   :  { %17282 = verf.f32 %v3680_v50  ;;  %v3679_v53 = vmul.f32 0.70710677, %v3669_v51  ;;  %v3677_v41 = vmul.f32 0.5, %v3669_v51 }
0x1a7c   :  { %17284 = verf.f32 %v3679_v53 }
0x1a87   :  { %v17283_v54 = vpop.eup %17282 }
0x1a88   :  { %v3684_v62 = vadd.f32 1.0, %v17283_v54 }
0x1a89   :  { %v17285_v52 = vpop.eup %17284 }
0x1a8a   :  { %v3683_v17 = vadd.f32 1.0, %v17285_v52  ;;  %v3686_v57 = vmul.f32 %v3684_v62, %v3678_v60 }
0x1a8c   :  { %v3685_v38 = vmul.f32 %v3683_v17, %v3677_v41 }
0x1a8e   :  { %16398 = vmatprep.mubr.f32.mxu1 %v3685_v38 }
0x1a8f   :  { %16399 = vmatmul.mubr.f32.vlgmr.msra.gmra.mxu1 %v3686_v57 }
0x1a90   :  { %16439 = vmatprep.mubr.msk.f32.mxu1 %vm17547_vm1, %v17546_v34 }
0x1b4f   :  { %v16400_v59 = vpop.f32.mrf.mxu1 }
0x1b50   :  { %v3782_v61 = vadd.f32 %v16400_v59, %v15303_v58 }
0x1b51   :  { %v3776_v63 = vpop.f32.mrf.mxu1 }
0x1b52   :  { %v18140_v0 = vadd.f32 %v3782_v61, %v18047_v55  ;;  %v3777_v1 = vadd.f32 %v15303_v58, %v3776_v63 }
0x1b54   :  { %v18143_v2 = vadd.f32 %v3777_v1, %v18054_v56  ;;  %v3794_v3 = vsel %vm49_vm0, %v18140_v0, 0.0 }
0x1b55   :  { %3795 = vadd.xlane.f32.xlu1 %v3794_v3 }
0x1b56   :  { %v3791_v4 = vsel %vm49_vm0, %v18143_v2, 0.0 }
0x1b57   :  { %3792 = vadd.xlane.f32.xlu0 %v3791_v4 }
0x1bde   :  { %v3796_v5 = vpop.xlane.xlu1 %3795 }
0x1bdf   :  { %v3798_v6 = vmul.f32 0.03125, %v3796_v5 }
0x1be0   :  { %v3793_v7 = vpop.xlane.xlu0 %3792 }
0x1be1   :  { %v3800_v8 = vsub.f32 %v18140_v0, %v3798_v6  ;;  %v3797_v9 = vmul.f32 0.03125, %v3793_v7 }
0x1be3   :  { %v3799_v55 = vsub.f32 %v18143_v2, %v3797_v9  ;;  %v3802_v10 = vmul.f32 %v3800_v8, %v3800_v8 }
0x1be5   :  { %v3806_v56 = vsel %vm49_vm0, %v3802_v10, 0.0  ;;  %v3801_v11 = vmul.f32 %v3799_v55, %v3799_v55 }
0x1be6   :  { %3807 = vadd.xlane.f32.xlu1 %v3806_v56 }
0x1be7   :  { %v3803_v12 = vsel %vm49_vm0, %v3801_v11, 0.0 }
0x1be8   :  { %3804 = vadd.xlane.f32.xlu0 %v3803_v12 }
0x1c6f   :  { %v3808_v18 = vpop.xlane.xlu1 %3807 }
0x1c70   :  { %v3810_v19 = vmul.f32 0.03125, %v3808_v18 }
0x1c71   :  { %v3805_v20 = vpop.xlane.xlu0 %3804 }
0x1c72   :  { %v3812_v21 = vadd.f32 1e-05, %v3810_v19  ;;  %v3809_v22 = vmul.f32 0.03125, %v3805_v20 }
0x1c74   :  { %17286 = vrsqrt.f32 %v3812_v21  ;;  %v3811_v23 = vadd.f32 1e-05, %v3809_v22 }
0x1c76   :  { %17288 = vrsqrt.f32 %v3811_v23 }
0x1c81   :  { %v17287_v24 = vpop.eup %17286 }
0x1c82   :  { %v3816_v26 = vmul.f32 %v17287_v24, %v3800_v8 }
0x1c83   :  { %v17289_v27 = vpop.eup %17288 }
0x1c84   :  { %v3815_v28 = vmul.f32 %v17289_v27, %v3799_v55  ;;  %v3824_v29 = vmul.f32 %v15306_v25, %v3816_v26 }
0x1c86   :  { %v3823_v31 = vmul.f32 %v15306_v25, %v3815_v28  ;;  %v3832_v37 = vadd.f32 %v15307_v30, %v3824_v29 }
0x1c88   :  { %v3831_v32 = vadd.f32 %v15307_v30, %v3823_v31 }
0x1c8a   :  { %16409 = vmatprep.mubr.msk.f32.mxu0 %vm49_vm0, %v3831_v32 }
0x1c8b   :  { %16410 = vmatmul.mubr.msk.f32.vlgmr.msra.gmra.mxu0 %vm49_vm0, %v3832_v37  ;;  %v15316_v37 = vld [vmem:[%s19636_s5 + $0x20] sm:$0xff] }
0x1c8c   :  { %16414 = vmatprep.mubr.msk.f32.mxu0 %vm17547_vm1, %v17546_v34 }
0x1d4b   :  { %v16411_v35 = vpop.f32.mrf.mxu0 }
0x1d4c   :  { %v18179_v36 = vadd.f32 %v16411_v35, %v15313_v33 }
0x1d4d   :  { %v3918_v39 = vpop.f32.mrf.mxu0 }
0x1d4e   :  { %v18181_v40 = vadd.f32 %v15313_v33, %v3918_v39  ;;  %4010 = vrot.lane.b32.xlu1 %v18179_v36, %s19689_s26 }
0x1d50   :  { %3933 = vrot.lane.b32.xlu0 %v18181_v40, %s19689_s26  ;;  %s19728_s26 = smov 84  }
0x1dc0   :  { %v4011_v43 = vpop.permute.xlu1 %4010 }
0x1dc2   :  { %v3934_v42 = vpop.permute.xlu0 %3933 }
0x1dc3   :  { %16413 = vmatpush3.xpose.msk.msra.mxu0 %vm192_vm2, %v3934_v42 }
0x1dc4   :  { %16417 = vmatprep.subr.mxu0 %v17546_v34 }
0x1dc6   :  { %16415 = vmatmul.mubr.msk.f32.vlgmr.msra.gmra.mxu0 %vm192_vm2, %v18181_v40 }
0x1dc7   :  { %16418 = vmatpush3.xpose.msk.msra.mxu0 %vm192_vm2, %v4011_v43  ;;  %16419 = vmatprep.mubr.msk.f32.mxu0 %vm17547_vm1, %v17546_v34 }
0x1dc8   :  { %16422 = vmatprep.subr.mxu0 %v17546_v34 }
0x1dca   :  { %16420 = vmatmul.mubr.msk.f32.vlgmr.msra.gmra.mxu0 %vm192_vm2, %v18179_v36 }
0x1dcb   :  { %16424 = vmatprep.mubr.msk.f32.mxu0 %vm17547_vm1, %v17546_v34 }
0x1e86   :  { %v4005_v44 = vpop.f32.mrf.mxu0 }
0x1e87   :  { %v4086_v45 = vmul.f32 0.5, %v4005_v44 }
0x1e88   :  { %v16416_v46 = vpop.f32.mrf.mxu0 }
0x1e89   :  { %v4088_v47 = vsel %vm346_vm3, %v4086_v45, -inf }
0x1e8a   :  { %4089 = vmax.xlane.f32.xlu1 %v4088_v47  ;;  %v4082_v48 = vpop.f32.mrf.mxu0 }
0x1e8b   :  { %v4087_v49 = vmul.f32 0.5, %v4082_v48 }
0x1e8c   :  { %v16421_v50 = vpop.f32.mrf.mxu0 }
0x1e8d   :  { %v4091_v51 = vsel %vm346_vm3, %v4087_v49, -inf }
0x1e8e   :  { %4092 = vmax.xlane.f32.xlu0 %v4091_v51 }
0x1e9b   :  { %4186 = vrot.lane.b32.xlu1 %v18179_v36, %s19687_s27 }
0x1e9f   :  { %4264 = vrot.lane.b32.xlu1 %v18181_v40, %s19685_s28 }
0x1ea3   :  { %4342 = vrot.lane.b32.xlu1 %v18179_v36, %s19685_s28  ;;  %s19725_s28 = smov 88  }
0x1f13   :  { %v4090_v53 = vpop.xlane.xlu1 %4089 }
0x1f14   :  { %v4094_v54 = vsub.f32 %v4086_v45, %v4090_v53  ;;  %v4595_v45 = vrot.slane %v15316_v37, 4 }
0x1f16   :  { %v4096_v52 = vmul.f32 1.442695, %v4094_v54 }
0x1f17   :  { %v4187_v62 = vpop.permute.xlu1 %4186  ;;  %v4093_v41 = vpop.xlane.xlu0 %4092 }
0x1f18   :  { %17290 = vpow2.f32 %v4096_v52  ;;  %v4095_v17 = vsub.f32 %v4087_v49, %v4093_v41 }
0x1f1a   :  { %v4098_v60 = vmul.f32 1.442695, %v4095_v17 }
0x1f1b   :  { %v4265_v38 = vpop.permute.xlu1 %4264 }
0x1f1c   :  { %17292 = vpow2.f32 %v4098_v60 }
0x1f1f   :  { %v4343_v57 = vpop.permute.xlu1 %4342 }
0x1f20   :  { %16438 = vmatpush3.xpose.msk.msra.mxu1 %vm192_vm2, %v4343_v57 }
0x1f21   :  { %16447 = vmatprep.subr.mxu1 %v17546_v34 }
0x1f25   :  { %v17291_v58 = vpop.eup %17290 }
0x1f26   :  { %v4100_v59 = vsel %vm346_vm3, %v17291_v58, 0.0 }
0x1f27   :  { %4101 = vadd.xlane.f32.xlu0 %v4100_v59 }
0x1f29   :  { %v17293_v61 = vpop.eup %17292 }
0x1f2a   :  { %v4103_v63 = vsel %vm346_vm3, %v17293_v61, 0.0 }
0x1f2b   :  { %4104 = vadd.xlane.f32.xlu1 %v4103_v63 }
0x1f3c   :  { %4340 = vrot.lane.b32.xlu1 %v18179_v36, %s19683_s29 }
0x1f3d   :  { %4110 = vrot.lane.b32.xlu0 %v18181_v40, %s19687_s27  ;;  %s19724_s27 = smov 60  }
0x1f41   :  { %4262 = vrot.lane.b32.xlu0 %v18181_v40, %s19683_s29  ;;  %s19722_s29 = smov 92  }
0x1fb0   :  { %v4102_v1 = vpop.xlane.xlu0 %4101 }
0x1fb1   :  { %17294 = vrcp.f32 %v4102_v1 }
0x1fb4   :  { %v4105_v3 = vpop.xlane.xlu1 %4104  ;;  %v4111_v4 = vpop.permute.xlu0 %4110 }
0x1fb5   :  { %17296 = vrcp.f32 %v4105_v3  ;;  %16423 = vmatpush3.msra.mxu0 %v4111_v4 }
0x1fb6   :  { %16427 = vmatprep.subr.mxu0 %v17546_v34 }
0x1fb8   :  { %v4341_v5 = vpop.permute.xlu1 %4340  ;;  %v4263_v55 = vpop.permute.xlu0 %4262 }
0x1fb9   :  { %16440 = vmatmul.mubr.msk.f32.vlgmr.msra.gmra.mxu1 %vm192_vm2, %v4341_v5 }
0x1fba   :  { %16449 = vmatprep.mubr.msk.f32.mxu1 %vm17547_vm1, %v17546_v34 }
0x1fbe   :  { %v17295_v6 = vpop.eup %17294 }
0x1fbf   :  { %v4108_v7 = vmul.f32 %v17295_v6, %v17291_v58 }
0x1fc1   :  { %16425 = vmatmul.mubr.msk.f32.vlgmr.msra.gmra.mxu0 %vm346_vm3, %v4108_v7 }
0x1fc2   :  { %v17297_v8 = vpop.eup %17296  ;;  %16428 = vmatpush3.msra.mxu0 %v4187_v62  ;;  %16429 = vmatprep.mubr.msk.f32.mxu0 %vm17547_vm1, %v17546_v34 }
0x1fc3   :  { %16432 = vmatprep.subr.mxu0 %v17546_v34  ;;  %v4109_v9 = vmul.f32 %v17297_v8, %v17293_v61 }
0x1fc5   :  { %16430 = vmatmul.mubr.msk.f32.vlgmr.msra.gmra.mxu0 %vm346_vm3, %v4109_v9 }
0x1fc6   :  { %16433 = vmatpush3.xpose.msk.msra.mxu0 %vm192_vm2, %v4265_v38  ;;  %16434 = vmatprep.mubr.msk.f32.mxu0 %vm17547_vm1, %v17546_v34 }
0x1fc7   :  { %16442 = vmatprep.subr.mxu0 %v17546_v34 }
0x1fc9   :  { %16435 = vmatmul.mubr.msk.f32.vlgmr.msra.gmra.mxu0 %vm192_vm2, %v4263_v55 }
0x1fca   :  { %16444 = vmatprep.mubr.msk.f32.mxu0 %vm17547_vm1, %v17546_v34 }
0x2079   :  { %v4414_v10 = vpop.f32.mrf.mxu1 }
0x207a   :  { %v4419_v56 = vmul.f32 0.5, %v4414_v10 }
0x207b   :  { %v16441_v11 = vpop.f32.mrf.mxu1 }
0x207c   :  { %v4423_v12 = vsel %vm346_vm3, %v4419_v56, -inf }
0x207d   :  { %4424 = vmax.xlane.f32.xlu1 %v4423_v12 }
0x2081   :  { %v4182_v13 = vpop.f32.mrf.mxu0 }
0x2083   :  { %v16426_v14 = vpop.f32.mrf.mxu0 }
0x2085   :  { %v4258_v15 = vpop.f32.mrf.mxu0 }
0x2087   :  { %v16431_v16 = vpop.f32.mrf.mxu0 }
0x2089   :  { %v4336_v18 = vpop.f32.mrf.mxu0 }
0x208a   :  { %v4418_v19 = vmul.f32 0.5, %v4336_v18 }
0x208b   :  { %v16436_v20 = vpop.f32.mrf.mxu0 }
0x208c   :  { %v4420_v21 = vsel %vm346_vm3, %v4418_v19, -inf }
0x208d   :  { %4421 = vmax.xlane.f32.xlu0 %v4420_v21 }
0x208e   :  { %4518 = vrot.lane.b32.xlu1 %v18179_v36, %s19681_s30 }
0x2092   :  { %4764 = vrot.lane.b32.xlu1 %v18181_v40, %s19679_s14 }
0x2096   :  { %4842 = vrot.lane.b32.xlu1 %v18179_v36, %s19679_s14  ;;  %s19723_s14 = smov 124  }
0x209a   :  { %4840 = vrot.lane.b32.xlu1 %v18179_v36, %s19677_s15 }
0x2106   :  { %v4425_v22 = vpop.xlane.xlu1 %4424 }
0x2107   :  { %v4427_v23 = vsub.f32 %v4419_v56, %v4425_v22 }
0x2109   :  { %v4430_v24 = vmul.f32 1.442695, %v4427_v23 }
0x210a   :  { %v4519_v25 = vpop.permute.xlu1 %4518 }
0x210b   :  { %17298 = vpow2.f32 %v4430_v24  ;;  %16448 = vmatpush3.msra.mxu1 %v4519_v25  ;;  %v18315_v25 = vld [vmem:[%s19636_s5 + $0x28] sm:$0xff] }
0x210c   :  { %16457 = vmatprep.subr.msk.mxu1 %vm861_vm4, %v15316_v37 }
0x210e   :  { %v4765_v35 = vpop.permute.xlu1 %4764 }
0x2112   :  { %v4843_v44 = vpop.permute.xlu1 %4842 }
0x2116   :  { %v4422_v26 = vpop.xlane.xlu0 %4421  ;;  %v4841_v47 = vpop.permute.xlu1 %4840 }
0x2117   :  { %v4426_v27 = vsub.f32 %v4418_v19, %v4422_v26 }
0x2118   :  { %v17299_v28 = vpop.eup %17298 }
0x2119   :  { %v4428_v29 = vmul.f32 1.442695, %v4426_v27  ;;  %v4435_v30 = vsel %vm346_vm3, %v17299_v28, 0.0 }
0x211a   :  { %4436 = vadd.xlane.f32.xlu0 %v4435_v30 }
0x211b   :  { %17300 = vpow2.f32 %v4428_v29 }
0x2128   :  { %v17301_v31 = vpop.eup %17300 }
0x2129   :  { %v4432_v32 = vsel %vm346_vm3, %v17301_v31, 0.0 }
0x212a   :  { %4433 = vadd.xlane.f32.xlu0 %v4432_v32 }
0x2140   :  { %4442 = vrot.lane.b32.xlu0 %v18181_v40, %s19681_s30  ;;  %s19719_s30 = smov 36  }
0x2144   :  { %4762 = vrot.lane.b32.xlu0 %v18181_v40, %s19677_s15  ;;  %s19718_s15 = smov 100  }
0x21a3   :  { %v4437_v33 = vpop.xlane.xlu0 %4436 }
0x21a4   :  { %17302 = vrcp.f32 %v4437_v33 }
0x21b1   :  { %v17303_v39 = vpop.eup %17302 }
0x21b2   :  { %v4441_v42 = vmul.f32 %v17303_v39, %v17299_v28 }
0x21b3   :  { %v4434_v43 = vpop.xlane.xlu0 %4433 }
0x21b4   :  { %17304 = vrcp.f32 %v4434_v43  ;;  %16450 = vmatmul.mubr.msk.f32.vlgmr.msra.gmra.mxu1 %vm346_vm3, %v4441_v42 }
0x21b5   :  { %16459 = vmatprep.mubr.msk.f32.mxu1 %vm192_vm2, %v4182_v13  ;;  %16458 = vmatpush3.msk.msra.mxu1 %vm861_vm4, %v15316_v37 }
0x21b6   :  { %16467 = vmatprep.subr.mxu1 %v17546_v34 }
0x21b7   :  { %v4443_v46 = vpop.permute.xlu0 %4442 }
0x21b8   :  { %16443 = vmatpush3.msra.mxu0 %v4443_v46  ;;  %16460 = vmatmul.mubr.msk.f32.vlgmr.msra.gmra.mxu1 %vm192_vm2, %v4258_v15 }
0x21b9   :  { %16468 = vmatpush3.xpose.msk.msra.mxu1 %vm192_vm2, %v4843_v44  ;;  %16469 = vmatprep.mubr.msk.f32.mxu1 %vm17547_vm1, %v17546_v34 }
0x21ba   :  { %16452 = vmatprep.subr.msk.mxu0 %vm861_vm4, %v4595_v45  ;;  %16477 = vmatprep.subr.mxu1 %v17546_v34 }
0x21bb   :  { %v4763_v57 = vpop.permute.xlu0 %4762 }
0x21bc   :  { %16470 = vmatmul.mubr.msk.f32.vlgmr.msra.gmra.mxu1 %vm192_vm2, %v4841_v47 }
0x21bd   :  { %16479 = vmatprep.mubr.msk.f32.mxu1 %vm17547_vm1, %v17546_v34 }
0x21c1   :  { %v17305_v48 = vpop.eup %17304 }
0x21c2   :  { %v4440_v49 = vmul.f32 %v17305_v48, %v17301_v31 }
0x21c4   :  { %16445 = vmatmul.mubr.msk.f32.vlgmr.msra.gmra.mxu0 %vm346_vm3, %v4440_v49 }
0x21c5   :  { %16453 = vmatpush3.msk.msra.mxu0 %vm861_vm4, %v4595_v45 }
0x21c6   :  { %16462 = vmatprep.subr.mxu0 %v17546_v34 }
0x2274   :  { %v4590_v50 = vpop.f32.mrf.mxu1 }
0x2276   :  { %v16451_v51 = vpop.f32.mrf.mxu1 }
0x2278   :  { %v18269_v53 = vpop.f32.mrf.mxu1 }
0x227a   :  { %v18271_v54 = vpop.f32.mrf.mxu1 }
0x227c   :  { %v4914_v52 = vpop.f32.mrf.mxu1 }
0x227d   :  { %v4919_v62 = vmul.f32 0.5, %v4914_v52 }
0x227e   :  { %v16471_v41 = vpop.f32.mrf.mxu1 }
0x227f   :  { %v4923_v17 = vsel %vm346_vm3, %v4919_v62, -inf }
0x2280   :  { %4924 = vmax.xlane.f32.xlu1 %v4923_v17 }
0x2284   :  { %v4514_v60 = vpop.f32.mrf.mxu0 }
0x2285   :  { %16454 = vmatprep.mubr.msk.f32.mxu0 %vm192_vm2, %v4514_v60 }
0x2286   :  { %v16446_v38 = vpop.f32.mrf.mxu0  ;;  %16455 = vmatmul.mubr.msk.f32.vlgmr.msra.gmra.mxu0 %vm192_vm2, %v4590_v50 }
0x2287   :  { %16463 = vmatpush3.xpose.msk.msra.mxu0 %vm192_vm2, %v4765_v35  ;;  %16464 = vmatprep.mubr.msk.f32.mxu0 %vm17547_vm1, %v17546_v34 }
0x2288   :  { %16472 = vmatprep.subr.mxu0 %v17546_v34 }
0x228a   :  { %16465 = vmatmul.mubr.msk.f32.vlgmr.msra.gmra.mxu0 %vm192_vm2, %v4763_v57 }
0x228b   :  { %16474 = vmatprep.mubr.msk.f32.mxu0 %vm17547_vm1, %v17546_v34 }
0x2291   :  { %5018 = vrot.lane.b32.xlu1 %v18179_v36, %s19675_s18 }
0x2295   :  { %5182 = vrot.lane.b32.xlu1 %v18181_v40, %s19673_s19 }
0x2299   :  { %5260 = vrot.lane.b32.xlu1 %v18179_v36, %s19673_s19  ;;  %s19716_s19 = smov 40  }
0x229d   :  { %5258 = vrot.lane.b32.xlu1 %v18179_v36, %s19671_s20 }
0x2309   :  { %v4925_v58 = vpop.xlane.xlu1 %4924 }
0x230a   :  { %v4927_v61 = vsub.f32 %v4919_v62, %v4925_v58 }
0x230c   :  { %v4930_v63 = vmul.f32 1.442695, %v4927_v61 }
0x230d   :  { %v5019_v59 = vpop.permute.xlu1 %5018 }
0x230e   :  { %16478 = vmatpush3.msra.mxu1 %v5019_v59  ;;  %17306 = vpow2.f32 %v4930_v63  ;;  %v5512_v59 = vrot.slane %v18315_v25, 4 }
0x230f   :  { %16487 = vmatprep.subr.mxu1 %v17546_v34 }
0x2311   :  { %v5183_v16 = vpop.permute.xlu1 %5182 }
0x2315   :  { %v5261_v30 = vpop.permute.xlu1 %5260 }
0x2319   :  { %v5259_v37 = vpop.permute.xlu1 %5258 }
0x231b   :  { %v17307_v8 = vpop.eup %17306 }
0x231c   :  { %v4935_v9 = vsel %vm346_vm3, %v17307_v8, 0.0 }
0x2346   :  { %v18292_v1 = vpop.f32.mrf.mxu0 }
0x2347   :  { %v4759_v44 = vadd.f32 %v18269_v53, %v18292_v1 }
0x2348   :  { %v18294_v3 = vpop.f32.mrf.mxu0 }
0x234a   :  { %v4836_v4 = vpop.f32.mrf.mxu0 }
0x234b   :  { %v4918_v5 = vmul.f32 0.5, %v4836_v4 }
0x234c   :  { %v16466_v6 = vpop.f32.mrf.mxu0 }
0x234d   :  { %v4920_v7 = vsel %vm346_vm3, %v4918_v5, -inf }
0x234e   :  { %4921 = vmax.xlane.f32.xlu0 %v4920_v7 }
0x2352   :  { %4936 = vadd.xlane.f32.xlu0 %v4935_v9 }
0x23d7   :  { %v4922_v55 = vpop.xlane.xlu0 %4921 }
0x23d8   :  { %v4926_v10 = vsub.f32 %v4918_v5, %v4922_v55 }
0x23da   :  { %v4928_v56 = vmul.f32 1.442695, %v4926_v10 }
0x23db   :  { %v4937_v11 = vpop.xlane.xlu0 %4936 }
0x23dc   :  { %17308 = vpow2.f32 %v4928_v56 }
0x23dd   :  { %17310 = vrcp.f32 %v4937_v11 }
0x23e9   :  { %v17309_v12 = vpop.eup %17308 }
0x23ea   :  { %v17311_v13 = vpop.eup %17310  ;;  %v4932_v14 = vsel %vm346_vm3, %v17309_v12, 0.0 }
0x23eb   :  { %4933 = vadd.xlane.f32.xlu0 %v4932_v14  ;;  %v4941_v15 = vmul.f32 %v17311_v13, %v17307_v8 }
0x23ed   :  { %16480 = vmatmul.mubr.msk.f32.vlgmr.msra.gmra.mxu1 %vm346_vm3, %v4941_v15 }
0x23ee   :  { %16488 = vmatpush3.xpose.msk.msra.mxu1 %vm192_vm2, %v5183_v16  ;;  %16489 = vmatprep.mubr.msk.f32.mxu1 %vm17547_vm1, %v17546_v34 }
0x23ef   :  { %16497 = vmatprep.subr.mxu1 %v17546_v34 }
0x2401   :  { %4942 = vrot.lane.b32.xlu0 %v18181_v40, %s19675_s18  ;;  %s19717_s18 = smov 68  }
0x2405   :  { %5180 = vrot.lane.b32.xlu0 %v18181_v40, %s19671_s20  ;;  %s19715_s20 = smov 104  }
0x2474   :  { %v4934_v18 = vpop.xlane.xlu0 %4933 }
0x2475   :  { %17312 = vrcp.f32 %v4934_v18 }
0x2478   :  { %v4943_v19 = vpop.permute.xlu0 %4942 }
0x2479   :  { %16473 = vmatpush3.msra.mxu0 %v4943_v19 }
0x247a   :  { %16482 = vmatprep.subr.msk.mxu0 %vm861_vm4, %v18315_v25 }
0x247c   :  { %v5181_v20 = vpop.permute.xlu0 %5180 }
0x247d   :  { %16490 = vmatmul.mubr.msk.f32.vlgmr.msra.gmra.mxu1 %vm192_vm2, %v5181_v20 }
0x247e   :  { %16499 = vmatprep.mubr.msk.f32.mxu1 %vm17547_vm1, %v17546_v34 }
0x2482   :  { %v17313_v21 = vpop.eup %17312 }
0x2483   :  { %v4940_v22 = vmul.f32 %v17313_v21, %v17309_v12 }
0x2485   :  { %16475 = vmatmul.mubr.msk.f32.vlgmr.msra.gmra.mxu0 %vm346_vm3, %v4940_v22 }
0x2486   :  { %16483 = vmatpush3.msk.msra.mxu0 %vm861_vm4, %v18315_v25 }
0x2487   :  { %16492 = vmatprep.subr.mxu0 %v17546_v34 }
0x24ad   :  { %v5090_v23 = vpop.f32.mrf.mxu1 }
0x24af   :  { %v16481_v24 = vpop.f32.mrf.mxu1 }
0x253d   :  { %v5254_v26 = vpop.f32.mrf.mxu1 }
0x253e   :  { %v5336_v27 = vmul.f32 0.5, %v5254_v26 }
0x253f   :  { %v16491_v28 = vpop.f32.mrf.mxu1 }
0x2540   :  { %v5338_v29 = vsel %vm346_vm3, %v5336_v27, -inf }
0x2541   :  { %5339 = vmax.xlane.f32.xlu0 %v5338_v29 }
0x2545   :  { %v5014_v31 = vpop.f32.mrf.mxu0 }
0x2546   :  { %16484 = vmatprep.mubr.msk.f32.mxu0 %vm192_vm2, %v5014_v31 }
0x2547   :  { %v16476_v32 = vpop.f32.mrf.mxu0  ;;  %16485 = vmatmul.mubr.msk.f32.vlgmr.msra.gmra.mxu0 %vm192_vm2, %v5090_v23 }
0x2548   :  { %16493 = vmatpush3.xpose.msk.msra.mxu0 %vm192_vm2, %v5261_v30  ;;  %16494 = vmatprep.mubr.msk.f32.mxu0 %vm17547_vm1, %v17546_v34 }
0x2549   :  { %16502 = vmatprep.subr.mxu0 %v17546_v34 }
0x254b   :  { %16495 = vmatmul.mubr.msk.f32.vlgmr.msra.gmra.mxu0 %vm192_vm2, %v5259_v37 }
0x254c   :  { %16504 = vmatprep.mubr.msk.f32.mxu0 %vm17547_vm1, %v17546_v34 }
0x25ca   :  { %v5340_v33 = vpop.xlane.xlu0 %5339 }
0x25cb   :  { %v5344_v35 = vsub.f32 %v5336_v27, %v5340_v33 }
0x25cd   :  { %v5346_v39 = vmul.f32 1.442695, %v5344_v35 }
0x25cf   :  { %17314 = vpow2.f32 %v5346_v39 }
0x25dc   :  { %v17315_v42 = vpop.eup %17314 }
0x25dd   :  { %v5350_v43 = vsel %vm346_vm3, %v17315_v42, 0.0 }
0x25de   :  { %5351 = vadd.xlane.f32.xlu0 %v5350_v43 }
0x2607   :  { %v16486_v45 = vpop.f32.mrf.mxu0 }
0x2608   :  { %v18335_v46 = vadd.f32 %v16486_v45, %v4759_v44 }
0x2609   :  { %v18337_v47 = vpop.f32.mrf.mxu0 }
0x260b   :  { %v5332_v48 = vpop.f32.mrf.mxu0 }
0x260c   :  { %v5337_v49 = vmul.f32 0.5, %v5332_v48 }
0x260d   :  { %v16496_v50 = vpop.f32.mrf.mxu0 }
0x260e   :  { %v5341_v51 = vsel %vm346_vm3, %v5337_v49, -inf }
0x260f   :  { %5342 = vmax.xlane.f32.xlu1 %v5341_v51 }
0x2620   :  { %5436 = vrot.lane.b32.xlu1 %v18179_v36, %s19707_s25 }
0x2624   :  { %5600 = vrot.lane.b32.xlu1 %v18181_v40, %s19708_s16 }
0x2628   :  { %5678 = vrot.lane.b32.xlu1 %v18179_v36, %s19708_s16 }
0x262c   :  { %5676 = vrot.lane.b32.xlu1 %v18179_v36, %s19709_s17 }
0x2667   :  { %v5352_v38 = vpop.xlane.xlu0 %5351 }
0x2698   :  { %v5343_v53 = vpop.xlane.xlu1 %5342 }
0x2699   :  { %v5345_v52 = vsub.f32 %v5337_v49, %v5343_v53  ;;  %v18410_v49 = vld [vmem:[%s19636_s5 + $0x30] sm:$0xff] }
0x269b   :  { %v5348_v62 = vmul.f32 1.442695, %v5345_v52 }
0x269c   :  { %v5437_v41 = vpop.permute.xlu1 %5436 }
0x269d   :  { %17316 = vpow2.f32 %v5348_v62  ;;  %16503 = vmatpush3.msra.mxu0 %v5437_v41 }
0x269e   :  { %16512 = vmatprep.subr.mxu0 %v17546_v34  ;;  %17318 = vrcp.f32 %v5352_v38 }
0x26a0   :  { %v5601_v5 = vpop.permute.xlu1 %5600 }
0x26a4   :  { %v5679_v9 = vpop.permute.xlu1 %5678 }
0x26a8   :  { %v5677_v56 = vpop.permute.xlu1 %5676 }
0x26aa   :  { %v17317_v17 = vpop.eup %17316 }
0x26ab   :  { %v5353_v60 = vsel %vm346_vm3, %v17317_v17, 0.0  ;;  %v17319_v58 = vpop.eup %17318 }
0x26ac   :  { %5354 = vadd.xlane.f32.xlu0 %v5353_v60  ;;  %v5358_v63 = vmul.f32 %v17319_v58, %v17315_v42 }
0x26c2   :  { %5360 = vrot.lane.b32.xlu0 %v18181_v40, %s19707_s25 }
0x26c6   :  { %5598 = vrot.lane.b32.xlu0 %v18181_v40, %s19709_s17 }
0x2735   :  { %v5355_v57 = vpop.xlane.xlu0 %5354 }
0x2736   :  { %17320 = vrcp.f32 %v5355_v57 }
0x2739   :  { %v5361_v61 = vpop.permute.xlu0 %5360 }
0x273a   :  { %16498 = vmatpush3.msra.mxu1 %v5361_v61 }
0x273b   :  { %16500 = vmatmul.mubr.msk.f32.vlgmr.msra.gmra.mxu1 %vm346_vm3, %v5358_v63  ;;  %16507 = vmatprep.subr.msk.mxu1 %vm861_vm4, %v5512_v59 }
0x273c   :  { %16508 = vmatpush3.msk.msra.mxu1 %vm861_vm4, %v5512_v59 }
0x273d   :  { %16517 = vmatprep.subr.mxu1 %v17546_v34  ;;  %v5599_v6 = vpop.permute.xlu0 %5598 }
0x2743   :  { %v17321_v1 = vpop.eup %17320 }
0x2744   :  { %v5359_v4 = vmul.f32 %v17321_v1, %v17317_v17 }
0x2746   :  { %16505 = vmatmul.mubr.msk.f32.vlgmr.msra.gmra.mxu0 %vm346_vm3, %v5359_v4 }
0x2747   :  { %16513 = vmatpush3.xpose.msk.msra.mxu0 %vm192_vm2, %v5601_v5  ;;  %16514 = vmatprep.mubr.msk.f32.mxu0 %vm17547_vm1, %v17546_v34 }
0x2748   :  { %16522 = vmatprep.subr.mxu0 %v17546_v34 }
0x274a   :  { %16515 = vmatmul.mubr.msk.f32.vlgmr.msra.gmra.mxu0 %vm192_vm2, %v5599_v6 }
0x274b   :  { %16524 = vmatprep.mubr.msk.f32.mxu0 %vm17547_vm1, %v17546_v34 }
0x27fb   :  { %v5432_v7 = vpop.f32.mrf.mxu1 }
0x27fc   :  { %16509 = vmatprep.mubr.msk.f32.mxu1 %vm192_vm2, %v5432_v7 }
0x27fd   :  { %v16501_v8 = vpop.f32.mrf.mxu1 }
0x2806   :  { %v5508_v55 = vpop.f32.mrf.mxu0 }
0x2807   :  { %16510 = vmatmul.mubr.msk.f32.vlgmr.msra.gmra.mxu1 %vm192_vm2, %v5508_v55 }
0x2808   :  { %16518 = vmatpush3.xpose.msk.msra.mxu1 %vm192_vm2, %v5679_v9  ;;  %v16506_v10 = vpop.f32.mrf.mxu0  ;;  %16519 = vmatprep.mubr.msk.f32.mxu1 %vm17547_vm1, %v17546_v34 }
0x2809   :  { %16527 = vmatprep.subr.mxu1 %v17546_v34 }
0x280a   :  { %v5672_v11 = vpop.f32.mrf.mxu0 }
0x280b   :  { %v5754_v12 = vmul.f32 0.5, %v5672_v11  ;;  %16520 = vmatmul.mubr.msk.f32.vlgmr.msra.gmra.mxu1 %vm192_vm2, %v5677_v56 }
0x280c   :  { %v16516_v13 = vpop.f32.mrf.mxu0  ;;  %16529 = vmatprep.mubr.msk.f32.mxu1 %vm17547_vm1, %v17546_v34 }
0x280d   :  { %v5756_v14 = vsel %vm346_vm3, %v5754_v12, -inf }
0x280e   :  { %5757 = vmax.xlane.f32.xlu0 %v5756_v14 }
0x2897   :  { %v5758_v15 = vpop.xlane.xlu0 %5757 }
0x2898   :  { %v5762_v16 = vsub.f32 %v5754_v12, %v5758_v15 }
0x289a   :  { %v5764_v18 = vmul.f32 1.442695, %v5762_v16 }
0x289c   :  { %17322 = vpow2.f32 %v5764_v18 }
0x28a9   :  { %v17323_v19 = vpop.eup %17322 }
0x28aa   :  { %v5768_v20 = vsel %vm346_vm3, %v17323_v19, 0.0 }
0x28ab   :  { %5769 = vadd.xlane.f32.xlu0 %v5768_v20 }
0x28c7   :  { %v16511_v21 = vpop.f32.mrf.mxu1 }
0x28c8   :  { %v18379_v22 = vadd.f32 %v16511_v21, %v18335_v46 }
0x28c9   :  { %v18381_v23 = vpop.f32.mrf.mxu1 }
0x28cb   :  { %v5750_v24 = vpop.f32.mrf.mxu1 }
0x28cc   :  { %v5755_v25 = vmul.f32 0.5, %v5750_v24 }
0x28cd   :  { %v16521_v26 = vpop.f32.mrf.mxu1 }
0x28ce   :  { %v5759_v27 = vsel %vm346_vm3, %v5755_v25, -inf }
0x28cf   :  { %5760 = vmax.xlane.f32.xlu1 %v5759_v27 }
0x28e0   :  { %5854 = vrot.lane.b32.xlu1 %v18179_v36, %s19710_s21 }
0x28e4   :  { %6018 = vrot.lane.b32.xlu1 %v18181_v40, %s19711_s23 }
0x28e8   :  { %6096 = vrot.lane.b32.xlu1 %v18179_v36, %s19711_s23 }
0x28ec   :  { %6094 = vrot.lane.b32.xlu1 %v18179_v36, %s19712_s22 }
0x2934   :  { %v5770_v33 = vpop.xlane.xlu0 %5769 }
0x2958   :  { %v5761_v28 = vpop.xlane.xlu1 %5760 }
0x2959   :  { %v5763_v29 = vsub.f32 %v5755_v25, %v5761_v28 }
0x295b   :  { %v5766_v30 = vmul.f32 1.442695, %v5763_v29 }
0x295c   :  { %v5855_v31 = vpop.permute.xlu1 %5854 }
0x295d   :  { %17324 = vpow2.f32 %v5766_v30  ;;  %16528 = vmatpush3.msra.mxu1 %v5855_v31 }
0x295e   :  { %16537 = vmatprep.subr.mxu1 %v17546_v34  ;;  %17326 = vrcp.f32 %v5770_v33 }
0x2960   :  { %v6019_v46 = vpop.permute.xlu1 %6018 }
0x2964   :  { %v6097_v53 = vpop.permute.xlu1 %6096 }
0x2968   :  { %v6095_v41 = vpop.permute.xlu1 %6094 }
0x296a   :  { %v17325_v32 = vpop.eup %17324 }
0x296b   :  { %v5771_v37 = vsel %vm346_vm3, %v17325_v32, 0.0  ;;  %v17327_v39 = vpop.eup %17326 }
0x296c   :  { %5772 = vadd.xlane.f32.xlu0 %v5771_v37  ;;  %v5776_v43 = vmul.f32 %v17327_v39, %v17323_v19  ;;  %v6348_v19 = vrot.slane %v18410_v49, 4 }
0x2982   :  { %5778 = vrot.lane.b32.xlu0 %v18181_v40, %s19710_s21 }
0x2986   :  { %6016 = vrot.lane.b32.xlu0 %v18181_v40, %s19712_s22 }
0x29f5   :  { %v5773_v35 = vpop.xlane.xlu0 %5772 }
0x29f6   :  { %17328 = vrcp.f32 %v5773_v35 }
0x29f9   :  { %v5779_v42 = vpop.permute.xlu0 %5778 }
0x29fa   :  { %16523 = vmatpush3.msra.mxu0 %v5779_v42 }
0x29fb   :  { %16525 = vmatmul.mubr.msk.f32.vlgmr.msra.gmra.mxu0 %vm346_vm3, %v5776_v43  ;;  %16532 = vmatprep.subr.msk.mxu0 %vm861_vm4, %v18410_v49 }
0x29fc   :  { %16533 = vmatpush3.msk.msra.mxu0 %vm861_vm4, %v18410_v49 }
0x29fd   :  { %v6017_v48 = vpop.permute.xlu0 %6016  ;;  %16542 = vmatprep.subr.mxu0 %v17546_v34 }
0x2a03   :  { %v17329_v44 = vpop.eup %17328 }
0x2a04   :  { %v5777_v45 = vmul.f32 %v17329_v44, %v17325_v32 }
0x2a06   :  { %16530 = vmatmul.mubr.msk.f32.vlgmr.msra.gmra.mxu1 %vm346_vm3, %v5777_v45 }
0x2a07   :  { %16538 = vmatpush3.xpose.msk.msra.mxu1 %vm192_vm2, %v6019_v46  ;;  %16539 = vmatprep.mubr.msk.f32.mxu1 %vm17547_vm1, %v17546_v34 }
0x2a08   :  { %16547 = vmatprep.subr.mxu1 %v17546_v34 }
0x2a0a   :  { %16540 = vmatmul.mubr.msk.f32.vlgmr.msra.gmra.mxu1 %vm192_vm2, %v6017_v48  ;;  %v4754_v48 = vadd.f32 %v18271_v54, %v18294_v3 }
0x2a0b   :  { %16549 = vmatprep.mubr.msk.f32.mxu1 %vm17547_vm1, %v17546_v34 }
0x2a0c   :  { %v5178_v49 = vadd.f32 %v18337_v47, %v4754_v48 }
0x2abb   :  { %v5850_v50 = vpop.f32.mrf.mxu0 }
0x2abc   :  { %16534 = vmatprep.mubr.msk.f32.mxu0 %vm192_vm2, %v5850_v50  ;;  %v5596_v50 = vadd.f32 %v18381_v23, %v5178_v49 }
0x2abd   :  { %v16526_v51 = vpop.f32.mrf.mxu0 }
0x2ac6   :  { %v5926_v52 = vpop.f32.mrf.mxu1 }
0x2ac7   :  { %16535 = vmatmul.mubr.msk.f32.vlgmr.msra.gmra.mxu0 %vm192_vm2, %v5926_v52 }
0x2ac8   :  { %16543 = vmatpush3.xpose.msk.msra.mxu0 %vm192_vm2, %v6097_v53  ;;  %v16531_v62 = vpop.f32.mrf.mxu1  ;;  %16544 = vmatprep.mubr.msk.f32.mxu0 %vm17547_vm1, %v17546_v34 }
0x2ac9   :  { %16552 = vmatprep.subr.mxu0 %v17546_v34 }
0x2aca   :  { %v6090_v17 = vpop.f32.mrf.mxu1 }
0x2acb   :  { %v6172_v60 = vmul.f32 0.5, %v6090_v17  ;;  %16545 = vmatmul.mubr.msk.f32.vlgmr.msra.gmra.mxu0 %vm192_vm2, %v6095_v41 }
0x2acc   :  { %v16541_v38 = vpop.f32.mrf.mxu1  ;;  %16554 = vmatprep.mubr.msk.f32.mxu0 %vm17547_vm1, %v17546_v34 }
0x2acd   :  { %v6174_v57 = vsel %vm346_vm3, %v6172_v60, -inf }
0x2ace   :  { %6175 = vmax.xlane.f32.xlu0 %v6174_v57 }
0x2b57   :  { %v6176_v58 = vpop.xlane.xlu0 %6175 }
0x2b58   :  { %v6180_v59 = vsub.f32 %v6172_v60, %v6176_v58 }
0x2b5a   :  { %v6182_v61 = vmul.f32 1.442695, %v6180_v59 }
0x2b5c   :  { %17330 = vpow2.f32 %v6182_v61 }
0x2b69   :  { %v17331_v63 = vpop.eup %17330 }
0x2b6a   :  { %v6186_v1 = vsel %vm346_vm3, %v17331_v63, 0.0 }
0x2b6b   :  { %6187 = vadd.xlane.f32.xlu0 %v6186_v1 }
0x2b87   :  { %v16536_v4 = vpop.f32.mrf.mxu0 }
0x2b88   :  { %v18429_v5 = vadd.f32 %v16536_v4, %v18379_v22 }
0x2b89   :  { %v18431_v6 = vpop.f32.mrf.mxu0 }
0x2b8a   :  { %v6014_v53 = vadd.f32 %v18431_v6, %v5596_v50 }
0x2b8b   :  { %v6168_v7 = vpop.f32.mrf.mxu0 }
0x2b8c   :  { %v6173_v8 = vmul.f32 0.5, %v6168_v7 }
0x2b8d   :  { %v16546_v9 = vpop.f32.mrf.mxu0 }
0x2b8e   :  { %v6177_v55 = vsel %vm346_vm3, %v6173_v8, -inf }
0x2b8f   :  { %6178 = vmax.xlane.f32.xlu1 %v6177_v55  ;;  %v15319_v55 = vld [vmem:[%s19636_s5 + $0x38] sm:$0xff] }
0x2b90   :  { %v7184_v49 = vrot.slane %v15319_v55, 4 }
0x2ba0   :  { %6272 = vrot.lane.b32.xlu1 %v18179_v36, %s19713_s0 }
0x2ba4   :  { %6436 = vrot.lane.b32.xlu1 %v18181_v40, %s19714_s24 }
0x2ba8   :  { %6514 = vrot.lane.b32.xlu1 %v18179_v36, %s19714_s24 }
0x2bac   :  { %6512 = vrot.lane.b32.xlu1 %v18179_v36, %s19715_s20 }
0x2bf4   :  { %v6188_v15 = vpop.xlane.xlu0 %6187 }
0x2c18   :  { %v6179_v10 = vpop.xlane.xlu1 %6178 }
0x2c19   :  { %v6181_v56 = vsub.f32 %v6173_v8, %v6179_v10 }
0x2c1b   :  { %v6184_v11 = vmul.f32 1.442695, %v6181_v56 }
0x2c1c   :  { %v6273_v12 = vpop.permute.xlu1 %6272 }
0x2c1d   :  { %17332 = vpow2.f32 %v6184_v11  ;;  %16553 = vmatpush3.msra.mxu0 %v6273_v12 }
0x2c1e   :  { %16562 = vmatprep.subr.mxu0 %v17546_v34  ;;  %17334 = vrcp.f32 %v6188_v15 }
0x2c20   :  { %v6437_v25 = vpop.permute.xlu1 %6436 }
0x2c24   :  { %v6515_v29 = vpop.permute.xlu1 %6514 }
0x2c28   :  { %v6513_v32 = vpop.permute.xlu1 %6512 }
0x2c2a   :  { %v17333_v13 = vpop.eup %17332 }
0x2c2b   :  { %v6189_v14 = vsel %vm346_vm3, %v17333_v13, 0.0  ;;  %v17335_v18 = vpop.eup %17334 }
0x2c2c   :  { %6190 = vadd.xlane.f32.xlu0 %v6189_v14  ;;  %v6194_v21 = vmul.f32 %v17335_v18, %v17331_v63 }
0x2c42   :  { %6196 = vrot.lane.b32.xlu0 %v18181_v40, %s19713_s0 }
0x2c46   :  { %6434 = vrot.lane.b32.xlu0 %v18181_v40, %s19715_s20 }
0x2cb5   :  { %v6191_v16 = vpop.xlane.xlu0 %6190 }
0x2cb6   :  { %17336 = vrcp.f32 %v6191_v16 }
0x2cb9   :  { %v6197_v20 = vpop.permute.xlu0 %6196 }
0x2cba   :  { %16548 = vmatpush3.msra.mxu1 %v6197_v20 }
0x2cbb   :  { %16550 = vmatmul.mubr.msk.f32.vlgmr.msra.gmra.mxu1 %vm346_vm3, %v6194_v21  ;;  %16557 = vmatprep.subr.msk.mxu1 %vm861_vm4, %v6348_v19 }
0x2cbc   :  { %16558 = vmatpush3.msk.msra.mxu1 %vm861_vm4, %v6348_v19 }
0x2cbd   :  { %16567 = vmatprep.subr.mxu1 %v17546_v34  ;;  %v6435_v26 = vpop.permute.xlu0 %6434 }
0x2cc3   :  { %v17337_v22 = vpop.eup %17336 }
0x2cc4   :  { %v6195_v24 = vmul.f32 %v17337_v22, %v17333_v13 }
0x2cc6   :  { %16555 = vmatmul.mubr.msk.f32.vlgmr.msra.gmra.mxu0 %vm346_vm3, %v6195_v24 }
0x2cc7   :  { %16563 = vmatpush3.xpose.msk.msra.mxu0 %vm192_vm2, %v6437_v25  ;;  %16564 = vmatprep.mubr.msk.f32.mxu0 %vm17547_vm1, %v17546_v34 }
0x2cc8   :  { %16572 = vmatprep.subr.mxu0 %v17546_v34 }
0x2cca   :  { %16565 = vmatmul.mubr.msk.f32.vlgmr.msra.gmra.mxu0 %vm192_vm2, %v6435_v26 }
0x2ccb   :  { %16574 = vmatprep.mubr.msk.f32.mxu0 %vm17547_vm1, %v17546_v34 }
0x2d7b   :  { %v6268_v27 = vpop.f32.mrf.mxu1 }
0x2d7c   :  { %16559 = vmatprep.mubr.msk.f32.mxu1 %vm192_vm2, %v6268_v27 }
0x2d7d   :  { %v16551_v28 = vpop.f32.mrf.mxu1 }
0x2d86   :  { %v6344_v30 = vpop.f32.mrf.mxu0 }
0x2d87   :  { %16560 = vmatmul.mubr.msk.f32.vlgmr.msra.gmra.mxu1 %vm192_vm2, %v6344_v30 }
0x2d88   :  { %16568 = vmatpush3.xpose.msk.msra.mxu1 %vm192_vm2, %v6515_v29  ;;  %v16556_v31 = vpop.f32.mrf.mxu0  ;;  %16569 = vmatprep.mubr.msk.f32.mxu1 %vm17547_vm1, %v17546_v34 }
0x2d89   :  { %16577 = vmatprep.subr.mxu1 %v17546_v34 }
0x2d8a   :  { %v6508_v37 = vpop.f32.mrf.mxu0 }
0x2d8b   :  { %v6590_v33 = vmul.f32 0.5, %v6508_v37  ;;  %16570 = vmatmul.mubr.msk.f32.vlgmr.msra.gmra.mxu1 %vm192_vm2, %v6513_v32 }
0x2d8c   :  { %v16566_v35 = vpop.f32.mrf.mxu0  ;;  %16579 = vmatprep.mubr.msk.f32.mxu1 %vm17547_vm1, %v17546_v34 }
0x2d8d   :  { %v6592_v39 = vsel %vm346_vm3, %v6590_v33, -inf }
0x2d8e   :  { %6593 = vmax.xlane.f32.xlu0 %v6592_v39 }
0x2e17   :  { %v6594_v42 = vpop.xlane.xlu0 %6593 }
0x2e18   :  { %v6598_v43 = vsub.f32 %v6590_v33, %v6594_v42 }
0x2e1a   :  { %v6600_v44 = vmul.f32 1.442695, %v6598_v43 }
0x2e1c   :  { %17338 = vpow2.f32 %v6600_v44 }
0x2e29   :  { %v17339_v45 = vpop.eup %17338 }
0x2e2a   :  { %v6604_v46 = vsel %vm346_vm3, %v17339_v45, 0.0 }
0x2e2b   :  { %6605 = vadd.xlane.f32.xlu0 %v6604_v46 }
0x2e47   :  { %v16561_v51 = vpop.f32.mrf.mxu1 }
0x2e48   :  { %v18478_v52 = vadd.f32 %v16561_v51, %v18429_v5 }
0x2e49   :  { %v6423_v62 = vpop.f32.mrf.mxu1 }
0x2e4a   :  { %v18480_v41 = vadd.f32 %v6423_v62, %v6014_v53 }
0x2e4b   :  { %v6586_v17 = vpop.f32.mrf.mxu1 }
0x2e4c   :  { %v6591_v60 = vmul.f32 0.5, %v6586_v17 }
0x2e4d   :  { %v16571_v38 = vpop.f32.mrf.mxu1 }
0x2e4e   :  { %v6595_v57 = vsel %vm346_vm3, %v6591_v60, -inf  ;;  %v15393_v38 = vld [vmem:[%s19637_s6 + $0x1] ss:$0 sm:$0xff]  ;;  %s19720_s6 = smov 96  }
0x2e4f   :  { %6596 = vmax.xlane.f32.xlu1 %v6595_v57 }
0x2e60   :  { %6690 = vrot.lane.b32.xlu1 %v18179_v36, %s19716_s19 }
0x2e64   :  { %6854 = vrot.lane.b32.xlu1 %v18181_v40, %s19717_s18 }
0x2e68   :  { %6932 = vrot.lane.b32.xlu1 %v18179_v36, %s19717_s18 }
0x2e6c   :  { %6930 = vrot.lane.b32.xlu1 %v18179_v36, %s19718_s15 }
0x2eb4   :  { %v6606_v61 = vpop.xlane.xlu0 %6605 }
0x2ed8   :  { %v6597_v54 = vpop.xlane.xlu1 %6596 }
0x2ed9   :  { %v6599_v3 = vsub.f32 %v6591_v60, %v6597_v54 }
0x2edb   :  { %v6602_v47 = vmul.f32 1.442695, %v6599_v3 }
0x2edc   :  { %v6691_v23 = vpop.permute.xlu1 %6690 }
0x2edd   :  { %17340 = vpow2.f32 %v6602_v47  ;;  %16578 = vmatpush3.msra.mxu1 %v6691_v23 }
0x2ede   :  { %16587 = vmatprep.subr.mxu1 %v17546_v34  ;;  %17342 = vrcp.f32 %v6606_v61 }
0x2ee0   :  { %v6855_v8 = vpop.permute.xlu1 %6854 }
0x2ee4   :  { %v6933_v11 = vpop.permute.xlu1 %6932 }
0x2ee8   :  { %v6931_v14 = vpop.permute.xlu1 %6930 }
0x2eea   :  { %v17341_v58 = vpop.eup %17340 }
0x2eeb   :  { %v6607_v59 = vsel %vm346_vm3, %v17341_v58, 0.0  ;;  %v17343_v1 = vpop.eup %17342 }
0x2eec   :  { %6608 = vadd.xlane.f32.xlu0 %v6607_v59  ;;  %v6612_v5 = vmul.f32 %v17343_v1, %v17339_v45 }
0x2f02   :  { %6614 = vrot.lane.b32.xlu0 %v18181_v40, %s19716_s19 }
0x2f06   :  { %6852 = vrot.lane.b32.xlu0 %v18181_v40, %s19718_s15 }
0x2f75   :  { %v6609_v63 = vpop.xlane.xlu0 %6608 }
0x2f76   :  { %17344 = vrcp.f32 %v6609_v63 }
0x2f79   :  { %v6615_v4 = vpop.permute.xlu0 %6614 }
0x2f7a   :  { %16573 = vmatpush3.msra.mxu0 %v6615_v4 }
0x2f7b   :  { %16575 = vmatmul.mubr.msk.f32.vlgmr.msra.gmra.mxu0 %vm346_vm3, %v6612_v5  ;;  %16582 = vmatprep.subr.msk.mxu0 %vm861_vm4, %v15319_v55 }
0x2f7c   :  { %16583 = vmatpush3.msk.msra.mxu0 %vm861_vm4, %v15319_v55  ;;  %v15401_v55 = vld [vmem:[%s19640_s9 + $0x38] sm:$0xff] }
0x2f7d   :  { %v6853_v9 = vpop.permute.xlu0 %6852  ;;  %16592 = vmatprep.subr.mxu0 %v17546_v34 }
0x2f83   :  { %v17345_v6 = vpop.eup %17344 }
0x2f84   :  { %v6613_v7 = vmul.f32 %v17345_v6, %v17341_v58 }
0x2f86   :  { %16580 = vmatmul.mubr.msk.f32.vlgmr.msra.gmra.mxu1 %vm346_vm3, %v6613_v7 }
0x2f87   :  { %16588 = vmatpush3.xpose.msk.msra.mxu1 %vm192_vm2, %v6855_v8  ;;  %16589 = vmatprep.mubr.msk.f32.mxu1 %vm17547_vm1, %v17546_v34 }
0x2f88   :  { %16597 = vmatprep.subr.mxu1 %v17546_v34 }
0x2f8a   :  { %16590 = vmatmul.mubr.msk.f32.vlgmr.msra.gmra.mxu1 %vm192_vm2, %v6853_v9 }
0x2f8b   :  { %16599 = vmatprep.mubr.msk.f32.mxu1 %vm17547_vm1, %v17546_v34 }
0x303b   :  { %v6686_v10 = vpop.f32.mrf.mxu0 }
0x303c   :  { %16584 = vmatprep.mubr.msk.f32.mxu0 %vm192_vm2, %v6686_v10  ;;  %v15400_v10 = vld [vmem:[%s19640_s9 + $0x30] sm:$0xff] }
0x303d   :  { %v16576_v56 = vpop.f32.mrf.mxu0 }
0x303e   :  { %v15399_v56 = vld [vmem:[%s19640_s9 + $0x28] sm:$0xff] }
0x3046   :  { %v6762_v12 = vpop.f32.mrf.mxu1 }
0x3047   :  { %16585 = vmatmul.mubr.msk.f32.vlgmr.msra.gmra.mxu0 %vm192_vm2, %v6762_v12  ;;  %v15421_v12 = vld [vmem:[%s19642_s11 + $0xf8] sm:$0xff] }
0x3048   :  { %16593 = vmatpush3.xpose.msk.msra.mxu0 %vm192_vm2, %v6933_v11  ;;  %v16581_v13 = vpop.f32.mrf.mxu1  ;;  %16594 = vmatprep.mubr.msk.f32.mxu0 %vm17547_vm1, %v17546_v34  ;;  %v15398_v11 = vld [vmem:[%s19640_s9 + $0x20] sm:$0xff] }
0x3049   :  { %16602 = vmatprep.subr.mxu0 %v17546_v34  ;;  %v15420_v13 = vld [vmem:[%s19642_s11 + $0xf0] sm:$0xff] }
0x304a   :  { %v6926_v15 = vpop.f32.mrf.mxu1 }
0x304b   :  { %v7008_v16 = vmul.f32 0.5, %v6926_v15  ;;  %16595 = vmatmul.mubr.msk.f32.vlgmr.msra.gmra.mxu0 %vm192_vm2, %v6931_v14  ;;  %v15419_v14 = vld [vmem:[%s19642_s11 + $0xe8] sm:$0xff] }
0x304c   :  { %v16591_v18 = vpop.f32.mrf.mxu1  ;;  %16604 = vmatprep.mubr.msk.f32.mxu0 %vm17547_vm1, %v17546_v34 }
0x304d   :  { %v7010_v19 = vsel %vm346_vm3, %v7008_v16, -inf }
0x304e   :  { %7011 = vmax.xlane.f32.xlu0 %v7010_v19 }
0x30d7   :  { %v7012_v20 = vpop.xlane.xlu0 %7011 }
0x30d8   :  { %v7016_v21 = vsub.f32 %v7008_v16, %v7012_v20 }
0x30da   :  { %v7018_v22 = vmul.f32 1.442695, %v7016_v21 }
0x30dc   :  { %17346 = vpow2.f32 %v7018_v22 }
0x30e9   :  { %v17347_v24 = vpop.eup %17346 }
0x30ea   :  { %v7022_v25 = vsel %vm346_vm3, %v17347_v24, 0.0 }
0x30eb   :  { %7023 = vadd.xlane.f32.xlu0 %v7022_v25 }
0x3107   :  { %v16586_v26 = vpop.f32.mrf.mxu0 }
0x3108   :  { %v6851_v27 = vadd.f32 %v16586_v26, %v18478_v52 }
0x3109   :  { %v6841_v28 = vpop.f32.mrf.mxu0 }
0x310a   :  { %v6850_v29 = vadd.f32 %v6841_v28, %v18480_v41 }
0x310b   :  { %v7004_v30 = vpop.f32.mrf.mxu0 }
0x310c   :  { %v7009_v31 = vmul.f32 0.5, %v7004_v30 }
0x310d   :  { %v16596_v32 = vpop.f32.mrf.mxu0 }
0x310e   :  { %v7013_v37 = vsel %vm346_vm3, %v7009_v31, -inf }
0x310f   :  { %7014 = vmax.xlane.f32.xlu1 %v7013_v37  ;;  %v15418_v37 = vld [vmem:[%s19642_s11 + $0xe0] sm:$0xff] }
0x3120   :  { %7108 = vrot.lane.b32.xlu1 %v18179_v36, %s19719_s30 }
0x3174   :  { %v7024_v45 = vpop.xlane.xlu0 %7023 }
0x3198   :  { %v7015_v33 = vpop.xlane.xlu1 %7014 }
0x3199   :  { %v7017_v35 = vsub.f32 %v7009_v31, %v7015_v33  ;;  %v15417_v33 = vld [vmem:[%s19642_s11 + $0xd8] sm:$0xff] }
0x319b   :  { %v7020_v39 = vmul.f32 1.442695, %v7017_v35  ;;  %v15416_v35 = vld [vmem:[%s19642_s11 + $0xd0] sm:$0xff] }
0x319c   :  { %v7109_v42 = vpop.permute.xlu1 %7108 }
0x319d   :  { %17348 = vpow2.f32 %v7020_v39  ;;  %16603 = vmatpush3.msra.mxu0 %v7109_v42  ;;  %v15415_v39 = vld [vmem:[%s19642_s11 + $0xc8] sm:$0xff]  ;;  %v15414_v42 = vld [vmem:[%s19642_s11 + $0xc0] sm:$0xff] }
0x319e   :  { %17350 = vrcp.f32 %v7024_v45  ;;  %16612 = vmatprep.subr.mxu0 %v15401_v55  ;;  %v15411_v45 = vld [vmem:[%s19642_s11 + $0xa8] sm:$0xff] }
0x31aa   :  { %v17349_v43 = vpop.eup %17348 }
0x31ab   :  { %v7025_v44 = vsel %vm346_vm3, %v17349_v43, 0.0  ;;  %v17351_v48 = vpop.eup %17350 }
0x31ac   :  { %7026 = vadd.xlane.f32.xlu0 %v7025_v44  ;;  %v7030_v50 = vmul.f32 %v17351_v48, %v17347_v24  ;;  %v15396_v24 = vld [vmem:[%s19638_s7 + $0x1] ss:$0 sm:$0xff]  ;;  %v15412_v44 = vld [vmem:[%s19642_s11 + $0xb0] sm:$0xff]  ;;  %v15409_v48 = vld [vmem:[%s19642_s11 + $0x98] sm:$0xff] }
0x31c2   :  { %7032 = vrot.lane.b32.xlu0 %v18181_v40, %s19719_s30  ;;  %s19721_s30 = smov 64  }
0x3235   :  { %v7027_v46 = vpop.xlane.xlu0 %7026 }
0x3236   :  { %17352 = vrcp.f32 %v7027_v46  ;;  %v15410_v46 = vld [vmem:[%s19642_s11 + $0xa0] sm:$0xff] }
0x3239   :  { %v7033_v36 = vpop.permute.xlu0 %7032 }
0x323a   :  { %16598 = vmatpush3.msra.mxu1 %v7033_v36  ;;  %v15407_v36 = vld [vmem:[%s19642_s11 + $0x88] sm:$0xff] }
0x323b   :  { %16600 = vmatmul.mubr.msk.f32.vlgmr.msra.gmra.mxu1 %vm346_vm3, %v7030_v50  ;;  %16607 = vmatprep.subr.msk.mxu1 %vm861_vm4, %v7184_v49  ;;  %v15406_v50 = vld [vmem:[%s19642_s11 + $0x80] sm:$0xff] }
0x323c   :  { %16608 = vmatpush3.msk.msra.mxu1 %vm861_vm4, %v7184_v49  ;;  %v15408_v49 = vld [vmem:[%s19642_s11 + $0x90] sm:$0xff] }
0x323d   :  { %16623 = vmatprep.subr.mxu1 %v15421_v12 }
0x3243   :  { %v17353_v51 = vpop.eup %17352 }
0x3244   :  { %v7031_v53 = vmul.f32 %v17353_v51, %v17349_v43  ;;  %v15413_v43 = vld [vmem:[%s19642_s11 + $0xb8] sm:$0xff]  ;;  %v15403_v51 = vld [vmem:[%s19641_s10 + $0x1] ss:$0 sm:$0xff] }
0x3246   :  { %16605 = vmatmul.mubr.msk.f32.vlgmr.msra.gmra.mxu0 %vm346_vm3, %v7031_v53 }
0x3247   :  { %16613 = vmatpush3.msra.mxu0 %v15401_v55 }
0x3248   :  { %16614 = vmatprep.subr.mxu0 %v15400_v10 }
0x3249   :  { %16615 = vmatpush3.msra.mxu0 %v15400_v10 }
0x324a   :  { %16616 = vmatprep.subr.mxu0 %v15399_v56 }
0x324b   :  { %16617 = vmatpush3.msra.mxu0 %v15399_v56 }
0x324c   :  { %16618 = vmatprep.subr.mxu0 %v15398_v11 }
0x324d   :  { %16619 = vmatpush3.msra.mxu0 %v15398_v11 }
0x32fb   :  { %v7104_v40 = vpop.f32.mrf.mxu1 }
0x32fc   :  { %16609 = vmatprep.mubr.msk.f32.mxu1 %vm192_vm2, %v7104_v40 }
0x32fd   :  { %v16601_v52 = vpop.f32.mrf.mxu1 }
0x3306   :  { %v7180_v62 = vpop.f32.mrf.mxu0 }
0x3307   :  { %16610 = vmatmul.mubr.msk.f32.vlgmr.msra.gmra.mxu1 %vm192_vm2, %v7180_v62 }
0x3308   :  { %v16606_v41 = vpop.f32.mrf.mxu0  ;;  %16624 = vmatpush3.msra.mxu1 %v15421_v12 }
0x3309   :  { %16625 = vmatprep.subr.mxu1 %v15420_v13 }
0x330a   :  { %16626 = vmatpush3.msra.mxu1 %v15420_v13 }
0x330b   :  { %16627 = vmatprep.subr.mxu1 %v15419_v14 }
0x330c   :  { %16628 = vmatpush3.msra.mxu1 %v15419_v14 }
0x330d   :  { %16629 = vmatprep.subr.mxu1 %v15418_v37 }
0x330e   :  { %16630 = vmatpush3.msra.mxu1 %v15418_v37  ;;  %v15427_v37 = vld [vmem:[%s19633_s2 + $0x2] ss:$0 sm:$0xff] }
0x330f   :  { %16631 = vmatprep.subr.mxu1 %v15417_v33 }
0x3310   :  { %16632 = vmatpush3.msra.mxu1 %v15417_v33 }
0x3311   :  { %16633 = vmatprep.subr.mxu1 %v15416_v35 }
0x3312   :  { %16634 = vmatpush3.msra.mxu1 %v15416_v35 }
0x3313   :  { %16635 = vmatprep.subr.mxu1 %v15415_v39 }
0x3314   :  { %16636 = vmatpush3.msra.mxu1 %v15415_v39 }
0x3315   :  { %16637 = vmatprep.subr.mxu1 %v15414_v42 }
0x3316   :  { %16638 = vmatpush3.msra.mxu1 %v15414_v42  ;;  %v15433_v42 = vld [vmem:[%s19635_s4 + $0x2] ss:$0 sm:$0xff] }
0x3317   :  { %16639 = vmatprep.subr.mxu1 %v15413_v43 }
0x3318   :  { %16640 = vmatpush3.msra.mxu1 %v15413_v43 }
0x3319   :  { %16641 = vmatprep.subr.mxu1 %v15412_v44 }
0x331a   :  { %16642 = vmatpush3.msra.mxu1 %v15412_v44 }
0x331b   :  { %16643 = vmatprep.subr.mxu1 %v15411_v45 }
0x331c   :  { %16644 = vmatpush3.msra.mxu1 %v15411_v45 }
0x331d   :  { %16645 = vmatprep.subr.mxu1 %v15410_v46 }
0x331e   :  { %16646 = vmatpush3.msra.mxu1 %v15410_v46 }
0x331f   :  { %16647 = vmatprep.subr.mxu1 %v15409_v48 }
0x3320   :  { %16648 = vmatpush3.msra.mxu1 %v15409_v48 }
0x3321   :  { %16649 = vmatprep.subr.mxu1 %v15408_v49 }
0x3322   :  { %16650 = vmatpush3.msra.mxu1 %v15408_v49 }
0x3323   :  { %16651 = vmatprep.subr.mxu1 %v15407_v36 }
0x3324   :  { %16652 = vmatpush3.msra.mxu1 %v15407_v36 }
0x3325   :  { %16653 = vmatprep.subr.mxu1 %v15406_v50 }
0x3326   :  { %16654 = vmatpush3.msra.mxu1 %v15406_v50 }
0x3327   :  { %16694 = vmatprep.subr.mxu1 %v17546_v34 }
0x33c7   :  { %v16611_v17 = vpop.f32.mrf.mxu1 }
0x33c8   :  { %v7269_v60 = vadd.f32 %v16611_v17, %v6851_v27 }
0x33c9   :  { %v7259_v57 = vpop.f32.mrf.mxu1 }
0x33ca   :  { %v7271_v54 = vadd.f32 %v7269_v60, %v18140_v0  ;;  %v7268_v3 = vadd.f32 %v7259_v57, %v6850_v29  ;;  %v15397_v29 = vld [vmem:[%s19639_s8 + $0x1] ss:$0 sm:$0xff] }
0x33cc   :  { %v18541_v47 = vadd.f32 %v15393_v38, %v7271_v54  ;;  %v7270_v23 = vadd.f32 %v7268_v3, %v18143_v2 }
0x33ce   :  { %v18544_v58 = vadd.f32 %v15393_v38, %v7270_v23  ;;  %v7289_v59 = vsel %vm49_vm0, %v18541_v47, 0.0 }
0x33cf   :  { %7290 = vadd.xlane.f32.xlu0 %v7289_v59 }
0x33d0   :  { %v7286_v61 = vsel %vm49_vm0, %v18544_v58, 0.0 }
0x33d1   :  { %7287 = vadd.xlane.f32.xlu1 %v7286_v61 }
0x3458   :  { %v7291_v63 = vpop.xlane.xlu0 %7290 }
0x3459   :  { %v7293_v1 = vmul.f32 0.03125, %v7291_v63  ;;  %v15423_v63 = vld [vmem:[%s19643_s12 + $0x1] ss:$0 sm:$0xff] }
0x345a   :  { %v7288_v4 = vpop.xlane.xlu1 %7287 }
0x345b   :  { %v7295_v0 = vsub.f32 %v18541_v47, %v7293_v1  ;;  %v7292_v5 = vmul.f32 0.03125, %v7288_v4 }
0x345d   :  { %v7294_v6 = vsub.f32 %v18544_v58, %v7292_v5  ;;  %v7297_v7 = vmul.f32 %v7295_v0, %v7295_v0 }
0x345f   :  { %v7301_v2 = vsel %vm49_vm0, %v7297_v7, 0.0  ;;  %v7296_v8 = vmul.f32 %v7294_v6, %v7294_v6 }
0x3460   :  { %7302 = vadd.xlane.f32.xlu1 %v7301_v2 }
0x3461   :  { %v7298_v9 = vsel %vm49_vm0, %v7296_v8, 0.0 }
0x3462   :  { %7299 = vadd.xlane.f32.xlu0 %v7298_v9 }
0x34e9   :  { %v7303_v15 = vpop.xlane.xlu1 %7302 }
0x34ea   :  { %v7305_v16 = vmul.f32 0.03125, %v7303_v15  ;;  %v15431_v15 = vld [vmem:[%s19634_s3 + $0x58] sm:$0xff] }
0x34eb   :  { %v7300_v18 = vpop.xlane.xlu0 %7299  ;;  %16658 = vmatprep.subr.mxu0 %v15431_v15 }
0x34ec   :  { %v7307_v19 = vadd.f32 1e-05, %v7305_v16  ;;  %v7304_v20 = vmul.f32 0.03125, %v7300_v18  ;;  %v15430_v16 = vld [vmem:[%s19634_s3 + $0x50] sm:$0xff]  ;;  %v15429_v18 = vld [vmem:[%s19634_s3 + $0x48] sm:$0xff] }
0x34ee   :  { %17354 = vrsqrt.f32 %v7307_v19  ;;  %v7306_v21 = vadd.f32 1e-05, %v7304_v20  ;;  %v15428_v19 = vld [vmem:[%s19634_s3 + $0x40] sm:$0xff] }
0x34f0   :  { %17356 = vrsqrt.f32 %v7306_v21 }
0x34fb   :  { %v17355_v22 = vpop.eup %17354 }
0x34fc   :  { %v7311_v25 = vmul.f32 %v17355_v22, %v7295_v0 }
0x34fd   :  { %v17357_v26 = vpop.eup %17356 }
0x34fe   :  { %v7310_v27 = vmul.f32 %v17357_v26, %v7294_v6  ;;  %v7319_v28 = vmul.f32 %v15396_v24, %v7311_v25 }
0x3500   :  { %v7318_v30 = vmul.f32 %v15396_v24, %v7310_v27  ;;  %v7327_v32 = vadd.f32 %v15397_v29, %v7319_v28  ;;  %v15426_v28 = vld [vmem:[%s19632_s1 + $0x2] ss:$0 sm:$0xff] }
0x3502   :  { %v7326_v31 = vadd.f32 %v15397_v29, %v7318_v30 }
0x3504   :  { %16620 = vmatprep.mubr.msk.f32.mxu0 %vm49_vm0, %v7326_v31 }
0x3505   :  { %16621 = vmatmul.mubr.msk.f32.vlgmr.msra.gmra.mxu0 %vm49_vm0, %v7327_v32 }
0x3506   :  { %16659 = vmatpush3.msra.mxu0 %v15431_v15 }
0x3507   :  { %16660 = vmatprep.subr.mxu0 %v15430_v16 }
0x3508   :  { %16661 = vmatpush3.msra.mxu0 %v15430_v16 }
0x3509   :  { %16662 = vmatprep.subr.mxu0 %v15429_v18 }
0x350a   :  { %16663 = vmatpush3.msra.mxu0 %v15429_v18 }
0x350b   :  { %16664 = vmatprep.subr.mxu0 %v15428_v19 }
0x350c   :  { %16665 = vmatpush3.msra.mxu0 %v15428_v19 }
0x350d   :  { %16669 = vmatprep.subr.mxu0 %v17546_v34 }
0x35c5   :  { %v16622_v53 = vpop.f32.mrf.mxu0 }
0x35c6   :  { %v7419_v40 = vadd.f32 %v16622_v53, %v15403_v51 }
0x35c7   :  { %v7413_v52 = vpop.f32.mrf.mxu0 }
0x35c8   :  { %v7425_v62 = vmul.f32 0.70710677, %v7419_v40  ;;  %v7414_v41 = vadd.f32 %v15403_v51, %v7413_v52  ;;  %v7423_v23 = vmul.f32 0.5, %v7419_v40 }
0x35ca   :  { %17358 = verf.f32 %v7425_v62  ;;  %v7424_v17 = vmul.f32 0.70710677, %v7414_v41  ;;  %v7422_v54 = vmul.f32 0.5, %v7414_v41 }
0x35cc   :  { %17360 = verf.f32 %v7424_v17 }
0x35d7   :  { %v17359_v60 = vpop.eup %17358 }
0x35d8   :  { %v7429_v57 = vadd.f32 1.0, %v17359_v60 }
0x35d9   :  { %v17361_v38 = vpop.eup %17360 }
0x35da   :  { %v7428_v3 = vadd.f32 1.0, %v17361_v38  ;;  %v7431_v61 = vmul.f32 %v7429_v57, %v7423_v23 }
0x35dc   :  { %v7430_v59 = vmul.f32 %v7428_v3, %v7422_v54 }
0x35de   :  { %16655 = vmatprep.mubr.f32.mxu1 %v7430_v59 }
0x35df   :  { %16656 = vmatmul.mubr.f32.vlgmr.msra.gmra.mxu1 %v7431_v61 }
0x35e0   :  { %16696 = vmatprep.mubr.msk.f32.mxu1 %vm17547_vm1, %v17546_v34 }
0x369f   :  { %v16657_v1 = vpop.f32.mrf.mxu1 }
0x36a0   :  { %v7529_v4 = vadd.f32 %v16657_v1, %v15423_v63 }
0x36a1   :  { %v7523_v0 = vpop.f32.mrf.mxu1 }
0x36a2   :  { %v18632_v5 = vadd.f32 %v7529_v4, %v18541_v47  ;;  %v7524_v6 = vadd.f32 %v15423_v63, %v7523_v0 }
0x36a4   :  { %v18635_v7 = vadd.f32 %v7524_v6, %v18544_v58  ;;  %v7541_v2 = vsel %vm49_vm0, %v18632_v5, 0.0 }
0x36a5   :  { %7542 = vadd.xlane.f32.xlu1 %v7541_v2 }
0x36a6   :  { %v7538_v8 = vsel %vm49_vm0, %v18635_v7, 0.0 }
0x36a7   :  { %7539 = vadd.xlane.f32.xlu0 %v7538_v8 }
0x372e   :  { %v7543_v9 = vpop.xlane.xlu1 %7542 }
0x372f   :  { %v7545_v55 = vmul.f32 0.03125, %v7543_v9 }
0x3730   :  { %v7540_v10 = vpop.xlane.xlu0 %7539 }
0x3731   :  { %v7547_v56 = vsub.f32 %v18632_v5, %v7545_v55  ;;  %v7544_v11 = vmul.f32 0.03125, %v7540_v10 }
0x3733   :  { %v7546_v47 = vsub.f32 %v18635_v7, %v7544_v11  ;;  %v7549_v12 = vmul.f32 %v7547_v56, %v7547_v56 }
0x3735   :  { %v7553_v58 = vsel %vm49_vm0, %v7549_v12, 0.0  ;;  %v7548_v13 = vmul.f32 %v7546_v47, %v7546_v47 }
0x3736   :  { %7554 = vadd.xlane.f32.xlu1 %v7553_v58 }
0x3737   :  { %v7550_v14 = vsel %vm49_vm0, %v7548_v13, 0.0 }
0x3738   :  { %7551 = vadd.xlane.f32.xlu0 %v7550_v14 }
0x37bf   :  { %v7555_v20 = vpop.xlane.xlu1 %7554 }
0x37c0   :  { %v7557_v21 = vmul.f32 0.03125, %v7555_v20 }
0x37c1   :  { %v7552_v22 = vpop.xlane.xlu0 %7551 }
0x37c2   :  { %v7559_v24 = vadd.f32 1e-05, %v7557_v21  ;;  %v7556_v25 = vmul.f32 0.03125, %v7552_v22 }
0x37c4   :  { %17362 = vrsqrt.f32 %v7559_v24  ;;  %v7558_v26 = vadd.f32 1e-05, %v7556_v25 }
0x37c6   :  { %17364 = vrsqrt.f32 %v7558_v26 }
0x37d1   :  { %v17363_v27 = vpop.eup %17362 }
0x37d2   :  { %v7563_v29 = vmul.f32 %v17363_v27, %v7547_v56 }
0x37d3   :  { %v17365_v30 = vpop.eup %17364 }
0x37d4   :  { %v7562_v31 = vmul.f32 %v17365_v30, %v7546_v47  ;;  %v7571_v32 = vmul.f32 %v15426_v28, %v7563_v29 }
0x37d6   :  { %v7570_v33 = vmul.f32 %v15426_v28, %v7562_v31  ;;  %v7579_v39 = vadd.f32 %v15427_v37, %v7571_v32 }
0x37d8   :  { %v7578_v35 = vadd.f32 %v15427_v37, %v7570_v33 }
0x37da   :  { %16666 = vmatprep.mubr.msk.f32.mxu0 %vm49_vm0, %v7578_v35 }
0x37db   :  { %16667 = vmatmul.mubr.msk.f32.vlgmr.msra.gmra.mxu0 %vm49_vm0, %v7579_v39  ;;  %v15436_v39 = vld [vmem:[%s19636_s5 + $0x40] sm:$0xff] }
0x37dc   :  { %16671 = vmatprep.mubr.msk.f32.mxu0 %vm17547_vm1, %v17546_v34 }
0x389b   :  { %v16668_v43 = vpop.f32.mrf.mxu0 }
0x389c   :  { %v18671_v44 = vadd.f32 %v16668_v43, %v15433_v42 }
0x389d   :  { %v7665_v45 = vpop.f32.mrf.mxu0 }
0x389e   :  { %v18673_v46 = vadd.f32 %v15433_v42, %v7665_v45  ;;  %7757 = vrot.lane.b32.xlu1 %v18671_v44, %s19720_s6 }
0x38a0   :  { %7680 = vrot.lane.b32.xlu0 %v18673_v46, %s19720_s6 }
0x3910   :  { %v7758_v49 = vpop.permute.xlu1 %7757 }
0x3912   :  { %v7681_v48 = vpop.permute.xlu0 %7680 }
0x3913   :  { %16670 = vmatpush3.xpose.msk.msra.mxu0 %vm192_vm2, %v7681_v48 }
0x3914   :  { %16674 = vmatprep.subr.mxu0 %v17546_v34 }
0x3916   :  { %16672 = vmatmul.mubr.msk.f32.vlgmr.msra.gmra.mxu0 %vm192_vm2, %v18673_v46 }
0x3917   :  { %16675 = vmatpush3.xpose.msk.msra.mxu0 %vm192_vm2, %v7758_v49  ;;  %16676 = vmatprep.mubr.msk.f32.mxu0 %vm17547_vm1, %v17546_v34 }
0x3918   :  { %16679 = vmatprep.subr.mxu0 %v17546_v34 }
0x391a   :  { %16677 = vmatmul.mubr.msk.f32.vlgmr.msra.gmra.mxu0 %vm192_vm2, %v18671_v44 }
0x391b   :  { %16681 = vmatprep.mubr.msk.f32.mxu0 %vm17547_vm1, %v17546_v34 }
0x39d6   :  { %v7752_v36 = vpop.f32.mrf.mxu0 }
0x39d7   :  { %v7833_v50 = vmul.f32 0.5, %v7752_v36 }
0x39d8   :  { %v16673_v51 = vpop.f32.mrf.mxu0 }
0x39d9   :  { %v7835_v53 = vsel %vm346_vm3, %v7833_v50, -inf }
0x39da   :  { %7836 = vmax.xlane.f32.xlu1 %v7835_v53  ;;  %v7829_v40 = vpop.f32.mrf.mxu0 }
0x39db   :  { %v7834_v52 = vmul.f32 0.5, %v7829_v40 }
0x39dc   :  { %v16678_v62 = vpop.f32.mrf.mxu0 }
0x39dd   :  { %v7838_v41 = vsel %vm346_vm3, %v7834_v52, -inf }
0x39de   :  { %7839 = vmax.xlane.f32.xlu0 %v7838_v41 }
0x39eb   :  { %7933 = vrot.lane.b32.xlu1 %v18671_v44, %s19721_s30 }
0x39ef   :  { %8011 = vrot.lane.b32.xlu1 %v18673_v46, %s19722_s29 }
0x39f3   :  { %8089 = vrot.lane.b32.xlu1 %v18671_v44, %s19722_s29 }
0x3a63   :  { %v7837_v17 = vpop.xlane.xlu1 %7836 }
0x3a64   :  { %v7841_v60 = vsub.f32 %v7833_v50, %v7837_v17  ;;  %v8342_v50 = vrot.slane %v15436_v39, 4 }
0x3a66   :  { %v7843_v38 = vmul.f32 1.442695, %v7841_v60 }
0x3a67   :  { %v7934_v57 = vpop.permute.xlu1 %7933  ;;  %v7840_v54 = vpop.xlane.xlu0 %7839 }
0x3a68   :  { %17366 = vpow2.f32 %v7843_v38  ;;  %v7842_v3 = vsub.f32 %v7834_v52, %v7840_v54 }
0x3a6a   :  { %v7845_v23 = vmul.f32 1.442695, %v7842_v3 }
0x3a6b   :  { %v8012_v59 = vpop.permute.xlu1 %8011 }
0x3a6c   :  { %17368 = vpow2.f32 %v7845_v23 }
0x3a6f   :  { %v8090_v61 = vpop.permute.xlu1 %8089 }
0x3a70   :  { %16695 = vmatpush3.xpose.msk.msra.mxu1 %vm192_vm2, %v8090_v61 }
0x3a71   :  { %16704 = vmatprep.subr.mxu1 %v17546_v34 }
0x3a75   :  { %v17367_v63 = vpop.eup %17366 }
0x3a76   :  { %v7847_v1 = vsel %vm346_vm3, %v17367_v63, 0.0 }
0x3a77   :  { %7848 = vadd.xlane.f32.xlu0 %v7847_v1 }
0x3a79   :  { %v17369_v4 = vpop.eup %17368 }
0x3a7a   :  { %v7850_v0 = vsel %vm346_vm3, %v17369_v4, 0.0 }
0x3a7b   :  { %7851 = vadd.xlane.f32.xlu1 %v7850_v0 }
0x3a8c   :  { %8087 = vrot.lane.b32.xlu1 %v18671_v44, %s19723_s14 }
0x3a8d   :  { %7857 = vrot.lane.b32.xlu0 %v18673_v46, %s19721_s30 }
0x3a91   :  { %8009 = vrot.lane.b32.xlu0 %v18673_v46, %s19723_s14 }
0x3b00   :  { %v7849_v6 = vpop.xlane.xlu0 %7848 }
0x3b01   :  { %17370 = vrcp.f32 %v7849_v6 }
0x3b04   :  { %v7852_v2 = vpop.xlane.xlu1 %7851  ;;  %v7858_v8 = vpop.permute.xlu0 %7857 }
0x3b05   :  { %17372 = vrcp.f32 %v7852_v2  ;;  %16680 = vmatpush3.msra.mxu0 %v7858_v8 }
0x3b06   :  { %16684 = vmatprep.subr.mxu0 %v17546_v34 }
0x3b08   :  { %v8088_v9 = vpop.permute.xlu1 %8087  ;;  %v8010_v47 = vpop.permute.xlu0 %8009 }
0x3b09   :  { %16697 = vmatmul.mubr.msk.f32.vlgmr.msra.gmra.mxu1 %vm192_vm2, %v8088_v9 }
0x3b0a   :  { %16706 = vmatprep.mubr.msk.f32.mxu1 %vm17547_vm1, %v17546_v34 }
0x3b0e   :  { %v17371_v55 = vpop.eup %17370 }
0x3b0f   :  { %v7855_v10 = vmul.f32 %v17371_v55, %v17367_v63 }
0x3b11   :  { %16682 = vmatmul.mubr.msk.f32.vlgmr.msra.gmra.mxu0 %vm346_vm3, %v7855_v10 }
0x3b12   :  { %v17373_v56 = vpop.eup %17372  ;;  %16685 = vmatpush3.msra.mxu0 %v7934_v57  ;;  %16686 = vmatprep.mubr.msk.f32.mxu0 %vm17547_vm1, %v17546_v34 }
0x3b13   :  { %16689 = vmatprep.subr.mxu0 %v17546_v34  ;;  %v7856_v11 = vmul.f32 %v17373_v56, %v17369_v4 }
0x3b15   :  { %16687 = vmatmul.mubr.msk.f32.vlgmr.msra.gmra.mxu0 %vm346_vm3, %v7856_v11 }
0x3b16   :  { %16690 = vmatpush3.xpose.msk.msra.mxu0 %vm192_vm2, %v8012_v59  ;;  %16691 = vmatprep.mubr.msk.f32.mxu0 %vm17547_vm1, %v17546_v34 }
0x3b17   :  { %16699 = vmatprep.subr.mxu0 %v17546_v34 }
0x3b19   :  { %16692 = vmatmul.mubr.msk.f32.vlgmr.msra.gmra.mxu0 %vm192_vm2, %v8010_v47 }
0x3b1a   :  { %16701 = vmatprep.mubr.msk.f32.mxu0 %vm17547_vm1, %v17546_v34 }
0x3bc9   :  { %v8161_v12 = vpop.f32.mrf.mxu1 }
0x3bca   :  { %v8166_v58 = vmul.f32 0.5, %v8161_v12 }
0x3bcb   :  { %v16698_v13 = vpop.f32.mrf.mxu1 }
0x3bcc   :  { %v8170_v14 = vsel %vm346_vm3, %v8166_v58, -inf }
0x3bcd   :  { %8171 = vmax.xlane.f32.xlu1 %v8170_v14 }
0x3bd1   :  { %v7929_v15 = vpop.f32.mrf.mxu0 }
0x3bd3   :  { %v16683_v16 = vpop.f32.mrf.mxu0 }
0x3bd5   :  { %v8005_v18 = vpop.f32.mrf.mxu0 }
0x3bd7   :  { %v16688_v19 = vpop.f32.mrf.mxu0 }
0x3bd9   :  { %v8083_v20 = vpop.f32.mrf.mxu0 }
0x3bda   :  { %v8165_v21 = vmul.f32 0.5, %v8083_v20 }
0x3bdb   :  { %v16693_v22 = vpop.f32.mrf.mxu0 }
0x3bdc   :  { %v8167_v24 = vsel %vm346_vm3, %v8165_v21, -inf }
0x3bdd   :  { %8168 = vmax.xlane.f32.xlu0 %v8167_v24 }
0x3bde   :  { %8265 = vrot.lane.b32.xlu1 %v18671_v44, %s19724_s27 }
0x3be2   :  { %8511 = vrot.lane.b32.xlu1 %v18673_v46, %s19725_s28 }
0x3be6   :  { %8589 = vrot.lane.b32.xlu1 %v18671_v44, %s19725_s28  ;;  %s19727_s28 = smov 56  }
0x3bea   :  { %8587 = vrot.lane.b32.xlu1 %v18671_v44, %s19726_s13 }
0x3c56   :  { %v8172_v25 = vpop.xlane.xlu1 %8171 }
0x3c57   :  { %v8174_v26 = vsub.f32 %v8166_v58, %v8172_v25 }
0x3c59   :  { %v8177_v27 = vmul.f32 1.442695, %v8174_v26 }
0x3c5a   :  { %v8266_v28 = vpop.permute.xlu1 %8265 }
0x3c5b   :  { %17374 = vpow2.f32 %v8177_v27  ;;  %16705 = vmatpush3.msra.mxu1 %v8266_v28  ;;  %v18807_v28 = vld [vmem:[%s19636_s5 + $0x48] sm:$0xff] }
0x3c5c   :  { %16714 = vmatprep.subr.msk.mxu1 %vm861_vm4, %v15436_v39 }
0x3c5e   :  { %v8512_v43 = vpop.permute.xlu1 %8511 }
0x3c62   :  { %v8590_v36 = vpop.permute.xlu1 %8589 }
0x3c66   :  { %v8169_v29 = vpop.xlane.xlu0 %8168  ;;  %v8588_v53 = vpop.permute.xlu1 %8587 }
0x3c67   :  { %v8173_v30 = vsub.f32 %v8165_v21, %v8169_v29 }
0x3c68   :  { %v17375_v31 = vpop.eup %17374 }
0x3c69   :  { %v8175_v32 = vmul.f32 1.442695, %v8173_v30  ;;  %v8182_v37 = vsel %vm346_vm3, %v17375_v31, 0.0 }
0x3c6a   :  { %8183 = vadd.xlane.f32.xlu0 %v8182_v37 }
0x3c6b   :  { %17376 = vpow2.f32 %v8175_v32 }
0x3c78   :  { %v17377_v33 = vpop.eup %17376 }
0x3c79   :  { %v8179_v35 = vsel %vm346_vm3, %v17377_v33, 0.0 }
0x3c7a   :  { %8180 = vadd.xlane.f32.xlu0 %v8179_v35 }
0x3c90   :  { %8189 = vrot.lane.b32.xlu0 %v18673_v46, %s19724_s27 }
0x3c94   :  { %8509 = vrot.lane.b32.xlu0 %v18673_v46, %s19726_s13  ;;  %s19729_s13 = smov 116  }
0x3cf3   :  { %v8184_v42 = vpop.xlane.xlu0 %8183 }
0x3cf4   :  { %17378 = vrcp.f32 %v8184_v42 }
0x3d01   :  { %v17379_v45 = vpop.eup %17378 }
0x3d02   :  { %v8188_v48 = vmul.f32 %v17379_v45, %v17375_v31 }
0x3d03   :  { %v8181_v49 = vpop.xlane.xlu0 %8180 }
0x3d04   :  { %17380 = vrcp.f32 %v8181_v49  ;;  %16707 = vmatmul.mubr.msk.f32.vlgmr.msra.gmra.mxu1 %vm346_vm3, %v8188_v48 }
0x3d05   :  { %16716 = vmatprep.mubr.msk.f32.mxu1 %vm192_vm2, %v7929_v15  ;;  %16715 = vmatpush3.msk.msra.mxu1 %vm861_vm4, %v15436_v39 }
0x3d06   :  { %16724 = vmatprep.subr.mxu1 %v17546_v34 }
0x3d07   :  { %v8190_v51 = vpop.permute.xlu0 %8189 }
0x3d08   :  { %16700 = vmatpush3.msra.mxu0 %v8190_v51  ;;  %16717 = vmatmul.mubr.msk.f32.vlgmr.msra.gmra.mxu1 %vm192_vm2, %v8005_v18 }
0x3d09   :  { %16725 = vmatpush3.xpose.msk.msra.mxu1 %vm192_vm2, %v8590_v36  ;;  %16726 = vmatprep.mubr.msk.f32.mxu1 %vm17547_vm1, %v17546_v34 }
0x3d0a   :  { %16709 = vmatprep.subr.msk.mxu0 %vm861_vm4, %v8342_v50  ;;  %16734 = vmatprep.subr.mxu1 %v17546_v34 }
0x3d0b   :  { %v8510_v61 = vpop.permute.xlu0 %8509 }
0x3d0c   :  { %16727 = vmatmul.mubr.msk.f32.vlgmr.msra.gmra.mxu1 %vm192_vm2, %v8588_v53 }
0x3d0d   :  { %16736 = vmatprep.mubr.msk.f32.mxu1 %vm17547_vm1, %v17546_v34 }
0x3d11   :  { %v17381_v40 = vpop.eup %17380 }
0x3d12   :  { %v8187_v52 = vmul.f32 %v17381_v40, %v17377_v33 }
0x3d14   :  { %16702 = vmatmul.mubr.msk.f32.vlgmr.msra.gmra.mxu0 %vm346_vm3, %v8187_v52 }
0x3d15   :  { %16710 = vmatpush3.msk.msra.mxu0 %vm861_vm4, %v8342_v50 }
0x3d16   :  { %16719 = vmatprep.subr.mxu0 %v17546_v34 }
0x3dc4   :  { %v8337_v62 = vpop.f32.mrf.mxu1 }
0x3dc6   :  { %v16708_v41 = vpop.f32.mrf.mxu1 }
0x3dc8   :  { %v18761_v17 = vpop.f32.mrf.mxu1 }
0x3dca   :  { %v18763_v60 = vpop.f32.mrf.mxu1 }
0x3dcc   :  { %v8661_v38 = vpop.f32.mrf.mxu1 }
0x3dcd   :  { %v8666_v57 = vmul.f32 0.5, %v8661_v38 }
0x3dce   :  { %v16728_v54 = vpop.f32.mrf.mxu1 }
0x3dcf   :  { %v8670_v3 = vsel %vm346_vm3, %v8666_v57, -inf }
0x3dd0   :  { %8671 = vmax.xlane.f32.xlu1 %v8670_v3 }
0x3dd4   :  { %v8261_v23 = vpop.f32.mrf.mxu0 }
0x3dd5   :  { %16711 = vmatprep.mubr.msk.f32.mxu0 %vm192_vm2, %v8261_v23 }
0x3dd6   :  { %v16703_v59 = vpop.f32.mrf.mxu0  ;;  %16712 = vmatmul.mubr.msk.f32.vlgmr.msra.gmra.mxu0 %vm192_vm2, %v8337_v62 }
0x3dd7   :  { %16720 = vmatpush3.xpose.msk.msra.mxu0 %vm192_vm2, %v8512_v43  ;;  %16721 = vmatprep.mubr.msk.f32.mxu0 %vm17547_vm1, %v17546_v34 }
0x3dd8   :  { %16729 = vmatprep.subr.mxu0 %v17546_v34 }
0x3dda   :  { %16722 = vmatmul.mubr.msk.f32.vlgmr.msra.gmra.mxu0 %vm192_vm2, %v8510_v61 }
0x3ddb   :  { %16731 = vmatprep.mubr.msk.f32.mxu0 %vm17547_vm1, %v17546_v34 }
0x3de1   :  { %8765 = vrot.lane.b32.xlu1 %v18671_v44, %s19727_s28 }
0x3de5   :  { %8929 = vrot.lane.b32.xlu1 %v18673_v46, %s19728_s26 }
0x3de9   :  { %9007 = vrot.lane.b32.xlu1 %v18671_v44, %s19728_s26 }
0x3ded   :  { %9005 = vrot.lane.b32.xlu1 %v18671_v44, %s19729_s13 }
0x3e59   :  { %v8672_v63 = vpop.xlane.xlu1 %8671 }
0x3e5a   :  { %v8674_v4 = vsub.f32 %v8666_v57, %v8672_v63 }
0x3e5c   :  { %v8677_v0 = vmul.f32 1.442695, %v8674_v4  ;;  %v9259_v4 = vrot.slane %v18807_v28, 4 }
0x3e5d   :  { %v8766_v1 = vpop.permute.xlu1 %8765 }
0x3e5e   :  { %16735 = vmatpush3.msra.mxu1 %v8766_v1  ;;  %17382 = vpow2.f32 %v8677_v0 }
0x3e5f   :  { %16744 = vmatprep.subr.mxu1 %v17546_v34 }
0x3e61   :  { %v8930_v19 = vpop.permute.xlu1 %8929 }
0x3e65   :  { %v9008_v37 = vpop.permute.xlu1 %9007 }
0x3e69   :  { %v9006_v39 = vpop.permute.xlu1 %9005 }
0x3e6b   :  { %v17383_v56 = vpop.eup %17382 }
0x3e6c   :  { %v8682_v11 = vsel %vm346_vm3, %v17383_v56, 0.0 }
0x3e96   :  { %v18784_v6 = vpop.f32.mrf.mxu0 }
0x3e97   :  { %v8506_v36 = vadd.f32 %v18761_v17, %v18784_v6 }
0x3e98   :  { %v18786_v2 = vpop.f32.mrf.mxu0 }
0x3e99   :  { %v8501_v51 = vadd.f32 %v18763_v60, %v18786_v2 }
0x3e9a   :  { %v8583_v8 = vpop.f32.mrf.mxu0 }
0x3e9b   :  { %v8665_v9 = vmul.f32 0.5, %v8583_v8 }
0x3e9c   :  { %v16723_v55 = vpop.f32.mrf.mxu0 }
0x3e9d   :  { %v8667_v10 = vsel %vm346_vm3, %v8665_v9, -inf }
0x3e9e   :  { %8668 = vmax.xlane.f32.xlu0 %v8667_v10 }
0x3ea2   :  { %8683 = vadd.xlane.f32.xlu0 %v8682_v11 }
0x3f27   :  { %v8669_v47 = vpop.xlane.xlu0 %8668 }
0x3f28   :  { %v8673_v12 = vsub.f32 %v8665_v9, %v8669_v47 }
0x3f2a   :  { %v8675_v58 = vmul.f32 1.442695, %v8673_v12 }
0x3f2b   :  { %v8684_v13 = vpop.xlane.xlu0 %8683 }
0x3f2c   :  { %17384 = vpow2.f32 %v8675_v58 }
0x3f2d   :  { %17386 = vrcp.f32 %v8684_v13 }
0x3f39   :  { %v17385_v14 = vpop.eup %17384 }
0x3f3a   :  { %v17387_v15 = vpop.eup %17386  ;;  %v8679_v16 = vsel %vm346_vm3, %v17385_v14, 0.0 }
0x3f3b   :  { %8680 = vadd.xlane.f32.xlu0 %v8679_v16  ;;  %v8688_v18 = vmul.f32 %v17387_v15, %v17383_v56 }
0x3f3d   :  { %16737 = vmatmul.mubr.msk.f32.vlgmr.msra.gmra.mxu1 %vm346_vm3, %v8688_v18 }
0x3f3e   :  { %16745 = vmatpush3.xpose.msk.msra.mxu1 %vm192_vm2, %v8930_v19  ;;  %16746 = vmatprep.mubr.msk.f32.mxu1 %vm17547_vm1, %v17546_v34 }
0x3f3f   :  { %16754 = vmatprep.subr.mxu1 %v17546_v34 }
0x3f51   :  { %8689 = vrot.lane.b32.xlu0 %v18673_v46, %s19727_s28  ;;  %s19730_s28 = smov 36  }
0x3f55   :  { %8927 = vrot.lane.b32.xlu0 %v18673_v46, %s19729_s13 }
0x3fc4   :  { %v8681_v20 = vpop.xlane.xlu0 %8680 }
0x3fc5   :  { %17388 = vrcp.f32 %v8681_v20 }
0x3fc8   :  { %v8690_v21 = vpop.permute.xlu0 %8689 }
0x3fc9   :  { %16730 = vmatpush3.msra.mxu0 %v8690_v21 }
0x3fca   :  { %16739 = vmatprep.subr.msk.mxu0 %vm861_vm4, %v18807_v28 }
0x3fcc   :  { %v8928_v22 = vpop.permute.xlu0 %8927 }
0x3fcd   :  { %16747 = vmatmul.mubr.msk.f32.vlgmr.msra.gmra.mxu1 %vm192_vm2, %v8928_v22 }
0x3fce   :  { %16756 = vmatprep.mubr.msk.f32.mxu1 %vm17547_vm1, %v17546_v34 }
0x3fd2   :  { %v17389_v24 = vpop.eup %17388 }
0x3fd3   :  { %v8687_v25 = vmul.f32 %v17389_v24, %v17385_v14 }
0x3fd5   :  { %16732 = vmatmul.mubr.msk.f32.vlgmr.msra.gmra.mxu0 %vm346_vm3, %v8687_v25 }
0x3fd6   :  { %16740 = vmatpush3.msk.msra.mxu0 %vm861_vm4, %v18807_v28 }
0x3fd7   :  { %16749 = vmatprep.subr.mxu0 %v17546_v34 }
0x3ffd   :  { %v8837_v26 = vpop.f32.mrf.mxu1 }
0x3fff   :  { %v16738_v27 = vpop.f32.mrf.mxu1 }
0x408d   :  { %v9001_v29 = vpop.f32.mrf.mxu1 }
0x408e   :  { %v9083_v30 = vmul.f32 0.5, %v9001_v29 }
0x408f   :  { %v16748_v31 = vpop.f32.mrf.mxu1 }
0x4090   :  { %v9085_v32 = vsel %vm346_vm3, %v9083_v30, -inf }
0x4091   :  { %9086 = vmax.xlane.f32.xlu0 %v9085_v32 }
0x4095   :  { %v8761_v33 = vpop.f32.mrf.mxu0 }
0x4096   :  { %16741 = vmatprep.mubr.msk.f32.mxu0 %vm192_vm2, %v8761_v33 }
0x4097   :  { %v16733_v35 = vpop.f32.mrf.mxu0  ;;  %16742 = vmatmul.mubr.msk.f32.vlgmr.msra.gmra.mxu0 %vm192_vm2, %v8837_v26 }
0x4098   :  { %16750 = vmatpush3.xpose.msk.msra.mxu0 %vm192_vm2, %v9008_v37  ;;  %16751 = vmatprep.mubr.msk.f32.mxu0 %vm17547_vm1, %v17546_v34 }
0x4099   :  { %16759 = vmatprep.subr.mxu0 %v17546_v34 }
0x409b   :  { %16752 = vmatmul.mubr.msk.f32.vlgmr.msra.gmra.mxu0 %vm192_vm2, %v9006_v39 }
0x409c   :  { %16761 = vmatprep.mubr.msk.f32.mxu0 %vm17547_vm1, %v17546_v34 }
0x411a   :  { %v9087_v42 = vpop.xlane.xlu0 %9086 }
0x411b   :  { %v9091_v43 = vsub.f32 %v9083_v30, %v9087_v42 }
0x411d   :  { %v9093_v45 = vmul.f32 1.442695, %v9091_v43 }
0x411f   :  { %17390 = vpow2.f32 %v9093_v45 }
0x412c   :  { %v17391_v48 = vpop.eup %17390 }
0x412d   :  { %v9097_v49 = vsel %vm346_vm3, %v17391_v48, 0.0 }
0x412e   :  { %9098 = vadd.xlane.f32.xlu0 %v9097_v49 }
0x4157   :  { %v16743_v50 = vpop.f32.mrf.mxu0 }
0x4158   :  { %v18829_v53 = vadd.f32 %v16743_v50, %v8506_v36 }
0x4159   :  { %v8916_v40 = vpop.f32.mrf.mxu0 }
0x415a   :  { %v18831_v52 = vadd.f32 %v8916_v40, %v8501_v51 }
0x415b   :  { %v9079_v62 = vpop.f32.mrf.mxu0 }
0x415c   :  { %v9084_v41 = vmul.f32 0.5, %v9079_v62 }
0x415d   :  { %v16753_v38 = vpop.f32.mrf.mxu0 }
0x415e   :  { %v9088_v57 = vsel %vm346_vm3, %v9084_v41, -inf }
0x415f   :  { %9089 = vmax.xlane.f32.xlu1 %v9088_v57 }
0x4170   :  { %9183 = vrot.lane.b32.xlu1 %v18671_v44, %s19707_s25 }
0x4174   :  { %9347 = vrot.lane.b32.xlu1 %v18673_v46, %s19708_s16 }
0x4178   :  { %9425 = vrot.lane.b32.xlu1 %v18671_v44, %s19708_s16 }
0x417c   :  { %9423 = vrot.lane.b32.xlu1 %v18671_v44, %s19709_s17 }
0x41b7   :  { %v9099_v61 = vpop.xlane.xlu0 %9098 }
0x41e8   :  { %v9090_v17 = vpop.xlane.xlu1 %9089 }
0x41e9   :  { %v9092_v60 = vsub.f32 %v9084_v41, %v9090_v17 }
0x41eb   :  { %v9095_v54 = vmul.f32 1.442695, %v9092_v60 }
0x41ec   :  { %v9184_v3 = vpop.permute.xlu1 %9183 }
0x41ed   :  { %17392 = vpow2.f32 %v9095_v54  ;;  %16760 = vmatpush3.msra.mxu0 %v9184_v3 }
0x41ee   :  { %16769 = vmatprep.subr.mxu0 %v17546_v34  ;;  %17394 = vrcp.f32 %v9099_v61 }
0x41f0   :  { %v9348_v9 = vpop.permute.xlu1 %9347 }
0x41f4   :  { %v9426_v11 = vpop.permute.xlu1 %9425 }
0x41f8   :  { %v9424_v58 = vpop.permute.xlu1 %9423 }
0x41fa   :  { %v17393_v23 = vpop.eup %17392 }
0x41fb   :  { %v9100_v59 = vsel %vm346_vm3, %v17393_v23, 0.0  ;;  %v17395_v1 = vpop.eup %17394 }
0x41fc   :  { %9101 = vadd.xlane.f32.xlu0 %v9100_v59  ;;  %v9105_v6 = vmul.f32 %v17395_v1, %v17391_v48 }
0x4212   :  { %9107 = vrot.lane.b32.xlu0 %v18673_v46, %s19707_s25 }
0x4216   :  { %9345 = vrot.lane.b32.xlu0 %v18673_v46, %s19709_s17 }
0x4285   :  { %v9102_v63 = vpop.xlane.xlu0 %9101 }
0x4286   :  { %17396 = vrcp.f32 %v9102_v63 }
0x4289   :  { %v9108_v0 = vpop.permute.xlu0 %9107 }
0x428a   :  { %16755 = vmatpush3.msra.mxu1 %v9108_v0 }
0x428b   :  { %16757 = vmatmul.mubr.msk.f32.vlgmr.msra.gmra.mxu1 %vm346_vm3, %v9105_v6  ;;  %16764 = vmatprep.subr.msk.mxu1 %vm861_vm4, %v9259_v4 }
0x428c   :  { %16765 = vmatpush3.msk.msra.mxu1 %vm861_vm4, %v9259_v4 }
0x428d   :  { %16774 = vmatprep.subr.mxu1 %v17546_v34  ;;  %v9346_v55 = vpop.permute.xlu0 %9345 }
0x4293   :  { %v17397_v2 = vpop.eup %17396 }
0x4294   :  { %v9106_v8 = vmul.f32 %v17397_v2, %v17393_v23 }
0x4296   :  { %16762 = vmatmul.mubr.msk.f32.vlgmr.msra.gmra.mxu0 %vm346_vm3, %v9106_v8 }
0x4297   :  { %16770 = vmatpush3.xpose.msk.msra.mxu0 %vm192_vm2, %v9348_v9  ;;  %16771 = vmatprep.mubr.msk.f32.mxu0 %vm17547_vm1, %v17546_v34 }
0x4298   :  { %16779 = vmatprep.subr.mxu0 %v17546_v34 }
0x429a   :  { %16772 = vmatmul.mubr.msk.f32.vlgmr.msra.gmra.mxu0 %vm192_vm2, %v9346_v55 }
0x429b   :  { %16781 = vmatprep.mubr.msk.f32.mxu0 %vm17547_vm1, %v17546_v34 }
0x434b   :  { %v9179_v10 = vpop.f32.mrf.mxu1 }
0x434c   :  { %16766 = vmatprep.mubr.msk.f32.mxu1 %vm192_vm2, %v9179_v10 }
0x434d   :  { %v16758_v56 = vpop.f32.mrf.mxu1 }
0x4356   :  { %v9255_v47 = vpop.f32.mrf.mxu0 }
0x4357   :  { %16767 = vmatmul.mubr.msk.f32.vlgmr.msra.gmra.mxu1 %vm192_vm2, %v9255_v47 }
0x4358   :  { %16775 = vmatpush3.xpose.msk.msra.mxu1 %vm192_vm2, %v9426_v11  ;;  %v16763_v12 = vpop.f32.mrf.mxu0  ;;  %16776 = vmatprep.mubr.msk.f32.mxu1 %vm17547_vm1, %v17546_v34 }
0x4359   :  { %16784 = vmatprep.subr.mxu1 %v17546_v34 }
0x435a   :  { %v9419_v13 = vpop.f32.mrf.mxu0 }
0x435b   :  { %v9501_v14 = vmul.f32 0.5, %v9419_v13  ;;  %16777 = vmatmul.mubr.msk.f32.vlgmr.msra.gmra.mxu1 %vm192_vm2, %v9424_v58 }
0x435c   :  { %v16773_v15 = vpop.f32.mrf.mxu0  ;;  %16786 = vmatprep.mubr.msk.f32.mxu1 %vm17547_vm1, %v17546_v34 }
0x435d   :  { %v9503_v16 = vsel %vm346_vm3, %v9501_v14, -inf }
0x435e   :  { %9504 = vmax.xlane.f32.xlu0 %v9503_v16 }
0x43e7   :  { %v9505_v18 = vpop.xlane.xlu0 %9504 }
0x43e8   :  { %v9509_v19 = vsub.f32 %v9501_v14, %v9505_v18 }
0x43ea   :  { %v9511_v20 = vmul.f32 1.442695, %v9509_v19 }
0x43ec   :  { %17398 = vpow2.f32 %v9511_v20 }
0x43f9   :  { %v17399_v21 = vpop.eup %17398 }
0x43fa   :  { %v9515_v22 = vsel %vm346_vm3, %v17399_v21, 0.0 }
0x43fb   :  { %9516 = vadd.xlane.f32.xlu0 %v9515_v22 }
0x4417   :  { %v16768_v24 = vpop.f32.mrf.mxu1 }
0x4418   :  { %v18873_v25 = vadd.f32 %v16768_v24, %v18829_v53 }
0x4419   :  { %v9334_v26 = vpop.f32.mrf.mxu1 }
0x441a   :  { %v18876_v27 = vadd.f32 %v9334_v26, %v18831_v52  ;;  %v18905_v52 = vld [vmem:[%s19636_s5 + $0x50] sm:$0xff] }
0x441b   :  { %v9497_v28 = vpop.f32.mrf.mxu1  ;;  %v10095_v20 = vrot.slane %v18905_v52, 4 }
0x441c   :  { %v9502_v29 = vmul.f32 0.5, %v9497_v28 }
0x441d   :  { %v16778_v30 = vpop.f32.mrf.mxu1 }
0x441e   :  { %v9506_v31 = vsel %vm346_vm3, %v9502_v29, -inf }
0x441f   :  { %9507 = vmax.xlane.f32.xlu1 %v9506_v31 }
0x4430   :  { %9601 = vrot.lane.b32.xlu1 %v18671_v44, %s19710_s21 }
0x4434   :  { %9765 = vrot.lane.b32.xlu1 %v18673_v46, %s19711_s23 }
0x4438   :  { %9843 = vrot.lane.b32.xlu1 %v18671_v44, %s19711_s23 }
0x443c   :  { %9841 = vrot.lane.b32.xlu1 %v18671_v44, %s19712_s22 }
0x4484   :  { %v9517_v43 = vpop.xlane.xlu0 %9516 }
0x44a8   :  { %v9508_v32 = vpop.xlane.xlu1 %9507 }
0x44a9   :  { %v9510_v37 = vsub.f32 %v9502_v29, %v9508_v32 }
0x44ab   :  { %v9513_v33 = vmul.f32 1.442695, %v9510_v37 }
0x44ac   :  { %v9602_v35 = vpop.permute.xlu1 %9601 }
0x44ad   :  { %17400 = vpow2.f32 %v9513_v33  ;;  %16785 = vmatpush3.msra.mxu1 %v9602_v35 }
0x44ae   :  { %16794 = vmatprep.subr.mxu1 %v17546_v34  ;;  %17402 = vrcp.f32 %v9517_v43 }
0x44b0   :  { %v9766_v53 = vpop.permute.xlu1 %9765 }
0x44b4   :  { %v9844_v38 = vpop.permute.xlu1 %9843 }
0x44b8   :  { %v9842_v60 = vpop.permute.xlu1 %9841 }
0x44ba   :  { %v17401_v39 = vpop.eup %17400 }
0x44bb   :  { %v9518_v42 = vsel %vm346_vm3, %v17401_v39, 0.0  ;;  %v17403_v48 = vpop.eup %17402 }
0x44bc   :  { %9519 = vadd.xlane.f32.xlu0 %v9518_v42  ;;  %v9523_v49 = vmul.f32 %v17403_v48, %v17399_v21 }
0x44d2   :  { %9525 = vrot.lane.b32.xlu0 %v18673_v46, %s19710_s21 }
0x44d6   :  { %9763 = vrot.lane.b32.xlu0 %v18673_v46, %s19712_s22 }
0x4545   :  { %v9520_v45 = vpop.xlane.xlu0 %9519 }
0x4546   :  { %17404 = vrcp.f32 %v9520_v45 }
0x4549   :  { %v9526_v36 = vpop.permute.xlu0 %9525 }
0x454a   :  { %16780 = vmatpush3.msra.mxu0 %v9526_v36 }
0x454b   :  { %16782 = vmatmul.mubr.msk.f32.vlgmr.msra.gmra.mxu0 %vm346_vm3, %v9523_v49  ;;  %16789 = vmatprep.subr.msk.mxu0 %vm861_vm4, %v18905_v52 }
0x454c   :  { %16790 = vmatpush3.msk.msra.mxu0 %vm861_vm4, %v18905_v52 }
0x454d   :  { %v9764_v40 = vpop.permute.xlu0 %9763  ;;  %16799 = vmatprep.subr.mxu0 %v17546_v34 }
0x4553   :  { %v17405_v50 = vpop.eup %17404 }
0x4554   :  { %v9524_v51 = vmul.f32 %v17405_v50, %v17401_v39 }
0x4556   :  { %16787 = vmatmul.mubr.msk.f32.vlgmr.msra.gmra.mxu1 %vm346_vm3, %v9524_v51 }
0x4557   :  { %16795 = vmatpush3.xpose.msk.msra.mxu1 %vm192_vm2, %v9766_v53  ;;  %16796 = vmatprep.mubr.msk.f32.mxu1 %vm17547_vm1, %v17546_v34 }
0x4558   :  { %16804 = vmatprep.subr.mxu1 %v17546_v34 }
0x455a   :  { %16797 = vmatmul.mubr.msk.f32.vlgmr.msra.gmra.mxu1 %vm192_vm2, %v9764_v40 }
0x455b   :  { %16806 = vmatprep.mubr.msk.f32.mxu1 %vm17547_vm1, %v17546_v34 }
0x460b   :  { %v9597_v62 = vpop.f32.mrf.mxu0 }
0x460c   :  { %16791 = vmatprep.mubr.msk.f32.mxu0 %vm192_vm2, %v9597_v62 }
0x460d   :  { %v16783_v41 = vpop.f32.mrf.mxu0 }
0x4616   :  { %v9673_v57 = vpop.f32.mrf.mxu1 }
0x4617   :  { %16792 = vmatmul.mubr.msk.f32.vlgmr.msra.gmra.mxu0 %vm192_vm2, %v9673_v57 }
0x4618   :  { %16800 = vmatpush3.xpose.msk.msra.mxu0 %vm192_vm2, %v9844_v38  ;;  %v16788_v17 = vpop.f32.mrf.mxu1  ;;  %16801 = vmatprep.mubr.msk.f32.mxu0 %vm17547_vm1, %v17546_v34 }
0x4619   :  { %16809 = vmatprep.subr.mxu0 %v17546_v34 }
0x461a   :  { %v9837_v54 = vpop.f32.mrf.mxu1 }
0x461b   :  { %v9919_v3 = vmul.f32 0.5, %v9837_v54  ;;  %16802 = vmatmul.mubr.msk.f32.vlgmr.msra.gmra.mxu0 %vm192_vm2, %v9842_v60 }
0x461c   :  { %v16798_v23 = vpop.f32.mrf.mxu1  ;;  %16811 = vmatprep.mubr.msk.f32.mxu0 %vm17547_vm1, %v17546_v34 }
0x461d   :  { %v9921_v59 = vsel %vm346_vm3, %v9919_v3, -inf }
0x461e   :  { %9922 = vmax.xlane.f32.xlu0 %v9921_v59 }
0x46a7   :  { %v9923_v61 = vpop.xlane.xlu0 %9922 }
0x46a8   :  { %v9927_v63 = vsub.f32 %v9919_v3, %v9923_v61 }
0x46aa   :  { %v9929_v1 = vmul.f32 1.442695, %v9927_v63 }
0x46ac   :  { %17406 = vpow2.f32 %v9929_v1 }
0x46b9   :  { %v17407_v4 = vpop.eup %17406 }
0x46ba   :  { %v9933_v0 = vsel %vm346_vm3, %v17407_v4, 0.0 }
0x46bb   :  { %9934 = vadd.xlane.f32.xlu0 %v9933_v0 }
0x46d7   :  { %v16793_v6 = vpop.f32.mrf.mxu0 }
0x46d8   :  { %v18924_v2 = vadd.f32 %v16793_v6, %v18873_v25 }
0x46d9   :  { %v9752_v8 = vpop.f32.mrf.mxu0 }
0x46da   :  { %v18927_v9 = vadd.f32 %v9752_v8, %v18876_v27 }
0x46db   :  { %v9915_v55 = vpop.f32.mrf.mxu0 }
0x46dc   :  { %v9920_v10 = vmul.f32 0.5, %v9915_v55 }
0x46dd   :  { %v16803_v56 = vpop.f32.mrf.mxu0 }
0x46de   :  { %v9924_v11 = vsel %vm346_vm3, %v9920_v10, -inf }
0x46df   :  { %9925 = vmax.xlane.f32.xlu1 %v9924_v11 }
0x46f0   :  { %10019 = vrot.lane.b32.xlu1 %v18671_v44, %s19713_s0 }
0x46f4   :  { %10183 = vrot.lane.b32.xlu1 %v18673_v46, %s19714_s24 }
0x46f8   :  { %10261 = vrot.lane.b32.xlu1 %v18671_v44, %s19714_s24 }
0x46fc   :  { %10259 = vrot.lane.b32.xlu1 %v18671_v44, %s19715_s20 }
0x4744   :  { %v9935_v16 = vpop.xlane.xlu0 %9934 }
0x4768   :  { %v9926_v47 = vpop.xlane.xlu1 %9925 }
0x4769   :  { %v9928_v12 = vsub.f32 %v9920_v10, %v9926_v47 }
0x476b   :  { %v9931_v58 = vmul.f32 1.442695, %v9928_v12 }
0x476c   :  { %v10020_v13 = vpop.permute.xlu1 %10019 }
0x476d   :  { %17408 = vpow2.f32 %v9931_v58  ;;  %16810 = vmatpush3.msra.mxu0 %v10020_v13 }
0x476e   :  { %16819 = vmatprep.subr.mxu0 %v17546_v34  ;;  %17410 = vrcp.f32 %v9935_v16 }
0x4770   :  { %v10184_v26 = vpop.permute.xlu1 %10183 }
0x4774   :  { %v10262_v30 = vpop.permute.xlu1 %10261 }
0x4778   :  { %v10260_v37 = vpop.permute.xlu1 %10259 }
0x477a   :  { %v17409_v14 = vpop.eup %17408 }
0x477b   :  { %v9936_v15 = vsel %vm346_vm3, %v17409_v14, 0.0  ;;  %v17411_v19 = vpop.eup %17410 }
0x477c   :  { %9937 = vadd.xlane.f32.xlu0 %v9936_v15  ;;  %v9941_v22 = vmul.f32 %v17411_v19, %v17407_v4 }
0x4792   :  { %9943 = vrot.lane.b32.xlu0 %v18673_v46, %s19713_s0 }
0x4796   :  { %10181 = vrot.lane.b32.xlu0 %v18673_v46, %s19715_s20  ;;  %s19741_s20 = smov 100  }
0x4805   :  { %v9938_v18 = vpop.xlane.xlu0 %9937 }
0x4806   :  { %17412 = vrcp.f32 %v9938_v18 }
0x4809   :  { %v9944_v21 = vpop.permute.xlu0 %9943 }
0x480a   :  { %16805 = vmatpush3.msra.mxu1 %v9944_v21 }
0x480b   :  { %16807 = vmatmul.mubr.msk.f32.vlgmr.msra.gmra.mxu1 %vm346_vm3, %v9941_v22  ;;  %16814 = vmatprep.subr.msk.mxu1 %vm861_vm4, %v10095_v20 }
0x480c   :  { %16815 = vmatpush3.msk.msra.mxu1 %vm861_vm4, %v10095_v20 }
0x480d   :  { %16824 = vmatprep.subr.mxu1 %v17546_v34  ;;  %v10182_v27 = vpop.permute.xlu0 %10181 }
0x4813   :  { %v17413_v24 = vpop.eup %17412 }
0x4814   :  { %v9942_v25 = vmul.f32 %v17413_v24, %v17409_v14 }
0x4816   :  { %16812 = vmatmul.mubr.msk.f32.vlgmr.msra.gmra.mxu0 %vm346_vm3, %v9942_v25 }
0x4817   :  { %16820 = vmatpush3.xpose.msk.msra.mxu0 %vm192_vm2, %v10184_v26  ;;  %16821 = vmatprep.mubr.msk.f32.mxu0 %vm17547_vm1, %v17546_v34 }
0x4818   :  { %16829 = vmatprep.subr.mxu0 %v17546_v34 }
0x481a   :  { %16822 = vmatmul.mubr.msk.f32.vlgmr.msra.gmra.mxu0 %vm192_vm2, %v10182_v27 }
0x481b   :  { %16831 = vmatprep.mubr.msk.f32.mxu0 %vm17547_vm1, %v17546_v34 }
0x48cb   :  { %v10015_v28 = vpop.f32.mrf.mxu1 }
0x48cc   :  { %16816 = vmatprep.mubr.msk.f32.mxu1 %vm192_vm2, %v10015_v28 }
0x48cd   :  { %v16808_v29 = vpop.f32.mrf.mxu1 }
0x48d6   :  { %v10091_v31 = vpop.f32.mrf.mxu0 }
0x48d7   :  { %16817 = vmatmul.mubr.msk.f32.vlgmr.msra.gmra.mxu1 %vm192_vm2, %v10091_v31 }
0x48d8   :  { %16825 = vmatpush3.xpose.msk.msra.mxu1 %vm192_vm2, %v10262_v30  ;;  %v16813_v32 = vpop.f32.mrf.mxu0  ;;  %16826 = vmatprep.mubr.msk.f32.mxu1 %vm17547_vm1, %v17546_v34 }
0x48d9   :  { %16834 = vmatprep.subr.mxu1 %v17546_v34 }
0x48da   :  { %v10255_v33 = vpop.f32.mrf.mxu0 }
0x48db   :  { %v10337_v35 = vmul.f32 0.5, %v10255_v33  ;;  %16827 = vmatmul.mubr.msk.f32.vlgmr.msra.gmra.mxu1 %vm192_vm2, %v10260_v37 }
0x48dc   :  { %v16823_v39 = vpop.f32.mrf.mxu0  ;;  %16836 = vmatprep.mubr.msk.f32.mxu1 %vm17547_vm1, %v17546_v34 }
0x48dd   :  { %v10339_v42 = vsel %vm346_vm3, %v10337_v35, -inf }
0x48de   :  { %10340 = vmax.xlane.f32.xlu0 %v10339_v42 }
0x4967   :  { %v10341_v43 = vpop.xlane.xlu0 %10340 }
0x4968   :  { %v10345_v45 = vsub.f32 %v10337_v35, %v10341_v43 }
0x496a   :  { %v10347_v48 = vmul.f32 1.442695, %v10345_v45 }
0x496c   :  { %17414 = vpow2.f32 %v10347_v48 }
0x4979   :  { %v17415_v49 = vpop.eup %17414 }
0x497a   :  { %v10351_v36 = vsel %vm346_vm3, %v17415_v49, 0.0 }
0x497b   :  { %10352 = vadd.xlane.f32.xlu0 %v10351_v36 }
0x4997   :  { %v16818_v50 = vpop.f32.mrf.mxu1 }
0x4998   :  { %v18969_v51 = vadd.f32 %v16818_v50, %v18924_v2 }
0x4999   :  { %v10170_v53 = vpop.f32.mrf.mxu1 }
0x499a   :  { %v18972_v40 = vadd.f32 %v10170_v53, %v18927_v9  ;;  %v15439_v9 = vld [vmem:[%s19636_s5 + $0x58] sm:$0xff] }
0x499b   :  { %v10333_v52 = vpop.f32.mrf.mxu1  ;;  %v10931_v48 = vrot.slane %v15439_v9, 4 }
0x499c   :  { %v10338_v62 = vmul.f32 0.5, %v10333_v52 }
0x499d   :  { %v16828_v41 = vpop.f32.mrf.mxu1 }
0x499e   :  { %v10342_v38 = vsel %vm346_vm3, %v10338_v62, -inf }
0x499f   :  { %10343 = vmax.xlane.f32.xlu1 %v10342_v38 }
0x49b0   :  { %10437 = vrot.lane.b32.xlu1 %v18671_v44, %s19716_s19 }
0x49b4   :  { %10601 = vrot.lane.b32.xlu1 %v18673_v46, %s19717_s18 }
0x49b8   :  { %10679 = vrot.lane.b32.xlu1 %v18671_v44, %s19717_s18 }
0x49bc   :  { %10677 = vrot.lane.b32.xlu1 %v18671_v44, %s19718_s15 }
0x4a04   :  { %v10353_v59 = vpop.xlane.xlu0 %10352 }
0x4a28   :  { %v10344_v57 = vpop.xlane.xlu1 %10343 }
0x4a29   :  { %v10346_v17 = vsub.f32 %v10338_v62, %v10344_v57 }
0x4a2b   :  { %v10349_v60 = vmul.f32 1.442695, %v10346_v17 }
0x4a2c   :  { %v10438_v54 = vpop.permute.xlu1 %10437 }
0x4a2d   :  { %17416 = vpow2.f32 %v10349_v60  ;;  %16835 = vmatpush3.msra.mxu1 %v10438_v54 }
0x4a2e   :  { %16844 = vmatprep.subr.mxu1 %v17546_v34  ;;  %17418 = vrcp.f32 %v10353_v59 }
0x4a30   :  { %v10602_v2 = vpop.permute.xlu1 %10601 }
0x4a34   :  { %v10680_v56 = vpop.permute.xlu1 %10679 }
0x4a38   :  { %v10678_v12 = vpop.permute.xlu1 %10677 }
0x4a3a   :  { %v17417_v3 = vpop.eup %17416 }
0x4a3b   :  { %v10354_v23 = vsel %vm346_vm3, %v17417_v3, 0.0  ;;  %v17419_v63 = vpop.eup %17418 }
0x4a3c   :  { %10355 = vadd.xlane.f32.xlu0 %v10354_v23  ;;  %v10359_v1 = vmul.f32 %v17419_v63, %v17415_v49 }
0x4a52   :  { %10361 = vrot.lane.b32.xlu0 %v18673_v46, %s19716_s19 }
0x4a56   :  { %10599 = vrot.lane.b32.xlu0 %v18673_v46, %s19718_s15  ;;  %s19731_s15 = sld [smem:[#allocation5_spill]] }
0x4a5c   :  { %v15513_v41 = vld [vmem:[%s19731_s15 + $0x2] ss:$0 sm:$0xff] }
0x4ac5   :  { %v10356_v61 = vpop.xlane.xlu0 %10355 }
0x4ac6   :  { %17420 = vrcp.f32 %v10356_v61 }
0x4ac9   :  { %v10362_v4 = vpop.permute.xlu0 %10361 }
0x4aca   :  { %16830 = vmatpush3.msra.mxu0 %v10362_v4 }
0x4acb   :  { %16832 = vmatmul.mubr.msk.f32.vlgmr.msra.gmra.mxu0 %vm346_vm3, %v10359_v1  ;;  %16839 = vmatprep.subr.msk.mxu0 %vm861_vm4, %v15439_v9 }
0x4acc   :  { %16840 = vmatpush3.msk.msra.mxu0 %vm861_vm4, %v15439_v9  ;;  %v15521_v9 = vld [vmem:[%s19640_s9 + $0x58] sm:$0xff] }
0x4acd   :  { %v10600_v8 = vpop.permute.xlu0 %10599  ;;  %16849 = vmatprep.subr.mxu0 %v17546_v34 }
0x4ad3   :  { %v17421_v0 = vpop.eup %17420 }
0x4ad4   :  { %v10360_v6 = vmul.f32 %v17421_v0, %v17417_v3 }
0x4ad6   :  { %16837 = vmatmul.mubr.msk.f32.vlgmr.msra.gmra.mxu1 %vm346_vm3, %v10360_v6 }
0x4ad7   :  { %16845 = vmatpush3.xpose.msk.msra.mxu1 %vm192_vm2, %v10602_v2  ;;  %16846 = vmatprep.mubr.msk.f32.mxu1 %vm17547_vm1, %v17546_v34 }
0x4ad8   :  { %16854 = vmatprep.subr.mxu1 %v17546_v34 }
0x4ada   :  { %16847 = vmatmul.mubr.msk.f32.vlgmr.msra.gmra.mxu1 %vm192_vm2, %v10600_v8 }
0x4adb   :  { %16856 = vmatprep.mubr.msk.f32.mxu1 %vm17547_vm1, %v17546_v34 }
0x4b8b   :  { %v10433_v55 = vpop.f32.mrf.mxu0 }
0x4b8c   :  { %16841 = vmatprep.mubr.msk.f32.mxu0 %vm192_vm2, %v10433_v55  ;;  %v15520_v55 = vld [vmem:[%s19640_s9 + $0x50] sm:$0xff] }
0x4b8d   :  { %v16833_v10 = vpop.f32.mrf.mxu0 }
0x4b8e   :  { %v15519_v10 = vld [vmem:[%s19640_s9 + $0x48] sm:$0xff] }
0x4b96   :  { %v10509_v11 = vpop.f32.mrf.mxu1 }
0x4b97   :  { %16842 = vmatmul.mubr.msk.f32.vlgmr.msra.gmra.mxu0 %vm192_vm2, %v10509_v11  ;;  %v15541_v11 = vld [vmem:[%s19642_s11 + $0x178] sm:$0xff] }
0x4b98   :  { %16850 = vmatpush3.xpose.msk.msra.mxu0 %vm192_vm2, %v10680_v56  ;;  %v16838_v47 = vpop.f32.mrf.mxu1  ;;  %16851 = vmatprep.mubr.msk.f32.mxu0 %vm17547_vm1, %v17546_v34  ;;  %v15518_v56 = vld [vmem:[%s19640_s9 + $0x40] sm:$0xff] }
0x4b99   :  { %16859 = vmatprep.subr.mxu0 %v17546_v34  ;;  %v15540_v47 = vld [vmem:[%s19642_s11 + $0x170] sm:$0xff] }
0x4b9a   :  { %v10673_v58 = vpop.f32.mrf.mxu1 }
0x4b9b   :  { %v10755_v13 = vmul.f32 0.5, %v10673_v58  ;;  %16852 = vmatmul.mubr.msk.f32.vlgmr.msra.gmra.mxu0 %vm192_vm2, %v10678_v12  ;;  %v15539_v12 = vld [vmem:[%s19642_s11 + $0x168] sm:$0xff] }
0x4b9c   :  { %v16848_v14 = vpop.f32.mrf.mxu1  ;;  %16861 = vmatprep.mubr.msk.f32.mxu0 %vm17547_vm1, %v17546_v34 }
0x4b9d   :  { %v10757_v15 = vsel %vm346_vm3, %v10755_v13, -inf }
0x4b9e   :  { %10758 = vmax.xlane.f32.xlu0 %v10757_v15 }
0x4c27   :  { %v10759_v16 = vpop.xlane.xlu0 %10758 }
0x4c28   :  { %v10763_v18 = vsub.f32 %v10755_v13, %v10759_v16 }
0x4c2a   :  { %v10765_v19 = vmul.f32 1.442695, %v10763_v18 }
0x4c2c   :  { %17422 = vpow2.f32 %v10765_v19 }
0x4c39   :  { %v17423_v20 = vpop.eup %17422 }
0x4c3a   :  { %v10769_v21 = vsel %vm346_vm3, %v17423_v20, 0.0 }
0x4c3b   :  { %10770 = vadd.xlane.f32.xlu0 %v10769_v21 }
0x4c57   :  { %v16843_v22 = vpop.f32.mrf.mxu0 }
0x4c58   :  { %v10598_v24 = vadd.f32 %v16843_v22, %v18969_v51 }
0x4c59   :  { %v10588_v25 = vpop.f32.mrf.mxu0 }
0x4c5a   :  { %v10597_v26 = vadd.f32 %v10588_v25, %v18972_v40 }
0x4c5b   :  { %v10751_v27 = vpop.f32.mrf.mxu0 }
0x4c5c   :  { %v10756_v28 = vmul.f32 0.5, %v10751_v27 }
0x4c5d   :  { %v16853_v29 = vpop.f32.mrf.mxu0 }
0x4c5e   :  { %v10760_v30 = vsel %vm346_vm3, %v10756_v28, -inf }
0x4c5f   :  { %10761 = vmax.xlane.f32.xlu1 %v10760_v30  ;;  %v15538_v30 = vld [vmem:[%s19642_s11 + $0x160] sm:$0xff] }
0x4c70   :  { %10855 = vrot.lane.b32.xlu1 %v18671_v44, %s19730_s28 }
0x4cc4   :  { %v10771_v42 = vpop.xlane.xlu0 %10770 }
0x4ce8   :  { %v10762_v31 = vpop.xlane.xlu1 %10761 }
0x4ce9   :  { %v10764_v32 = vsub.f32 %v10756_v28, %v10762_v31  ;;  %v15537_v31 = vld [vmem:[%s19642_s11 + $0x158] sm:$0xff] }
0x4ceb   :  { %v10767_v37 = vmul.f32 1.442695, %v10764_v32  ;;  %v15536_v32 = vld [vmem:[%s19642_s11 + $0x150] sm:$0xff] }
0x4cec   :  { %v10856_v33 = vpop.permute.xlu1 %10855 }
0x4ced   :  { %17424 = vpow2.f32 %v10767_v37  ;;  %16860 = vmatpush3.msra.mxu0 %v10856_v33  ;;  %v15535_v37 = vld [vmem:[%s19642_s11 + $0x148] sm:$0xff]  ;;  %v15534_v33 = vld [vmem:[%s19642_s11 + $0x140] sm:$0xff] }
0x4cee   :  { %17426 = vrcp.f32 %v10771_v42  ;;  %16869 = vmatprep.subr.mxu0 %v15521_v9  ;;  %v15531_v42 = vld [vmem:[%s19642_s11 + $0x128] sm:$0xff] }
0x4cfa   :  { %v17425_v35 = vpop.eup %17424 }
0x4cfb   :  { %v10772_v39 = vsel %vm346_vm3, %v17425_v35, 0.0  ;;  %v17427_v45 = vpop.eup %17426 }
0x4cfc   :  { %10773 = vadd.xlane.f32.xlu0 %v10772_v39  ;;  %v10777_v49 = vmul.f32 %v17427_v45, %v17423_v20  ;;  %v15516_v20 = vld [vmem:[%s19638_s7 + $0x2] ss:$0 sm:$0xff]  ;;  %v15532_v39 = vld [vmem:[%s19642_s11 + $0x130] sm:$0xff]  ;;  %v15529_v45 = vld [vmem:[%s19642_s11 + $0x118] sm:$0xff] }
0x4d12   :  { %10779 = vrot.lane.b32.xlu0 %v18673_v46, %s19730_s28 }
0x4d85   :  { %v10774_v43 = vpop.xlane.xlu0 %10773 }
0x4d86   :  { %17428 = vrcp.f32 %v10774_v43  ;;  %v15530_v43 = vld [vmem:[%s19642_s11 + $0x120] sm:$0xff] }
0x4d89   :  { %v10780_v44 = vpop.permute.xlu0 %10779 }
0x4d8a   :  { %16855 = vmatpush3.msra.mxu1 %v10780_v44  ;;  %v15527_v44 = vld [vmem:[%s19642_s11 + $0x108] sm:$0xff] }
0x4d8b   :  { %16857 = vmatmul.mubr.msk.f32.vlgmr.msra.gmra.mxu1 %vm346_vm3, %v10777_v49  ;;  %16864 = vmatprep.subr.msk.mxu1 %vm861_vm4, %v10931_v48  ;;  %v15526_v49 = vld [vmem:[%s19642_s11 + $0x100] sm:$0xff] }
0x4d8c   :  { %16865 = vmatpush3.msk.msra.mxu1 %vm861_vm4, %v10931_v48  ;;  %v15528_v48 = vld [vmem:[%s19642_s11 + $0x110] sm:$0xff] }
0x4d8d   :  { %16880 = vmatprep.subr.mxu1 %v15541_v11 }
0x4d93   :  { %v17429_v36 = vpop.eup %17428 }
0x4d94   :  { %v10778_v50 = vmul.f32 %v17429_v36, %v17425_v35  ;;  %v15533_v35 = vld [vmem:[%s19642_s11 + $0x138] sm:$0xff]  ;;  %v15523_v36 = vld [vmem:[%s19641_s10 + $0x2] ss:$0 sm:$0xff] }
0x4d96   :  { %16862 = vmatmul.mubr.msk.f32.vlgmr.msra.gmra.mxu0 %vm346_vm3, %v10778_v50 }
0x4d97   :  { %16870 = vmatpush3.msra.mxu0 %v15521_v9 }
0x4d98   :  { %16871 = vmatprep.subr.mxu0 %v15520_v55 }
0x4d99   :  { %16872 = vmatpush3.msra.mxu0 %v15520_v55 }
0x4d9a   :  { %16873 = vmatprep.subr.mxu0 %v15519_v10 }
0x4d9b   :  { %16874 = vmatpush3.msra.mxu0 %v15519_v10 }
0x4d9c   :  { %16875 = vmatprep.subr.mxu0 %v15518_v56 }
0x4d9d   :  { %16876 = vmatpush3.msra.mxu0 %v15518_v56 }
0x4e4b   :  { %v10851_v46 = vpop.f32.mrf.mxu1 }
0x4e4c   :  { %16866 = vmatprep.mubr.msk.f32.mxu1 %vm192_vm2, %v10851_v46 }
0x4e4d   :  { %v16858_v51 = vpop.f32.mrf.mxu1 }
0x4e56   :  { %v10927_v53 = vpop.f32.mrf.mxu0 }
0x4e57   :  { %16867 = vmatmul.mubr.msk.f32.vlgmr.msra.gmra.mxu1 %vm192_vm2, %v10927_v53 }
0x4e58   :  { %v16863_v40 = vpop.f32.mrf.mxu0  ;;  %16881 = vmatpush3.msra.mxu1 %v15541_v11 }
0x4e59   :  { %16882 = vmatprep.subr.mxu1 %v15540_v47 }
0x4e5a   :  { %16883 = vmatpush3.msra.mxu1 %v15540_v47 }
0x4e5b   :  { %16884 = vmatprep.subr.mxu1 %v15539_v12 }
0x4e5c   :  { %16885 = vmatpush3.msra.mxu1 %v15539_v12 }
0x4e5d   :  { %16886 = vmatprep.subr.mxu1 %v15538_v30 }
0x4e5e   :  { %16887 = vmatpush3.msra.mxu1 %v15538_v30  ;;  %v15547_v30 = vld [vmem:[%s19633_s2 + $0x3] ss:$0 sm:$0xff]  ;;  %s19732_s2 = smov 88  }
0x4e5f   :  { %16888 = vmatprep.subr.mxu1 %v15537_v31 }
0x4e60   :  { %16889 = vmatpush3.msra.mxu1 %v15537_v31 }
0x4e61   :  { %16890 = vmatprep.subr.mxu1 %v15536_v32 }
0x4e62   :  { %16891 = vmatpush3.msra.mxu1 %v15536_v32 }
0x4e63   :  { %16892 = vmatprep.subr.mxu1 %v15535_v37 }
0x4e64   :  { %16893 = vmatpush3.msra.mxu1 %v15535_v37 }
0x4e65   :  { %16894 = vmatprep.subr.mxu1 %v15534_v33 }
0x4e66   :  { %16895 = vmatpush3.msra.mxu1 %v15534_v33  ;;  %v15553_v33 = vld [vmem:[%s19635_s4 + $0x3] ss:$0 sm:$0xff]  ;;  %s19733_s4 = smov 120  }
0x4e67   :  { %16896 = vmatprep.subr.mxu1 %v15533_v35 }
0x4e68   :  { %16897 = vmatpush3.msra.mxu1 %v15533_v35 }
0x4e69   :  { %16898 = vmatprep.subr.mxu1 %v15532_v39 }
0x4e6a   :  { %16899 = vmatpush3.msra.mxu1 %v15532_v39 }
0x4e6b   :  { %16900 = vmatprep.subr.mxu1 %v15531_v42 }
0x4e6c   :  { %16901 = vmatpush3.msra.mxu1 %v15531_v42 }
0x4e6d   :  { %16902 = vmatprep.subr.mxu1 %v15530_v43 }
0x4e6e   :  { %16903 = vmatpush3.msra.mxu1 %v15530_v43 }
0x4e6f   :  { %16904 = vmatprep.subr.mxu1 %v15529_v45 }
0x4e70   :  { %16905 = vmatpush3.msra.mxu1 %v15529_v45 }
0x4e71   :  { %16906 = vmatprep.subr.mxu1 %v15528_v48 }
0x4e72   :  { %16907 = vmatpush3.msra.mxu1 %v15528_v48 }
0x4e73   :  { %16908 = vmatprep.subr.mxu1 %v15527_v44 }
0x4e74   :  { %16909 = vmatpush3.msra.mxu1 %v15527_v44 }
0x4e75   :  { %16910 = vmatprep.subr.mxu1 %v15526_v49 }
0x4e76   :  { %16911 = vmatpush3.msra.mxu1 %v15526_v49 }
0x4e77   :  { %16951 = vmatprep.subr.mxu1 %v17546_v34 }
0x4f17   :  { %v16868_v52 = vpop.f32.mrf.mxu1 }
0x4f18   :  { %v11016_v62 = vadd.f32 %v16868_v52, %v10598_v24 }
0x4f19   :  { %v11006_v38 = vpop.f32.mrf.mxu1 }
0x4f1a   :  { %v11018_v57 = vadd.f32 %v11016_v62, %v18632_v5  ;;  %v11015_v17 = vadd.f32 %v11006_v38, %v10597_v26  ;;  %v15517_v26 = vld [vmem:[%s19639_s8 + $0x2] ss:$0 sm:$0xff] }
0x4f1c   :  { %v19033_v60 = vadd.f32 %v15513_v41, %v11018_v57  ;;  %v11017_v54 = vadd.f32 %v11015_v17, %v18635_v7 }
0x4f1e   :  { %v19036_v3 = vadd.f32 %v15513_v41, %v11017_v54  ;;  %v11036_v23 = vsel %vm49_vm0, %v19033_v60, 0.0 }
0x4f1f   :  { %11037 = vadd.xlane.f32.xlu0 %v11036_v23 }
0x4f20   :  { %v11033_v59 = vsel %vm49_vm0, %v19036_v3, 0.0 }
0x4f21   :  { %11034 = vadd.xlane.f32.xlu1 %v11033_v59 }
0x4fa8   :  { %v11038_v61 = vpop.xlane.xlu0 %11037 }
0x4fa9   :  { %v11040_v63 = vmul.f32 0.03125, %v11038_v61  ;;  %v15543_v61 = vld [vmem:[%s19643_s12 + $0x2] ss:$0 sm:$0xff] }
0x4faa   :  { %v11035_v1 = vpop.xlane.xlu1 %11034 }
0x4fab   :  { %v11042_v5 = vsub.f32 %v19033_v60, %v11040_v63  ;;  %v11039_v4 = vmul.f32 0.03125, %v11035_v1 }
0x4fad   :  { %v11041_v0 = vsub.f32 %v19036_v3, %v11039_v4  ;;  %v11044_v6 = vmul.f32 %v11042_v5, %v11042_v5 }
0x4faf   :  { %v11048_v7 = vsel %vm49_vm0, %v11044_v6, 0.0  ;;  %v11043_v2 = vmul.f32 %v11041_v0, %v11041_v0 }
0x4fb0   :  { %11049 = vadd.xlane.f32.xlu1 %v11048_v7 }
0x4fb1   :  { %v11045_v8 = vsel %vm49_vm0, %v11043_v2, 0.0 }
0x4fb2   :  { %11046 = vadd.xlane.f32.xlu0 %v11045_v8 }
0x5039   :  { %v11050_v58 = vpop.xlane.xlu1 %11049 }
0x503a   :  { %v11052_v13 = vmul.f32 0.03125, %v11050_v58  ;;  %v15551_v58 = vld [vmem:[%s19634_s3 + $0x78] sm:$0xff] }
0x503b   :  { %v11047_v14 = vpop.xlane.xlu0 %11046  ;;  %16915 = vmatprep.subr.mxu0 %v15551_v58 }
0x503c   :  { %v11054_v15 = vadd.f32 1e-05, %v11052_v13  ;;  %v11051_v16 = vmul.f32 0.03125, %v11047_v14  ;;  %v15550_v13 = vld [vmem:[%s19634_s3 + $0x70] sm:$0xff]  ;;  %v15549_v14 = vld [vmem:[%s19634_s3 + $0x68] sm:$0xff] }
0x503e   :  { %17430 = vrsqrt.f32 %v11054_v15  ;;  %v11053_v18 = vadd.f32 1e-05, %v11051_v16  ;;  %v15548_v15 = vld [vmem:[%s19634_s3 + $0x60] sm:$0xff]  ;;  %s19743_s3 = sld [smem:[#allocation5_spill]] }
0x5040   :  { %17432 = vrsqrt.f32 %v11053_v18 }
0x504b   :  { %v17431_v19 = vpop.eup %17430 }
0x504c   :  { %v11058_v21 = vmul.f32 %v17431_v19, %v11042_v5 }
0x504d   :  { %v17433_v22 = vpop.eup %17432 }
0x504e   :  { %v11057_v24 = vmul.f32 %v17433_v22, %v11041_v0  ;;  %v11066_v25 = vmul.f32 %v15516_v20, %v11058_v21 }
0x5050   :  { %v11065_v27 = vmul.f32 %v15516_v20, %v11057_v24  ;;  %v11074_v29 = vadd.f32 %v15517_v26, %v11066_v25  ;;  %v15546_v25 = vld [vmem:[%s19632_s1 + $0x3] ss:$0 sm:$0xff] }
0x5052   :  { %v11073_v28 = vadd.f32 %v15517_v26, %v11065_v27 }
0x5054   :  { %16877 = vmatprep.mubr.msk.f32.mxu0 %vm49_vm0, %v11073_v28 }
0x5055   :  { %16878 = vmatmul.mubr.msk.f32.vlgmr.msra.gmra.mxu0 %vm49_vm0, %v11074_v29 }
0x5056   :  { %16916 = vmatpush3.msra.mxu0 %v15551_v58 }
0x5057   :  { %16917 = vmatprep.subr.mxu0 %v15550_v13 }
0x5058   :  { %16918 = vmatpush3.msra.mxu0 %v15550_v13 }
0x5059   :  { %16919 = vmatprep.subr.mxu0 %v15549_v14 }
0x505a   :  { %16920 = vmatpush3.msra.mxu0 %v15549_v14 }
0x505b   :  { %16921 = vmatprep.subr.mxu0 %v15548_v15 }
0x505c   :  { %16922 = vmatpush3.msra.mxu0 %v15548_v15 }
0x505d   :  { %16926 = vmatprep.subr.mxu0 %v17546_v34 }
0x5115   :  { %v16879_v50 = vpop.f32.mrf.mxu0 }
0x5116   :  { %v11166_v46 = vadd.f32 %v16879_v50, %v15523_v36 }
0x5117   :  { %v11160_v51 = vpop.f32.mrf.mxu0 }
0x5118   :  { %v11172_v53 = vmul.f32 0.70710677, %v11166_v46  ;;  %v11161_v40 = vadd.f32 %v15523_v36, %v11160_v51  ;;  %v11170_v54 = vmul.f32 0.5, %v11166_v46 }
0x511a   :  { %17434 = verf.f32 %v11172_v53  ;;  %v11171_v52 = vmul.f32 0.70710677, %v11161_v40  ;;  %v11169_v57 = vmul.f32 0.5, %v11161_v40 }
0x511c   :  { %17436 = verf.f32 %v11171_v52 }
0x5127   :  { %v17435_v62 = vpop.eup %17434 }
0x5128   :  { %v11176_v38 = vadd.f32 1.0, %v17435_v62 }
0x5129   :  { %v17437_v41 = vpop.eup %17436 }
0x512a   :  { %v11175_v17 = vadd.f32 1.0, %v17437_v41  ;;  %v11178_v59 = vmul.f32 %v11176_v38, %v11170_v54 }
0x512c   :  { %v11177_v23 = vmul.f32 %v11175_v17, %v11169_v57 }
0x512e   :  { %16912 = vmatprep.mubr.f32.mxu1 %v11177_v23 }
0x512f   :  { %16913 = vmatmul.mubr.f32.vlgmr.msra.gmra.mxu1 %v11178_v59 }
0x5130   :  { %16953 = vmatprep.mubr.msk.f32.mxu1 %vm17547_vm1, %v17546_v34 }
0x51ef   :  { %v16914_v63 = vpop.f32.mrf.mxu1 }
0x51f0   :  { %v11276_v1 = vadd.f32 %v16914_v63, %v15543_v61 }
0x51f1   :  { %v11270_v5 = vpop.f32.mrf.mxu1 }
0x51f2   :  { %v19124_v4 = vadd.f32 %v11276_v1, %v19033_v60  ;;  %v11271_v0 = vadd.f32 %v15543_v61, %v11270_v5 }
0x51f4   :  { %v19127_v6 = vadd.f32 %v11271_v0, %v19036_v3  ;;  %v11288_v7 = vsel %vm49_vm0, %v19124_v4, 0.0 }
0x51f5   :  { %11289 = vadd.xlane.f32.xlu1 %v11288_v7 }
0x51f6   :  { %v11285_v2 = vsel %vm49_vm0, %v19127_v6, 0.0 }
0x51f7   :  { %11286 = vadd.xlane.f32.xlu0 %v11285_v2 }
0x527e   :  { %v11290_v8 = vpop.xlane.xlu1 %11289 }
0x527f   :  { %v11292_v9 = vmul.f32 0.03125, %v11290_v8 }
0x5280   :  { %v11287_v55 = vpop.xlane.xlu0 %11286 }
0x5281   :  { %v11294_v10 = vsub.f32 %v19124_v4, %v11292_v9  ;;  %v11291_v56 = vmul.f32 0.03125, %v11287_v55 }
0x5283   :  { %v11293_v60 = vsub.f32 %v19127_v6, %v11291_v56  ;;  %v11296_v11 = vmul.f32 %v11294_v10, %v11294_v10 }
0x5285   :  { %v11300_v3 = vsel %vm49_vm0, %v11296_v11, 0.0  ;;  %v11295_v47 = vmul.f32 %v11293_v60, %v11293_v60 }
0x5286   :  { %11301 = vadd.xlane.f32.xlu1 %v11300_v3 }
0x5287   :  { %v11297_v12 = vsel %vm49_vm0, %v11295_v47, 0.0 }
0x5288   :  { %11298 = vadd.xlane.f32.xlu0 %v11297_v12 }
0x530f   :  { %v11302_v16 = vpop.xlane.xlu1 %11301 }
0x5310   :  { %v11304_v18 = vmul.f32 0.03125, %v11302_v16 }
0x5311   :  { %v11299_v19 = vpop.xlane.xlu0 %11298 }
0x5312   :  { %v11306_v20 = vadd.f32 1e-05, %v11304_v18  ;;  %v11303_v21 = vmul.f32 0.03125, %v11299_v19 }
0x5314   :  { %17438 = vrsqrt.f32 %v11306_v20  ;;  %v11305_v22 = vadd.f32 1e-05, %v11303_v21 }
0x5316   :  { %17440 = vrsqrt.f32 %v11305_v22 }
0x5321   :  { %v17439_v24 = vpop.eup %17438 }
0x5322   :  { %v11310_v26 = vmul.f32 %v17439_v24, %v11294_v10 }
0x5323   :  { %v17441_v27 = vpop.eup %17440 }
0x5324   :  { %v11309_v28 = vmul.f32 %v17441_v27, %v11293_v60  ;;  %v11318_v29 = vmul.f32 %v15546_v25, %v11310_v26 }
0x5326   :  { %v11317_v31 = vmul.f32 %v15546_v25, %v11309_v28  ;;  %v11326_v37 = vadd.f32 %v15547_v30, %v11318_v29 }
0x5328   :  { %v11325_v32 = vadd.f32 %v15547_v30, %v11317_v31 }
0x532a   :  { %16923 = vmatprep.mubr.msk.f32.mxu0 %vm49_vm0, %v11325_v32 }
0x532b   :  { %16924 = vmatmul.mubr.msk.f32.vlgmr.msra.gmra.mxu0 %vm49_vm0, %v11326_v37  ;;  %v15556_v37 = vld [vmem:[%s19636_s5 + $0x60] sm:$0xff] }
0x532c   :  { %16928 = vmatprep.mubr.msk.f32.mxu0 %vm17547_vm1, %v17546_v34 }
0x53eb   :  { %v16925_v35 = vpop.f32.mrf.mxu0 }
0x53ec   :  { %v19163_v39 = vadd.f32 %v16925_v35, %v15553_v33 }
0x53ed   :  { %v11412_v42 = vpop.f32.mrf.mxu0 }
0x53ee   :  { %v19165_v43 = vadd.f32 %v15553_v33, %v11412_v42  ;;  %11504 = vrot.lane.b32.xlu1 %v19163_v39, %s19720_s6 }
0x53f0   :  { %11427 = vrot.lane.b32.xlu0 %v19165_v43, %s19720_s6 }
0x5460   :  { %v11505_v48 = vpop.permute.xlu1 %11504 }
0x5462   :  { %v11428_v45 = vpop.permute.xlu0 %11427 }
0x5463   :  { %16927 = vmatpush3.xpose.msk.msra.mxu0 %vm192_vm2, %v11428_v45 }
0x5464   :  { %16931 = vmatprep.subr.mxu0 %v17546_v34 }
0x5466   :  { %16929 = vmatmul.mubr.msk.f32.vlgmr.msra.gmra.mxu0 %vm192_vm2, %v19165_v43 }
0x5467   :  { %16932 = vmatpush3.xpose.msk.msra.mxu0 %vm192_vm2, %v11505_v48  ;;  %16933 = vmatprep.mubr.msk.f32.mxu0 %vm17547_vm1, %v17546_v34 }
0x5468   :  { %16936 = vmatprep.subr.mxu0 %v17546_v34 }
0x546a   :  { %16934 = vmatmul.mubr.msk.f32.vlgmr.msra.gmra.mxu0 %vm192_vm2, %v19163_v39 }
0x546b   :  { %16938 = vmatprep.mubr.msk.f32.mxu0 %vm17547_vm1, %v17546_v34 }
0x5526   :  { %v11499_v44 = vpop.f32.mrf.mxu0 }
0x5527   :  { %v11580_v49 = vmul.f32 0.5, %v11499_v44 }
0x5528   :  { %v16930_v36 = vpop.f32.mrf.mxu0 }
0x5529   :  { %v11582_v50 = vsel %vm346_vm3, %v11580_v49, -inf }
0x552a   :  { %11583 = vmax.xlane.f32.xlu1 %v11582_v50  ;;  %v11576_v46 = vpop.f32.mrf.mxu0 }
0x552b   :  { %v11581_v51 = vmul.f32 0.5, %v11576_v46 }
0x552c   :  { %v16935_v53 = vpop.f32.mrf.mxu0 }
0x552d   :  { %v11585_v40 = vsel %vm346_vm3, %v11581_v51, -inf }
0x552e   :  { %11586 = vmax.xlane.f32.xlu0 %v11585_v40 }
0x553b   :  { %11680 = vrot.lane.b32.xlu1 %v19163_v39, %s19721_s30 }
0x553f   :  { %11758 = vrot.lane.b32.xlu1 %v19165_v43, %s19722_s29 }
0x5543   :  { %11836 = vrot.lane.b32.xlu1 %v19163_v39, %s19722_s29  ;;  %s19734_s29 = smov 56  }
0x55b3   :  { %v11584_v52 = vpop.xlane.xlu1 %11583 }
0x55b4   :  { %v11588_v62 = vsub.f32 %v11580_v49, %v11584_v52  ;;  %v12089_v49 = vrot.slane %v15556_v37, 4 }
0x55b6   :  { %v11590_v41 = vmul.f32 1.442695, %v11588_v62 }
0x55b7   :  { %v11681_v38 = vpop.permute.xlu1 %11680  ;;  %v11587_v57 = vpop.xlane.xlu0 %11586 }
0x55b8   :  { %17442 = vpow2.f32 %v11590_v41  ;;  %v11589_v17 = vsub.f32 %v11581_v51, %v11587_v57 }
0x55ba   :  { %v11592_v54 = vmul.f32 1.442695, %v11589_v17 }
0x55bb   :  { %v11759_v23 = vpop.permute.xlu1 %11758 }
0x55bc   :  { %17444 = vpow2.f32 %v11592_v54 }
0x55bf   :  { %v11837_v59 = vpop.permute.xlu1 %11836 }
0x55c0   :  { %16952 = vmatpush3.xpose.msk.msra.mxu1 %vm192_vm2, %v11837_v59 }
0x55c1   :  { %16961 = vmatprep.subr.mxu1 %v17546_v34 }
0x55c5   :  { %v17443_v61 = vpop.eup %17442 }
0x55c6   :  { %v11594_v63 = vsel %vm346_vm3, %v17443_v61, 0.0 }
0x55c7   :  { %11595 = vadd.xlane.f32.xlu0 %v11594_v63 }
0x55c9   :  { %v17445_v1 = vpop.eup %17444 }
0x55ca   :  { %v11597_v5 = vsel %vm346_vm3, %v17445_v1, 0.0 }
0x55cb   :  { %11598 = vadd.xlane.f32.xlu1 %v11597_v5 }
0x55dc   :  { %11834 = vrot.lane.b32.xlu1 %v19163_v39, %s19723_s14 }
0x55dd   :  { %11604 = vrot.lane.b32.xlu0 %v19165_v43, %s19721_s30 }
0x55e1   :  { %11756 = vrot.lane.b32.xlu0 %v19165_v43, %s19723_s14  ;;  %s19735_s14 = smov 84  }
0x5650   :  { %v11596_v0 = vpop.xlane.xlu0 %11595 }
0x5651   :  { %17446 = vrcp.f32 %v11596_v0 }
0x5654   :  { %v11599_v7 = vpop.xlane.xlu1 %11598  ;;  %v11605_v2 = vpop.permute.xlu0 %11604 }
0x5655   :  { %17448 = vrcp.f32 %v11599_v7  ;;  %16937 = vmatpush3.msra.mxu0 %v11605_v2 }
0x5656   :  { %16941 = vmatprep.subr.mxu0 %v17546_v34 }
0x5658   :  { %v11835_v8 = vpop.permute.xlu1 %11834  ;;  %v11757_v60 = vpop.permute.xlu0 %11756 }
0x5659   :  { %16954 = vmatmul.mubr.msk.f32.vlgmr.msra.gmra.mxu1 %vm192_vm2, %v11835_v8 }
0x565a   :  { %16963 = vmatprep.mubr.msk.f32.mxu1 %vm17547_vm1, %v17546_v34 }
0x565e   :  { %v17447_v9 = vpop.eup %17446 }
0x565f   :  { %v11602_v55 = vmul.f32 %v17447_v9, %v17443_v61 }
0x5661   :  { %16939 = vmatmul.mubr.msk.f32.vlgmr.msra.gmra.mxu0 %vm346_vm3, %v11602_v55 }
0x5662   :  { %v17449_v10 = vpop.eup %17448  ;;  %16942 = vmatpush3.msra.mxu0 %v11681_v38  ;;  %16943 = vmatprep.mubr.msk.f32.mxu0 %vm17547_vm1, %v17546_v34 }
0x5663   :  { %v11603_v56 = vmul.f32 %v17449_v10, %v17445_v1  ;;  %16946 = vmatprep.subr.mxu0 %v17546_v34 }
0x5665   :  { %16944 = vmatmul.mubr.msk.f32.vlgmr.msra.gmra.mxu0 %vm346_vm3, %v11603_v56 }
0x5666   :  { %16947 = vmatpush3.xpose.msk.msra.mxu0 %vm192_vm2, %v11759_v23  ;;  %16948 = vmatprep.mubr.msk.f32.mxu0 %vm17547_vm1, %v17546_v34 }
0x5667   :  { %16956 = vmatprep.subr.mxu0 %v17546_v34 }
0x5669   :  { %16949 = vmatmul.mubr.msk.f32.vlgmr.msra.gmra.mxu0 %vm192_vm2, %v11757_v60 }
0x566a   :  { %16958 = vmatprep.mubr.msk.f32.mxu0 %vm17547_vm1, %v17546_v34 }
0x5719   :  { %v11908_v11 = vpop.f32.mrf.mxu1 }
0x571a   :  { %v11913_v3 = vmul.f32 0.5, %v11908_v11 }
0x571b   :  { %v16955_v47 = vpop.f32.mrf.mxu1 }
0x571c   :  { %v11917_v12 = vsel %vm346_vm3, %v11913_v3, -inf }
0x571d   :  { %11918 = vmax.xlane.f32.xlu1 %v11917_v12 }
0x5721   :  { %v11676_v58 = vpop.f32.mrf.mxu0 }
0x5723   :  { %v16940_v13 = vpop.f32.mrf.mxu0 }
0x5725   :  { %v11752_v14 = vpop.f32.mrf.mxu0 }
0x5727   :  { %v16945_v15 = vpop.f32.mrf.mxu0 }
0x5729   :  { %v11830_v16 = vpop.f32.mrf.mxu0 }
0x572a   :  { %v11912_v18 = vmul.f32 0.5, %v11830_v16 }
0x572b   :  { %v16950_v19 = vpop.f32.mrf.mxu0 }
0x572c   :  { %v11914_v20 = vsel %vm346_vm3, %v11912_v18, -inf }
0x572d   :  { %11915 = vmax.xlane.f32.xlu0 %v11914_v20 }
0x572e   :  { %12012 = vrot.lane.b32.xlu1 %v19163_v39, %s19724_s27 }
0x5732   :  { %12258 = vrot.lane.b32.xlu1 %v19165_v43, %s19732_s2 }
0x5736   :  { %12336 = vrot.lane.b32.xlu1 %v19163_v39, %s19732_s2 }
0x573a   :  { %12334 = vrot.lane.b32.xlu1 %v19163_v39, %s19733_s4 }
0x57a6   :  { %v11919_v21 = vpop.xlane.xlu1 %11918 }
0x57a7   :  { %v11921_v22 = vsub.f32 %v11913_v3, %v11919_v21 }
0x57a9   :  { %v11924_v24 = vmul.f32 1.442695, %v11921_v22 }
0x57aa   :  { %v12013_v25 = vpop.permute.xlu1 %12012 }
0x57ab   :  { %17450 = vpow2.f32 %v11924_v24  ;;  %16962 = vmatpush3.msra.mxu1 %v12013_v25  ;;  %v19299_v25 = vld [vmem:[%s19636_s5 + $0x68] sm:$0xff] }
0x57ac   :  { %16971 = vmatprep.subr.msk.mxu1 %vm861_vm4, %v15556_v37 }
0x57ae   :  { %v12259_v35 = vpop.permute.xlu1 %12258 }
0x57b2   :  { %v12337_v44 = vpop.permute.xlu1 %12336 }
0x57b6   :  { %v11916_v26 = vpop.xlane.xlu0 %11915  ;;  %v12335_v50 = vpop.permute.xlu1 %12334 }
0x57b7   :  { %v11920_v27 = vsub.f32 %v11912_v18, %v11916_v26 }
0x57b8   :  { %v17451_v28 = vpop.eup %17450 }
0x57b9   :  { %v11922_v29 = vmul.f32 1.442695, %v11920_v27  ;;  %v11929_v30 = vsel %vm346_vm3, %v17451_v28, 0.0 }
0x57ba   :  { %11930 = vadd.xlane.f32.xlu0 %v11929_v30 }
0x57bb   :  { %17452 = vpow2.f32 %v11922_v29 }
0x57c8   :  { %v17453_v31 = vpop.eup %17452 }
0x57c9   :  { %v11926_v32 = vsel %vm346_vm3, %v17453_v31, 0.0 }
0x57ca   :  { %11927 = vadd.xlane.f32.xlu0 %v11926_v32 }
0x57e0   :  { %11936 = vrot.lane.b32.xlu0 %v19165_v43, %s19724_s27 }
0x57e4   :  { %12256 = vrot.lane.b32.xlu0 %v19165_v43, %s19733_s4 }
0x5843   :  { %v11931_v33 = vpop.xlane.xlu0 %11930 }
0x5844   :  { %17454 = vrcp.f32 %v11931_v33 }
0x5851   :  { %v17455_v42 = vpop.eup %17454 }
0x5852   :  { %v11935_v45 = vmul.f32 %v17455_v42, %v17451_v28 }
0x5853   :  { %v11928_v48 = vpop.xlane.xlu0 %11927 }
0x5854   :  { %17456 = vrcp.f32 %v11928_v48  ;;  %16964 = vmatmul.mubr.msk.f32.vlgmr.msra.gmra.mxu1 %vm346_vm3, %v11935_v45 }
0x5855   :  { %16973 = vmatprep.mubr.msk.f32.mxu1 %vm192_vm2, %v11676_v58  ;;  %16972 = vmatpush3.msk.msra.mxu1 %vm861_vm4, %v15556_v37 }
0x5856   :  { %16981 = vmatprep.subr.mxu1 %v17546_v34 }
0x5857   :  { %v11937_v36 = vpop.permute.xlu0 %11936 }
0x5858   :  { %16957 = vmatpush3.msra.mxu0 %v11937_v36  ;;  %16974 = vmatmul.mubr.msk.f32.vlgmr.msra.gmra.mxu1 %vm192_vm2, %v11752_v14 }
0x5859   :  { %16982 = vmatpush3.xpose.msk.msra.mxu1 %vm192_vm2, %v12337_v44  ;;  %16983 = vmatprep.mubr.msk.f32.mxu1 %vm17547_vm1, %v17546_v34 }
0x585a   :  { %16966 = vmatprep.subr.msk.mxu0 %vm861_vm4, %v12089_v49  ;;  %16991 = vmatprep.subr.mxu1 %v17546_v34 }
0x585b   :  { %v12257_v59 = vpop.permute.xlu0 %12256 }
0x585c   :  { %16984 = vmatmul.mubr.msk.f32.vlgmr.msra.gmra.mxu1 %vm192_vm2, %v12335_v50 }
0x585d   :  { %16993 = vmatprep.mubr.msk.f32.mxu1 %vm17547_vm1, %v17546_v34 }
0x5861   :  { %v17457_v46 = vpop.eup %17456 }
0x5862   :  { %v11934_v51 = vmul.f32 %v17457_v46, %v17453_v31 }
0x5864   :  { %16959 = vmatmul.mubr.msk.f32.vlgmr.msra.gmra.mxu0 %vm346_vm3, %v11934_v51 }
0x5865   :  { %16967 = vmatpush3.msk.msra.mxu0 %vm861_vm4, %v12089_v49 }
0x5866   :  { %16976 = vmatprep.subr.mxu0 %v17546_v34 }
0x5914   :  { %v12084_v53 = vpop.f32.mrf.mxu1 }
0x5916   :  { %v16965_v40 = vpop.f32.mrf.mxu1 }
0x5918   :  { %v19253_v52 = vpop.f32.mrf.mxu1 }
0x591a   :  { %v19255_v62 = vpop.f32.mrf.mxu1 }
0x591c   :  { %v12408_v41 = vpop.f32.mrf.mxu1 }
0x591d   :  { %v12413_v38 = vmul.f32 0.5, %v12408_v41 }
0x591e   :  { %v16985_v57 = vpop.f32.mrf.mxu1 }
0x591f   :  { %v12417_v17 = vsel %vm346_vm3, %v12413_v38, -inf }
0x5920   :  { %12418 = vmax.xlane.f32.xlu1 %v12417_v17 }
0x5924   :  { %v12008_v54 = vpop.f32.mrf.mxu0 }
0x5925   :  { %16968 = vmatprep.mubr.msk.f32.mxu0 %vm192_vm2, %v12008_v54 }
0x5926   :  { %v16960_v23 = vpop.f32.mrf.mxu0  ;;  %16969 = vmatmul.mubr.msk.f32.vlgmr.msra.gmra.mxu0 %vm192_vm2, %v12084_v53 }
0x5927   :  { %16977 = vmatpush3.xpose.msk.msra.mxu0 %vm192_vm2, %v12259_v35  ;;  %16978 = vmatprep.mubr.msk.f32.mxu0 %vm17547_vm1, %v17546_v34 }
0x5928   :  { %16986 = vmatprep.subr.mxu0 %v17546_v34 }
0x592a   :  { %16979 = vmatmul.mubr.msk.f32.vlgmr.msra.gmra.mxu0 %vm192_vm2, %v12257_v59 }
0x592b   :  { %16988 = vmatprep.mubr.msk.f32.mxu0 %vm17547_vm1, %v17546_v34 }
0x5931   :  { %12512 = vrot.lane.b32.xlu1 %v19163_v39, %s19734_s29 }
0x5935   :  { %12676 = vrot.lane.b32.xlu1 %v19165_v43, %s19735_s14 }
0x5939   :  { %12754 = vrot.lane.b32.xlu1 %v19163_v39, %s19735_s14 }
0x593d   :  { %12752 = vrot.lane.b32.xlu1 %v19163_v39, %s19729_s13 }
0x59a9   :  { %v12419_v61 = vpop.xlane.xlu1 %12418 }
0x59aa   :  { %v12421_v1 = vsub.f32 %v12413_v38, %v12419_v61 }
0x59ac   :  { %v12424_v5 = vmul.f32 1.442695, %v12421_v1  ;;  %v13006_v1 = vrot.slane %v19299_v25, 4 }
0x59ad   :  { %v12513_v63 = vpop.permute.xlu1 %12512 }
0x59ae   :  { %16992 = vmatpush3.msra.mxu1 %v12513_v63  ;;  %17458 = vpow2.f32 %v12424_v5 }
0x59af   :  { %17001 = vmatprep.subr.mxu1 %v17546_v34 }
0x59b1   :  { %v12677_v15 = vpop.permute.xlu1 %12676 }
0x59b5   :  { %v12755_v30 = vpop.permute.xlu1 %12754 }
0x59b9   :  { %v12753_v37 = vpop.permute.xlu1 %12752 }
0x59bb   :  { %v17459_v10 = vpop.eup %17458 }
0x59bc   :  { %v12429_v56 = vsel %vm346_vm3, %v17459_v10, 0.0 }
0x59e6   :  { %v19276_v0 = vpop.f32.mrf.mxu0 }
0x59e7   :  { %v12253_v44 = vadd.f32 %v19253_v52, %v19276_v0 }
0x59e8   :  { %v19278_v7 = vpop.f32.mrf.mxu0 }
0x59e9   :  { %v12248_v36 = vadd.f32 %v19255_v62, %v19278_v7 }
0x59ea   :  { %v12330_v2 = vpop.f32.mrf.mxu0 }
0x59eb   :  { %v12412_v8 = vmul.f32 0.5, %v12330_v2 }
0x59ec   :  { %v16980_v9 = vpop.f32.mrf.mxu0 }
0x59ed   :  { %v12414_v55 = vsel %vm346_vm3, %v12412_v8, -inf }
0x59ee   :  { %12415 = vmax.xlane.f32.xlu0 %v12414_v55 }
0x59f2   :  { %12430 = vadd.xlane.f32.xlu0 %v12429_v56 }
0x5a77   :  { %v12416_v60 = vpop.xlane.xlu0 %12415 }
0x5a78   :  { %v12420_v11 = vsub.f32 %v12412_v8, %v12416_v60 }
0x5a7a   :  { %v12422_v3 = vmul.f32 1.442695, %v12420_v11 }
0x5a7b   :  { %v12431_v47 = vpop.xlane.xlu0 %12430 }
0x5a7c   :  { %17460 = vpow2.f32 %v12422_v3 }
0x5a7d   :  { %17462 = vrcp.f32 %v12431_v47 }
0x5a89   :  { %v17461_v12 = vpop.eup %17460 }
0x5a8a   :  { %v17463_v58 = vpop.eup %17462  ;;  %v12426_v13 = vsel %vm346_vm3, %v17461_v12, 0.0 }
0x5a8b   :  { %v12435_v14 = vmul.f32 %v17463_v58, %v17459_v10  ;;  %12427 = vadd.xlane.f32.xlu0 %v12426_v13 }
0x5a8d   :  { %16994 = vmatmul.mubr.msk.f32.vlgmr.msra.gmra.mxu1 %vm346_vm3, %v12435_v14 }
0x5a8e   :  { %17002 = vmatpush3.xpose.msk.msra.mxu1 %vm192_vm2, %v12677_v15  ;;  %17003 = vmatprep.mubr.msk.f32.mxu1 %vm17547_vm1, %v17546_v34 }
0x5a8f   :  { %17011 = vmatprep.subr.mxu1 %v17546_v34 }
0x5aa1   :  { %12436 = vrot.lane.b32.xlu0 %v19165_v43, %s19734_s29 }
0x5aa5   :  { %12674 = vrot.lane.b32.xlu0 %v19165_v43, %s19729_s13  ;;  %s19740_s13 = smov 68  }
0x5b14   :  { %v12428_v16 = vpop.xlane.xlu0 %12427 }
0x5b15   :  { %17464 = vrcp.f32 %v12428_v16 }
0x5b18   :  { %v12437_v18 = vpop.permute.xlu0 %12436 }
0x5b19   :  { %16987 = vmatpush3.msra.mxu0 %v12437_v18 }
0x5b1a   :  { %16996 = vmatprep.subr.msk.mxu0 %vm861_vm4, %v19299_v25 }
0x5b1c   :  { %v12675_v19 = vpop.permute.xlu0 %12674 }
0x5b1d   :  { %17004 = vmatmul.mubr.msk.f32.vlgmr.msra.gmra.mxu1 %vm192_vm2, %v12675_v19 }
0x5b1e   :  { %17013 = vmatprep.mubr.msk.f32.mxu1 %vm17547_vm1, %v17546_v34 }
0x5b22   :  { %v17465_v20 = vpop.eup %17464 }
0x5b23   :  { %v12434_v21 = vmul.f32 %v17465_v20, %v17461_v12 }
0x5b25   :  { %16989 = vmatmul.mubr.msk.f32.vlgmr.msra.gmra.mxu0 %vm346_vm3, %v12434_v21 }
0x5b26   :  { %16997 = vmatpush3.msk.msra.mxu0 %vm861_vm4, %v19299_v25 }
0x5b27   :  { %17006 = vmatprep.subr.mxu0 %v17546_v34 }
0x5b4d   :  { %v12584_v22 = vpop.f32.mrf.mxu1 }
0x5b4f   :  { %v16995_v24 = vpop.f32.mrf.mxu1 }
0x5bdd   :  { %v12748_v26 = vpop.f32.mrf.mxu1 }
0x5bde   :  { %v12830_v27 = vmul.f32 0.5, %v12748_v26 }
0x5bdf   :  { %v17005_v28 = vpop.f32.mrf.mxu1 }
0x5be0   :  { %v12832_v29 = vsel %vm346_vm3, %v12830_v27, -inf }
0x5be1   :  { %12833 = vmax.xlane.f32.xlu0 %v12832_v29 }
0x5be5   :  { %v12508_v31 = vpop.f32.mrf.mxu0 }
0x5be6   :  { %16998 = vmatprep.mubr.msk.f32.mxu0 %vm192_vm2, %v12508_v31 }
0x5be7   :  { %v16990_v32 = vpop.f32.mrf.mxu0  ;;  %16999 = vmatmul.mubr.msk.f32.vlgmr.msra.gmra.mxu0 %vm192_vm2, %v12584_v22 }
0x5be8   :  { %17007 = vmatpush3.xpose.msk.msra.mxu0 %vm192_vm2, %v12755_v30  ;;  %17008 = vmatprep.mubr.msk.f32.mxu0 %vm17547_vm1, %v17546_v34 }
0x5be9   :  { %17016 = vmatprep.subr.mxu0 %v17546_v34 }
0x5beb   :  { %17009 = vmatmul.mubr.msk.f32.vlgmr.msra.gmra.mxu0 %vm192_vm2, %v12753_v37 }
0x5bec   :  { %17018 = vmatprep.mubr.msk.f32.mxu0 %vm17547_vm1, %v17546_v34 }
0x5c6a   :  { %v12834_v33 = vpop.xlane.xlu0 %12833 }
0x5c6b   :  { %v12838_v35 = vsub.f32 %v12830_v27, %v12834_v33 }
0x5c6d   :  { %v12840_v42 = vmul.f32 1.442695, %v12838_v35 }
0x5c6f   :  { %17466 = vpow2.f32 %v12840_v42 }
0x5c7c   :  { %v17467_v45 = vpop.eup %17466 }
0x5c7d   :  { %v12844_v48 = vsel %vm346_vm3, %v17467_v45, 0.0 }
0x5c7e   :  { %12845 = vadd.xlane.f32.xlu0 %v12844_v48 }
0x5ca7   :  { %v17000_v49 = vpop.f32.mrf.mxu0 }
0x5ca8   :  { %v19321_v50 = vadd.f32 %v17000_v49, %v12253_v44 }
0x5ca9   :  { %v12663_v46 = vpop.f32.mrf.mxu0 }
0x5caa   :  { %v19323_v51 = vadd.f32 %v12663_v46, %v12248_v36 }
0x5cab   :  { %v12826_v53 = vpop.f32.mrf.mxu0 }
0x5cac   :  { %v12831_v40 = vmul.f32 0.5, %v12826_v53 }
0x5cad   :  { %v17010_v41 = vpop.f32.mrf.mxu0 }
0x5cae   :  { %v12835_v38 = vsel %vm346_vm3, %v12831_v40, -inf }
0x5caf   :  { %12836 = vmax.xlane.f32.xlu1 %v12835_v38 }
0x5cc0   :  { %12930 = vrot.lane.b32.xlu1 %v19163_v39, %s19707_s25 }
0x5cc4   :  { %13094 = vrot.lane.b32.xlu1 %v19165_v43, %s19708_s16 }
0x5cc8   :  { %13172 = vrot.lane.b32.xlu1 %v19163_v39, %s19708_s16 }
0x5ccc   :  { %13170 = vrot.lane.b32.xlu1 %v19163_v39, %s19709_s17 }
0x5d07   :  { %v12846_v59 = vpop.xlane.xlu0 %12845 }
0x5d38   :  { %v12837_v52 = vpop.xlane.xlu1 %12836 }
0x5d39   :  { %v12839_v62 = vsub.f32 %v12831_v40, %v12837_v52 }
0x5d3b   :  { %v12842_v57 = vmul.f32 1.442695, %v12839_v62 }
0x5d3c   :  { %v12931_v17 = vpop.permute.xlu1 %12930 }
0x5d3d   :  { %17468 = vpow2.f32 %v12842_v57  ;;  %17017 = vmatpush3.msra.mxu0 %v12931_v17 }
0x5d3e   :  { %17026 = vmatprep.subr.mxu0 %v17546_v34  ;;  %17470 = vrcp.f32 %v12846_v59 }
0x5d40   :  { %v13095_v8 = vpop.permute.xlu1 %13094 }
0x5d44   :  { %v13173_v56 = vpop.permute.xlu1 %13172 }
0x5d48   :  { %v13171_v3 = vpop.permute.xlu1 %13170 }
0x5d4a   :  { %v17469_v54 = vpop.eup %17468 }
0x5d4b   :  { %v12847_v23 = vsel %vm346_vm3, %v17469_v54, 0.0  ;;  %v17471_v63 = vpop.eup %17470 }
0x5d4c   :  { %12848 = vadd.xlane.f32.xlu0 %v12847_v23  ;;  %v12852_v5 = vmul.f32 %v17471_v63, %v17467_v45 }
0x5d62   :  { %12854 = vrot.lane.b32.xlu0 %v19165_v43, %s19707_s25 }
0x5d66   :  { %13092 = vrot.lane.b32.xlu0 %v19165_v43, %s19709_s17  ;;  %s19736_s17 = smov 44  }
0x5dd5   :  { %v12849_v61 = vpop.xlane.xlu0 %12848 }
0x5dd6   :  { %17472 = vrcp.f32 %v12849_v61 }
0x5dd9   :  { %v12855_v0 = vpop.permute.xlu0 %12854 }
0x5dda   :  { %17012 = vmatpush3.msra.mxu1 %v12855_v0 }
0x5ddb   :  { %17014 = vmatmul.mubr.msk.f32.vlgmr.msra.gmra.mxu1 %vm346_vm3, %v12852_v5  ;;  %17021 = vmatprep.subr.msk.mxu1 %vm861_vm4, %v13006_v1 }
0x5ddc   :  { %17022 = vmatpush3.msk.msra.mxu1 %vm861_vm4, %v13006_v1 }
0x5ddd   :  { %17031 = vmatprep.subr.mxu1 %v17546_v34  ;;  %v13093_v9 = vpop.permute.xlu0 %13092 }
0x5de3   :  { %v17473_v7 = vpop.eup %17472 }
0x5de4   :  { %v12853_v2 = vmul.f32 %v17473_v7, %v17469_v54 }
0x5de6   :  { %17019 = vmatmul.mubr.msk.f32.vlgmr.msra.gmra.mxu0 %vm346_vm3, %v12853_v2 }
0x5de7   :  { %17027 = vmatpush3.xpose.msk.msra.mxu0 %vm192_vm2, %v13095_v8  ;;  %17028 = vmatprep.mubr.msk.f32.mxu0 %vm17547_vm1, %v17546_v34 }
0x5de8   :  { %17036 = vmatprep.subr.mxu0 %v17546_v34 }
0x5dea   :  { %17029 = vmatmul.mubr.msk.f32.vlgmr.msra.gmra.mxu0 %vm192_vm2, %v13093_v9 }
0x5deb   :  { %17038 = vmatprep.mubr.msk.f32.mxu0 %vm17547_vm1, %v17546_v34 }
0x5e9b   :  { %v12926_v55 = vpop.f32.mrf.mxu1 }
0x5e9c   :  { %17023 = vmatprep.mubr.msk.f32.mxu1 %vm192_vm2, %v12926_v55 }
0x5e9d   :  { %v17015_v10 = vpop.f32.mrf.mxu1 }
0x5ea6   :  { %v13002_v60 = vpop.f32.mrf.mxu0 }
0x5ea7   :  { %17024 = vmatmul.mubr.msk.f32.vlgmr.msra.gmra.mxu1 %vm192_vm2, %v13002_v60 }
0x5ea8   :  { %17032 = vmatpush3.xpose.msk.msra.mxu1 %vm192_vm2, %v13173_v56  ;;  %v17020_v11 = vpop.f32.mrf.mxu0  ;;  %17033 = vmatprep.mubr.msk.f32.mxu1 %vm17547_vm1, %v17546_v34 }
0x5ea9   :  { %17041 = vmatprep.subr.mxu1 %v17546_v34 }
0x5eaa   :  { %v13166_v47 = vpop.f32.mrf.mxu0 }
0x5eab   :  { %v13248_v12 = vmul.f32 0.5, %v13166_v47  ;;  %17034 = vmatmul.mubr.msk.f32.vlgmr.msra.gmra.mxu1 %vm192_vm2, %v13171_v3 }
0x5eac   :  { %v17030_v58 = vpop.f32.mrf.mxu0  ;;  %17043 = vmatprep.mubr.msk.f32.mxu1 %vm17547_vm1, %v17546_v34 }
0x5ead   :  { %v13250_v13 = vsel %vm346_vm3, %v13248_v12, -inf }
0x5eae   :  { %13251 = vmax.xlane.f32.xlu0 %v13250_v13 }
0x5f37   :  { %v13252_v14 = vpop.xlane.xlu0 %13251 }
0x5f38   :  { %v13256_v15 = vsub.f32 %v13248_v12, %v13252_v14 }
0x5f3a   :  { %v13258_v16 = vmul.f32 1.442695, %v13256_v15 }
0x5f3c   :  { %17474 = vpow2.f32 %v13258_v16 }
0x5f49   :  { %v17475_v18 = vpop.eup %17474 }
0x5f4a   :  { %v13262_v19 = vsel %vm346_vm3, %v17475_v18, 0.0 }
0x5f4b   :  { %13263 = vadd.xlane.f32.xlu0 %v13262_v19 }
0x5f67   :  { %v17025_v20 = vpop.f32.mrf.mxu1 }
0x5f68   :  { %v19365_v21 = vadd.f32 %v17025_v20, %v19321_v50 }
0x5f69   :  { %v13081_v22 = vpop.f32.mrf.mxu1 }
0x5f6a   :  { %v19368_v24 = vadd.f32 %v13081_v22, %v19323_v51  ;;  %v19397_v51 = vld [vmem:[%s19636_s5 + $0x70] sm:$0xff] }
0x5f6b   :  { %v13244_v25 = vpop.f32.mrf.mxu1  ;;  %v13842_v16 = vrot.slane %v19397_v51, 4 }
0x5f6c   :  { %v13249_v26 = vmul.f32 0.5, %v13244_v25 }
0x5f6d   :  { %v17035_v27 = vpop.f32.mrf.mxu1 }
0x5f6e   :  { %v13253_v28 = vsel %vm346_vm3, %v13249_v26, -inf }
0x5f6f   :  { %13254 = vmax.xlane.f32.xlu1 %v13253_v28 }
0x5f80   :  { %13348 = vrot.lane.b32.xlu1 %v19163_v39, %s19710_s21 }
0x5f84   :  { %13512 = vrot.lane.b32.xlu1 %v19165_v43, %s19711_s23 }
0x5f88   :  { %13590 = vrot.lane.b32.xlu1 %v19163_v39, %s19711_s23  ;;  %s19738_s23 = smov 104  }
0x5f8c   :  { %13588 = vrot.lane.b32.xlu1 %v19163_v39, %s19712_s22 }
0x5fd4   :  { %v13264_v35 = vpop.xlane.xlu0 %13263 }
0x5ff8   :  { %v13255_v29 = vpop.xlane.xlu1 %13254 }
0x5ff9   :  { %v13257_v30 = vsub.f32 %v13249_v26, %v13255_v29 }
0x5ffb   :  { %v13260_v31 = vmul.f32 1.442695, %v13257_v30 }
0x5ffc   :  { %v13349_v32 = vpop.permute.xlu1 %13348 }
0x5ffd   :  { %17476 = vpow2.f32 %v13260_v31  ;;  %17042 = vmatpush3.msra.mxu1 %v13349_v32 }
0x5ffe   :  { %17051 = vmatprep.subr.mxu1 %v17546_v34  ;;  %17478 = vrcp.f32 %v13264_v35 }
0x6000   :  { %v13513_v50 = vpop.permute.xlu1 %13512 }
0x6004   :  { %v13591_v41 = vpop.permute.xlu1 %13590 }
0x6008   :  { %v13589_v62 = vpop.permute.xlu1 %13588 }
0x600a   :  { %v17477_v37 = vpop.eup %17476 }
0x600b   :  { %v13265_v33 = vsel %vm346_vm3, %v17477_v37, 0.0  ;;  %v17479_v45 = vpop.eup %17478 }
0x600c   :  { %13266 = vadd.xlane.f32.xlu0 %v13265_v33  ;;  %v13270_v48 = vmul.f32 %v17479_v45, %v17475_v18 }
0x6022   :  { %13272 = vrot.lane.b32.xlu0 %v19165_v43, %s19710_s21  ;;  %s19737_s21 = smov 72  }
0x6026   :  { %13510 = vrot.lane.b32.xlu0 %v19165_v43, %s19712_s22  ;;  %s19739_s22 = smov 40  }
0x6095   :  { %v13267_v42 = vpop.xlane.xlu0 %13266 }
0x6096   :  { %17480 = vrcp.f32 %v13267_v42 }
0x6099   :  { %v13273_v44 = vpop.permute.xlu0 %13272 }
0x609a   :  { %17037 = vmatpush3.msra.mxu0 %v13273_v44 }
0x609b   :  { %17039 = vmatmul.mubr.msk.f32.vlgmr.msra.gmra.mxu0 %vm346_vm3, %v13270_v48  ;;  %17046 = vmatprep.subr.msk.mxu0 %vm861_vm4, %v19397_v51 }
0x609c   :  { %17047 = vmatpush3.msk.msra.mxu0 %vm861_vm4, %v19397_v51 }
0x609d   :  { %v13511_v46 = vpop.permute.xlu0 %13510  ;;  %17056 = vmatprep.subr.mxu0 %v17546_v34 }
0x60a3   :  { %v17481_v49 = vpop.eup %17480 }
0x60a4   :  { %v13271_v36 = vmul.f32 %v17481_v49, %v17477_v37 }
0x60a6   :  { %17044 = vmatmul.mubr.msk.f32.vlgmr.msra.gmra.mxu1 %vm346_vm3, %v13271_v36 }
0x60a7   :  { %17052 = vmatpush3.xpose.msk.msra.mxu1 %vm192_vm2, %v13513_v50  ;;  %17053 = vmatprep.mubr.msk.f32.mxu1 %vm17547_vm1, %v17546_v34 }
0x60a8   :  { %17061 = vmatprep.subr.mxu1 %v17546_v34 }
0x60aa   :  { %17054 = vmatmul.mubr.msk.f32.vlgmr.msra.gmra.mxu1 %vm192_vm2, %v13511_v46 }
0x60ab   :  { %17063 = vmatprep.mubr.msk.f32.mxu1 %vm17547_vm1, %v17546_v34 }
0x615b   :  { %v13344_v53 = vpop.f32.mrf.mxu0 }
0x615c   :  { %17048 = vmatprep.mubr.msk.f32.mxu0 %vm192_vm2, %v13344_v53 }
0x615d   :  { %v17040_v40 = vpop.f32.mrf.mxu0 }
0x6166   :  { %v13420_v38 = vpop.f32.mrf.mxu1 }
0x6167   :  { %17049 = vmatmul.mubr.msk.f32.vlgmr.msra.gmra.mxu0 %vm192_vm2, %v13420_v38 }
0x6168   :  { %17057 = vmatpush3.xpose.msk.msra.mxu0 %vm192_vm2, %v13591_v41  ;;  %v17045_v52 = vpop.f32.mrf.mxu1  ;;  %17058 = vmatprep.mubr.msk.f32.mxu0 %vm17547_vm1, %v17546_v34 }
0x6169   :  { %17066 = vmatprep.subr.mxu0 %v17546_v34 }
0x616a   :  { %v13584_v57 = vpop.f32.mrf.mxu1 }
0x616b   :  { %v13666_v17 = vmul.f32 0.5, %v13584_v57  ;;  %17059 = vmatmul.mubr.msk.f32.vlgmr.msra.gmra.mxu0 %vm192_vm2, %v13589_v62 }
0x616c   :  { %v17055_v54 = vpop.f32.mrf.mxu1  ;;  %17068 = vmatprep.mubr.msk.f32.mxu0 %vm17547_vm1, %v17546_v34 }
0x616d   :  { %v13668_v23 = vsel %vm346_vm3, %v13666_v17, -inf }
0x616e   :  { %13669 = vmax.xlane.f32.xlu0 %v13668_v23 }
0x61f7   :  { %v13670_v59 = vpop.xlane.xlu0 %13669 }
0x61f8   :  { %v13674_v61 = vsub.f32 %v13666_v17, %v13670_v59 }
0x61fa   :  { %v13676_v63 = vmul.f32 1.442695, %v13674_v61 }
0x61fc   :  { %17482 = vpow2.f32 %v13676_v63 }
0x6209   :  { %v17483_v1 = vpop.eup %17482 }
0x620a   :  { %v13680_v5 = vsel %vm346_vm3, %v17483_v1, 0.0 }
0x620b   :  { %13681 = vadd.xlane.f32.xlu0 %v13680_v5 }
0x6227   :  { %v17050_v0 = vpop.f32.mrf.mxu0 }
0x6228   :  { %v19416_v7 = vadd.f32 %v17050_v0, %v19365_v21 }
0x6229   :  { %v13499_v2 = vpop.f32.mrf.mxu0 }
0x622a   :  { %v19419_v8 = vadd.f32 %v13499_v2, %v19368_v24 }
0x622b   :  { %v13662_v9 = vpop.f32.mrf.mxu0 }
0x622c   :  { %v13667_v55 = vmul.f32 0.5, %v13662_v9 }
0x622d   :  { %v17060_v10 = vpop.f32.mrf.mxu0 }
0x622e   :  { %v13671_v56 = vsel %vm346_vm3, %v13667_v55, -inf }
0x622f   :  { %13672 = vmax.xlane.f32.xlu1 %v13671_v56 }
0x6240   :  { %13766 = vrot.lane.b32.xlu1 %v19163_v39, %s19736_s17 }
0x6244   :  { %13930 = vrot.lane.b32.xlu1 %v19165_v43, %s19737_s21 }
0x6248   :  { %14008 = vrot.lane.b32.xlu1 %v19163_v39, %s19737_s21 }
0x624c   :  { %14006 = vrot.lane.b32.xlu1 %v19163_v39, %s19738_s23 }
0x6294   :  { %v13682_v13 = vpop.xlane.xlu0 %13681 }
0x62b8   :  { %v13673_v60 = vpop.xlane.xlu1 %13672 }
0x62b9   :  { %v13675_v11 = vsub.f32 %v13667_v55, %v13673_v60 }
0x62bb   :  { %v13678_v3 = vmul.f32 1.442695, %v13675_v11 }
0x62bc   :  { %v13767_v47 = vpop.permute.xlu1 %13766 }
0x62bd   :  { %17484 = vpow2.f32 %v13678_v3  ;;  %17067 = vmatpush3.msra.mxu0 %v13767_v47 }
0x62be   :  { %17076 = vmatprep.subr.mxu0 %v17546_v34  ;;  %17486 = vrcp.f32 %v13682_v13 }
0x62c0   :  { %v13931_v22 = vpop.permute.xlu1 %13930 }
0x62c4   :  { %v14009_v27 = vpop.permute.xlu1 %14008 }
0x62c8   :  { %v14007_v30 = vpop.permute.xlu1 %14006 }
0x62ca   :  { %v17485_v12 = vpop.eup %17484 }
0x62cb   :  { %v13683_v58 = vsel %vm346_vm3, %v17485_v12, 0.0  ;;  %v17487_v15 = vpop.eup %17486 }
0x62cc   :  { %13684 = vadd.xlane.f32.xlu0 %v13683_v58  ;;  %v13688_v18 = vmul.f32 %v17487_v15, %v17483_v1 }
0x62e2   :  { %13690 = vrot.lane.b32.xlu0 %v19165_v43, %s19736_s17 }
0x62e6   :  { %13928 = vrot.lane.b32.xlu0 %v19165_v43, %s19738_s23 }
0x6355   :  { %v13685_v14 = vpop.xlane.xlu0 %13684 }
0x6356   :  { %17488 = vrcp.f32 %v13685_v14 }
0x6359   :  { %v13691_v19 = vpop.permute.xlu0 %13690 }
0x635a   :  { %17062 = vmatpush3.msra.mxu1 %v13691_v19 }
0x635b   :  { %17064 = vmatmul.mubr.msk.f32.vlgmr.msra.gmra.mxu1 %vm346_vm3, %v13688_v18  ;;  %17071 = vmatprep.subr.msk.mxu1 %vm861_vm4, %v13842_v16 }
0x635c   :  { %17072 = vmatpush3.msk.msra.mxu1 %vm861_vm4, %v13842_v16 }
0x635d   :  { %17081 = vmatprep.subr.mxu1 %v17546_v34  ;;  %v13929_v24 = vpop.permute.xlu0 %13928 }
0x6363   :  { %v17489_v20 = vpop.eup %17488 }
0x6364   :  { %v13689_v21 = vmul.f32 %v17489_v20, %v17485_v12 }
0x6366   :  { %17069 = vmatmul.mubr.msk.f32.vlgmr.msra.gmra.mxu0 %vm346_vm3, %v13689_v21 }
0x6367   :  { %17077 = vmatpush3.xpose.msk.msra.mxu0 %vm192_vm2, %v13931_v22  ;;  %17078 = vmatprep.mubr.msk.f32.mxu0 %vm17547_vm1, %v17546_v34 }
0x6368   :  { %17086 = vmatprep.subr.mxu0 %v17546_v34 }
0x636a   :  { %17079 = vmatmul.mubr.msk.f32.vlgmr.msra.gmra.mxu0 %vm192_vm2, %v13929_v24 }
0x636b   :  { %17088 = vmatprep.mubr.msk.f32.mxu0 %vm17547_vm1, %v17546_v34 }
0x641b   :  { %v13762_v25 = vpop.f32.mrf.mxu1 }
0x641c   :  { %17073 = vmatprep.mubr.msk.f32.mxu1 %vm192_vm2, %v13762_v25 }
0x641d   :  { %v17065_v26 = vpop.f32.mrf.mxu1 }
0x6426   :  { %v13838_v28 = vpop.f32.mrf.mxu0 }
0x6427   :  { %17074 = vmatmul.mubr.msk.f32.vlgmr.msra.gmra.mxu1 %vm192_vm2, %v13838_v28 }
0x6428   :  { %17082 = vmatpush3.xpose.msk.msra.mxu1 %vm192_vm2, %v14009_v27  ;;  %v17070_v29 = vpop.f32.mrf.mxu0  ;;  %17083 = vmatprep.mubr.msk.f32.mxu1 %vm17547_vm1, %v17546_v34 }
0x6429   :  { %17091 = vmatprep.subr.mxu1 %v17546_v34 }
0x642a   :  { %v14002_v31 = vpop.f32.mrf.mxu0 }
0x642b   :  { %v14084_v32 = vmul.f32 0.5, %v14002_v31  ;;  %17084 = vmatmul.mubr.msk.f32.vlgmr.msra.gmra.mxu1 %vm192_vm2, %v14007_v30 }
0x642c   :  { %v17080_v37 = vpop.f32.mrf.mxu0  ;;  %17093 = vmatprep.mubr.msk.f32.mxu1 %vm17547_vm1, %v17546_v34 }
0x642d   :  { %v14086_v33 = vsel %vm346_vm3, %v14084_v32, -inf }
0x642e   :  { %14087 = vmax.xlane.f32.xlu0 %v14086_v33 }
0x64b7   :  { %v14088_v35 = vpop.xlane.xlu0 %14087 }
0x64b8   :  { %v14092_v42 = vsub.f32 %v14084_v32, %v14088_v35 }
0x64ba   :  { %v14094_v45 = vmul.f32 1.442695, %v14092_v42 }
0x64bc   :  { %17490 = vpow2.f32 %v14094_v45 }
0x64c9   :  { %v17491_v48 = vpop.eup %17490 }
0x64ca   :  { %v14098_v44 = vsel %vm346_vm3, %v17491_v48, 0.0 }
0x64cb   :  { %14099 = vadd.xlane.f32.xlu0 %v14098_v44 }
0x64e7   :  { %v17075_v49 = vpop.f32.mrf.mxu1 }
0x64e8   :  { %v19461_v36 = vadd.f32 %v17075_v49, %v19416_v7 }
0x64e9   :  { %v13917_v50 = vpop.f32.mrf.mxu1 }
0x64ea   :  { %v19464_v46 = vadd.f32 %v13917_v50, %v19419_v8  ;;  %v15559_v8 = vld [vmem:[%s19636_s5 + $0x78] sm:$0xff]  ;;  %s19742_s5 = smov 36  }
0x64eb   :  { %v14080_v51 = vpop.f32.mrf.mxu1  ;;  %v14678_v45 = vrot.slane %v15559_v8, 4 }
0x64ec   :  { %v14085_v53 = vmul.f32 0.5, %v14080_v51 }
0x64ed   :  { %v17085_v40 = vpop.f32.mrf.mxu1 }
0x64ee   :  { %v14089_v41 = vsel %vm346_vm3, %v14085_v53, -inf  ;;  %v15633_v40 = vld [vmem:[%s19743_s3 + $0x3] ss:$0 sm:$0xff] }
0x64ef   :  { %14090 = vmax.xlane.f32.xlu1 %v14089_v41 }
0x6500   :  { %14184 = vrot.lane.b32.xlu1 %v19163_v39, %s19739_s22 }
0x6504   :  { %14348 = vrot.lane.b32.xlu1 %v19165_v43, %s19740_s13 }
0x6508   :  { %14426 = vrot.lane.b32.xlu1 %v19163_v39, %s19740_s13 }
0x650c   :  { %14424 = vrot.lane.b32.xlu1 %v19163_v39, %s19741_s20 }
0x6554   :  { %v14100_v23 = vpop.xlane.xlu0 %14099 }
0x6578   :  { %v14091_v38 = vpop.xlane.xlu1 %14090 }
0x6579   :  { %v14093_v52 = vsub.f32 %v14085_v53, %v14091_v38 }
0x657b   :  { %v14096_v62 = vmul.f32 1.442695, %v14093_v52 }
0x657c   :  { %v14185_v57 = vpop.permute.xlu1 %14184 }
0x657d   :  { %17492 = vpow2.f32 %v14096_v62  ;;  %17092 = vmatpush3.msra.mxu1 %v14185_v57 }
0x657e   :  { %17101 = vmatprep.subr.mxu1 %v17546_v34  ;;  %17494 = vrcp.f32 %v14100_v23 }
0x6580   :  { %v14349_v7 = vpop.permute.xlu1 %14348 }
0x6584   :  { %v14427_v10 = vpop.permute.xlu1 %14426 }
0x6588   :  { %v14425_v11 = vpop.permute.xlu1 %14424 }
0x658a   :  { %v17493_v17 = vpop.eup %17492 }
0x658b   :  { %v14101_v54 = vsel %vm346_vm3, %v17493_v17, 0.0  ;;  %v17495_v61 = vpop.eup %17494 }
0x658c   :  { %14102 = vadd.xlane.f32.xlu0 %v14101_v54  ;;  %v14106_v63 = vmul.f32 %v17495_v61, %v17491_v48 }
0x65a2   :  { %14108 = vrot.lane.b32.xlu0 %v19165_v43, %s19739_s22 }
0x65a6   :  { %14346 = vrot.lane.b32.xlu0 %v19165_v43, %s19741_s20 }
0x6615   :  { %v14103_v59 = vpop.xlane.xlu0 %14102 }
0x6616   :  { %17496 = vrcp.f32 %v14103_v59 }
0x6619   :  { %v14109_v1 = vpop.permute.xlu0 %14108 }
0x661a   :  { %17087 = vmatpush3.msra.mxu0 %v14109_v1 }
0x661b   :  { %17089 = vmatmul.mubr.msk.f32.vlgmr.msra.gmra.mxu0 %vm346_vm3, %v14106_v63  ;;  %17096 = vmatprep.subr.msk.mxu0 %vm861_vm4, %v15559_v8 }
0x661c   :  { %17097 = vmatpush3.msk.msra.mxu0 %vm861_vm4, %v15559_v8  ;;  %v15641_v8 = vld [vmem:[%s19640_s9 + $0x78] sm:$0xff] }
0x661d   :  { %v14347_v2 = vpop.permute.xlu0 %14346  ;;  %17106 = vmatprep.subr.mxu0 %v17546_v34 }
0x6623   :  { %v17497_v5 = vpop.eup %17496 }
0x6624   :  { %v14107_v0 = vmul.f32 %v17497_v5, %v17493_v17 }
0x6626   :  { %17094 = vmatmul.mubr.msk.f32.vlgmr.msra.gmra.mxu1 %vm346_vm3, %v14107_v0 }
0x6627   :  { %17102 = vmatpush3.xpose.msk.msra.mxu1 %vm192_vm2, %v14349_v7  ;;  %17103 = vmatprep.mubr.msk.f32.mxu1 %vm17547_vm1, %v17546_v34 }
0x6628   :  { %17111 = vmatprep.subr.mxu1 %v17546_v34 }
0x662a   :  { %17104 = vmatmul.mubr.msk.f32.vlgmr.msra.gmra.mxu1 %vm192_vm2, %v14347_v2 }
0x662b   :  { %17113 = vmatprep.mubr.msk.f32.mxu1 %vm17547_vm1, %v17546_v34 }
0x66db   :  { %v14180_v9 = vpop.f32.mrf.mxu0 }
0x66dc   :  { %17098 = vmatprep.mubr.msk.f32.mxu0 %vm192_vm2, %v14180_v9  ;;  %v15640_v9 = vld [vmem:[%s19640_s9 + $0x70] sm:$0xff] }
0x66dd   :  { %v17090_v55 = vpop.f32.mrf.mxu0 }
0x66de   :  { %v15639_v55 = vld [vmem:[%s19640_s9 + $0x68] sm:$0xff] }
0x66e6   :  { %v14256_v56 = vpop.f32.mrf.mxu1 }
0x66e7   :  { %17099 = vmatmul.mubr.msk.f32.vlgmr.msra.gmra.mxu0 %vm192_vm2, %v14256_v56  ;;  %v15661_v56 = vld [vmem:[%s19642_s11 + $0x1f8] sm:$0xff] }
0x66e8   :  { %17107 = vmatpush3.xpose.msk.msra.mxu0 %vm192_vm2, %v14427_v10  ;;  %v17095_v60 = vpop.f32.mrf.mxu1  ;;  %17108 = vmatprep.mubr.msk.f32.mxu0 %vm17547_vm1, %v17546_v34  ;;  %v15638_v10 = vld [vmem:[%s19640_s9 + $0x60] sm:$0xff] }
0x66e9   :  { %17116 = vmatprep.subr.mxu0 %v17546_v34  ;;  %v15660_v60 = vld [vmem:[%s19642_s11 + $0x1f0] sm:$0xff] }
0x66ea   :  { %v14420_v3 = vpop.f32.mrf.mxu1 }
0x66eb   :  { %v14502_v47 = vmul.f32 0.5, %v14420_v3  ;;  %17109 = vmatmul.mubr.msk.f32.vlgmr.msra.gmra.mxu0 %vm192_vm2, %v14425_v11  ;;  %v15659_v11 = vld [vmem:[%s19642_s11 + $0x1e8] sm:$0xff] }
0x66ec   :  { %v17105_v12 = vpop.f32.mrf.mxu1  ;;  %17118 = vmatprep.mubr.msk.f32.mxu0 %vm17547_vm1, %v17546_v34 }
0x66ed   :  { %v14504_v58 = vsel %vm346_vm3, %v14502_v47, -inf }
0x66ee   :  { %14505 = vmax.xlane.f32.xlu0 %v14504_v58 }
0x6777   :  { %v14506_v13 = vpop.xlane.xlu0 %14505 }
0x6778   :  { %v14510_v14 = vsub.f32 %v14502_v47, %v14506_v13 }
0x677a   :  { %v14512_v15 = vmul.f32 1.442695, %v14510_v14 }
0x677c   :  { %17498 = vpow2.f32 %v14512_v15 }
0x6789   :  { %v17499_v16 = vpop.eup %17498 }
0x678a   :  { %v14516_v18 = vsel %vm346_vm3, %v17499_v16, 0.0 }
0x678b   :  { %14517 = vadd.xlane.f32.xlu0 %v14516_v18 }
0x67a7   :  { %v17100_v19 = vpop.f32.mrf.mxu0 }
0x67a8   :  { %v14345_v20 = vadd.f32 %v17100_v19, %v19461_v36 }
0x67a9   :  { %v14335_v21 = vpop.f32.mrf.mxu0 }
0x67aa   :  { %v14344_v22 = vadd.f32 %v14335_v21, %v19464_v46 }
0x67ab   :  { %v14498_v24 = vpop.f32.mrf.mxu0 }
0x67ac   :  { %v14503_v25 = vmul.f32 0.5, %v14498_v24 }
0x67ad   :  { %v17110_v26 = vpop.f32.mrf.mxu0 }
0x67ae   :  { %v14507_v27 = vsel %vm346_vm3, %v14503_v25, -inf }
0x67af   :  { %14508 = vmax.xlane.f32.xlu1 %v14507_v27  ;;  %v15658_v27 = vld [vmem:[%s19642_s11 + $0x1e0] sm:$0xff] }
0x67c0   :  { %14602 = vrot.lane.b32.xlu1 %v19163_v39, %s19742_s5 }
0x6814   :  { %v14518_v33 = vpop.xlane.xlu0 %14517 }
0x6838   :  { %v14509_v28 = vpop.xlane.xlu1 %14508 }
0x6839   :  { %v14511_v29 = vsub.f32 %v14503_v25, %v14509_v28  ;;  %v15657_v28 = vld [vmem:[%s19642_s11 + $0x1d8] sm:$0xff] }
0x683b   :  { %v14514_v30 = vmul.f32 1.442695, %v14511_v29  ;;  %v15656_v29 = vld [vmem:[%s19642_s11 + $0x1d0] sm:$0xff] }
0x683c   :  { %v14603_v31 = vpop.permute.xlu1 %14602 }
0x683d   :  { %17500 = vpow2.f32 %v14514_v30  ;;  %17117 = vmatpush3.msra.mxu0 %v14603_v31  ;;  %v15655_v30 = vld [vmem:[%s19642_s11 + $0x1c8] sm:$0xff]  ;;  %v15654_v31 = vld [vmem:[%s19642_s11 + $0x1c0] sm:$0xff] }
0x683e   :  { %17502 = vrcp.f32 %v14518_v33  ;;  %17126 = vmatprep.subr.mxu0 %v15641_v8  ;;  %v15651_v33 = vld [vmem:[%s19642_s11 + $0x1a8] sm:$0xff] }
0x684a   :  { %v17501_v32 = vpop.eup %17500 }
0x684b   :  { %v14519_v37 = vsel %vm346_vm3, %v17501_v32, 0.0  ;;  %v17503_v42 = vpop.eup %17502 }
0x684c   :  { %14520 = vadd.xlane.f32.xlu0 %v14519_v37  ;;  %v14524_v39 = vmul.f32 %v17503_v42, %v17499_v16  ;;  %v15636_v16 = vld [vmem:[%s19638_s7 + $0x3] ss:$0 sm:$0xff]  ;;  %v15652_v37 = vld [vmem:[%s19642_s11 + $0x1b0] sm:$0xff]  ;;  %v15649_v42 = vld [vmem:[%s19642_s11 + $0x198] sm:$0xff] }
0x6862   :  { %14526 = vrot.lane.b32.xlu0 %v19165_v43, %s19742_s5 }
0x68d5   :  { %v14521_v35 = vpop.xlane.xlu0 %14520 }
0x68d6   :  { %17504 = vrcp.f32 %v14521_v35  ;;  %v15650_v35 = vld [vmem:[%s19642_s11 + $0x1a0] sm:$0xff] }
0x68d9   :  { %v14527_v48 = vpop.permute.xlu0 %14526 }
0x68da   :  { %17112 = vmatpush3.msra.mxu1 %v14527_v48  ;;  %v15646_v48 = vld [vmem:[%s19642_s11 + $0x180] sm:$0xff] }
0x68db   :  { %17114 = vmatmul.mubr.msk.f32.vlgmr.msra.gmra.mxu1 %vm346_vm3, %v14524_v39  ;;  %17121 = vmatprep.subr.msk.mxu1 %vm861_vm4, %v14678_v45  ;;  %v15647_v39 = vld [vmem:[%s19642_s11 + $0x188] sm:$0xff] }
0x68dc   :  { %17122 = vmatpush3.msk.msra.mxu1 %vm861_vm4, %v14678_v45  ;;  %v15648_v45 = vld [vmem:[%s19642_s11 + $0x190] sm:$0xff] }
0x68dd   :  { %17137 = vmatprep.subr.mxu1 %v15661_v56 }
0x68e3   :  { %v17505_v44 = vpop.eup %17504 }
0x68e4   :  { %v14525_v49 = vmul.f32 %v17505_v44, %v17501_v32  ;;  %v15653_v32 = vld [vmem:[%s19642_s11 + $0x1b8] sm:$0xff]  ;;  %v15643_v44 = vld [vmem:[%s19641_s10 + $0x3] ss:$0 sm:$0xff] }
0x68e6   :  { %17119 = vmatmul.mubr.msk.f32.vlgmr.msra.gmra.mxu0 %vm346_vm3, %v14525_v49 }
0x68e7   :  { %17127 = vmatpush3.msra.mxu0 %v15641_v8 }
0x68e8   :  { %17128 = vmatprep.subr.mxu0 %v15640_v9 }
0x68e9   :  { %17129 = vmatpush3.msra.mxu0 %v15640_v9 }
0x68ea   :  { %17130 = vmatprep.subr.mxu0 %v15639_v55 }
0x68eb   :  { %17131 = vmatpush3.msra.mxu0 %v15639_v55 }
0x68ec   :  { %17132 = vmatprep.subr.mxu0 %v15638_v10 }
0x68ed   :  { %17133 = vmatpush3.msra.mxu0 %v15638_v10 }
0x68ee   :  { %17172 = vmatprep.subr.mxu0 %v17546_v34 }
0x699b   :  { %v14598_v43 = vpop.f32.mrf.mxu1 }
0x699c   :  { %17123 = vmatprep.mubr.msk.f32.mxu1 %vm192_vm2, %v14598_v43 }
0x699d   :  { %v17115_v36 = vpop.f32.mrf.mxu1 }
0x69a6   :  { %v14674_v50 = vpop.f32.mrf.mxu0 }
0x69a7   :  { %17124 = vmatmul.mubr.msk.f32.vlgmr.msra.gmra.mxu1 %vm192_vm2, %v14674_v50 }
0x69a8   :  { %v17120_v46 = vpop.f32.mrf.mxu0  ;;  %17138 = vmatpush3.msra.mxu1 %v15661_v56 }
0x69a9   :  { %17139 = vmatprep.subr.mxu1 %v15660_v60 }
0x69aa   :  { %17140 = vmatpush3.msra.mxu1 %v15660_v60 }
0x69ab   :  { %17141 = vmatprep.subr.mxu1 %v15659_v11 }
0x69ac   :  { %17142 = vmatpush3.msra.mxu1 %v15659_v11 }
0x69ad   :  { %17143 = vmatprep.subr.mxu1 %v15658_v27 }
0x69ae   :  { %17144 = vmatpush3.msra.mxu1 %v15658_v27 }
0x69af   :  { %17145 = vmatprep.subr.mxu1 %v15657_v28 }
0x69b0   :  { %17146 = vmatpush3.msra.mxu1 %v15657_v28 }
0x69b1   :  { %17147 = vmatprep.subr.mxu1 %v15656_v29 }
0x69b2   :  { %17148 = vmatpush3.msra.mxu1 %v15656_v29 }
0x69b3   :  { %17149 = vmatprep.subr.mxu1 %v15655_v30 }
0x69b4   :  { %17150 = vmatpush3.msra.mxu1 %v15655_v30 }
0x69b5   :  { %17151 = vmatprep.subr.mxu1 %v15654_v31 }
0x69b6   :  { %17152 = vmatpush3.msra.mxu1 %v15654_v31 }
0x69b7   :  { %17153 = vmatprep.subr.mxu1 %v15653_v32 }
0x69b8   :  { %17154 = vmatpush3.msra.mxu1 %v15653_v32 }
0x69b9   :  { %17155 = vmatprep.subr.mxu1 %v15652_v37 }
0x69ba   :  { %17156 = vmatpush3.msra.mxu1 %v15652_v37 }
0x69bb   :  { %17157 = vmatprep.subr.mxu1 %v15651_v33 }
0x69bc   :  { %17158 = vmatpush3.msra.mxu1 %v15651_v33 }
0x69bd   :  { %17159 = vmatprep.subr.mxu1 %v15650_v35 }
0x69be   :  { %17160 = vmatpush3.msra.mxu1 %v15650_v35 }
0x69bf   :  { %17161 = vmatprep.subr.mxu1 %v15649_v42 }
0x69c0   :  { %17162 = vmatpush3.msra.mxu1 %v15649_v42 }
0x69c1   :  { %17163 = vmatprep.subr.mxu1 %v15648_v45 }
0x69c2   :  { %17164 = vmatpush3.msra.mxu1 %v15648_v45 }
0x69c3   :  { %17165 = vmatprep.subr.mxu1 %v15647_v39 }
0x69c4   :  { %17166 = vmatpush3.msra.mxu1 %v15647_v39 }
0x69c5   :  { %17167 = vmatprep.subr.mxu1 %v15646_v48 }
0x69c6   :  { %17168 = vmatpush3.msra.mxu1 %v15646_v48 }
0x6a67   :  { %v17125_v51 = vpop.f32.mrf.mxu1 }
0x6a68   :  { %v14763_v53 = vadd.f32 %v17125_v51, %v14345_v20 }
0x6a69   :  { %v14753_v41 = vpop.f32.mrf.mxu1 }
0x6a6a   :  { %v14765_v38 = vadd.f32 %v14763_v53, %v19124_v4  ;;  %v14762_v52 = vadd.f32 %v14753_v41, %v14344_v22  ;;  %v15637_v22 = vld [vmem:[%s19639_s8 + $0x3] ss:$0 sm:$0xff] }
0x6a6c   :  { %v19525_v62 = vadd.f32 %v15633_v40, %v14765_v38  ;;  %v14764_v57 = vadd.f32 %v14762_v52, %v19127_v6 }
0x6a6e   :  { %v19528_v17 = vadd.f32 %v15633_v40, %v14764_v57  ;;  %v14783_v54 = vsel %vm49_vm0, %v19525_v62, 0.0 }
0x6a6f   :  { %14784 = vadd.xlane.f32.xlu0 %v14783_v54 }
0x6a70   :  { %v14780_v23 = vsel %vm49_vm0, %v19528_v17, 0.0 }
0x6a71   :  { %14781 = vadd.xlane.f32.xlu1 %v14780_v23 }
0x6af8   :  { %v14785_v59 = vpop.xlane.xlu0 %14784 }
0x6af9   :  { %v14787_v61 = vmul.f32 0.03125, %v14785_v59  ;;  %v15663_v59 = vld [vmem:[%s19643_s12 + $0x3] ss:$0 sm:$0xff]  ;;  %s17571_s12 = smov [#allocation2]  }
0x6afa   :  { %v14782_v63 = vpop.xlane.xlu1 %14781  ;;  %s15209_s13 = sshll.u32 %s17571_s12, 4  ;;  %s15210_s13 = int_to_ptr.vmem [resolvable:$true] %s15209_s13 }
0x6afb   :  { %v14789_v4 = vsub.f32 %v19525_v62, %v14787_v61  ;;  %v14786_v1 = vmul.f32 0.03125, %v14782_v63  ;;  %s17524_s7 = scalar_lea.vmem %s15210_s13, 256  ;;  %p17529_p1 = scmp.lt.s32.totalorder %s15210_s13, %s15210_s13 }
0x6afc   :  { %p17525_p0 = scmp.ne.s32.totalorder %s15210_s13, %s17524_s7  ;;  %p17530_p2 = scmp.lt.s32.totalorder %s17524_s7, %s17524_s7 }
0x6afd   :  { %v14788_v5 = vsub.f32 %v19528_v17, %v14786_v1  ;;  %v14791_v0 = vmul.f32 %v14789_v4, %v14789_v4 }
0x6afe   :  { %p17531_p3 = por %p17530_p2, %p17529_p1 }
0x6aff   :  { %v14795_v6 = vsel %vm49_vm0, %v14791_v0, 0.0  ;;  %v14790_v7 = vmul.f32 %v14788_v5, %v14788_v5 }
0x6b00   :  { %14796 = vadd.xlane.f32.xlu1 %v14795_v6  ;;  %p17532_p4 = pnand %p17531_p3, %p17525_p0 }
0x6b01   :  { %v14792_v2 = vsel %vm49_vm0, %v14790_v7, 0.0 }
0x6b02   :  { %14793 = vadd.xlane.f32.xlu0 %v14792_v2 }
0x6b89   :  { %v14797_v3 = vpop.xlane.xlu1 %14796 }
0x6b8a   :  { %v14799_v47 = vmul.f32 0.03125, %v14797_v3 }
0x6b8b   :  { %v14794_v12 = vpop.xlane.xlu0 %14793 }
0x6b8c   :  { %v14801_v58 = vadd.f32 1e-05, %v14799_v47  ;;  %v14798_v13 = vmul.f32 0.03125, %v14794_v12 }
0x6b8e   :  { %17506 = vrsqrt.f32 %v14801_v58  ;;  %v14800_v14 = vadd.f32 1e-05, %v14798_v13 }
0x6b90   :  { %17508 = vrsqrt.f32 %v14800_v14 }
0x6b9b   :  { %v17507_v15 = vpop.eup %17506 }
0x6b9c   :  { %v14805_v18 = vmul.f32 %v17507_v15, %v14789_v4 }
0x6b9d   :  { %v17509_v19 = vpop.eup %17508 }
0x6b9e   :  { %v14804_v20 = vmul.f32 %v17509_v19, %v14788_v5  ;;  %v14813_v21 = vmul.f32 %v15636_v16, %v14805_v18 }
0x6ba0   :  { %v14812_v24 = vmul.f32 %v15636_v16, %v14804_v20  ;;  %v14821_v26 = vadd.f32 %v15637_v22, %v14813_v21 }
0x6ba2   :  { %v14820_v25 = vadd.f32 %v15637_v22, %v14812_v24 }
0x6ba4   :  { %17134 = vmatprep.mubr.msk.f32.mxu0 %vm49_vm0, %v14820_v25 }
0x6ba5   :  { %17135 = vmatmul.mubr.msk.f32.vlgmr.msra.gmra.mxu0 %vm49_vm0, %v14821_v26 }
0x6ba6   :  { %17174 = vmatprep.mubr.msk.f32.mxu0 %vm17547_vm1, %v17546_v34 }
0x6c65   :  { %v17136_v49 = vpop.f32.mrf.mxu0 }
0x6c66   :  { %v14913_v43 = vadd.f32 %v17136_v49, %v15643_v44 }
0x6c67   :  { %v14907_v36 = vpop.f32.mrf.mxu0 }
0x6c68   :  { %v14919_v50 = vmul.f32 0.70710677, %v14913_v43  ;;  %v14908_v46 = vadd.f32 %v15643_v44, %v14907_v36  ;;  %v14917_v57 = vmul.f32 0.5, %v14913_v43 }
0x6c6a   :  { %17510 = verf.f32 %v14919_v50  ;;  %v14918_v51 = vmul.f32 0.70710677, %v14908_v46  ;;  %v14916_v38 = vmul.f32 0.5, %v14908_v46 }
0x6c6c   :  { %17512 = verf.f32 %v14918_v51 }
0x6c77   :  { %v17511_v53 = vpop.eup %17510 }
0x6c78   :  { %v14923_v41 = vadd.f32 1.0, %v17511_v53 }
0x6c79   :  { %v17513_v40 = vpop.eup %17512 }
0x6c7a   :  { %v14922_v52 = vadd.f32 1.0, %v17513_v40  ;;  %v14925_v23 = vmul.f32 %v14923_v41, %v14917_v57 }
0x6c7c   :  { %v14924_v54 = vmul.f32 %v14922_v52, %v14916_v38 }
0x6c7e   :  { %17169 = vmatprep.mubr.f32.mxu1 %v14924_v54 }
0x6c7f   :  { %17170 = vmatmul.mubr.f32.vlgmr.msra.gmra.mxu1 %v14925_v23 }
0x6d3f   :  { %v17171_v61 = vpop.f32.mrf.mxu1 }
0x6d40   :  { %v15023_v63 = vadd.f32 %v17171_v61, %v15663_v59 }
0x6d41   :  { %v15017_v4 = vpop.f32.mrf.mxu1 }
0x6d42   :  { %v15027_v1 = vadd.f32 %v15023_v63, %v19525_v62  ;;  %v15018_v5 = vadd.f32 %v15663_v59, %v15017_v4 }
0x6d44   :  { %v15026_v0 = vadd.f32 %v15018_v5, %v19528_v17  ;;  %v15029_v6 = vmul.f32 %v15027_v1, %v15027_v1 }
0x6d46   :  { %v15033_v7 = vsel %vm49_vm0, %v15029_v6, 0.0  ;;  %v15028_v2 = vmul.f32 %v15026_v0, %v15026_v0 }
0x6d47   :  { %15034 = vadd.xlane.f32.xlu1 %v15033_v7 }
0x6d48   :  { %v15030_v8 = vsel %vm49_vm0, %v15028_v2, 0.0 }
0x6d49   :  { %15031 = vadd.xlane.f32.xlu0 %v15030_v8 }
0x6dd0   :  { %v15035_v9 = vpop.xlane.xlu1 %15034 }
0x6dd1   :  { %17514 = vrsqrt.f32 %v15035_v9  ;;  %vm15045_vm5 = vcmp.eq.f32.partialorder %v15035_v9, inf  ;;  %v15048_v62 = vand.u32 2147483648, %v15035_v9  ;;  %vm15047_vm6 = vcmp.eq.f32.partialorder %v15035_v9, 0.0 }
0x6dd2   :  { %v15032_v55 = vpop.xlane.xlu0 %15031 }
0x6dd3   :  { %17516 = vrsqrt.f32 %v15032_v55  ;;  %vm15038_vm7 = vcmp.eq.f32.partialorder %v15032_v55, inf  ;;  %v15041_v47 = vand.u32 2147483648, %v15032_v55  ;;  %vm15040_vm8 = vcmp.eq.f32.partialorder %v15032_v55, 0.0 }
0x6dde   :  { %v17515_v10 = vpop.eup %17514 }
0x6ddf   :  { %v15044_v56 = vmul.f32 %v17515_v10, %v15035_v9 }
0x6de0   :  { %v17517_v60 = vpop.eup %17516 }
0x6de1   :  { %v15046_v11 = vsel %vm15045_vm5, %v15035_v9, %v15044_v56  ;;  %v15037_v17 = vmul.f32 %v17517_v60, %v15032_v55 }
0x6de2   :  { %v15049_v3 = vsel %vm15047_vm6, %v15048_v62, %v15046_v11 }
0x6de3   :  { %v15039_v12 = vsel %vm15038_vm7, %v15032_v55, %v15037_v17  ;;  %v15051_v13 = vmax.f32 %v15049_v3, 1e-12 }
0x6de4   :  { %v15042_v58 = vsel %vm15040_vm8, %v15041_v47, %v15039_v12 }
0x6de5   :  { %v15050_v14 = vmax.f32 %v15042_v58, 1e-12 }
0x6de7   :  { %17518 = vrcp.f32 %v15050_v14 }
0x6de8   :  { %17520 = vrcp.f32 %v15051_v13 }
0x6df4   :  { %v17519_v15 = vpop.eup %17518 }
0x6df5   :  { %v15054_v16 = vmul.f32 %v17519_v15, %v15026_v0  ;;  %v17521_v18 = vpop.eup %17520 }
0x6df6   :  { %v15055_v19 = vmul.f32 %v17521_v18, %v15027_v1 }
0x6df7   :  { %17173 = vmatpush3.xpose.msk.msra.mxu0 %vm49_vm0, %v15054_v16 }
0x6df8   :  { %17177 = vmatprep.subr.mxu0 %v17546_v34 }
0x6dfa   :  { %17175 = vmatmul.mubr.msk.f32.vlgmr.msra.gmra.mxu0 %vm49_vm0, %v15054_v16 }
0x6dfb   :  { %17178 = vmatpush3.xpose.msk.msra.mxu0 %vm49_vm0, %v15055_v19  ;;  %17179 = vmatprep.mubr.msk.f32.mxu0 %vm17547_vm1, %v17546_v34 }
0x6dfe   :  { %17180 = vmatmul.mubr.msk.f32.vlgmr.msra.gmra.mxu0 %vm49_vm0, %v15055_v19 }
0x6eba   :  { %v15125_v20 = vpop.f32.mrf.mxu0 }
0x6ebb   :  { %15202 = vst.msk [vmem:[#allocation2] sm:$0xff] %vm346_vm3, %v15125_v20 }
0x6ebc   :  { %v17176_v21 = vpop.f32.mrf.mxu0 }
0x6ebe   :  { %v15198_v22 = vpop.f32.mrf.mxu0 }
0x6ebf   :  { %15203 = vst.msk [vmem:[#allocation2 + $0x8] sm:$0xff] %vm346_vm3, %v15198_v22 }
0x6ec0   :  { %v17181_v24 = vpop.f32.mrf.mxu0 }
0x6ec1   :  { %17535 = shalt.err (!%p17532_p4)
}
0x6ec2   :  { %s17572_s20 = smov 128   ;;  %s17573_s0 = smov 8  }
0x6ec3   :  { %s19744_s5 = sld [smem:[#allocation6_spill]] }
0x6ec9   :  { %15215 = dma.vmem_to_hbm [thread:$0]  %s15210_s13, 256, %s19744_s5, [#allocation3], %s17572_s20, %s17572_s20, %s17573_s0  }
0x6eca   :  { %17544 = dma.done.wait [#allocation3], 256  }
0x6ecb   :  { %17545 = vsyncadd [#allocation3], 4294967040 }
0x6ecc   :  { %15219 = vsyncpa [#allocation3], 1 }

</bundles_post_ra>
